<compile_context>
chip_gen: v5e
topology: v5e:2x2
jax: 0.10.0
libtpu: 0.0.40
codegen_flags: <defaults>
</compile_context>

<pallas_src>
import jax
import jax.numpy as jnp
from jax.experimental import pallas as pl
from jax.experimental.pallas import tpu as pltpu

LANE = 128
_VMEM_LIMIT = 32 * 1024 * 1024


# ----------------------------------------------------------------------------
# helpers
# ----------------------------------------------------------------------------
def _pick_batch_tile(n):
    """Batch tile that divides n and is a multiple of 8 (or == n); prefers
    >= 2 grid tiles so v7x's two TensorCores both get work at larger batches."""
    if n <= 8:
        return n
    half = (n // 2) // 8 * 8
    for bt in range(half, 0, -8):
        if n % bt == 0:
            return bt
    return n


def _full_spec(a):
    zeros = (0,) * a.ndim
    return pl.BlockSpec(a.shape, lambda i: zeros)


def _gelu_exact(x):
    """erf-based GELU (nn.GELU default) via the Abramowitz-Stegun 7.1.26
    polynomial (|erf err| < 1.5e-7): only exp/mul/add/where, so it lowers on
    Mosaic without relying on a native erf."""
    z = x * 0.7071067811865476
    a = jnp.abs(z)
    t = 1.0 / (1.0 + 0.3275911 * a)
    poly = t * (0.254829592 + t * (-0.284496736 + t * (1.421413741 +
               t * (-1.453152027 + t * 1.061405429))))
    e = poly * jnp.exp(-a * a)
    erf = jnp.where(z < 0.0, e - 1.0, 1.0 - e)
    return 0.5 * x * (1.0 + erf)


# ----------------------------------------------------------------------------
# Kernel 1: fused conv1->conv2->pool->conv3->conv4->pool, channels-last.
# ----------------------------------------------------------------------------
def _conv_stack_kernel(x_ref, w1_ref, b1_ref, w2_ref, b2_ref,
                       w3_ref, b3_ref, w4_ref, b4_ref, o_ref):
    """x_ref: (B, L, 1). w1_ref: (3, 64). wk_ref: (3, Cin, Cout).
       bk_ref: (1, Cout). o_ref: (B, 3, 128). Everything between the input
       and the final store lives in VMEM / vregs."""

    def conv_k3(h, w_ref, b_ref):
        bh, lh, ci = h.shape
        lo = lh - 2
        co = w_ref.shape[2]
        acc = None
        for k in range(3):                      # K accumulating MXU matmuls,
            lhs = h[:, k:k + lo, :].reshape(bh * lo, ci)   # M = B_TILE * L_out
            part = jnp.dot(lhs, w_ref[k], preferred_element_type=jnp.float32)
            acc = part if acc is None else acc + part
        return _gelu_exact(acc.reshape(bh, lo, co) + b_ref[...])

    def pool_ceil2(h):                          # MaxPool1d(k=2, ceil_mode=True)
        bh, lh, ch = h.shape
        lp = (lh + 1) // 2
        if lh % 2:
            h = jnp.concatenate(
                [h, jnp.full((bh, 1, ch), -jnp.inf, h.dtype)], axis=1)
        return jnp.max(h.reshape(bh, lp, 2, ch), axis=2)

    x = x_ref[...].astype(jnp.float32)          # (B, L, 1), C_in == 1
    b, l, _ = x.shape
    l1 = l - 2
    # conv1: C_in == 1 -> three broadcasted outer-product taps (no zero-padded
    # 128-deep contraction, no MXU needed).
    h = None
    for k in range(3):
        part = x[:, k:k + l1, :] * w1_ref[k].reshape(1, 1, -1)
        h = part if h is None else h + part
    h = _gelu_exact(h + b1_ref[...])            # (B, L-2, 64)

    h = conv_k3(h, w2_ref, b2_ref)              # (B, L-4, 128)
    h = pool_ceil2(h)
    h = conv_k3(h, w3_ref, b3_ref)
    h = conv_k3(h, w4_ref, b4_ref)
    h = pool_ceil2(h)                           # (B, 3, 128) channels-last
    o_ref[...] = h.astype(o_ref.dtype)


def conv_stack_forward(x_nl1, p):
    """x_nl1: (N, L, 1) -> (N, 3, 128) channels-last pooled conv features."""
    n, l, _ = x_nl1.shape
    bt = _pick_batch_tile(n)
    lp1 = (l - 4 + 1) // 2
    lp2 = (lp1 - 4 + 1) // 2

    w1 = jnp.transpose(p["conv1_w"][:, 0, :])              # (3, 64)
    b1 = p["conv1_b"].reshape(1, -1)
    w2 = jnp.transpose(p["conv2_w"], (2, 1, 0))            # (3, 64, 128)
    b2 = p["conv2_b"].reshape(1, -1)
    w3 = jnp.transpose(p["conv3_w"], (2, 1, 0))            # (3, 128, 128)
    b3 = p["conv3_b"].reshape(1, -1)
    w4 = jnp.transpose(p["conv4_w"], (2, 1, 0))
    b4 = p["conv4_b"].reshape(1, -1)
    c_out = w4.shape[2]

    return pl.pallas_call(
        _conv_stack_kernel,
        out_shape=jax.ShapeDtypeStruct((n, lp2, c_out), x_nl1.dtype),
        grid_spec=pltpu.PrefetchScalarGridSpec(
            num_scalar_prefetch=0,
            grid=(n // bt,),
            in_specs=[
                pl.BlockSpec((bt, l, 1), lambda i: (i, 0, 0)),
                _full_spec(w1), _full_spec(b1),
                _full_spec(w2), _full_spec(b2),
                _full_spec(w3), _full_spec(b3),
                _full_spec(w4), _full_spec(b4),
            ],
            out_specs=pl.BlockSpec((bt, lp2, c_out), lambda i: (i, 0, 0)),
        ),
        compiler_params=pltpu.CompilerParams(
            dimension_semantics=("parallel",),
            vmem_limit_bytes=_VMEM_LIMIT,
        ),
    )(x_nl1, w1, b1, w2, b2, w3, b3, w4, b4)


# ----------------------------------------------------------------------------
# Kernel 2: fused 2-layer LSTM (in-kernel time loop) + fc1 + fc2 + softmax.
# ----------------------------------------------------------------------------
def _lstm_head_kernel(x_ref, wih1_ref, whh1_ref, b1_ref, whw2_ref, b2_ref,
                      w1fc_ref, bfc1_ref, w2fc_ref, bfc2_ref,
                      o_ref, xproj_ref):
    """x_ref:    (B, 128, 3)   LSTM input (seq=conv channels, feat=3)
       wih1_ref: (3, 512)      layer-1 input weights, gates padded to 128 lanes
       whh1_ref: (128, 512)    layer-1 recurrent weights (rows 48: are zero)
       b1_ref:   (1, 512)      layer-1 combined bias (gate-padded)
       whw2_ref: (256, 512)    layer-2 [Wih; Whh] stacked, gate-padded
       b2_ref:   (1, 512)
       w1fc_ref: (128, 48, 128) fc1 weights split per timestep
       bfc1_ref: (1, 128)   w2fc_ref: (128, 128)   bfc2_ref: (1, 128) (pad -1e30)
       o_ref:    (B, 128)   softmax probabilities (first 8 lanes are real)
       xproj_ref:(B, 128, 512) VMEM scratch: hoisted layer-1 input projection."""
    b, s, feat = x_ref.shape
    hsz = w1fc_ref.shape[1]

    # Hoisted: layer-1 input projection for ALL 128 timesteps as one matmul.
    xp = jnp.dot(x_ref[...].astype(jnp.float32).reshape(b * s, feat),
                 wih1_ref[...].astype(jnp.float32),
                 preferred_element_type=jnp.float32)       # (B*S, 512)
    xproj_ref[...] = xp.reshape(b, s, 4 * LANE) + b1_ref[...]

    def split_gates(g):                          # lane-aligned gate slices
        i = jax.nn.sigmoid(g[:, 0 * LANE:1 * LANE])
        f = jax.nn.sigmoid(g[:, 1 * LANE:2 * LANE])
        c = jnp.tanh(g[:, 2 * LANE:3 * LANE])
        o = jax.nn.sigmoid(g[:, 3 * LANE:4 * LANE])
        return i, f, c, o

    def step(t, carry):
        h1, c1, h2, c2, acc = carry
        # layer 1: only the recurrent matmul is on the critical path
        g1 = xproj_ref[:, t, :] + jnp.dot(
            h1, whh1_ref[...], preferred_element_type=jnp.float32)
        i1, f1, gg1, o1 = split_gates(g1)
        c1 = f1 * c1 + i1 * gg1
        h1 = o1 * jnp.tanh(c1)
        # layer 2: [h1 | h2] @ [Wih; Whh] in a single MXU push
        g2 = jnp.dot(jnp.concatenate([h1, h2], axis=1), whw2_ref[...],
                     preferred_element_type=jnp.float32) + b2_ref[...]
        i2, f2, gg2, o2 = split_gates(g2)
        c2 = f2 * c2 + i2 * gg2
        h2 = o2 * jnp.tanh(c2)
        # fc1 accumulated on the fly: flatten layout is [t*48 + h]
        acc = acc + jnp.dot(h2[:, :hsz], w1fc_ref[t],
                            preferred_element_type=jnp.float32)
        return h1, c1, h2, c2, acc

    zeros = jnp.zeros((b, LANE), jnp.float32)
    _, _, _, _, acc = jax.lax.fori_loop(
        0, s, step, (zeros, zeros, zeros, zeros, zeros))

    # Head: fc1 bias + fc2 + softmax.  dropout1/dropout2 are inference
    # identities.  TODO(synk): dropout is train-time only; no in-kernel RNG.
    hfc = acc + bfc1_ref[...]                               # (B, 128)
    logits = jnp.dot(hfc, w2fc_ref[...].astype(jnp.float32),
                     preferred_element_type=jnp.float32) + bfc2_ref[...]
    z = logits - jnp.max(logits, axis=-1, keepdims=True)
    e = jnp.exp(z)                                          # padded lanes -> 0
    o_ref[...] = (e / jnp.sum(e, axis=-1, keepdims=True)).astype(o_ref.dtype)


def _pad_gates(w, rows):
    """torch (4H, In) gate-stacked weight -> (rows, 4*128) with each gate's
       columns at lane offsets 0/128/256/384; padded rows/cols are zero."""
    h4, cin = w.shape
    h = h4 // 4
    out = jnp.zeros((rows, 4 * LANE), jnp.float32)
    for g in range(4):
        out = out.at[:cin, g * LANE:g * LANE + h].set(
            jnp.transpose(w[g * h:(g + 1) * h, :]))
    return out


def _pad_gate_bias(bias):
    h = bias.shape[0] // 4
    out = jnp.zeros((1, 4 * LANE), jnp.float32)
    for g in range(4):
        out = out.at[0, g * LANE:g * LANE + h].set(bias[g * h:(g + 1) * h])
    return out


def lstm_head_forward(pooled, p):
    """pooled: (N, 3, 128) channels-last conv features -> (N, 8) probabilities."""
    n, feat, s = pooled.shape
    bt = _pick_batch_tile(n)
    hsz = p["lstm_whh0"].shape[1]
    n_cls = p["fc2_w"].shape[0]

    # PyTorch feeds the NCL conv output straight to the LSTM: (N, seq=128, feat=3).
    x_lstm = jnp.transpose(pooled, (0, 2, 1))               # tiny (N*384) transpose

    wih1 = _pad_gates(p["lstm_wih0"], feat)                 # (3, 512)
    whh1 = _pad_gates(p["lstm_whh0"], LANE)                 # (128, 512)
    b1 = _pad_gate_bias(p["lstm_bih0"] + p["lstm_bhh0"])    # (1, 512)
    whw2 = jnp.concatenate([_pad_gates(p["lstm_wih1"], LANE),
                            _pad_gates(p["lstm_whh1"], LANE)], axis=0)  # (256, 512)
    b2 = _pad_gate_bias(p["lstm_bih1"] + p["lstm_bhh1"])    # (1, 512)

    w1fc = jnp.transpose(p["fc1_w"]).reshape(s, hsz, p["fc1_w"].shape[0])  # (128,48,128)
    bfc1 = p["fc1_b"].reshape(1, -1)                        # (1, 128)
    w2fc = jnp.zeros((p["fc2_w"].shape[1], LANE), jnp.float32)
    w2fc = w2fc.at[:, :n_cls].set(jnp.transpose(p["fc2_w"]))  # (128, 128)
    bfc2 = jnp.full((1, LANE), -1e30, jnp.float32)          # padded logits -> prob 0
    bfc2 = bfc2.at[0, :n_cls].set(p["fc2_b"])

    probs = pl.pallas_call(
        _lstm_head_kernel,
        out_shape=jax.ShapeDtypeStruct((n, LANE), pooled.dtype),
        grid_spec=pltpu.PrefetchScalarGridSpec(
            num_scalar_prefetch=0,
            grid=(n // bt,),
            in_specs=[
                pl.BlockSpec((bt, s, feat), lambda i: (i, 0, 0)),
                _full_spec(wih1), _full_spec(whh1), _full_spec(b1),
                _full_spec(whw2), _full_spec(b2),
                _full_spec(w1fc), _full_spec(bfc1),
                _full_spec(w2fc), _full_spec(bfc2),
            ],
            out_specs=pl.BlockSpec((bt, LANE), lambda i: (i, 0)),
            scratch_shapes=[pltpu.VMEM((bt, s, 4 * LANE), jnp.float32)],
        ),
        compiler_params=pltpu.CompilerParams(
            dimension_semantics=("parallel",),
            vmem_limit_bytes=_VMEM_LIMIT,
        ),
    )(x_lstm, wih1, whh1, b1, whw2, b2, w1fc, bfc1, w2fc, bfc2)
    return probs[:, :n_cls]


# ----------------------------------------------------------------------------
# Full ConvNet forward: exactly two pallas_calls.
# ----------------------------------------------------------------------------
@jax.jit
def convnet_forward(x, params):
    """x: (N, 1, L) -> class probabilities (N, 8)."""
    x_nl1 = jnp.transpose(x, (0, 2, 1))                     # (N, L, 1); C_in == 1
    pooled = conv_stack_forward(x_nl1, params)              # (N, 3, 128)
    return lstm_head_forward(pooled, params)                # (N, 8)
    # TODO(synk): self.avgpool is defined in the module but never used in forward.


# ----------------------------------------------------------------------------
# Plain-JAX reference (PyTorch semantics) for the correctness check.
# ----------------------------------------------------------------------------
def _conv1d_ref(x_ncl, w, bias):
    y = jax.lax.conv_general_dilated(
        x_ncl, w, window_strides=(1,), padding="VALID",
        dimension_numbers=("NCH", "OIH", "NCH"),
        precision=jax.lax.Precision.HIGHEST)
    return jax.nn.gelu(y + bias[None, :, None], approximate=False)


def _maxpool_ref(x_ncl):
    n, c, l = x_ncl.shape
    lp = -(-l // 2)
    xp = jnp.pad(x_ncl, ((0, 0), (0, 0), (0, 2 * lp - l)),
                 constant_values=-jnp.inf)
    return jnp.max(xp.reshape(n, c, lp, 2), axis=-1)


def _lstm_layer_ref(x_bsf, wih, whh, bih, bhh):
    n = x_bsf.shape[0]
    hsz = whh.shape[1]

    def step(carry, x_t):
        h, c = carry
        gates = (jnp.dot(x_t, wih.T, precision=jax.lax.Precision.HIGHEST) + bih
                 + jnp.dot(h, whh.T, precision=jax.lax.Precision.HIGHEST) + bhh)
        i = jax.nn.sigmoid(gates[:, :hsz])
        f = jax.nn.sigmoid(gates[:, hsz:2 * hsz])
        g = jnp.tanh(gates[:, 2 * hsz:3 * hsz])
        o = jax.nn.sigmoid(gates[:, 3 * hsz:])
        c = f * c + i * g
        h = o * jnp.tanh(c)
        return (h, c), h

    x_tm = jnp.transpose(x_bsf, (1, 0, 2))
    init = (jnp.zeros((n, hsz), jnp.float32), jnp.zeros((n, hsz), jnp.float32))
    _, hs = jax.lax.scan(step, init, x_tm)
    return jnp.transpose(hs, (1, 0, 2))


def convnet_reference(x, p):
    h = _conv1d_ref(x, p["conv1_w"], p["conv1_b"])
    h = _conv1d_ref(h, p["conv2_w"], p["conv2_b"])
    h = _maxpool_ref(h)
    h = _conv1d_ref(h, p["conv3_w"], p["conv3_b"])
    h = _conv1d_ref(h, p["conv4_w"], p["conv4_b"])
    h = _maxpool_ref(h)                                     # (N, 128, 3) NCL
    out = _lstm_layer_ref(h, p["lstm_wih0"], p["lstm_whh0"],
                          p["lstm_bih0"], p["lstm_bhh0"])
    out = _lstm_layer_ref(out, p["lstm_wih1"], p["lstm_whh1"],
                          p["lstm_bih1"], p["lstm_bhh1"])
    out = out.reshape(x.shape[0], -1)                       # (N, 6144)
    y = jnp.dot(out, p["fc1_w"].T, precision=jax.lax.Precision.HIGHEST) + p["fc1_b"]
    y = jnp.dot(y, p["fc2_w"].T, precision=jax.lax.Precision.HIGHEST) + p["fc2_b"]
    return jax.nn.softmax(y, axis=1)


# ----------------------------------------------------------------------------
# Deterministic parameter initialization (PyTorch layouts).
# ----------------------------------------------------------------------------
def init_params(key):
    ks = iter(jax.random.split(key, 24))

    def u(shape, bound):
        return jax.random.uniform(next(ks), shape, jnp.float32, -bound, bound)

    p = {}
    for name, cin, cout, ksz in [("conv1", 1, 64, 3), ("conv2", 64, 128, 3),
                                 ("conv3", 128, 128, 3), ("conv4", 128, 128, 3)]:
        bound = 1.0 / (cin * ksz) ** 0.5
        p[name + "_w"] = u((cout, cin, ksz), bound)
        p[name + "_b"] = u((cout,), bound)
    hsz = 48
    for layer, insz in [(0, 3), (1, hsz)]:
        bound = 1.0 / hsz ** 0.5
        p[f"lstm_wih{layer}"] = u((4 * hsz, insz), bound)
        p[f"lstm_whh{layer}"] = u((4 * hsz, hsz), bound)
        p[f"lstm_bih{layer}"] = u((4 * hsz,), bound)
        p[f"lstm_bhh{layer}"] = u((4 * hsz,), bound)
    for name, fin, fout in [("fc1", 6144, 128), ("fc2", 128, 8)]:
        bound = 1.0 / fin ** 0.5
        p[name + "_w"] = u((fout, fin), bound)
        p[name + "_b"] = u((fout,), bound)
    return p


if __name__ == "__main__":
    key = jax.random.PRNGKey(0)
    k_p, k_x = jax.random.split(key)
    params = init_params(k_p)

    # L=22 is what the forward implies: the conv/pool stack yields (N, 128, 3)
    # so the LSTM's input_size=3 and fc1's 6144 = 128*48 both line up.
    N, L = 2, 22
    x = jax.random.normal(k_x, (N, 1, L), dtype=jnp.float32)

    out = jax.block_until_ready(convnet_forward(x, params))
    ref = convnet_reference(x, params)

    assert out.shape == (N, 8), out.shape
    assert bool(jnp.all(jnp.isfinite(out)))
    assert bool(jnp.allclose(jnp.sum(out, axis=1), 1.0, atol=1e-4))
    max_err = float(jnp.max(jnp.abs(out - ref)))
    assert jnp.allclose(out, ref, atol=2e-3, rtol=2e-3), max_err

    print("KERNEL_OK")
</pallas_src>

<mosaic_0001>
module attributes {stable_mosaic.version = 11 : i64} {
  func.func @_conv_stack_kernel(%arg0: i32, %arg1: memref<2x22x1xf32, #tpu.memory_space<vmem>>, %arg2: memref<3x64xf32, #tpu.memory_space<vmem>>, %arg3: memref<1x64xf32, #tpu.memory_space<vmem>>, %arg4: memref<3x64x128xf32, #tpu.memory_space<vmem>>, %arg5: memref<1x128xf32, #tpu.memory_space<vmem>>, %arg6: memref<3x128x128xf32, #tpu.memory_space<vmem>>, %arg7: memref<1x128xf32, #tpu.memory_space<vmem>>, %arg8: memref<3x128x128xf32, #tpu.memory_space<vmem>>, %arg9: memref<1x128xf32, #tpu.memory_space<vmem>>, %arg10: memref<2x3x128xf32, #tpu.memory_space<vmem>>) attributes {dimension_semantics = [#tpu.dimension_semantics<parallel>], iteration_bounds = array<i64: 1>, scalar_prefetch = 0 : i64, scratch_operands = 0 : i64, tpu.core_type = #tpu.core_type<tc>, window_params = [{transform_indices = @transform_0, window_bounds = array<i64: 2, 22, 1>}, {pipeline_mode = #tpu.pipeline_mode<synchronous>, transform_indices = @transform_1, window_bounds = array<i64: 3, 64>}, {pipeline_mode = #tpu.pipeline_mode<synchronous>, transform_indices = @transform_2, window_bounds = array<i64: 1, 64>}, {pipeline_mode = #tpu.pipeline_mode<synchronous>, transform_indices = @transform_3, window_bounds = array<i64: 3, 64, 128>}, {pipeline_mode = #tpu.pipeline_mode<synchronous>, transform_indices = @transform_4, window_bounds = array<i64: 1, 128>}, {pipeline_mode = #tpu.pipeline_mode<synchronous>, transform_indices = @transform_5, window_bounds = array<i64: 3, 128, 128>}, {pipeline_mode = #tpu.pipeline_mode<synchronous>, transform_indices = @transform_6, window_bounds = array<i64: 1, 128>}, {pipeline_mode = #tpu.pipeline_mode<synchronous>, transform_indices = @transform_7, window_bounds = array<i64: 3, 128, 128>}, {pipeline_mode = #tpu.pipeline_mode<synchronous>, transform_indices = @transform_8, window_bounds = array<i64: 1, 128>}, {transform_indices = @transform_9, window_bounds = array<i64: 2, 3, 128>}]} {
    %c0 = arith.constant 0 : index
    %c0_0 = arith.constant 0 : index
    %c0_1 = arith.constant 0 : index
    %0 = vector.load %arg1[%c0, %c0_0, %c0_1] : memref<2x22x1xf32, #tpu.memory_space<vmem>>, vector<2x22x1xf32>
    %1 = vector.extract_strided_slice %0 {offsets = [0, 0, 0], sizes = [2, 20, 1], strides = [1, 1, 1]} : vector<2x22x1xf32> to vector<2x20x1xf32>
    %c0_2 = arith.constant 0 : index
    %c0_3 = arith.constant 0 : index
    %2 = vector.load %arg2[%c0_2, %c0_3] : memref<3x64xf32, #tpu.memory_space<vmem>>, vector<1x64xf32>
    %3 = vector.shape_cast %2 : vector<1x64xf32> to vector<64xf32>
    %4 = vector.shape_cast %3 : vector<64xf32> to vector<1x1x64xf32>
    %5 = vector.broadcast %1 : vector<2x20x1xf32> to vector<2x20x64xf32>
    %6 = vector.broadcast %4 : vector<1x1x64xf32> to vector<2x20x64xf32>
    %7 = arith.mulf %5, %6 : vector<2x20x64xf32>
    %8 = vector.extract_strided_slice %0 {offsets = [0, 1, 0], sizes = [2, 20, 1], strides = [1, 1, 1]} : vector<2x22x1xf32> to vector<2x20x1xf32>
    %c1 = arith.constant 1 : index
    %c0_4 = arith.constant 0 : index
    %9 = vector.load %arg2[%c1, %c0_4] : memref<3x64xf32, #tpu.memory_space<vmem>>, vector<1x64xf32>
    %10 = vector.shape_cast %9 : vector<1x64xf32> to vector<64xf32>
    %11 = vector.shape_cast %10 : vector<64xf32> to vector<1x1x64xf32>
    %12 = vector.broadcast %8 : vector<2x20x1xf32> to vector<2x20x64xf32>
    %13 = vector.broadcast %11 : vector<1x1x64xf32> to vector<2x20x64xf32>
    %14 = arith.mulf %12, %13 : vector<2x20x64xf32>
    %15 = arith.addf %7, %14 : vector<2x20x64xf32>
    %16 = vector.extract_strided_slice %0 {offsets = [0, 2, 0], sizes = [2, 20, 1], strides = [1, 1, 1]} : vector<2x22x1xf32> to vector<2x20x1xf32>
    %c2 = arith.constant 2 : index
    %c0_5 = arith.constant 0 : index
    %17 = vector.load %arg2[%c2, %c0_5] : memref<3x64xf32, #tpu.memory_space<vmem>>, vector<1x64xf32>
    %18 = vector.shape_cast %17 : vector<1x64xf32> to vector<64xf32>
    %19 = vector.shape_cast %18 : vector<64xf32> to vector<1x1x64xf32>
    %20 = vector.broadcast %16 : vector<2x20x1xf32> to vector<2x20x64xf32>
    %21 = vector.broadcast %19 : vector<1x1x64xf32> to vector<2x20x64xf32>
    %22 = arith.mulf %20, %21 : vector<2x20x64xf32>
    %23 = arith.addf %15, %22 : vector<2x20x64xf32>
    %c0_6 = arith.constant 0 : index
    %c0_7 = arith.constant 0 : index
    %24 = vector.load %arg3[%c0_6, %c0_7] : memref<1x64xf32, #tpu.memory_space<vmem>>, vector<1x64xf32>
    %25 = vector.shape_cast %24 : vector<1x64xf32> to vector<1x1x64xf32>
    %26 = vector.broadcast %25 : vector<1x1x64xf32> to vector<2x20x64xf32>
    %27 = arith.addf %23, %26 : vector<2x20x64xf32>
    %cst = arith.constant 0.707106769 : f32
    %28 = vector.broadcast %cst : f32 to vector<2x20x64xf32>
    %29 = arith.mulf %27, %28 : vector<2x20x64xf32>
    %30 = math.absf %29 : vector<2x20x64xf32>
    %cst_8 = arith.constant 0.327591091 : f32
    %31 = vector.broadcast %cst_8 : f32 to vector<2x20x64xf32>
    %32 = arith.mulf %31, %30 : vector<2x20x64xf32>
    %cst_9 = arith.constant 1.000000e+00 : f32
    %33 = vector.broadcast %cst_9 : f32 to vector<2x20x64xf32>
    %34 = arith.addf %33, %32 : vector<2x20x64xf32>
    %cst_10 = arith.constant 1.000000e+00 : f32
    %35 = vector.broadcast %cst_10 : f32 to vector<2x20x64xf32>
    %36 = arith.divf %35, %34 : vector<2x20x64xf32>
    %cst_11 = arith.constant 1.06140542 : f32
    %37 = vector.broadcast %cst_11 : f32 to vector<2x20x64xf32>
    %38 = arith.mulf %36, %37 : vector<2x20x64xf32>
    %cst_12 = arith.constant -1.45315206 : f32
    %39 = vector.broadcast %cst_12 : f32 to vector<2x20x64xf32>
    %40 = arith.addf %39, %38 : vector<2x20x64xf32>
    %41 = arith.mulf %36, %40 : vector<2x20x64xf32>
    %cst_13 = arith.constant 1.42141378 : f32
    %42 = vector.broadcast %cst_13 : f32 to vector<2x20x64xf32>
    %43 = arith.addf %42, %41 : vector<2x20x64xf32>
    %44 = arith.mulf %36, %43 : vector<2x20x64xf32>
    %cst_14 = arith.constant -0.284496725 : f32
    %45 = vector.broadcast %cst_14 : f32 to vector<2x20x64xf32>
    %46 = arith.addf %45, %44 : vector<2x20x64xf32>
    %47 = arith.mulf %36, %46 : vector<2x20x64xf32>
    %cst_15 = arith.constant 0.254829586 : f32
    %48 = vector.broadcast %cst_15 : f32 to vector<2x20x64xf32>
    %49 = arith.addf %48, %47 : vector<2x20x64xf32>
    %50 = arith.mulf %36, %49 : vector<2x20x64xf32>
    %cst_16 = arith.constant 0.000000e+00 : f32
    %51 = vector.broadcast %cst_16 : f32 to vector<2x20x64xf32>
    %52 = arith.subf %51, %30 : vector<2x20x64xf32>
    %53 = arith.mulf %52, %30 : vector<2x20x64xf32>
    %54 = math.exp %53 : vector<2x20x64xf32>
    %55 = arith.mulf %50, %54 : vector<2x20x64xf32>
    %cst_17 = arith.constant 0.000000e+00 : f32
    %56 = vector.broadcast %cst_17 : f32 to vector<2x20x64xf32>
    %57 = arith.cmpf olt, %29, %56 : vector<2x20x64xf32>
    %cst_18 = arith.constant 1.000000e+00 : f32
    %58 = vector.broadcast %cst_18 : f32 to vector<2x20x64xf32>
    %59 = arith.subf %55, %58 : vector<2x20x64xf32>
    %cst_19 = arith.constant 1.000000e+00 : f32
    %60 = vector.broadcast %cst_19 : f32 to vector<2x20x64xf32>
    %61 = arith.subf %60, %55 : vector<2x20x64xf32>
    %62 = arith.select %57, %59, %61 : vector<2x20x64xi1>, vector<2x20x64xf32>
    %cst_20 = arith.constant 5.000000e-01 : f32
    %63 = vector.broadcast %cst_20 : f32 to vector<2x20x64xf32>
    %64 = arith.mulf %63, %27 : vector<2x20x64xf32>
    %cst_21 = arith.constant 1.000000e+00 : f32
    %65 = vector.broadcast %cst_21 : f32 to vector<2x20x64xf32>
    %66 = arith.addf %65, %62 : vector<2x20x64xf32>
    %67 = arith.mulf %64, %66 : vector<2x20x64xf32>
    %68 = vector.extract_strided_slice %67 {offsets = [0, 0, 0], sizes = [2, 18, 64], strides = [1, 1, 1]} : vector<2x20x64xf32> to vector<2x18x64xf32>
    %69 = vector.shape_cast %68 : vector<2x18x64xf32> to vector<36x64xf32>
    %c0_22 = arith.constant 0 : index
    %c0_23 = arith.constant 0 : index
    %c0_24 = arith.constant 0 : index
    %70 = vector.load %arg4[%c0_22, %c0_23, %c0_24] : memref<3x64x128xf32, #tpu.memory_space<vmem>>, vector<1x64x128xf32>
    %71 = vector.shape_cast %70 : vector<1x64x128xf32> to vector<64x128xf32>
    %cst_25 = arith.constant dense<0.000000e+00> : vector<36x128xf32>
    %72 = tpu.matmul %69, %71, %cst_25 {dimension_numbers = #tpu.dot_dimension_numbers<[1], [0], [0], [1], [0, 0, 1, 1], [], []>} : vector<36x64xf32>, vector<64x128xf32>, vector<36x128xf32> -> vector<36x128xf32>
    %73 = vector.extract_strided_slice %67 {offsets = [0, 1, 0], sizes = [2, 18, 64], strides = [1, 1, 1]} : vector<2x20x64xf32> to vector<2x18x64xf32>
    %74 = vector.shape_cast %73 : vector<2x18x64xf32> to vector<36x64xf32>
    %c1_26 = arith.constant 1 : index
    %c0_27 = arith.constant 0 : index
    %c0_28 = arith.constant 0 : index
    %75 = vector.load %arg4[%c1_26, %c0_27, %c0_28] : memref<3x64x128xf32, #tpu.memory_space<vmem>>, vector<1x64x128xf32>
    %76 = vector.shape_cast %75 : vector<1x64x128xf32> to vector<64x128xf32>
    %cst_29 = arith.constant dense<0.000000e+00> : vector<36x128xf32>
    %77 = tpu.matmul %74, %76, %cst_29 {dimension_numbers = #tpu.dot_dimension_numbers<[1], [0], [0], [1], [0, 0, 1, 1], [], []>} : vector<36x64xf32>, vector<64x128xf32>, vector<36x128xf32> -> vector<36x128xf32>
    %78 = arith.addf %72, %77 : vector<36x128xf32>
    %79 = vector.extract_strided_slice %67 {offsets = [0, 2, 0], sizes = [2, 18, 64], strides = [1, 1, 1]} : vector<2x20x64xf32> to vector<2x18x64xf32>
    %80 = vector.shape_cast %79 : vector<2x18x64xf32> to vector<36x64xf32>
    %c2_30 = arith.constant 2 : index
    %c0_31 = arith.constant 0 : index
    %c0_32 = arith.constant 0 : index
    %81 = vector.load %arg4[%c2_30, %c0_31, %c0_32] : memref<3x64x128xf32, #tpu.memory_space<vmem>>, vector<1x64x128xf32>
    %82 = vector.shape_cast %81 : vector<1x64x128xf32> to vector<64x128xf32>
    %cst_33 = arith.constant dense<0.000000e+00> : vector<36x128xf32>
    %83 = tpu.matmul %80, %82, %cst_33 {dimension_numbers = #tpu.dot_dimension_numbers<[1], [0], [0], [1], [0, 0, 1, 1], [], []>} : vector<36x64xf32>, vector<64x128xf32>, vector<36x128xf32> -> vector<36x128xf32>
    %84 = arith.addf %78, %83 : vector<36x128xf32>
    %85 = vector.shape_cast %84 : vector<36x128xf32> to vector<2x18x128xf32>
    %c0_34 = arith.constant 0 : index
    %c0_35 = arith.constant 0 : index
    %86 = vector.load %arg5[%c0_34, %c0_35] : memref<1x128xf32, #tpu.memory_space<vmem>>, vector<1x128xf32>
    %87 = vector.shape_cast %86 : vector<1x128xf32> to vector<1x1x128xf32>
    %88 = vector.broadcast %87 : vector<1x1x128xf32> to vector<2x18x128xf32>
    %89 = arith.addf %85, %88 : vector<2x18x128xf32>
    %cst_36 = arith.constant 0.707106769 : f32
    %90 = vector.broadcast %cst_36 : f32 to vector<2x18x128xf32>
    %91 = arith.mulf %89, %90 : vector<2x18x128xf32>
    %92 = math.absf %91 : vector<2x18x128xf32>
    %cst_37 = arith.constant 0.327591091 : f32
    %93 = vector.broadcast %cst_37 : f32 to vector<2x18x128xf32>
    %94 = arith.mulf %93, %92 : vector<2x18x128xf32>
    %cst_38 = arith.constant 1.000000e+00 : f32
    %95 = vector.broadcast %cst_38 : f32 to vector<2x18x128xf32>
    %96 = arith.addf %95, %94 : vector<2x18x128xf32>
    %cst_39 = arith.constant 1.000000e+00 : f32
    %97 = vector.broadcast %cst_39 : f32 to vector<2x18x128xf32>
    %98 = arith.divf %97, %96 : vector<2x18x128xf32>
    %cst_40 = arith.constant 1.06140542 : f32
    %99 = vector.broadcast %cst_40 : f32 to vector<2x18x128xf32>
    %100 = arith.mulf %98, %99 : vector<2x18x128xf32>
    %cst_41 = arith.constant -1.45315206 : f32
    %101 = vector.broadcast %cst_41 : f32 to vector<2x18x128xf32>
    %102 = arith.addf %101, %100 : vector<2x18x128xf32>
    %103 = arith.mulf %98, %102 : vector<2x18x128xf32>
    %cst_42 = arith.constant 1.42141378 : f32
    %104 = vector.broadcast %cst_42 : f32 to vector<2x18x128xf32>
    %105 = arith.addf %104, %103 : vector<2x18x128xf32>
    %106 = arith.mulf %98, %105 : vector<2x18x128xf32>
    %cst_43 = arith.constant -0.284496725 : f32
    %107 = vector.broadcast %cst_43 : f32 to vector<2x18x128xf32>
    %108 = arith.addf %107, %106 : vector<2x18x128xf32>
    %109 = arith.mulf %98, %108 : vector<2x18x128xf32>
    %cst_44 = arith.constant 0.254829586 : f32
    %110 = vector.broadcast %cst_44 : f32 to vector<2x18x128xf32>
    %111 = arith.addf %110, %109 : vector<2x18x128xf32>
    %112 = arith.mulf %98, %111 : vector<2x18x128xf32>
    %cst_45 = arith.constant 0.000000e+00 : f32
    %113 = vector.broadcast %cst_45 : f32 to vector<2x18x128xf32>
    %114 = arith.subf %113, %92 : vector<2x18x128xf32>
    %115 = arith.mulf %114, %92 : vector<2x18x128xf32>
    %116 = math.exp %115 : vector<2x18x128xf32>
    %117 = arith.mulf %112, %116 : vector<2x18x128xf32>
    %cst_46 = arith.constant 0.000000e+00 : f32
    %118 = vector.broadcast %cst_46 : f32 to vector<2x18x128xf32>
    %119 = arith.cmpf olt, %91, %118 : vector<2x18x128xf32>
    %cst_47 = arith.constant 1.000000e+00 : f32
    %120 = vector.broadcast %cst_47 : f32 to vector<2x18x128xf32>
    %121 = arith.subf %117, %120 : vector<2x18x128xf32>
    %cst_48 = arith.constant 1.000000e+00 : f32
    %122 = vector.broadcast %cst_48 : f32 to vector<2x18x128xf32>
    %123 = arith.subf %122, %117 : vector<2x18x128xf32>
    %124 = arith.select %119, %121, %123 : vector<2x18x128xi1>, vector<2x18x128xf32>
    %cst_49 = arith.constant 5.000000e-01 : f32
    %125 = vector.broadcast %cst_49 : f32 to vector<2x18x128xf32>
    %126 = arith.mulf %125, %89 : vector<2x18x128xf32>
    %cst_50 = arith.constant 1.000000e+00 : f32
    %127 = vector.broadcast %cst_50 : f32 to vector<2x18x128xf32>
    %128 = arith.addf %127, %124 : vector<2x18x128xf32>
    %129 = arith.mulf %126, %128 : vector<2x18x128xf32>
    %130 = vector.shape_cast %129 : vector<2x18x128xf32> to vector<2x9x2x128xf32>
    %cst_51 = arith.constant dense<0xFF800000> : vector<2x9x128xf32>
    %131 = vector.multi_reduction <maximumf>, %130, %cst_51 [2] : vector<2x9x2x128xf32> to vector<2x9x128xf32>
    %132 = vector.extract_strided_slice %131 {offsets = [0, 0, 0], sizes = [2, 7, 128], strides = [1, 1, 1]} : vector<2x9x128xf32> to vector<2x7x128xf32>
    %133 = vector.shape_cast %132 : vector<2x7x128xf32> to vector<14x128xf32>
    %c0_52 = arith.constant 0 : index
    %c0_53 = arith.constant 0 : index
    %c0_54 = arith.constant 0 : index
    %134 = vector.load %arg6[%c0_52, %c0_53, %c0_54] : memref<3x128x128xf32, #tpu.memory_space<vmem>>, vector<1x128x128xf32>
    %135 = vector.shape_cast %134 : vector<1x128x128xf32> to vector<128x128xf32>
    %cst_55 = arith.constant dense<0.000000e+00> : vector<14x128xf32>
    %136 = tpu.matmul %133, %135, %cst_55 {dimension_numbers = #tpu.dot_dimension_numbers<[1], [0], [0], [1], [0, 0, 1, 1], [], []>} : vector<14x128xf32>, vector<128x128xf32>, vector<14x128xf32> -> vector<14x128xf32>
    %137 = vector.extract_strided_slice %131 {offsets = [0, 1, 0], sizes = [2, 7, 128], strides = [1, 1, 1]} : vector<2x9x128xf32> to vector<2x7x128xf32>
    %138 = vector.shape_cast %137 : vector<2x7x128xf32> to vector<14x128xf32>
    %c1_56 = arith.constant 1 : index
    %c0_57 = arith.constant 0 : index
    %c0_58 = arith.constant 0 : index
    %139 = vector.load %arg6[%c1_56, %c0_57, %c0_58] : memref<3x128x128xf32, #tpu.memory_space<vmem>>, vector<1x128x128xf32>
    %140 = vector.shape_cast %139 : vector<1x128x128xf32> to vector<128x128xf32>
    %cst_59 = arith.constant dense<0.000000e+00> : vector<14x128xf32>
    %141 = tpu.matmul %138, %140, %cst_59 {dimension_numbers = #tpu.dot_dimension_numbers<[1], [0], [0], [1], [0, 0, 1, 1], [], []>} : vector<14x128xf32>, vector<128x128xf32>, vector<14x128xf32> -> vector<14x128xf32>
    %142 = arith.addf %136, %141 : vector<14x128xf32>
    %143 = vector.extract_strided_slice %131 {offsets = [0, 2, 0], sizes = [2, 7, 128], strides = [1, 1, 1]} : vector<2x9x128xf32> to vector<2x7x128xf32>
    %144 = vector.shape_cast %143 : vector<2x7x128xf32> to vector<14x128xf32>
    %c2_60 = arith.constant 2 : index
    %c0_61 = arith.constant 0 : index
    %c0_62 = arith.constant 0 : index
    %145 = vector.load %arg6[%c2_60, %c0_61, %c0_62] : memref<3x128x128xf32, #tpu.memory_space<vmem>>, vector<1x128x128xf32>
    %146 = vector.shape_cast %145 : vector<1x128x128xf32> to vector<128x128xf32>
    %cst_63 = arith.constant dense<0.000000e+00> : vector<14x128xf32>
    %147 = tpu.matmul %144, %146, %cst_63 {dimension_numbers = #tpu.dot_dimension_numbers<[1], [0], [0], [1], [0, 0, 1, 1], [], []>} : vector<14x128xf32>, vector<128x128xf32>, vector<14x128xf32> -> vector<14x128xf32>
    %148 = arith.addf %142, %147 : vector<14x128xf32>
    %149 = vector.shape_cast %148 : vector<14x128xf32> to vector<2x7x128xf32>
    %c0_64 = arith.constant 0 : index
    %c0_65 = arith.constant 0 : index
    %150 = vector.load %arg7[%c0_64, %c0_65] : memref<1x128xf32, #tpu.memory_space<vmem>>, vector<1x128xf32>
    %151 = vector.shape_cast %150 : vector<1x128xf32> to vector<1x1x128xf32>
    %152 = vector.broadcast %151 : vector<1x1x128xf32> to vector<2x7x128xf32>
    %153 = arith.addf %149, %152 : vector<2x7x128xf32>
    %cst_66 = arith.constant 0.707106769 : f32
    %154 = vector.broadcast %cst_66 : f32 to vector<2x7x128xf32>
    %155 = arith.mulf %153, %154 : vector<2x7x128xf32>
    %156 = math.absf %155 : vector<2x7x128xf32>
    %cst_67 = arith.constant 0.327591091 : f32
    %157 = vector.broadcast %cst_67 : f32 to vector<2x7x128xf32>
    %158 = arith.mulf %157, %156 : vector<2x7x128xf32>
    %cst_68 = arith.constant 1.000000e+00 : f32
    %159 = vector.broadcast %cst_68 : f32 to vector<2x7x128xf32>
    %160 = arith.addf %159, %158 : vector<2x7x128xf32>
    %cst_69 = arith.constant 1.000000e+00 : f32
    %161 = vector.broadcast %cst_69 : f32 to vector<2x7x128xf32>
    %162 = arith.divf %161, %160 : vector<2x7x128xf32>
    %cst_70 = arith.constant 1.06140542 : f32
    %163 = vector.broadcast %cst_70 : f32 to vector<2x7x128xf32>
    %164 = arith.mulf %162, %163 : vector<2x7x128xf32>
    %cst_71 = arith.constant -1.45315206 : f32
    %165 = vector.broadcast %cst_71 : f32 to vector<2x7x128xf32>
    %166 = arith.addf %165, %164 : vector<2x7x128xf32>
    %167 = arith.mulf %162, %166 : vector<2x7x128xf32>
    %cst_72 = arith.constant 1.42141378 : f32
    %168 = vector.broadcast %cst_72 : f32 to vector<2x7x128xf32>
    %169 = arith.addf %168, %167 : vector<2x7x128xf32>
    %170 = arith.mulf %162, %169 : vector<2x7x128xf32>
    %cst_73 = arith.constant -0.284496725 : f32
    %171 = vector.broadcast %cst_73 : f32 to vector<2x7x128xf32>
    %172 = arith.addf %171, %170 : vector<2x7x128xf32>
    %173 = arith.mulf %162, %172 : vector<2x7x128xf32>
    %cst_74 = arith.constant 0.254829586 : f32
    %174 = vector.broadcast %cst_74 : f32 to vector<2x7x128xf32>
    %175 = arith.addf %174, %173 : vector<2x7x128xf32>
    %176 = arith.mulf %162, %175 : vector<2x7x128xf32>
    %cst_75 = arith.constant 0.000000e+00 : f32
    %177 = vector.broadcast %cst_75 : f32 to vector<2x7x128xf32>
    %178 = arith.subf %177, %156 : vector<2x7x128xf32>
    %179 = arith.mulf %178, %156 : vector<2x7x128xf32>
    %180 = math.exp %179 : vector<2x7x128xf32>
    %181 = arith.mulf %176, %180 : vector<2x7x128xf32>
    %cst_76 = arith.constant 0.000000e+00 : f32
    %182 = vector.broadcast %cst_76 : f32 to vector<2x7x128xf32>
    %183 = arith.cmpf olt, %155, %182 : vector<2x7x128xf32>
    %cst_77 = arith.constant 1.000000e+00 : f32
    %184 = vector.broadcast %cst_77 : f32 to vector<2x7x128xf32>
    %185 = arith.subf %181, %184 : vector<2x7x128xf32>
    %cst_78 = arith.constant 1.000000e+00 : f32
    %186 = vector.broadcast %cst_78 : f32 to vector<2x7x128xf32>
    %187 = arith.subf %186, %181 : vector<2x7x128xf32>
    %188 = arith.select %183, %185, %187 : vector<2x7x128xi1>, vector<2x7x128xf32>
    %cst_79 = arith.constant 5.000000e-01 : f32
    %189 = vector.broadcast %cst_79 : f32 to vector<2x7x128xf32>
    %190 = arith.mulf %189, %153 : vector<2x7x128xf32>
    %cst_80 = arith.constant 1.000000e+00 : f32
    %191 = vector.broadcast %cst_80 : f32 to vector<2x7x128xf32>
    %192 = arith.addf %191, %188 : vector<2x7x128xf32>
    %193 = arith.mulf %190, %192 : vector<2x7x128xf32>
    %194 = vector.extract_strided_slice %193 {offsets = [0, 0, 0], sizes = [2, 5, 128], strides = [1, 1, 1]} : vector<2x7x128xf32> to vector<2x5x128xf32>
    %195 = vector.shape_cast %194 : vector<2x5x128xf32> to vector<10x128xf32>
    %c0_81 = arith.constant 0 : index
    %c0_82 = arith.constant 0 : index
    %c0_83 = arith.constant 0 : index
    %196 = vector.load %arg8[%c0_81, %c0_82, %c0_83] : memref<3x128x128xf32, #tpu.memory_space<vmem>>, vector<1x128x128xf32>
    %197 = vector.shape_cast %196 : vector<1x128x128xf32> to vector<128x128xf32>
    %cst_84 = arith.constant dense<0.000000e+00> : vector<10x128xf32>
    %198 = tpu.matmul %195, %197, %cst_84 {dimension_numbers = #tpu.dot_dimension_numbers<[1], [0], [0], [1], [0, 0, 1, 1], [], []>} : vector<10x128xf32>, vector<128x128xf32>, vector<10x128xf32> -> vector<10x128xf32>
    %199 = vector.extract_strided_slice %193 {offsets = [0, 1, 0], sizes = [2, 5, 128], strides = [1, 1, 1]} : vector<2x7x128xf32> to vector<2x5x128xf32>
    %200 = vector.shape_cast %199 : vector<2x5x128xf32> to vector<10x128xf32>
    %c1_85 = arith.constant 1 : index
    %c0_86 = arith.constant 0 : index
    %c0_87 = arith.constant 0 : index
    %201 = vector.load %arg8[%c1_85, %c0_86, %c0_87] : memref<3x128x128xf32, #tpu.memory_space<vmem>>, vector<1x128x128xf32>
    %202 = vector.shape_cast %201 : vector<1x128x128xf32> to vector<128x128xf32>
    %cst_88 = arith.constant dense<0.000000e+00> : vector<10x128xf32>
    %203 = tpu.matmul %200, %202, %cst_88 {dimension_numbers = #tpu.dot_dimension_numbers<[1], [0], [0], [1], [0, 0, 1, 1], [], []>} : vector<10x128xf32>, vector<128x128xf32>, vector<10x128xf32> -> vector<10x128xf32>
    %204 = arith.addf %198, %203 : vector<10x128xf32>
    %205 = vector.extract_strided_slice %193 {offsets = [0, 2, 0], sizes = [2, 5, 128], strides = [1, 1, 1]} : vector<2x7x128xf32> to vector<2x5x128xf32>
    %206 = vector.shape_cast %205 : vector<2x5x128xf32> to vector<10x128xf32>
    %c2_89 = arith.constant 2 : index
    %c0_90 = arith.constant 0 : index
    %c0_91 = arith.constant 0 : index
    %207 = vector.load %arg8[%c2_89, %c0_90, %c0_91] : memref<3x128x128xf32, #tpu.memory_space<vmem>>, vector<1x128x128xf32>
    %208 = vector.shape_cast %207 : vector<1x128x128xf32> to vector<128x128xf32>
    %cst_92 = arith.constant dense<0.000000e+00> : vector<10x128xf32>
    %209 = tpu.matmul %206, %208, %cst_92 {dimension_numbers = #tpu.dot_dimension_numbers<[1], [0], [0], [1], [0, 0, 1, 1], [], []>} : vector<10x128xf32>, vector<128x128xf32>, vector<10x128xf32> -> vector<10x128xf32>
    %210 = arith.addf %204, %209 : vector<10x128xf32>
    %211 = vector.shape_cast %210 : vector<10x128xf32> to vector<2x5x128xf32>
    %c0_93 = arith.constant 0 : index
    %c0_94 = arith.constant 0 : index
    %212 = vector.load %arg9[%c0_93, %c0_94] : memref<1x128xf32, #tpu.memory_space<vmem>>, vector<1x128xf32>
    %213 = vector.shape_cast %212 : vector<1x128xf32> to vector<1x1x128xf32>
    %214 = vector.broadcast %213 : vector<1x1x128xf32> to vector<2x5x128xf32>
    %215 = arith.addf %211, %214 : vector<2x5x128xf32>
    %cst_95 = arith.constant 0.707106769 : f32
    %216 = vector.broadcast %cst_95 : f32 to vector<2x5x128xf32>
    %217 = arith.mulf %215, %216 : vector<2x5x128xf32>
    %218 = math.absf %217 : vector<2x5x128xf32>
    %cst_96 = arith.constant 0.327591091 : f32
    %219 = vector.broadcast %cst_96 : f32 to vector<2x5x128xf32>
    %220 = arith.mulf %219, %218 : vector<2x5x128xf32>
    %cst_97 = arith.constant 1.000000e+00 : f32
    %221 = vector.broadcast %cst_97 : f32 to vector<2x5x128xf32>
    %222 = arith.addf %221, %220 : vector<2x5x128xf32>
    %cst_98 = arith.constant 1.000000e+00 : f32
    %223 = vector.broadcast %cst_98 : f32 to vector<2x5x128xf32>
    %224 = arith.divf %223, %222 : vector<2x5x128xf32>
    %cst_99 = arith.constant 1.06140542 : f32
    %225 = vector.broadcast %cst_99 : f32 to vector<2x5x128xf32>
    %226 = arith.mulf %224, %225 : vector<2x5x128xf32>
    %cst_100 = arith.constant -1.45315206 : f32
    %227 = vector.broadcast %cst_100 : f32 to vector<2x5x128xf32>
    %228 = arith.addf %227, %226 : vector<2x5x128xf32>
    %229 = arith.mulf %224, %228 : vector<2x5x128xf32>
    %cst_101 = arith.constant 1.42141378 : f32
    %230 = vector.broadcast %cst_101 : f32 to vector<2x5x128xf32>
    %231 = arith.addf %230, %229 : vector<2x5x128xf32>
    %232 = arith.mulf %224, %231 : vector<2x5x128xf32>
    %cst_102 = arith.constant -0.284496725 : f32
    %233 = vector.broadcast %cst_102 : f32 to vector<2x5x128xf32>
    %234 = arith.addf %233, %232 : vector<2x5x128xf32>
    %235 = arith.mulf %224, %234 : vector<2x5x128xf32>
    %cst_103 = arith.constant 0.254829586 : f32
    %236 = vector.broadcast %cst_103 : f32 to vector<2x5x128xf32>
    %237 = arith.addf %236, %235 : vector<2x5x128xf32>
    %238 = arith.mulf %224, %237 : vector<2x5x128xf32>
    %cst_104 = arith.constant 0.000000e+00 : f32
    %239 = vector.broadcast %cst_104 : f32 to vector<2x5x128xf32>
    %240 = arith.subf %239, %218 : vector<2x5x128xf32>
    %241 = arith.mulf %240, %218 : vector<2x5x128xf32>
    %242 = math.exp %241 : vector<2x5x128xf32>
    %243 = arith.mulf %238, %242 : vector<2x5x128xf32>
    %cst_105 = arith.constant 0.000000e+00 : f32
    %244 = vector.broadcast %cst_105 : f32 to vector<2x5x128xf32>
    %245 = arith.cmpf olt, %217, %244 : vector<2x5x128xf32>
    %cst_106 = arith.constant 1.000000e+00 : f32
    %246 = vector.broadcast %cst_106 : f32 to vector<2x5x128xf32>
    %247 = arith.subf %243, %246 : vector<2x5x128xf32>
    %cst_107 = arith.constant 1.000000e+00 : f32
    %248 = vector.broadcast %cst_107 : f32 to vector<2x5x128xf32>
    %249 = arith.subf %248, %243 : vector<2x5x128xf32>
    %250 = arith.select %245, %247, %249 : vector<2x5x128xi1>, vector<2x5x128xf32>
    %cst_108 = arith.constant 5.000000e-01 : f32
    %251 = vector.broadcast %cst_108 : f32 to vector<2x5x128xf32>
    %252 = arith.mulf %251, %215 : vector<2x5x128xf32>
    %cst_109 = arith.constant 1.000000e+00 : f32
    %253 = vector.broadcast %cst_109 : f32 to vector<2x5x128xf32>
    %254 = arith.addf %253, %250 : vector<2x5x128xf32>
    %255 = arith.mulf %252, %254 : vector<2x5x128xf32>
    %cst_110 = arith.constant 0xFF800000 : f32
    %256 = vector.broadcast %cst_110 : f32 to vector<2x1x128xf32>
    %257 = tpu.concatenate %255, %256 in 1 : vector<2x5x128xf32>, vector<2x1x128xf32> -> vector<2x6x128xf32>
    %258 = vector.shape_cast %257 : vector<2x6x128xf32> to vector<2x3x2x128xf32>
    %cst_111 = arith.constant dense<0xFF800000> : vector<2x3x128xf32>
    %259 = vector.multi_reduction <maximumf>, %258, %cst_111 [2] : vector<2x3x2x128xf32> to vector<2x3x128xf32>
    %c0_112 = arith.constant 0 : index
    %c0_113 = arith.constant 0 : index
    %c0_114 = arith.constant 0 : index
    %260 = vector.load %arg10[%c0_112, %c0_113, %c0_114] : memref<2x3x128xf32, #tpu.memory_space<vmem>>, vector<2x3x128xf32>
    tpu.vector_store %arg10[%c0_112, %c0_113, %c0_114], %259 {strides = array<i32>} : memref<2x3x128xf32, #tpu.memory_space<vmem>>, vector<2x3x128xf32>,
    return
  }
  func.func @transform_0(%arg0: i32) -> (i32, i32, i32) {
    %c0_i32 = arith.constant 0 : i32
    %c0_i32_0 = arith.constant 0 : i32
    %c0_i32_1 = arith.constant 0 : i32
    return %arg0, %c0_i32, %c0_i32_0 : i32, i32, i32
  }
  func.func @transform_1(%arg0: i32) -> (i32, i32) {
    %c0_i32 = arith.constant 0 : i32
    %c0_i32_0 = arith.constant 0 : i32
    %c0_i32_1 = arith.constant 0 : i32
    return %c0_i32, %c0_i32_0 : i32, i32
  }
  func.func @transform_2(%arg0: i32) -> (i32, i32) {
    %c0_i32 = arith.constant 0 : i32
    %c0_i32_0 = arith.constant 0 : i32
    %c0_i32_1 = arith.constant 0 : i32
    return %c0_i32, %c0_i32_0 : i32, i32
  }
  func.func @transform_3(%arg0: i32) -> (i32, i32, i32) {
    %c0_i32 = arith.constant 0 : i32
    %c0_i32_0 = arith.constant 0 : i32
    %c0_i32_1 = arith.constant 0 : i32
    %c0_i32_2 = arith.constant 0 : i32
    return %c0_i32, %c0_i32_0, %c0_i32_1 : i32, i32, i32
  }
  func.func @transform_4(%arg0: i32) -> (i32, i32) {
    %c0_i32 = arith.constant 0 : i32
    %c0_i32_0 = arith.constant 0 : i32
    %c0_i32_1 = arith.constant 0 : i32
    return %c0_i32, %c0_i32_0 : i32, i32
  }
  func.func @transform_5(%arg0: i32) -> (i32, i32, i32) {
    %c0_i32 = arith.constant 0 : i32
    %c0_i32_0 = arith.constant 0 : i32
    %c0_i32_1 = arith.constant 0 : i32
    %c0_i32_2 = arith.constant 0 : i32
    return %c0_i32, %c0_i32_0, %c0_i32_1 : i32, i32, i32
  }
  func.func @transform_6(%arg0: i32) -> (i32, i32) {
    %c0_i32 = arith.constant 0 : i32
    %c0_i32_0 = arith.constant 0 : i32
    %c0_i32_1 = arith.constant 0 : i32
    return %c0_i32, %c0_i32_0 : i32, i32
  }
  func.func @transform_7(%arg0: i32) -> (i32, i32, i32) {
    %c0_i32 = arith.constant 0 : i32
    %c0_i32_0 = arith.constant 0 : i32
    %c0_i32_1 = arith.constant 0 : i32
    %c0_i32_2 = arith.constant 0 : i32
    return %c0_i32, %c0_i32_0, %c0_i32_1 : i32, i32, i32
  }
  func.func @transform_8(%arg0: i32) -> (i32, i32) {
    %c0_i32 = arith.constant 0 : i32
    %c0_i32_0 = arith.constant 0 : i32
    %c0_i32_1 = arith.constant 0 : i32
    return %c0_i32, %c0_i32_0 : i32, i32
  }
  func.func @transform_9(%arg0: i32) -> (i32, i32, i32) {
    %c0_i32 = arith.constant 0 : i32
    %c0_i32_0 = arith.constant 0 : i32
    %c0_i32_1 = arith.constant 0 : i32
    return %arg0, %c0_i32, %c0_i32_0 : i32, i32, i32
  }
}

module attributes {stable_mosaic.version = 11 : i64} {
  func.func @_lstm_head_kernel(%arg0: i32, %arg1: memref<2x128x3xf32, #tpu.memory_space<vmem>>, %arg2: memref<3x512xf32, #tpu.memory_space<vmem>>, %arg3: memref<128x512xf32, #tpu.memory_space<vmem>>, %arg4: memref<1x512xf32, #tpu.memory_space<vmem>>, %arg5: memref<256x512xf32, #tpu.memory_space<vmem>>, %arg6: memref<1x512xf32, #tpu.memory_space<vmem>>, %arg7: memref<128x48x128xf32, #tpu.memory_space<vmem>>, %arg8: memref<1x128xf32, #tpu.memory_space<vmem>>, %arg9: memref<128x128xf32, #tpu.memory_space<vmem>>, %arg10: memref<1x128xf32, #tpu.memory_space<vmem>>, %arg11: memref<2x128xf32, #tpu.memory_space<vmem>>, %arg12: memref<2x128x512xf32, #tpu.memory_space<vmem>>) attributes {dimension_semantics = [#tpu.dimension_semantics<parallel>], iteration_bounds = array<i64: 1>, scalar_prefetch = 0 : i64, scratch_operands = 1 : i64, tpu.core_type = #tpu.core_type<tc>, window_params = [{transform_indices = @transform_0, window_bounds = array<i64: 2, 128, 3>}, {pipeline_mode = #tpu.pipeline_mode<synchronous>, transform_indices = @transform_1, window_bounds = array<i64: 3, 512>}, {pipeline_mode = #tpu.pipeline_mode<synchronous>, transform_indices = @transform_2, window_bounds = array<i64: 128, 512>}, {pipeline_mode = #tpu.pipeline_mode<synchronous>, transform_indices = @transform_3, window_bounds = array<i64: 1, 512>}, {pipeline_mode = #tpu.pipeline_mode<synchronous>, transform_indices = @transform_4, window_bounds = array<i64: 256, 512>}, {pipeline_mode = #tpu.pipeline_mode<synchronous>, transform_indices = @transform_5, window_bounds = array<i64: 1, 512>}, {pipeline_mode = #tpu.pipeline_mode<synchronous>, transform_indices = @transform_6, window_bounds = array<i64: 128, 48, 128>}, {pipeline_mode = #tpu.pipeline_mode<synchronous>, transform_indices = @transform_7, window_bounds = array<i64: 1, 128>}, {pipeline_mode = #tpu.pipeline_mode<synchronous>, transform_indices = @transform_8, window_bounds = array<i64: 128, 128>}, {pipeline_mode = #tpu.pipeline_mode<synchronous>, transform_indices = @transform_9, window_bounds = array<i64: 1, 128>}, {transform_indices = @transform_10, window_bounds = array<i64: 2, 128>}]} {
    %c0 = arith.constant 0 : index
    %c0_0 = arith.constant 0 : index
    %c0_1 = arith.constant 0 : index
    %0 = vector.load %arg1[%c0, %c0_0, %c0_1] : memref<2x128x3xf32, #tpu.memory_space<vmem>>, vector<2x128x3xf32>
    %1 = vector.shape_cast %0 : vector<2x128x3xf32> to vector<256x3xf32>
    %c0_2 = arith.constant 0 : index
    %c0_3 = arith.constant 0 : index
    %2 = vector.load %arg2[%c0_2, %c0_3] : memref<3x512xf32, #tpu.memory_space<vmem>>, vector<3x512xf32>
    %cst = arith.constant dense<0.000000e+00> : vector<256x512xf32>
    %3 = tpu.matmul %1, %2, %cst {dimension_numbers = #tpu.dot_dimension_numbers<[1], [0], [0], [1], [0, 0, 1, 1], [], []>} : vector<256x3xf32>, vector<3x512xf32>, vector<256x512xf32> -> vector<256x512xf32>
    %4 = vector.shape_cast %3 : vector<256x512xf32> to vector<2x128x512xf32>
    %c0_4 = arith.constant 0 : index
    %c0_5 = arith.constant 0 : index
    %5 = vector.load %arg4[%c0_4, %c0_5] : memref<1x512xf32, #tpu.memory_space<vmem>>, vector<1x512xf32>
    %6 = vector.shape_cast %5 : vector<1x512xf32> to vector<1x1x512xf32>
    %7 = vector.broadcast %6 : vector<1x1x512xf32> to vector<2x128x512xf32>
    %8 = arith.addf %4, %7 : vector<2x128x512xf32>
    %c0_6 = arith.constant 0 : index
    %c0_7 = arith.constant 0 : index
    %c0_8 = arith.constant 0 : index
    %9 = vector.load %arg12[%c0_6, %c0_7, %c0_8] : memref<2x128x512xf32, #tpu.memory_space<vmem>>, vector<2x128x512xf32>
    tpu.vector_store %arg12[%c0_6, %c0_7, %c0_8], %8 {strides = array<i32>} : memref<2x128x512xf32, #tpu.memory_space<vmem>>, vector<2x128x512xf32>,
    %cst_9 = arith.constant 0.000000e+00 : f32
    %10 = vector.broadcast %cst_9 : f32 to vector<2x128xf32>
    %c0_i32 = arith.constant 0 : i32
    %c128_i32 = arith.constant 128 : i32
    %11 = arith.addi %c0_i32, %c128_i32 : i32
    %c1_i32 = arith.constant 1 : i32
    %12:5 = scf.for %arg13 = %c0_i32 to %11 step %c1_i32 iter_args(%arg14 = %10, %arg15 = %10, %arg16 = %10, %arg17 = %10, %arg18 = %10) -> (vector<2x128xf32>, vector<2x128xf32>, vector<2x128xf32>, vector<2x128xf32>, vector<2x128xf32>)  : i32 {
      %c0_22 = arith.constant 0 : index
      %31 = arith.index_cast %arg13 : i32 to index
      %c0_23 = arith.constant 0 : index
      %32 = vector.load %arg12[%c0_22, %31, %c0_23] : memref<2x128x512xf32, #tpu.memory_space<vmem>>, vector<2x1x512xf32>
      %33 = vector.shape_cast %32 : vector<2x1x512xf32> to vector<2x512xf32>
      %c0_24 = arith.constant 0 : index
      %c0_25 = arith.constant 0 : index
      %34 = vector.load %arg3[%c0_24, %c0_25] : memref<128x512xf32, #tpu.memory_space<vmem>>, vector<128x512xf32>
      %cst_26 = arith.constant dense<0.000000e+00> : vector<2x512xf32>
      %35 = tpu.matmul %arg14, %34, %cst_26 {dimension_numbers = #tpu.dot_dimension_numbers<[1], [0], [0], [1], [0, 0, 1, 1], [], []>} : vector<2x128xf32>, vector<128x512xf32>, vector<2x512xf32> -> vector<2x512xf32>
      %36 = arith.addf %33, %35 : vector<2x512xf32>
      %37 = vector.extract_strided_slice %36 {offsets = [0, 0], sizes = [2, 128], strides = [1, 1]} : vector<2x512xf32> to vector<2x128xf32>
      %38 = arith.negf %37 : vector<2x128xf32>
      %39 = math.exp %38 : vector<2x128xf32>
      %cst_27 = arith.constant 1.000000e+00 : f32
      %40 = vector.broadcast %cst_27 : f32 to vector<2x128xf32>
      %41 = arith.addf %40, %39 : vector<2x128xf32>
      %42 = arith.divf %40, %41 : vector<2x128xf32>
      %43 = vector.extract_strided_slice %36 {offsets = [0, 128], sizes = [2, 128], strides = [1, 1]} : vector<2x512xf32> to vector<2x128xf32>
      %44 = arith.negf %43 : vector<2x128xf32>
      %45 = math.exp %44 : vector<2x128xf32>
      %cst_28 = arith.constant 1.000000e+00 : f32
      %46 = vector.broadcast %cst_28 : f32 to vector<2x128xf32>
      %47 = arith.addf %46, %45 : vector<2x128xf32>
      %48 = arith.divf %46, %47 : vector<2x128xf32>
      %49 = vector.extract_strided_slice %36 {offsets = [0, 256], sizes = [2, 128], strides = [1, 1]} : vector<2x512xf32> to vector<2x128xf32>
      %50 = math.tanh %49 : vector<2x128xf32>
      %51 = vector.extract_strided_slice %36 {offsets = [0, 384], sizes = [2, 128], strides = [1, 1]} : vector<2x512xf32> to vector<2x128xf32>
      %52 = arith.negf %51 : vector<2x128xf32>
      %53 = math.exp %52 : vector<2x128xf32>
      %cst_29 = arith.constant 1.000000e+00 : f32
      %54 = vector.broadcast %cst_29 : f32 to vector<2x128xf32>
      %55 = arith.addf %54, %53 : vector<2x128xf32>
      %56 = arith.divf %54, %55 : vector<2x128xf32>
      %57 = arith.mulf %48, %arg15 : vector<2x128xf32>
      %58 = arith.mulf %42, %50 : vector<2x128xf32>
      %59 = arith.addf %57, %58 : vector<2x128xf32>
      %60 = math.tanh %59 : vector<2x128xf32>
      %61 = arith.mulf %56, %60 : vector<2x128xf32>
      %62 = tpu.concatenate %61, %arg16 in 1 : vector<2x128xf32>, vector<2x128xf32> -> vector<2x256xf32>
      %c0_30 = arith.constant 0 : index
      %c0_31 = arith.constant 0 : index
      %63 = vector.load %arg5[%c0_30, %c0_31] : memref<256x512xf32, #tpu.memory_space<vmem>>, vector<256x512xf32>
      %cst_32 = arith.constant dense<0.000000e+00> : vector<2x512xf32>
      %64 = tpu.matmul %62, %63, %cst_32 {dimension_numbers = #tpu.dot_dimension_numbers<[1], [0], [0], [1], [0, 0, 1, 1], [], []>} : vector<2x256xf32>, vector<256x512xf32>, vector<2x512xf32> -> vector<2x512xf32>
      %c0_33 = arith.constant 0 : index
      %c0_34 = arith.constant 0 : index
      %65 = vector.load %arg6[%c0_33, %c0_34] : memref<1x512xf32, #tpu.memory_space<vmem>>, vector<1x512xf32>
      %66 = vector.broadcast %65 : vector<1x512xf32> to vector<2x512xf32>
      %67 = arith.addf %64, %66 : vector<2x512xf32>
      %68 = vector.extract_strided_slice %67 {offsets = [0, 0], sizes = [2, 128], strides = [1, 1]} : vector<2x512xf32> to vector<2x128xf32>
      %69 = arith.negf %68 : vector<2x128xf32>
      %70 = math.exp %69 : vector<2x128xf32>
      %cst_35 = arith.constant 1.000000e+00 : f32
      %71 = vector.broadcast %cst_35 : f32 to vector<2x128xf32>
      %72 = arith.addf %71, %70 : vector<2x128xf32>
      %73 = arith.divf %71, %72 : vector<2x128xf32>
      %74 = vector.extract_strided_slice %67 {offsets = [0, 128], sizes = [2, 128], strides = [1, 1]} : vector<2x512xf32> to vector<2x128xf32>
      %75 = arith.negf %74 : vector<2x128xf32>
      %76 = math.exp %75 : vector<2x128xf32>
      %cst_36 = arith.constant 1.000000e+00 : f32
      %77 = vector.broadcast %cst_36 : f32 to vector<2x128xf32>
      %78 = arith.addf %77, %76 : vector<2x128xf32>
      %79 = arith.divf %77, %78 : vector<2x128xf32>
      %80 = vector.extract_strided_slice %67 {offsets = [0, 256], sizes = [2, 128], strides = [1, 1]} : vector<2x512xf32> to vector<2x128xf32>
      %81 = math.tanh %80 : vector<2x128xf32>
      %82 = vector.extract_strided_slice %67 {offsets = [0, 384], sizes = [2, 128], strides = [1, 1]} : vector<2x512xf32> to vector<2x128xf32>
      %83 = arith.negf %82 : vector<2x128xf32>
      %84 = math.exp %83 : vector<2x128xf32>
      %cst_37 = arith.constant 1.000000e+00 : f32
      %85 = vector.broadcast %cst_37 : f32 to vector<2x128xf32>
      %86 = arith.addf %85, %84 : vector<2x128xf32>
      %87 = arith.divf %85, %86 : vector<2x128xf32>
      %88 = arith.mulf %79, %arg17 : vector<2x128xf32>
      %89 = arith.mulf %73, %81 : vector<2x128xf32>
      %90 = arith.addf %88, %89 : vector<2x128xf32>
      %91 = math.tanh %90 : vector<2x128xf32>
      %92 = arith.mulf %87, %91 : vector<2x128xf32>
      %93 = vector.extract_strided_slice %92 {offsets = [0, 0], sizes = [2, 48], strides = [1, 1]} : vector<2x128xf32> to vector<2x48xf32>
      %94 = arith.index_cast %arg13 : i32 to index
      %c0_38 = arith.constant 0 : index
      %c0_39 = arith.constant 0 : index
      %95 = vector.load %arg7[%94, %c0_38, %c0_39] : memref<128x48x128xf32, #tpu.memory_space<vmem>>, vector<1x48x128xf32>
      %96 = vector.shape_cast %95 : vector<1x48x128xf32> to vector<48x128xf32>
      %cst_40 = arith.constant dense<0.000000e+00> : vector<2x128xf32>
      %97 = tpu.matmul %93, %96, %cst_40 {dimension_numbers = #tpu.dot_dimension_numbers<[1], [0], [0], [1], [0, 0, 1, 1], [], []>} : vector<2x48xf32>, vector<48x128xf32>, vector<2x128xf32> -> vector<2x128xf32>
      %98 = arith.addf %arg18, %97 : vector<2x128xf32>
      scf.yield %61, %59, %92, %90, %98 : vector<2x128xf32>, vector<2x128xf32>, vector<2x128xf32>, vector<2x128xf32>, vector<2x128xf32>
    }
    %c128_i32_10 = arith.constant 128 : i32
    %c0_11 = arith.constant 0 : index
    %c0_12 = arith.constant 0 : index
    %13 = vector.load %arg8[%c0_11, %c0_12] : memref<1x128xf32, #tpu.memory_space<vmem>>, vector<1x128xf32>
    %14 = vector.broadcast %13 : vector<1x128xf32> to vector<2x128xf32>
    %15 = arith.addf %12#4, %14 : vector<2x128xf32>
    %c0_13 = arith.constant 0 : index
    %c0_14 = arith.constant 0 : index
    %16 = vector.load %arg9[%c0_13, %c0_14] : memref<128x128xf32, #tpu.memory_space<vmem>>, vector<128x128xf32>
    %cst_15 = arith.constant dense<0.000000e+00> : vector<2x128xf32>
    %17 = tpu.matmul %15, %16, %cst_15 {dimension_numbers = #tpu.dot_dimension_numbers<[1], [0], [0], [1], [0, 0, 1, 1], [], []>} : vector<2x128xf32>, vector<128x128xf32>, vector<2x128xf32> -> vector<2x128xf32>
    %c0_16 = arith.constant 0 : index
    %c0_17 = arith.constant 0 : index
    %18 = vector.load %arg10[%c0_16, %c0_17] : memref<1x128xf32, #tpu.memory_space<vmem>>, vector<1x128xf32>
    %19 = vector.broadcast %18 : vector<1x128xf32> to vector<2x128xf32>
    %20 = arith.addf %17, %19 : vector<2x128xf32>
    %cst_18 = arith.constant dense<0xFF800000> : vector<2xf32>
    %21 = vector.multi_reduction <maximumf>, %20, %cst_18 [1] : vector<2x128xf32> to vector<2xf32>
    %22 = vector.shape_cast %21 : vector<2xf32> to vector<2x1xf32>
    %23 = vector.broadcast %22 : vector<2x1xf32> to vector<2x128xf32>
    %24 = arith.subf %20, %23 : vector<2x128xf32>
    %25 = math.exp %24 : vector<2x128xf32>
    %cst_19 = arith.constant dense<0.000000e+00> : vector<2xf32>
    %26 = vector.multi_reduction <add>, %25, %cst_19 [1] : vector<2x128xf32> to vector<2xf32>
    %27 = vector.shape_cast %26 : vector<2xf32> to vector<2x1xf32>
    %28 = vector.broadcast %27 : vector<2x1xf32> to vector<2x128xf32>
    %29 = arith.divf %25, %28 : vector<2x128xf32>
    %c0_20 = arith.constant 0 : index
    %c0_21 = arith.constant 0 : index
    %30 = vector.load %arg11[%c0_20, %c0_21] : memref<2x128xf32, #tpu.memory_space<vmem>>, vector<2x128xf32>
    tpu.vector_store %arg11[%c0_20, %c0_21], %29 {strides = array<i32>} : memref<2x128xf32, #tpu.memory_space<vmem>>, vector<2x128xf32>,
    return
  }
  func.func @transform_0(%arg0: i32) -> (i32, i32, i32) {
    %c0_i32 = arith.constant 0 : i32
    %c0_i32_0 = arith.constant 0 : i32
    %c0_i32_1 = arith.constant 0 : i32
    return %arg0, %c0_i32, %c0_i32_0 : i32, i32, i32
  }
  func.func @transform_1(%arg0: i32) -> (i32, i32) {
    %c0_i32 = arith.constant 0 : i32
    %c0_i32_0 = arith.constant 0 : i32
    %c0_i32_1 = arith.constant 0 : i32
    return %c0_i32, %c0_i32_0 : i32, i32
  }
  func.func @transform_2(%arg0: i32) -> (i32, i32) {
    %c0_i32 = arith.constant 0 : i32
    %c0_i32_0 = arith.constant 0 : i32
    %c0_i32_1 = arith.constant 0 : i32
    return %c0_i32, %c0_i32_0 : i32, i32
  }
  func.func @transform_3(%arg0: i32) -> (i32, i32) {
    %c0_i32 = arith.constant 0 : i32
    %c0_i32_0 = arith.constant 0 : i32
    %c0_i32_1 = arith.constant 0 : i32
    return %c0_i32, %c0_i32_0 : i32, i32
  }
  func.func @transform_4(%arg0: i32) -> (i32, i32) {
    %c0_i32 = arith.constant 0 : i32
    %c0_i32_0 = arith.constant 0 : i32
    %c0_i32_1 = arith.constant 0 : i32
    return %c0_i32, %c0_i32_0 : i32, i32
  }
  func.func @transform_5(%arg0: i32) -> (i32, i32) {
    %c0_i32 = arith.constant 0 : i32
    %c0_i32_0 = arith.constant 0 : i32
    %c0_i32_1 = arith.constant 0 : i32
    return %c0_i32, %c0_i32_0 : i32, i32
  }
  func.func @transform_6(%arg0: i32) -> (i32, i32, i32) {
    %c0_i32 = arith.constant 0 : i32
    %c0_i32_0 = arith.constant 0 : i32
    %c0_i32_1 = arith.constant 0 : i32
    %c0_i32_2 = arith.constant 0 : i32
    return %c0_i32, %c0_i32_0, %c0_i32_1 : i32, i32, i32
  }
  func.func @transform_7(%arg0: i32) -> (i32, i32) {
    %c0_i32 = arith.constant 0 : i32
    %c0_i32_0 = arith.constant 0 : i32
    %c0_i32_1 = arith.constant 0 : i32
    return %c0_i32, %c0_i32_0 : i32, i32
  }
  func.func @transform_8(%arg0: i32) -> (i32, i32) {
    %c0_i32 = arith.constant 0 : i32
    %c0_i32_0 = arith.constant 0 : i32
    %c0_i32_1 = arith.constant 0 : i32
    return %c0_i32, %c0_i32_0 : i32, i32
  }
  func.func @transform_9(%arg0: i32) -> (i32, i32) {
    %c0_i32 = arith.constant 0 : i32
    %c0_i32_0 = arith.constant 0 : i32
    %c0_i32_1 = arith.constant 0 : i32
    return %c0_i32, %c0_i32_0 : i32, i32
  }
  func.func @transform_10(%arg0: i32) -> (i32, i32) {
    %c0_i32 = arith.constant 0 : i32
    %c0_i32_0 = arith.constant 0 : i32
    return %arg0, %c0_i32 : i32, i32
  }
}

</mosaic_0001>

<bundles_post_ra>
// kernel: convnet_forward.2
= control target key start
LH: loop header
LB: loop body
LE: loop exit
PB: predicated region body
PF: predicated region fallthrough
CT: control target
= control target key end

     0   :  { %14 = vsyncpa [#allocation3], 0  ;;  %s6749_s0 = inlined_call_operand.vmem [shape: f32[2,22,1], index: 0, kind: input, shape index: {}]   ;;  %s6750_s1 = inlined_call_operand.vmem [shape: f32[3,64], index: 1, kind: input, shape index: {}]   ;;  %s6751_s2 = inlined_call_operand.hbm [shape: f32[1,64], index: 2, kind: input, shape index: {}]   ;;  %s6752_s3 = inlined_call_operand.hbm [shape: f32[3,64,128], index: 3, kind: input, shape index: {}]   ;;  %s6753_s4 = inlined_call_operand.hbm [shape: f32[1,128], index: 4, kind: input, shape index: {}]   ;;  %s6754_s5 = inlined_call_operand.vmem [shape: f32[3,128,128], index: 5, kind: input, shape index: {}]   ;;  %s6755_s6 = inlined_call_operand.hbm [shape: f32[1,128], index: 6, kind: input, shape index: {}]   ;;  %s6756_s7 = inlined_call_operand.vmem [shape: f32[3,128,128], index: 7, kind: input, shape index: {}]   ;;  %s6757_s8 = inlined_call_operand.hbm [shape: f32[1,128], index: 8, kind: input, shape index: {}]   ;;  %s6758_s9 = inlined_call_operand.vmem [shape: f32[2,3,128], index: 9, kind: output, shape index: {}]  }
   0x1   :  { %15 = vsyncpa [#allocation5], 0  ;;  %s36_s11 = sshll.u32 %s6752_s3, 4  ;;  %s37_s11 = int_to_ptr.hbm [resolvable:$true] %s36_s11 }
   0x2   :  { %16 = vsyncpa [#allocation8], 0  ;;  %s3757_s12 = smov [#allocation4]   ;;  %s63_s16 = sshll.u32 %s6755_s6, 4  ;;  %s64_s16 = int_to_ptr.hbm [resolvable:$true] %s63_s16 }
   0x3   :  { %s38_s13 = sshll.u32 %s3757_s12, 4  ;;  %s3758_s17 = smov 128   ;;  %s39_s13 = int_to_ptr.vmem [resolvable:$true] %s38_s13 }
   0x4   :  { %s3759_s18 = smov 8   ;;  %s3760_s19 = smov [#allocation7]  }
   0x5   :  { %44 = dma.hbm_to_vmem [thread:$0]  %s37_s11, 3072, %s39_s13, [#allocation5], %s3758_s17, %s3758_s17, %s3759_s18  }
   0x6   :  { %s65_s20 = sshll.u32 %s3760_s19, 4  ;;  %s26_s23 = sshll.u32 %s6751_s2, 4  ;;  %s66_s20 = int_to_ptr.vmem [resolvable:$true] %s65_s20  ;;  %s27_s23 = int_to_ptr.hbm [resolvable:$true] %s26_s23 }
   0x7   :  { %68 = dma.hbm_to_vmem [thread:$0]  %s64_s16, 16, %s66_s20, [#allocation8]  }
   0x8   :  { %s50_s25 = sshll.u32 %s6753_s4, 4  ;;  %s3761_s26 = smov [#allocation2]   ;;  %s51_s25 = int_to_ptr.hbm [resolvable:$true] %s50_s25 }
   0x9   :  { %s28_s27 = sshll.u32 %s3761_s26, 4  ;;  %s3762_s6 = smov [#allocation6]   ;;  %s29_s27 = int_to_ptr.vmem [resolvable:$true] %s28_s27 }
   0xa   :  { %31 = dma.hbm_to_vmem [thread:$0]  %s27_s23, 16, %s29_s27, [#allocation3]  }
   0xb   :  { %s52_s28 = sshll.u32 %s3762_s6, 4  ;;  %s76_s10 = sshll.u32 %s6757_s8, 4  ;;  %s53_s28 = int_to_ptr.vmem [resolvable:$true] %s52_s28  ;;  %s77_s10 = int_to_ptr.hbm [resolvable:$true] %s76_s10 }
   0xc   :  { %55 = dma.hbm_to_vmem [thread:$0]  %s51_s25, 16, %s53_s28, [#allocation5]  }
   0xd   :  { %s3763_s2 = smov [#allocation9]  }
   0xe   :  { %s78_s11 = sshll.u32 %s3763_s2, 4  ;;  %s79_s11 = int_to_ptr.vmem [resolvable:$true] %s78_s11 }
   0xf   :  { %81 = dma.hbm_to_vmem [thread:$0]  %s77_s10, 16, %s79_s11, [#allocation8]  }
  0x10   :  { %3751 = dma.done.wait [#allocation3], 16  }
  0x11   :  { %3752 = vsyncadd [#allocation3], 4294967280 }
  0x12   :  { %3753 = dma.done.wait [#allocation5], 3088  }
  0x13   :  { %3754 = vsyncadd [#allocation5], 4294964208 }
  0x14   :  { %3755 = dma.done.wait [#allocation8], 32  }
  0x15   :  { %3756 = vsyncadd [#allocation8], 4294967264  ;;  %v3764_v0 = vmov 0   ;;  %v106_v1 = vld [vmem:[%s6749_s0 + $0x20] sm:$0xff]  ;;  %v104_v2 = vld [vmem:[%s6749_s0 + $0x10] sm:$0x3f] }
  0x16   :  { %3430 = vset.pattern.permute.xlu2 %v3764_v0  ;;  %3429 = vset.pattern.permute.xlu1 %v3764_v0  ;;  %v102_v3 = vld [vmem:[%s6749_s0] sm:$0xff]  ;;  %v107_v4 = vld [vmem:[%s6749_s0 + $0x28] sm:$0x3f]  ;;  %v105_v5 = vld [vmem:[%s6749_s0 + $0x18] sm:$0xff]  ;;  %vm160_vm0 = vcmask 1046528   ;;  %vm197_vm1 = vcmask 1045504  }
  0x17   :  { %3428 = vset.pattern.permute.xlu0 %v3764_v0  ;;  %131 = vperm.xlu2 %3430, %v106_v1   ;;  %v103_v6 = vld [vmem:[%s6749_s0 + $0x8] sm:$0xff]  ;;  %v3432_v7 = vld [vmem:[%s6750_s1 + $0x1] ss:$0 sm:$0xff]  ;;  %v3854_v9 = vld [vmem:[%s6750_s1 + $0x2] ss:$0 sm:$0xff] }
  0x18   :  { %121 = vperm.xlu1 %3429, %v104_v2   ;;  %111 = vperm.xlu0 %3428, %v102_v3   ;;  %v3859_v11 = vld [vmem:[%s6750_s1] ss:$0 sm:$0xff]  ;;  %v3865_v22 = vld [vmem:[#allocation2] ss:$0 sm:$0xff] }
  0x1f   :  { %136 = vperm.xlu2 %3430, %v107_v4  }
  0x20   :  { %126 = vperm.xlu1 %3429, %v105_v5   ;;  %116 = vperm.xlu0 %3428, %v103_v6  }
  0x71   :  { %v132_v8 = vpop.permute.xlu2 %131 }
  0x72   :  { %v152_v10 = vmul.f32 %v3432_v7, %v132_v8  ;;  %v189_v12 = vmul.f32 %v3854_v9, %v132_v8  ;;  %v144_v19 = vmul.f32 %v3859_v11, %v132_v8 }
  0x74   :  { %v167_v13 = vrot.slane %v152_v10, 1  ;;  %v204_v15 = vrot.slane %v189_v12, 2 }
  0x79   :  { %v137_v14 = vpop.permute.xlu2 %136 }
  0x7a   :  { %v145_v16 = vmul.f32 %v3859_v11, %v137_v14  ;;  %v153_v17 = vmul.f32 %v3432_v7, %v137_v14  ;;  %v190_v18 = vmul.f32 %v3854_v9, %v137_v14 }
  0x7c   :  { %v169_v20 = vrot.slane %v153_v17, 1  ;;  %v206_v21 = vrot.slane %v190_v18, 2 }
  0x7e   :  { %v170_v23 = vsel %vm160_vm0, %v167_v13, %v169_v20  ;;  %v182_v24 = vadd.f32 %v169_v20, %v145_v16  ;;  %v207_v25 = vsel %vm197_vm1, %v204_v15, %v206_v21 }
  0x7f   :  { %v181_v26 = vadd.f32 %v170_v23, %v144_v19 }
  0x80   :  { %v219_v27 = vadd.f32 %v206_v21, %v182_v24 }
  0x81   :  { %v218_v28 = vadd.f32 %v207_v25, %v181_v26 }
  0x82   :  { %v3870_v29 = vadd.f32 %v3865_v22, %v219_v27 }
  0x83   :  { %v3873_v30 = vadd.f32 %v3865_v22, %v218_v28 }
  0x84   :  { %v3876_v31 = vmul.f32 0.70710677, %v3870_v29 }
  0x85   :  { %v3879_v32 = vmul.f32 0.70710677, %v3873_v30 }
  0x86   :  { %v3885_v34 = vand.u32 2147483647, %v3876_v31 }
  0x87   :  { %v3882_v33 = vand.u32 2147483647, %v3879_v32 }
  0x88   :  { %v247_v38 = vmul.f32 0.3275911, %v3885_v34 }
  0x89   :  { %v246_v35 = vmul.f32 0.3275911, %v3882_v33 }
  0x8a   :  { %v122_v36 = vpop.permute.xlu1 %121  ;;  %v112_v37 = vpop.permute.xlu0 %111  ;;  %v3894_v43 = vadd.f32 1.0, %v247_v38 }
  0x8b   :  { %v3889_v39 = vadd.f32 1.0, %v246_v35  ;;  %v150_v40 = vmul.f32 %v3432_v7, %v122_v36  ;;  %v187_v41 = vmul.f32 %v3854_v9, %v122_v36  ;;  %v142_v42 = vmul.f32 %v3859_v11, %v122_v36 }
  0x8c   :  { %v148_v53 = vmul.f32 %v3432_v7, %v112_v37  ;;  %v140_v12 = vmul.f32 %v3859_v11, %v112_v37  ;;  %vm334_vm5 = vweird.f32 %v3894_v43 }
  0x8d   :  { %3438 = vrcp.f32 %v3889_v39  ;;  %v164_v44 = vrot.slane %v150_v40, 1  ;;  %v201_v45 = vrot.slane %v187_v41, 2  ;;  %vm319_vm2 = vweird.f32 %v3889_v39 }
  0x8e   :  { %3440 = vrcp.f32 %v3894_v43  ;;  %v161_v63 = vrot.slane %v148_v53, 1  ;;  %v323_v24 = vand.u32 2147483647, %v3889_v39  ;;  %v325_v26 = vand.u32 2147483648, %v3889_v39 }
  0x8f   :  { %v179_v46 = vadd.f32 %v164_v44, %v142_v42  ;;  %v340_v53 = vand.u32 2147483648, %v3894_v43 }
  0x90   :  { %vm324_vm6 = vcmp.eq.f32.partialorder %v323_v24, 8.507059e+37 }
  0x91   :  { %v216_v51 = vadd.f32 %v201_v45, %v179_v46 }
  0x92   :  { %v127_v47 = vpop.permute.xlu1 %126  ;;  %v117_v49 = vpop.permute.xlu0 %116 }
  0x93   :  { %v151_v48 = vmul.f32 %v3432_v7, %v127_v47  ;;  %v3896_v50 = vpop.eup %3438  ;;  %v188_v52 = vmul.f32 %v3854_v9, %v127_v47  ;;  %v3901_v55 = vadd.f32 %v3865_v22, %v216_v51  ;;  %v143_v56 = vmul.f32 %v3859_v11, %v127_v47 }
  0x94   :  { %v149_v58 = vmul.f32 %v3432_v7, %v117_v49  ;;  %v315_v59 = vmul.f32 %v3896_v50, %v3889_v39  ;;  %v186_v2 = vmul.f32 %v3854_v9, %v117_v49  ;;  %v3912_v3 = vpop.eup %3440  ;;  %v185_v7 = vmul.f32 %v3854_v9, %v112_v37 }
  0x95   :  { %v166_v54 = vrot.slane %v151_v48, 1  ;;  %v203_v57 = vrot.slane %v188_v52, 2  ;;  %v3908_v61 = vmul.f32 0.70710677, %v3901_v55  ;;  %v141_v16 = vmul.f32 %v3859_v11, %v117_v49 }
  0x96   :  { %v162_v1 = vrot.slane %v149_v58, 1  ;;  %v316_v6 = vsub.f32 1.0, %v315_v59  ;;  %v199_v17 = vrot.slane %v186_v2, 2  ;;  %v198_v20 = vrot.slane %v185_v7, 2 }
  0x97   :  { %v168_v60 = vsel %vm160_vm0, %v166_v54, %v167_v13  ;;  %v205_v0 = vsel %vm197_vm1, %v203_v57, %v204_v15  ;;  %v3915_v4 = vand.u32 2147483647, %v3908_v61  ;;  %v330_v15 = vmul.f32 %v3912_v3, %v3894_v43 }
  0x98   :  { %v180_v62 = vadd.f32 %v168_v60, %v143_v56  ;;  %v163_v8 = vsel %vm160_vm0, %v161_v63, %v162_v1  ;;  %v165_v14 = vsel %vm160_vm0, %v162_v1, %v164_v44  ;;  %v317_v9 = vmul.f32 %v3896_v50, %v316_v6 }
  0x99   :  { %v244_v10 = vmul.f32 0.3275911, %v3915_v4  ;;  %v177_v19 = vadd.f32 %v163_v8, %v140_v12  ;;  %v178_v23 = vadd.f32 %v165_v14, %v141_v16  ;;  %vm320_vm3 = vweird.f32 %v3896_v50 }
  0x9a   :  { %v217_v5 = vadd.f32 %v205_v0, %v180_v62  ;;  %v331_v25 = vsub.f32 1.0, %v330_v15  ;;  %v200_v11 = vsel %vm197_vm1, %v198_v20, %v199_v17  ;;  %v202_v28 = vsel %vm197_vm1, %v199_v17, %v201_v45  ;;  %vm3942_vm4 = vmor %vm319_vm2, %vm320_vm3 }
  0x9b   :  { %v250_v18 = vadd.f32 1.0, %v244_v10  ;;  %v214_v35 = vadd.f32 %v200_v11, %v177_v19  ;;  %v318_v36 = vadd.f32 %v3896_v50, %v317_v9  ;;  %v215_v37 = vadd.f32 %v202_v28, %v178_v23 }
  0x9c   :  { %v3922_v13 = vadd.f32 %v3865_v22, %v217_v5  ;;  %v332_v39 = vmul.f32 %v3912_v3, %v331_v25  ;;  %v326_v45 = vor.u32 1.1754944e-38, %v325_v26  ;;  %vm335_vm7 = vweird.f32 %v3912_v3 }
  0x9d   :  { %3442 = vrcp.f32 %v250_v18  ;;  %v3948_v41 = vadd.f32 %v3865_v22, %v214_v35  ;;  %v3953_v42 = vadd.f32 %v3865_v22, %v215_v37  ;;  %v322_v48 = vsel %vm3942_vm4, %v3896_v50, %v318_v36  ;;  %vm3972_vm8 = vmor %vm334_vm5, %vm335_vm7 }
  0x9e   :  { %v3930_v21 = vmul.f32 0.70710677, %v3922_v13  ;;  %v333_v22 = vadd.f32 %v3912_v3, %v332_v39  ;;  %v338_v52 = vand.u32 2147483647, %v3894_v43  ;;  %v3968_v56 = vsel %vm324_vm6, %v326_v45, %v322_v48 }
  0x9f   :  { %v3956_v47 = vmul.f32 0.70710677, %v3948_v41  ;;  %v3963_v51 = vmul.f32 0.70710677, %v3953_v42  ;;  %v295_v57 = vand.u32 2147483648, %v250_v18  ;;  %vm289_vm9 = vweird.f32 %v250_v18 }
  0xa0   :  { %v3938_v27 = vand.u32 2147483647, %v3930_v21  ;;  %v293_v62 = vand.u32 2147483647, %v250_v18  ;;  %v337_v43 = vsel %vm3972_vm8, %v3912_v3, %v333_v22  ;;  %vm339_vm11 = vcmp.eq.f32.partialorder %v338_v52, 8.507059e+37 }
  0xa1   :  { %v3977_v58 = vand.u32 2147483647, %v3956_v47  ;;  %v3980_v59 = vand.u32 2147483647, %v3963_v51  ;;  %v341_v0 = vor.u32 1.1754944e-38, %v340_v53  ;;  %v296_v6 = vor.u32 1.1754944e-38, %v295_v57 }
  0xa2   :  { %v245_v40 = vmul.f32 0.3275911, %v3938_v27  ;;  %v348_v5 = vmul.f32 1.0614054, %v3968_v56  ;;  %vm294_vm13 = vcmp.eq.f32.partialorder %v293_v62, 8.507059e+37  ;;  %v402_v45 = vsub.f32 0.0, %v3882_v33 }
  0xa3   :  { %v3443_v44 = vpop.eup %3442  ;;  %v242_v63 = vmul.f32 0.3275911, %v3977_v58  ;;  %v243_v7 = vmul.f32 0.3275911, %v3980_v59  ;;  %v3990_v15 = vsel %vm339_vm11, %v341_v0, %v337_v43  ;;  %v401_v53 = vsub.f32 0.0, %v3938_v27 }
  0xa4   :  { %v251_v46 = vadd.f32 1.0, %v245_v40  ;;  %v285_v49 = vmul.f32 %v3443_v44, %v250_v18  ;;  %vm290_vm10 = vweird.f32 %v3443_v44  ;;  %v354_v17 = vadd.f32 -1.4531521, %v348_v5 }
  0xa5   :  { %vm291_vm12 = vmor %vm289_vm9, %vm290_vm10  ;;  %v248_v8 = vadd.f32 1.0, %v242_v63  ;;  %v3993_v19 = vadd.f32 1.0, %v243_v7  ;;  %v349_v23 = vmul.f32 1.0614054, %v3990_v15  ;;  %v408_v63 = vmul.f32 %v402_v45, %v3882_v33 }
  0xa6   :  { %3444 = vrcp.f32 %v251_v46  ;;  %v286_v54 = vsub.f32 1.0, %v285_v49  ;;  %v310_v18 = vand.u32 2147483648, %v251_v46  ;;  %v308_v20 = vand.u32 2147483647, %v251_v46 }
  0xa7   :  { %3446 = vrcp.f32 %v248_v8  ;;  %vm304_vm15 = vweird.f32 %v251_v46  ;;  %v360_v26 = vmul.f32 %v354_v17, %v3968_v56  ;;  %v355_v37 = vadd.f32 -1.4531521, %v349_v23 }
  0xa8   :  { %v287_v60 = vmul.f32 %v3443_v44, %v286_v54  ;;  %v311_v28 = vor.u32 1.1754944e-38, %v310_v18  ;;  %3448 = vrcp.f32 %v3993_v19  ;;  %vm309_vm1 = vcmp.eq.f32.partialorder %v308_v20, 8.507059e+37 }
  0xa9   :  { %v361_v22 = vmul.f32 %v355_v37, %v3990_v15  ;;  %v265_v54 = vand.u32 2147483648, %v248_v8  ;;  %v400_v43 = vsub.f32 0.0, %v3915_v4  ;;  %vm259_vm3 = vweird.f32 %v248_v8 }
  0xaa   :  { %v288_v1 = vadd.f32 %v3443_v44, %v287_v60  ;;  %v263_v60 = vand.u32 2147483647, %v248_v8  ;;  %v407_v7 = vmul.f32 %v401_v53, %v3938_v27  ;;  %v278_v18 = vand.u32 2147483647, %v3993_v19 }
  0xab   :  { %v367_v5 = vadd.f32 1.4214138, %v361_v22  ;;  %v403_v27 = vsub.f32 0.0, %v3885_v34  ;;  %vm274_vm7 = vweird.f32 %v3993_v19  ;;  %vm498_vm10 = vcmask 1040384  }
  0xac   :  { %v3445_v2 = vpop.eup %3444  ;;  %v292_v10 = vsel %vm291_vm12, %v3443_v44, %v288_v1  ;;  %v366_v44 = vadd.f32 1.4214138, %v360_v26  ;;  %vm264_vm5 = vcmp.eq.f32.partialorder %v263_v60, 8.507059e+37  ;;  %v416_v37 = vmul.f32 1.442695, %v407_v7 }
  0xad   :  { %v300_v12 = vmul.f32 %v3445_v2, %v251_v46  ;;  %v3988_v14 = vsel %vm294_vm13, %v296_v6, %v292_v10  ;;  %vm305_vm14 = vweird.f32 %v3445_v2  ;;  %v3447_v11 = vpop.eup %3446  ;;  %v266_v10 = vor.u32 1.1754944e-38, %v265_v54 }
  0xae   :  { %v346_v3 = vmul.f32 1.0614054, %v3988_v14  ;;  %vm306_vm0 = vmor %vm304_vm15, %vm305_vm14  ;;  %v255_v36 = vmul.f32 %v3447_v11, %v248_v8  ;;  %v3449_v49 = vpop.eup %3448  ;;  %vm260_vm2 = vweird.f32 %v3447_v11  ;;  %v372_v62 = vmul.f32 %v366_v44, %v3968_v56 }
  0xaf   :  { %v301_v16 = vsub.f32 1.0, %v300_v12  ;;  %vm261_vm4 = vmor %vm259_vm3, %vm260_vm2  ;;  %v280_v8 = vand.u32 2147483648, %v3993_v19  ;;  %vm275_vm6 = vweird.f32 %v3449_v49  ;;  %v373_v26 = vmul.f32 %v367_v5, %v3990_v15 }
  0xb0   :  { %v352_v24 = vadd.f32 -1.4531521, %v346_v3  ;;  %v256_v48 = vsub.f32 1.0, %v255_v36  ;;  %v378_v33 = vadd.f32 -0.28449672, %v372_v62  ;;  %vm276_vm8 = vmor %vm274_vm7, %vm275_vm6  ;;  %vm279_vm9 = vcmp.eq.f32.partialorder %v278_v18, 8.507059e+37 }
  0xb1   :  { %v302_v9 = vmul.f32 %v3445_v2, %v301_v16  ;;  %vm6799_vm11 = vcmask 1042434   ;;  %vm501_vm12 = vcmask 1044484   ;;  %vm6759_vm13 = vcmask 1046534  }
  0xb2   :  { %v358_v38 = vmul.f32 %v352_v24, %v3988_v14  ;;  %v257_v57 = vmul.f32 %v3447_v11, %v256_v48  ;;  %v418_v24 = vmul.f32 1.442695, %v408_v63  ;;  %v384_v44 = vmul.f32 %v378_v33, %v3968_v56  ;;  %vm4047_vm2 = vmor %vm498_vm10, %vm6799_vm11 }
  0xb3   :  { %v303_v25 = vadd.f32 %v3445_v2, %v302_v9  ;;  %vm431_vm14 = vcmp.lt.f32.partialorder %v3930_v21, 0.0  ;;  %vm428_vm15 = vcmp.lt.f32.partialorder %v3956_v47, 0.0  ;;  %v568_v21 = vld [vmem:[#allocation4 + $0x70] sm:$0xff]  ;;  %vm429_vm3 = vcmp.lt.f32.partialorder %v3963_v51, 0.0 }
  0xb4   :  { %v364_v52 = vadd.f32 1.4214138, %v358_v38  ;;  %v258_v1 = vadd.f32 %v3447_v11, %v257_v57  ;;  %v281_v38 = vor.u32 1.1754944e-38, %v280_v8  ;;  %3450 = vpow2.f32 %v418_v24 }
  0xb5   :  { %v307_v35 = vsel %vm306_vm0, %v3445_v2, %v303_v25  ;;  %v270_v2 = vmul.f32 %v3449_v49, %v3993_v19  ;;  %v409_v19 = vmul.f32 %v403_v27, %v3885_v34  ;;  %v390_v62 = vadd.f32 0.2548296, %v384_v44 }
  0xb6   :  { %v3999_v40 = vsel %vm309_vm1, %v311_v28, %v307_v35  ;;  %v370_v6 = vmul.f32 %v364_v52, %v3988_v14  ;;  %v262_v3 = vsel %vm261_vm4, %v3447_v11, %v258_v1  ;;  %v398_v11 = vsub.f32 0.0, %v3977_v58  ;;  %vm4059_vm4 = vmor %vm4047_vm2, %vm501_vm12 }
  0xb7   :  { %v347_v39 = vmul.f32 1.0614054, %v3999_v40  ;;  %v271_v16 = vsub.f32 1.0, %v270_v2  ;;  %v4013_v17 = vsel %vm264_vm5, %v266_v10, %v262_v3  ;;  %v406_v28 = vmul.f32 %v400_v43, %v3915_v4  ;;  %vm4082_vm6 = vmor %vm4059_vm4, %vm6759_vm13 }
  0xb8   :  { %v344_v23 = vmul.f32 1.0614054, %v4013_v17  ;;  %v376_v25 = vadd.f32 -0.28449672, %v370_v6  ;;  %v404_v52 = vmul.f32 %v398_v11, %v3977_v58  ;;  %3452 = vpow2.f32 %v416_v37 }
  0xb9   :  { %v353_v46 = vadd.f32 -1.4531521, %v347_v39  ;;  %v272_v20 = vmul.f32 %v3449_v49, %v271_v16  ;;  %v414_v53 = vmul.f32 1.442695, %v406_v28  ;;  %v420_v2 = vmul.f32 1.442695, %v409_v19 }
  0xba   :  { %v350_v39 = vadd.f32 -1.4531521, %v344_v23  ;;  %v382_v48 = vmul.f32 %v376_v25, %v3988_v14  ;;  %v410_v1 = vmul.f32 1.442695, %v404_v52  ;;  %v396_v7 = vmul.f32 %v390_v62, %v3968_v56 }
  0xbb   :  { %v359_v50 = vmul.f32 %v353_v46, %v3999_v40  ;;  %v273_v35 = vadd.f32 %v3449_v49, %v272_v20  ;;  %v399_v46 = vsub.f32 0.0, %v3980_v59  ;;  %3454 = vpow2.f32 %v414_v53 }
  0xbc   :  { %v356_v4 = vmul.f32 %v350_v39, %v4013_v17  ;;  %v388_v63 = vadd.f32 0.2548296, %v382_v48  ;;  %3456 = vpow2.f32 %v410_v1  ;;  %v456_v19 = vmul.f32 0.5, %v3873_v30 }
  0xbd   :  { %v365_v0 = vadd.f32 1.4214138, %v359_v50  ;;  %v277_v45 = vsel %vm276_vm8, %v3449_v49, %v273_v35  ;;  %v379_v50 = vadd.f32 -0.28449672, %v373_v26  ;;  %3458 = vpow2.f32 %v420_v2 }
  0xbe   :  { %v282_v22 = vsel %vm279_vm9, %v281_v38, %v277_v45  ;;  %v362_v60 = vadd.f32 1.4214138, %v356_v4  ;;  %v394_v3 = vmul.f32 %v388_v63, %v3988_v14  ;;  %v569_v4 = vld [vmem:[#allocation4 + $0x78] sm:$0xff]  ;;  %vm432_vm0 = vcmp.lt.f32.partialorder %v3879_v32, 0.0  ;;  %v567_v63 = vld [vmem:[#allocation4 + $0x68] sm:$0xff] }
  0xbf   :  { %v371_v12 = vmul.f32 %v365_v0, %v3999_v40  ;;  %v345_v54 = vmul.f32 1.0614054, %v282_v22  ;;  %v405_v0 = vmul.f32 %v399_v46, %v3980_v59  ;;  %v385_v34 = vmul.f32 %v379_v50, %v3990_v15  ;;  %619 = vmatpush.msra.mxu0 %v569_v4  ;;  %3412 = vmatpush.msra.mxu1 %v569_v4 }
  0xc0   :  { %v368_v43 = vmul.f32 %v362_v60, %v4013_v17  ;;  %vm430_vm1 = vcmp.lt.f32.partialorder %v3908_v61, 0.0  ;;  %v452_v60 = vmul.f32 0.5, %v3948_v41  ;;  %v455_v32 = vmul.f32 0.5, %v3922_v13  ;;  %v491_v13 = vld [vmem:[#allocation4 + $0x18] sm:$0xff] }
  0xc1   :  { %v377_v9 = vadd.f32 -0.28449672, %v371_v12  ;;  %v351_v49 = vadd.f32 -1.4531521, %v345_v54  ;;  %v3451_v12 = vpop.eup %3450  ;;  %v412_v33 = vmul.f32 1.442695, %v405_v0  ;;  %620 = vmatpush.msra.mxu0 %v568_v21  ;;  %3413 = vmatpush.msra.mxu1 %v568_v21 }
  0xc2   :  { %v374_v6 = vadd.f32 -0.28449672, %v368_v43  ;;  %v3453_v59 = vpop.eup %3452  ;;  %v391_v8 = vadd.f32 0.2548296, %v385_v34  ;;  %v453_v34 = vmul.f32 0.5, %v3953_v42  ;;  %vm433_vm5 = vcmp.lt.f32.partialorder %v3876_v31, 0.0 }
  0xc3   :  { %v383_v36 = vmul.f32 %v377_v9, %v3999_v40  ;;  %v357_v58 = vmul.f32 %v351_v49, %v282_v22  ;;  %v3455_v23 = vpop.eup %3454  ;;  %3460 = vpow2.f32 %v412_v33  ;;  %621 = vmatpush.msra.mxu0 %v567_v63  ;;  %3414 = vmatpush.msra.mxu1 %v567_v63  ;;  %v454_v42 = vmul.f32 0.5, %v3901_v55  ;;  %v494_v21 = vld [vmem:[#allocation4 + $0x30] sm:$0xff] }
  0xc4   :  { %v380_v16 = vmul.f32 %v374_v6, %v4013_v17  ;;  %v424_v24 = vmul.f32 %v3455_v23, %v394_v3  ;;  %v3457_v11 = vpop.eup %3456  ;;  %v397_v14 = vmul.f32 %v391_v8, %v3990_v15  ;;  %v564_v23 = vld [vmem:[#allocation4 + $0x50] sm:$0xff]  ;;  %vm600_vm7 = vcmask 523264  }
  0xc5   :  { %v389_v57 = vadd.f32 0.2548296, %v383_v36  ;;  %v363_v10 = vadd.f32 1.4214138, %v357_v58  ;;  %v3459_v35 = vpop.eup %3458 }
  0xc6   :  { %v386_v20 = vadd.f32 0.2548296, %v380_v16  ;;  %v3283_v44 = vadd.f32 -1.0, %v424_v24  ;;  %v442_v45 = vsub.f32 1.0, %v424_v24  ;;  %v427_v15 = vmul.f32 %v3459_v35, %v397_v14  ;;  %v565_v16 = vld [vmem:[#allocation4 + $0x58] sm:$0xff] }
  0xc7   :  { %v395_v5 = vmul.f32 %v389_v57, %v3999_v40  ;;  %v369_v18 = vmul.f32 %v363_v10, %v282_v22  ;;  %v426_v40 = vmul.f32 %v3451_v12, %v396_v7 }
  0xc8   :  { %v392_v25 = vmul.f32 %v386_v20, %v4013_v17  ;;  %v448_v57 = vsel %vm430_vm1, %v3283_v44, %v442_v45  ;;  %v3286_v43 = vadd.f32 -1.0, %v427_v15  ;;  %v445_v0 = vsub.f32 1.0, %v427_v15 }
  0xc9   :  { %v425_v9 = vmul.f32 %v3453_v59, %v395_v5  ;;  %v375_v27 = vadd.f32 -0.28449672, %v369_v18  ;;  %v3285_v38 = vadd.f32 -1.0, %v426_v40  ;;  %v444_v39 = vsub.f32 1.0, %v426_v40  ;;  %v3461_v52 = vpop.eup %3460  ;;  %v566_v5 = vld [vmem:[#allocation4 + $0x60] sm:$0xff] }
  0xca   :  { %v422_v37 = vmul.f32 %v3457_v11, %v392_v25  ;;  %v460_v2 = vadd.f32 1.0, %v448_v57  ;;  %622 = vmatpush.msra.mxu0 %v566_v5  ;;  %3415 = vmatpush.msra.mxu1 %v566_v5  ;;  %v451_v55 = vsel %vm433_vm5, %v3286_v43, %v445_v0 }
  0xcb   :  { %v381_v56 = vmul.f32 %v375_v27, %v282_v22  ;;  %v3284_v26 = vadd.f32 -1.0, %v425_v9  ;;  %v443_v28 = vsub.f32 1.0, %v425_v9 }
  0xcc   :  { %v3281_v17 = vadd.f32 -1.0, %v422_v37  ;;  %v440_v48 = vsub.f32 1.0, %v422_v37  ;;  %623 = vmatpush.msra.mxu0 %v565_v16  ;;  %3416 = vmatpush.msra.mxu1 %v565_v16  ;;  %v4088_v20 = vmul.f32 %v460_v2, %v454_v42 }
  0xcd   :  { %v387_v36 = vadd.f32 0.2548296, %v381_v56  ;;  %v449_v53 = vsel %vm431_vm14, %v3284_v26, %v443_v28 }
  0xce   :  { %v446_v50 = vsel %vm428_vm15, %v3281_v17, %v440_v48  ;;  %v461_v47 = vadd.f32 1.0, %v449_v53  ;;  %624 = vmatpush.msra.mxu0 %v564_v23  ;;  %3417 = vmatpush.msra.mxu1 %v564_v23  ;;  %v562_v17 = vld [vmem:[#allocation4 + $0x40] sm:$0xff] }
  0xcf   :  { %v393_v46 = vmul.f32 %v387_v36, %v282_v22  ;;  %v450_v22 = vsel %vm432_vm0, %v3285_v38, %v444_v39  ;;  %v458_v62 = vadd.f32 1.0, %v446_v50  ;;  %v563_v38 = vld [vmem:[#allocation4 + $0x48] sm:$0xff]  ;;  %v495_v50 = vld [vmem:[#allocation4 + $0x38] sm:$0xff] }
  0xd0   :  { %v462_v1 = vadd.f32 1.0, %v450_v22  ;;  %v4068_v12 = vmul.f32 %v461_v47, %v455_v32  ;;  %625 = vmatpush.msra.mxu0 %v563_v38  ;;  %3418 = vmatpush.msra.mxu1 %v563_v38  ;;  %v463_v22 = vadd.f32 1.0, %v451_v55  ;;  %v493_v47 = vld [vmem:[#allocation4 + $0x28] sm:$0xff]  ;;  %v490_v55 = vld [vmem:[#allocation4 + $0x10] sm:$0xff] }
  0xd1   :  { %v423_v54 = vmul.f32 %v3461_v52, %v393_v46  ;;  %v4053_v41 = vmul.f32 %v458_v62, %v452_v60 }
  0xd2   :  { %v4086_v9 = vmul.f32 %v462_v1, %v456_v19  ;;  %v482_v28 = vrot.slane %v4068_v12, 2  ;;  %v483_v48 = vrot.slane %v4068_v12, 4  ;;  %v528_v19 = vrot.slane %v4088_v20, 7  ;;  %626 = vmatpush.msra.mxu0 %v562_v17  ;;  %3419 = vmatpush.msra.mxu1 %v562_v17  ;;  %v492_v1 = vld [vmem:[#allocation4 + $0x20] sm:$0xff] }
  0xd3   :  { %v3282_v61 = vadd.f32 -1.0, %v423_v54  ;;  %v441_v49 = vsub.f32 1.0, %v423_v54  ;;  %v476_v51 = vrot.slane %v4053_v41, 2  ;;  %v477_v7 = vrot.slane %v4053_v41, 4 }
  0xd4   :  { %v478_v10 = vrot.slane %v4053_v41, 6  ;;  %v3287_v3 = vrot.slane %v4053_v41, 9  ;;  %v484_v53 = vrot.slane %v4068_v12, 6  ;;  %691 = vmatpush.msrb.mxu1 %v495_v50  ;;  %v485_v62 = vrot.slane %v4086_v9, 2 }
  0xd5   :  { %v447_v58 = vsel %vm429_vm3, %v3282_v61, %v441_v49  ;;  %v507_v59 = vrot.slane %v476_v51, 7  ;;  %v510_v18 = vrot.slane %v477_v7, 7  ;;  %v535_v30 = vrot.slane %v482_v28, 7 }
  0xd6   :  { %v459_v6 = vadd.f32 1.0, %v447_v58  ;;  %v513_v8 = vrot.slane %v478_v10, 7  ;;  %v457_v61 = vmul.f32 0.5, %v3870_v29  ;;  %v486_v49 = vrot.slane %v4086_v9, 4  ;;  %692 = vmatpush.msrb.mxu1 %v494_v21 }
  0xd7   :  { %v508_v56 = vsel %vm4082_vm6, %v3287_v3, %v507_v59  ;;  %v509_v25 = vrot.slane %v507_v59, 2  ;;  %v512_v11 = vrot.slane %v510_v18, 2  ;;  %v538_v63 = vrot.slane %v483_v48, 7 }
  0xd8   :  { %v4071_v33 = vmul.f32 %v459_v6, %v453_v34  ;;  %v515_v14 = vrot.slane %v513_v8, 2  ;;  %570 = vst [vmem:[#allocation1] ss:$4 sm:$0xff] %v508_v56  ;;  %v530_v43 = vrot.slane %v528_v19, 2  ;;  %v541_v0 = vrot.slane %v484_v53, 7  ;;  %693 = vmatpush.msrb.mxu1 %v493_v47  ;;  %v749_v47 = vld [vmem:[#allocation4 + $0x90] sm:$0xff] }
  0xd9   :  { %v511_v39 = vsel %vm4082_vm6, %v509_v25, %v510_v18  ;;  %v514_v44 = vsel %vm4082_vm6, %v512_v11, %v513_v8  ;;  %v4129_v2 = vmul.f32 %v463_v22, %v457_v61  ;;  %v544_v58 = vrot.slane %v4086_v9, 7 }
  0xda   :  { %v479_v27 = vrot.slane %v4071_v33, 2  ;;  %v480_v40 = vrot.slane %v4071_v33, 4  ;;  %v481_v24 = vrot.slane %v4071_v33, 6  ;;  %v516_v26 = vrot.slane %v4071_v33, 7  ;;  %572 = vst [vmem:[#allocation1 + $0x1] ss:$4 sm:$0xff] %v511_v39  ;;  %694 = vmatpush.msrb.mxu1 %v492_v1 }
  0xdb   :  { %574 = vst [vmem:[#allocation1 + $0x2] ss:$4 sm:$0xff] %v514_v44  ;;  %v547_v29 = vrot.slane %v485_v62, 7  ;;  %v3288_v34 = vrot.slane %v4088_v20, 9  ;;  %v537_v5 = vrot.slane %v535_v30, 2  ;;  %v487_v6 = vrot.slane %v4086_v9, 6 }
  0xdc   :  { %v519_v35 = vrot.slane %v479_v27, 7  ;;  %v522_v36 = vrot.slane %v480_v40, 7  ;;  %v525_v37 = vrot.slane %v481_v24, 7  ;;  %v517_v45 = vsel %vm4082_vm6, %v515_v14, %v516_v26  ;;  %695 = vmatpush.msrb.mxu1 %v491_v13  ;;  %v489_v14 = vld [vmem:[#allocation4 + $0x8] sm:$0xff]  ;;  %v488_v44 = vld [vmem:[#allocation4] sm:$0xff] }
  0xdd   :  { %v518_v46 = vrot.slane %v516_v26, 2  ;;  %576 = vst [vmem:[#allocation1 + $0x3] ss:$4 sm:$0xff] %v517_v45  ;;  %v550_v42 = vrot.slane %v486_v49, 7  ;;  %v3289_v3 = vrot.slane %v4068_v12, 9  ;;  %v540_v16 = vrot.slane %v538_v63, 2 }
  0xde   :  { %v521_v4 = vrot.slane %v519_v35, 2  ;;  %v524_v52 = vrot.slane %v522_v36, 2  ;;  %v527_v15 = vrot.slane %v525_v37, 2  ;;  %v532_v59 = vsel %vm4082_vm6, %v530_v43, %v3288_v34  ;;  %696 = vmatpush.msrb.mxu1 %v490_v55  ;;  %v747_v1 = vld [vmem:[#allocation4 + $0x80] sm:$0xff] }
  0xdf   :  { %v520_v54 = vsel %vm4082_vm6, %v518_v46, %v519_v35  ;;  %v543_v18 = vrot.slane %v541_v0, 2  ;;  %v546_v23 = vrot.slane %v544_v58, 2  ;;  %v536_v56 = vsel %vm4082_vm6, %v3289_v3, %v535_v30 }
  0xe0   :  { %v523_v57 = vsel %vm4082_vm6, %v521_v4, %v522_v36  ;;  %v526_v60 = vsel %vm4082_vm6, %v524_v52, %v525_v37  ;;  %v529_v32 = vsel %vm4082_vm6, %v527_v15, %v528_v19  ;;  %578 = vst [vmem:[#allocation1 + $0x20] ss:$4 sm:$0xff] %v520_v54  ;;  %v549_v25 = vrot.slane %v547_v29, 2  ;;  %697 = vmatpush.msrb.mxu1 %v489_v14 }
  0xe1   :  { %580 = vst [vmem:[#allocation1 + $0x21] ss:$4 sm:$0xff] %v523_v57  ;;  %v539_v11 = vsel %vm4082_vm6, %v537_v5, %v538_v63  ;;  %v552_v26 = vrot.slane %v550_v42, 2  ;;  %v553_v35 = vrot.slane %v487_v6, 7  ;;  %v556_v36 = vrot.slane %v4129_v2, 7  ;;  %v752_v57 = vld [vmem:[#allocation4 + $0xa8] sm:$0xff] }
  0xe2   :  { %582 = vst [vmem:[#allocation1 + $0x22] ss:$4 sm:$0xff] %v526_v60  ;;  %v542_v37 = vsel %vm4082_vm6, %v540_v16, %v541_v0  ;;  %v545_v38 = vsel %vm4082_vm6, %v543_v18, %v544_v58  ;;  %v548_v45 = vsel %vm4082_vm6, %v546_v23, %v547_v29  ;;  %v551_v46 = vsel %vm4082_vm6, %v549_v25, %v550_v42  ;;  %v4216_v18 = vld [vmem:[#allocation6] ss:$0 sm:$0xff] }
  0xe3   :  { %584 = vst [vmem:[#allocation1 + $0x23] ss:$4 sm:$0xff] %v529_v32  ;;  %v554_v17 = vsel %vm4082_vm6, %v552_v26, %v553_v35  ;;  %v555_v4 = vrot.slane %v553_v35, 2  ;;  %698 = vmatpush.msrb.mxu1 %v488_v44  ;;  %v558_v52 = vrot.slane %v556_v36, 2  ;;  %v3290_v15 = vrot.slane %v4129_v2, 9  ;;  %v751_v32 = vld [vmem:[#allocation4 + $0xa0] sm:$0xff] }
  0xe4   :  { %v585_v8 = vld.sshfl [vmem:[#allocation1] sm:$0xff pattern:$0x73625140]  ;;  %v4219_v25 = vrot.slane %v4216_v18, 2  ;;  %v4225_v14 = vrot.slane %v4216_v18, 6 }
  0xe5   :  { %587 = vst [vmem:[#allocation1] ss:$4 sm:$0xff] %v532_v59  ;;  %3291 = vmatmul.msk.f32.vlgmr.msra.gmra.mxu0 %vm600_vm7, %v585_v8  ;;  %v557_v19 = vsel %vm4082_vm6, %v555_v4, %v556_v36  ;;  %v560_v50 = vsel %vm4082_vm6, %v558_v52, %v3290_v15 }
  0xe6   :  { %588 = vst [vmem:[#allocation1 + $0x1] ss:$4 sm:$0xff] %v536_v56 }
  0xe7   :  { %589 = vst [vmem:[#allocation1 + $0x2] ss:$4 sm:$0xff] %v539_v11  ;;  %v4222_v11 = vrot.slane %v4216_v18, 4 }
  0xe8   :  { %590 = vst [vmem:[#allocation1 + $0x3] ss:$4 sm:$0xff] %v542_v37 }
  0xea   :  { %v586_v39 = vld.sshfl [vmem:[#allocation1 + $0x20] sm:$0xff pattern:$0x73625140] }
  0xeb   :  { %591 = vst [vmem:[#allocation1 + $0x20] ss:$4 sm:$0xff] %v545_v38 }
  0xec   :  { %592 = vst [vmem:[#allocation1 + $0x21] ss:$4 sm:$0xff] %v548_v45 }
  0xed   :  { %593 = vst [vmem:[#allocation1 + $0x22] ss:$4 sm:$0xff] %v551_v46  ;;  %3292 = vmatmul.msk.f32.gmra.mxu0 %vm600_vm7, %v586_v39 }
  0xee   :  { %594 = vst [vmem:[#allocation1 + $0x23] ss:$4 sm:$0xff] %v554_v17 }
  0xef   :  { %v595_v54 = vld.sshfl [vmem:[#allocation1] sm:$0xff pattern:$0x73625140] }
  0xf0   :  { %597 = vst [vmem:[#allocation1] ss:$4 sm:$0xff] %v557_v19 }
  0xf1   :  { %598 = vst [vmem:[#allocation1 + $0x1] ss:$4 sm:$0xff] %v560_v50 }
  0xf5   :  { %v596_v21 = vld.sshfl [vmem:[#allocation1 + $0x20] sm:$0xff pattern:$0x73625140]  ;;  %3293 = vmatmul.msk.f32.gmra.mxu0 %vm600_vm7, %v595_v54 }
  0xf6   :  { %651 = vst [vmem:[#allocation1 + $0x20] ss:$4 sm:$0xff] %v4071_v33 }
  0xf7   :  { %653 = vst [vmem:[#allocation1 + $0x21] ss:$4 sm:$0xff] %v479_v27 }
  0xf8   :  { %655 = vst [vmem:[#allocation1 + $0x22] ss:$4 sm:$0xff] %v480_v40  ;;  %v599_v22 = vld.sshfl [vmem:[#allocation1] sm:$0xff pattern:$0x73625140] }
  0xf9   :  { %657 = vst [vmem:[#allocation1 + $0x23] ss:$4 sm:$0xff] %v481_v24  ;;  %3295 = vmatmul.msk.f32.vlgmr.msra.gmra.mxu1 %vm600_vm7, %v599_v22 }
  0xfa   :  { %643 = vst [vmem:[#allocation1] ss:$4 sm:$0xff] %v4053_v41 }
  0xfb   :  { %645 = vst [vmem:[#allocation1 + $0x1] ss:$4 sm:$0xff] %v476_v51 }
  0xfc   :  { %647 = vst [vmem:[#allocation1 + $0x2] ss:$4 sm:$0xff] %v477_v7 }
  0xfd   :  { %649 = vst [vmem:[#allocation1 + $0x3] ss:$4 sm:$0xff] %v478_v10  ;;  %3294 = vmatmul.msk.f32.gmra.mxu0 %vm600_vm7, %v596_v21 }
 0x100   :  { %v659_v31 = vld.sshfl [vmem:[#allocation1 + $0x20] sm:$0xff pattern:$0x73625140] }
 0x101   :  { %664 = vst [vmem:[#allocation1 + $0x20] ss:$4 sm:$0xff] %v484_v53 }
 0x102   :  { %665 = vst [vmem:[#allocation1 + $0x21] ss:$4 sm:$0xff] %v4086_v9 }
 0x103   :  { %666 = vst [vmem:[#allocation1 + $0x22] ss:$4 sm:$0xff] %v485_v62 }
 0x104   :  { %667 = vst [vmem:[#allocation1 + $0x23] ss:$4 sm:$0xff] %v486_v49  ;;  %v658_v51 = vld.sshfl [vmem:[#allocation1] sm:$0xff pattern:$0x73625140] }
 0x105   :  { %660 = vst [vmem:[#allocation1] ss:$4 sm:$0xff] %v4088_v20  ;;  %3296 = vmatmul.msk.f32.vlgmr.msrb.gmra.mxu1 %vm600_vm7, %v658_v51 }
 0x106   :  { %661 = vst [vmem:[#allocation1 + $0x1] ss:$4 sm:$0xff] %v4068_v12 }
 0x107   :  { %662 = vst [vmem:[#allocation1 + $0x2] ss:$4 sm:$0xff] %v482_v28  ;;  %v754_v28 = vld [vmem:[#allocation4 + $0xb8] sm:$0xff] }
 0x108   :  { %663 = vst [vmem:[#allocation1 + $0x3] ss:$4 sm:$0xff] %v483_v48  ;;  %803 = vmatpush.msra.mxu2 %v754_v28  ;;  %v753_v48 = vld [vmem:[#allocation4 + $0xb0] sm:$0xff] }
 0x10a   :  { %804 = vmatpush.msra.mxu2 %v753_v48 }
 0x10b   :  { %v669_v7 = vld.sshfl [vmem:[#allocation1 + $0x20] sm:$0xff pattern:$0x73625140] }
 0x10c   :  { %716 = vst.sshfl [vmem:[#allocation1 + $0x20] sm:$0xff pattern:$0x73625140] %v4071_v33  ;;  %805 = vmatpush.msra.mxu2 %v752_v57 }
 0x10d   :  { %3297 = vmatmul.msk.f32.gmra.mxu1 %vm600_vm7, %v659_v31 }
 0x10e   :  { %806 = vmatpush.msra.mxu2 %v751_v32 }
 0x10f   :  { %v668_v10 = vld.sshfl [vmem:[#allocation1] sm:$0xff pattern:$0x73625140] }
 0x110   :  { %670 = vst [vmem:[#allocation1] ss:$4 sm:$0xff] %v487_v6 }
 0x111   :  { %671 = vst [vmem:[#allocation1 + $0x1] ss:$4 sm:$0xff] %v4129_v2 }
 0x113   :  { %v724_v27 = vld [vmem:[#allocation1 + $0x20] ss:$4 sm:$0xff]  ;;  %v726_v40 = vld [vmem:[#allocation1 + $0x21] ss:$4 sm:$0xff]  ;;  %v728_v24 = vld [vmem:[#allocation1 + $0x22] ss:$4 sm:$0xff] }
 0x114   :  { %v730_v53 = vld [vmem:[#allocation1 + $0x23] ss:$4 sm:$0xff] }
 0x115   :  { %734 = vst.sshfl [vmem:[#allocation1 + $0x20] sm:$0xff pattern:$0x73625140] %v4068_v12  ;;  %3298 = vmatmul.msk.f32.gmra.mxu1 %vm600_vm7, %v668_v10  ;;  %v750_v12 = vld [vmem:[#allocation4 + $0x98] sm:$0xff] }
 0x116   :  { %807 = vmatpush.msra.mxu2 %v750_v12 }
 0x118   :  { %v672_v33 = vld.sshfl [vmem:[#allocation1] sm:$0xff pattern:$0x73625140]  ;;  %808 = vmatpush.msra.mxu2 %v749_v47 }
 0x119   :  { %715 = vst.sshfl [vmem:[#allocation1] sm:$0xff pattern:$0x73625140] %v4053_v41  ;;  %v748_v41 = vld [vmem:[#allocation4 + $0x88] sm:$0xff] }
 0x11a   :  { %809 = vmatpush.msra.mxu2 %v748_v41 }
 0x11c   :  { %v735_v60 = vld [vmem:[#allocation1 + $0x21] ss:$4 sm:$0xff]  ;;  %v736_v62 = vld [vmem:[#allocation1 + $0x22] ss:$4 sm:$0xff]  ;;  %v737_v30 = vld [vmem:[#allocation1 + $0x23] ss:$4 sm:$0xff]  ;;  %810 = vmatpush.msra.mxu2 %v747_v1 }
 0x11d   :  { %739 = vst.sshfl [vmem:[#allocation1 + $0x20] sm:$0xff pattern:$0x73625140] %v4129_v2  ;;  %3299 = vmatmul.msk.f32.gmra.mxu1 %vm600_vm7, %v669_v7 }
 0x11e   :  { %767 = vst [vmem:[#allocation1 + $0x22] ss:$4 sm:$0xff] %v730_v53 }
 0x120   :  { %v718_v61 = vld [vmem:[#allocation1 + $0x1] ss:$4 sm:$0xff]  ;;  %v720_v49 = vld [vmem:[#allocation1 + $0x2] ss:$4 sm:$0xff]  ;;  %v722_v63 = vld [vmem:[#allocation1 + $0x3] ss:$4 sm:$0xff] }
 0x121   :  { %731 = vst.sshfl [vmem:[#allocation1] sm:$0xff pattern:$0x73625140] %v4088_v20 }
 0x124   :  { %v744_v43 = vld [vmem:[#allocation1 + $0x20] ss:$4 sm:$0xff]  ;;  %v745_v0 = vld [vmem:[#allocation1 + $0x21] ss:$4 sm:$0xff] }
 0x125   :  { %763 = vst [vmem:[#allocation1 + $0x20] ss:$4 sm:$0xff] %v726_v40  ;;  %3300 = vmatmul.msk.f32.gmra.mxu1 %vm600_vm7, %v672_v33 }
 0x126   :  { %765 = vst [vmem:[#allocation1 + $0x21] ss:$4 sm:$0xff] %v728_v24 }
 0x128   :  { %v732_v2 = vld [vmem:[#allocation1] ss:$4 sm:$0xff]  ;;  %v733_v58 = vld [vmem:[#allocation1 + $0x1] ss:$4 sm:$0xff] }
 0x129   :  { %738 = vst.sshfl [vmem:[#allocation1] sm:$0xff pattern:$0x73625140] %v4086_v9 }
 0x12a   :  { %769 = vst [vmem:[#allocation1 + $0x23] ss:$4 sm:$0xff] %v732_v2 }
 0x130   :  { %v740_v29 = vld [vmem:[#allocation1] ss:$4 sm:$0xff]  ;;  %v741_v34 = vld [vmem:[#allocation1 + $0x1] ss:$4 sm:$0xff]  ;;  %v742_v5 = vld [vmem:[#allocation1 + $0x2] ss:$4 sm:$0xff] }
 0x131   :  { %v771_v20 = vld.sshfl [vmem:[#allocation1 + $0x20] sm:$0xff pattern:$0x73625140]  ;;  %755 = vst [vmem:[#allocation1] ss:$4 sm:$0xff] %v718_v61 }
 0x132   :  { %776 = vst [vmem:[#allocation1 + $0x20] ss:$4 sm:$0xff] %v740_v29  ;;  %v743_v13 = vld [vmem:[#allocation1 + $0x3] ss:$4 sm:$0xff] }
 0x133   :  { %777 = vst [vmem:[#allocation1 + $0x21] ss:$4 sm:$0xff] %v741_v34 }
 0x134   :  { %778 = vst [vmem:[#allocation1 + $0x22] ss:$4 sm:$0xff] %v742_v5 }
 0x135   :  { %757 = vst [vmem:[#allocation1 + $0x1] ss:$4 sm:$0xff] %v720_v49 }
 0x136   :  { %759 = vst [vmem:[#allocation1 + $0x2] ss:$4 sm:$0xff] %v722_v63 }
 0x137   :  { %761 = vst [vmem:[#allocation1 + $0x3] ss:$4 sm:$0xff] %v724_v27 }
 0x138   :  { %779 = vst [vmem:[#allocation1 + $0x23] ss:$4 sm:$0xff] %v743_v13 }
 0x13e   :  { %v770_v6 = vld.sshfl [vmem:[#allocation1] sm:$0xff pattern:$0x73625140] }
 0x13f   :  { %772 = vst [vmem:[#allocation1] ss:$4 sm:$0xff] %v733_v58  ;;  %3301 = vmatmul.msk.f32.vlgmr.msra.gmra.mxu2 %vm600_vm7, %v770_v6  ;;  %v781_v42 = vld.sshfl [vmem:[#allocation1 + $0x20] sm:$0xff pattern:$0x73625140] }
 0x140   :  { %773 = vst [vmem:[#allocation1 + $0x1] ss:$4 sm:$0xff] %v735_v60 }
 0x141   :  { %774 = vst [vmem:[#allocation1 + $0x2] ss:$4 sm:$0xff] %v736_v62 }
 0x142   :  { %775 = vst [vmem:[#allocation1 + $0x3] ss:$4 sm:$0xff] %v737_v30 }
 0x147   :  { %3302 = vmatmul.msk.f32.gmra.mxu2 %vm600_vm7, %v771_v20 }
 0x149   :  { %v780_v9 = vld.sshfl [vmem:[#allocation1] sm:$0xff pattern:$0x73625140] }
 0x14a   :  { %782 = vst [vmem:[#allocation1] ss:$4 sm:$0xff] %v744_v43 }
 0x14b   :  { %783 = vst [vmem:[#allocation1 + $0x1] ss:$4 sm:$0xff] %v745_v0 }
 0x14f   :  { %3303 = vmatmul.msk.f32.gmra.mxu2 %vm600_vm7, %v780_v9 }
 0x152   :  { %v784_v3 = vld.sshfl [vmem:[#allocation1] sm:$0xff pattern:$0x73625140] }
 0x157   :  { %3304 = vmatmul.msk.f32.gmra.mxu2 %vm600_vm7, %v781_v42 }
 0x15f   :  { %3305 = vmatmul.msk.f32.gmra.mxu2 %vm600_vm7, %v784_v3 }
 0x162   :  { %v628_v8 = vpop.f32.mrf.mxu0 }
 0x16a   :  { %v631_v10 = vpop.f32.mrf.mxu0 }
 0x176   :  { %v4214_v16 = vpop.f32.mrf.mxu1 }
 0x182   :  { %v700_v59 = vpop.f32.mrf.mxu1 }
 0x183   :  { %v701_v55 = vadd.f32 %v700_v59, %v628_v8 }
 0x18a   :  { %v703_v21 = vpop.f32.mrf.mxu1 }
 0x18b   :  { %v704_v53 = vadd.f32 %v703_v21, %v631_v10 }
 0x1c2   :  { %v812_v23 = vpop.f32.mrf.mxu2 }
 0x1c3   :  { %v827_v56 = vadd.f32 %v812_v23, %v701_v55 }
 0x1c5   :  { %v837_v26 = vrot.slane %v827_v56, 2  ;;  %v838_v35 = vrot.slane %v827_v56, 4  ;;  %v839_v36 = vrot.slane %v827_v56, 6  ;;  %v4228_v37 = vadd.f32 %v4216_v18, %v827_v56 }
 0x1c7   :  { %v4231_v38 = vadd.f32 %v4219_v25, %v837_v26  ;;  %v4234_v39 = vadd.f32 %v4222_v11, %v838_v35  ;;  %v4237_v44 = vadd.f32 %v4225_v14, %v839_v36  ;;  %v4240_v45 = vmul.f32 0.70710677, %v4228_v37 }
 0x1c9   :  { %v4243_v46 = vmul.f32 0.70710677, %v4231_v38  ;;  %v4246_v17 = vmul.f32 0.70710677, %v4234_v39  ;;  %v4249_v4 = vmul.f32 0.70710677, %v4237_v44 }
 0x1ca   :  { %v4252_v52 = vand.u32 2147483647, %v4240_v45  ;;  %v815_v24 = vpop.f32.mrf.mxu2 }
 0x1cb   :  { %v4255_v15 = vand.u32 2147483647, %v4243_v46  ;;  %v4258_v19 = vand.u32 2147483647, %v4246_v17  ;;  %v4261_v54 = vand.u32 2147483647, %v4249_v4  ;;  %v4269_v48 = vadd.f32 %v815_v24, %v704_v53 }
 0x1cc   :  { %v927_v50 = vmul.f32 0.3275911, %v4252_v52 }
 0x1cd   :  { %v928_v22 = vmul.f32 0.3275911, %v4255_v15  ;;  %v929_v31 = vmul.f32 0.3275911, %v4258_v19  ;;  %v930_v51 = vmul.f32 0.3275911, %v4261_v54  ;;  %v4274_v47 = vadd.f32 %v4216_v18, %v4269_v48 }
 0x1ce   :  { %v945_v7 = vadd.f32 1.0, %v927_v50  ;;  %v840_v55 = vrot.slane %v4269_v48, 2  ;;  %v841_v23 = vrot.slane %v4269_v48, 4 }
 0x1cf   :  { %v946_v27 = vadd.f32 1.0, %v928_v22  ;;  %v947_v40 = vadd.f32 1.0, %v929_v31  ;;  %v4267_v28 = vadd.f32 1.0, %v930_v51  ;;  %v4312_v53 = vmul.f32 0.70710677, %v4274_v47 }
 0x1d0   :  { %3462 = vrcp.f32 %v945_v7  ;;  %v972_v33 = vand.u32 2147483647, %v945_v7  ;;  %v974_v57 = vand.u32 2147483648, %v945_v7  ;;  %vm968_vm8 = vweird.f32 %v945_v7 }
 0x1d1   :  { %3464 = vrcp.f32 %v946_v27  ;;  %v987_v60 = vand.u32 2147483647, %v946_v27  ;;  %v989_v62 = vand.u32 2147483648, %v946_v27  ;;  %v1002_v32 = vand.u32 2147483647, %v947_v40 }
 0x1d2   :  { %3466 = vrcp.f32 %v947_v40  ;;  %v1004_v12 = vand.u32 2147483648, %v947_v40  ;;  %vm4276_vm9 = vcmp.eq.f32.partialorder %v972_v33, 8.507059e+37  ;;  %v975_v41 = vor.u32 1.1754944e-38, %v974_v57 }
 0x1d3   :  { %3468 = vrcp.f32 %v4267_v28  ;;  %vm983_vm10 = vweird.f32 %v946_v27  ;;  %vm4280_vm14 = vcmp.eq.f32.partialorder %v987_v60, 8.507059e+37  ;;  %v990_v2 = vor.u32 1.1754944e-38, %v989_v62 }
 0x1d4   :  { %vm998_vm15 = vweird.f32 %v947_v40  ;;  %vm1013_vm0 = vweird.f32 %v4267_v28  ;;  %v1017_v34 = vand.u32 2147483647, %v4267_v28  ;;  %vm4286_vm1 = vcmp.eq.f32.partialorder %v1002_v32, 8.507059e+37 }
 0x1d5   :  { %v1005_v6 = vor.u32 1.1754944e-38, %v1004_v12  ;;  %v1019_v9 = vand.u32 2147483648, %v4267_v28  ;;  %v4300_v21 = vadd.f32 %v4219_v25, %v840_v55  ;;  %v4303_v22 = vadd.f32 %v4222_v11, %v841_v23 }
 0x1d6   :  { %v3463_v30 = vpop.eup %3462  ;;  %vm4295_vm6 = vcmp.eq.f32.partialorder %v1017_v34, 8.507059e+37 }
 0x1d7   :  { %v3465_v61 = vpop.eup %3464  ;;  %v964_v49 = vmul.f32 %v3463_v30, %v945_v7  ;;  %vm969_vm2 = vweird.f32 %v3463_v30  ;;  %v4315_v33 = vmul.f32 0.70710677, %v4300_v21  ;;  %v4330_v12 = vmul.f32 0.70710677, %v4303_v22 }
 0x1d8   :  { %v3467_v43 = vpop.eup %3466  ;;  %v979_v0 = vmul.f32 %v3465_v61, %v946_v27  ;;  %vm984_vm3 = vweird.f32 %v3465_v61  ;;  %vm970_vm5 = vmor %vm968_vm8, %vm969_vm2 }
 0x1d9   :  { %v965_v58 = vsub.f32 1.0, %v964_v49  ;;  %v994_v29 = vmul.f32 %v3467_v43, %v947_v40  ;;  %v3469_v5 = vpop.eup %3468  ;;  %vm999_vm4 = vweird.f32 %v3467_v43  ;;  %vm985_vm7 = vmor %vm983_vm10, %vm984_vm3  ;;  %v1020_v40 = vor.u32 1.1754944e-38, %v1019_v9 }
 0x1da   :  { %v980_v20 = vsub.f32 1.0, %v979_v0  ;;  %v1009_v59 = vmul.f32 %v3469_v5, %v4267_v28  ;;  %vm1014_vm13 = vweird.f32 %v3469_v5  ;;  %vm1000_vm8 = vmor %vm998_vm15, %vm999_vm4  ;;  %v4341_v28 = vand.u32 2147483647, %v4315_v33 }
 0x1db   :  { %v966_v42 = vmul.f32 %v3463_v30, %v965_v58  ;;  %v995_v3 = vsub.f32 1.0, %v994_v29  ;;  %v4347_v34 = vand.u32 2147483647, %v4330_v12  ;;  %vm1485_vm10 = vcmp.lt.f32.partialorder %v4240_v45, 0.0 }
 0x1dc   :  { %v981_v8 = vmul.f32 %v3465_v61, %v980_v20  ;;  %v1010_v35 = vsub.f32 1.0, %v1009_v59  ;;  %v932_v20 = vmul.f32 0.3275911, %v4341_v28  ;;  %v1557_v45 = vmul.f32 0.5, %v4228_v37 }
 0x1dd   :  { %v967_v56 = vadd.f32 %v3463_v30, %v966_v42  ;;  %v996_v26 = vmul.f32 %v3467_v43, %v995_v3  ;;  %v1395_v42 = vsub.f32 0.0, %v4252_v52  ;;  %v933_v50 = vmul.f32 0.3275911, %v4347_v34 }
 0x1de   :  { %v982_v36 = vadd.f32 %v3465_v61, %v981_v8  ;;  %v1011_v10 = vmul.f32 %v3469_v5, %v1010_v35  ;;  %v4355_v8 = vadd.f32 1.0, %v932_v20  ;;  %v1558_v37 = vmul.f32 0.5, %v4231_v38  ;;  %v634_v38 = vpop.f32.mrf.mxu0 }
 0x1df   :  { %v971_v31 = vsel %vm970_vm5, %v3463_v30, %v967_v56  ;;  %v997_v51 = vadd.f32 %v3467_v43, %v996_v26  ;;  %v1396_v26 = vsub.f32 0.0, %v4255_v15 }
 0x1e0   :  { %v4308_v7 = vsel %vm4276_vm9, %v975_v41, %v971_v31  ;;  %v986_v24 = vsel %vm985_vm7, %v3465_v61, %v982_v36  ;;  %v1012_v60 = vadd.f32 %v3469_v5, %v1011_v10  ;;  %vm1015_vm9 = vmor %vm1013_vm0, %vm1014_vm13  ;;  %v4334_v41 = vand.u32 2147483647, %v4312_v53 }
 0x1e1   :  { %v4319_v27 = vsel %vm4280_vm14, %v990_v2, %v986_v24  ;;  %v1001_v57 = vsel %vm1000_vm8, %v3467_v43, %v997_v51  ;;  %v1233_v62 = vmul.f32 1.0614054, %v4308_v7  ;;  %v1397_v36 = vsub.f32 0.0, %v4258_v19 }
 0x1e2   :  { %v4324_v30 = vsel %vm4286_vm1, %v1005_v6, %v1001_v57  ;;  %v1234_v32 = vmul.f32 1.0614054, %v4319_v27  ;;  %v1016_v61 = vsel %vm1015_vm9, %v3469_v5, %v1012_v60  ;;  %v931_v5 = vmul.f32 0.3275911, %v4334_v41 }
 0x1e3   :  { %v1235_v49 = vmul.f32 1.0614054, %v4324_v30  ;;  %v1251_v63 = vadd.f32 -1.4531521, %v1233_v62  ;;  %v4338_v43 = vsel %vm4295_vm6, %v1020_v40, %v1016_v61  ;;  %v1413_v24 = vmul.f32 %v1395_v42, %v4252_v52 }
 0x1e4   :  { %v1252_v0 = vadd.f32 -1.4531521, %v1234_v32  ;;  %v1236_v1 = vmul.f32 1.0614054, %v4338_v43  ;;  %v4353_v59 = vadd.f32 1.0, %v931_v5  ;;  %v1398_v60 = vsub.f32 0.0, %v4261_v54 }
 0x1e5   :  { %v1253_v2 = vadd.f32 -1.4531521, %v1235_v49  ;;  %v1269_v58 = vmul.f32 %v1251_v63, %v4308_v7  ;;  %v1414_v62 = vmul.f32 %v1396_v26, %v4255_v15  ;;  %v4371_v61 = vadd.f32 1.0, %v933_v50 }
 0x1e6   :  { %v1270_v29 = vmul.f32 %v1252_v0, %v4319_v27  ;;  %v1254_v13 = vadd.f32 -1.4531521, %v1236_v1  ;;  %3470 = vrcp.f32 %v4353_v59  ;;  %v1415_v63 = vmul.f32 %v1397_v36, %v4258_v19 }
 0x1e7   :  { %v1271_v6 = vmul.f32 %v1253_v2, %v4324_v30  ;;  %v1287_v9 = vadd.f32 1.4214138, %v1269_v58  ;;  %3472 = vrcp.f32 %v4355_v8  ;;  %v1431_v0 = vmul.f32 1.442695, %v1413_v24 }
 0x1e8   :  { %v1288_v3 = vadd.f32 1.4214138, %v1270_v29  ;;  %v1272_v55 = vmul.f32 %v1254_v13, %v4338_v43  ;;  %v1416_v2 = vmul.f32 %v1398_v60, %v4261_v54  ;;  %v1433_v58 = vmul.f32 1.442695, %v1414_v62 }
 0x1e9   :  { %v1289_v23 = vadd.f32 1.4214138, %v1271_v6  ;;  %v1305_v56 = vmul.f32 %v1287_v9, %v4308_v7  ;;  %3474 = vrcp.f32 %v4371_v61  ;;  %v1435_v19 = vmul.f32 1.442695, %v1415_v63 }
 0x1ea   :  { %v1306_v35 = vmul.f32 %v1288_v3, %v4319_v27  ;;  %v1290_v31 = vadd.f32 1.4214138, %v1272_v55  ;;  %3476 = vpow2.f32 %v1431_v0  ;;  %v1437_v54 = vmul.f32 1.442695, %v1416_v2 }
 0x1eb   :  { %v1307_v51 = vmul.f32 %v1289_v23, %v4324_v30  ;;  %v1323_v10 = vadd.f32 -0.28449672, %v1305_v56  ;;  %3478 = vpow2.f32 %v1433_v58  ;;  %v842_v3 = vrot.slane %v4269_v48, 6 }
 0x1ec   :  { %v1324_v57 = vadd.f32 -0.28449672, %v1306_v35  ;;  %v1308_v40 = vmul.f32 %v1290_v31, %v4338_v43  ;;  %v4374_v1 = vpop.eup %3470  ;;  %3480 = vpow2.f32 %v1435_v19  ;;  %v1032_v36 = vand.u32 2147483647, %v4353_v59 }
 0x1ed   :  { %v1341_v32 = vmul.f32 %v1323_v10, %v4308_v7  ;;  %v1325_v49 = vadd.f32 -0.28449672, %v1307_v51  ;;  %v1024_v15 = vmul.f32 %v4374_v1, %v4353_v59  ;;  %v4380_v29 = vpop.eup %3472  ;;  %v1034_v50 = vand.u32 2147483648, %v4353_v59 }
 0x1ee   :  { %v1342_v52 = vmul.f32 %v1324_v57, %v4319_v27  ;;  %v1326_v5 = vadd.f32 -0.28449672, %v1308_v40  ;;  %v1039_v42 = vmul.f32 %v4380_v29, %v4355_v8  ;;  %vm1029_vm13 = vweird.f32 %v4374_v1 }
 0x1ef   :  { %v1359_v20 = vadd.f32 0.2548296, %v1341_v32  ;;  %v1343_v13 = vmul.f32 %v1325_v49, %v4324_v30  ;;  %v1025_v6 = vsub.f32 1.0, %v1024_v15  ;;  %v3475_v31 = vpop.eup %3474  ;;  %3482 = vpow2.f32 %v1437_v54 }
 0x1f0   :  { %v1360_v9 = vadd.f32 0.2548296, %v1342_v52  ;;  %v1344_v55 = vmul.f32 %v1326_v5, %v4338_v43  ;;  %v1040_v26 = vsub.f32 1.0, %v1039_v42  ;;  %v3477_v24 = vpop.eup %3476  ;;  %vm1028_vm14 = vweird.f32 %v4353_v59 }
 0x1f1   :  { %v1377_v23 = vmul.f32 %v1359_v20, %v4308_v7  ;;  %v1026_v56 = vmul.f32 %v4374_v1, %v1025_v6  ;;  %v1361_v35 = vadd.f32 0.2548296, %v1343_v13  ;;  %v4398_v7 = vadd.f32 %v4225_v14, %v842_v3  ;;  %v3479_v40 = vpop.eup %3478  ;;  %vm4405_vm0 = vmor %vm1028_vm14, %vm1029_vm13 }
 0x1f2   :  { %v1378_v51 = vmul.f32 %v1360_v9, %v4319_v27  ;;  %v1041_v48 = vmul.f32 %v4380_v29, %v1040_v26  ;;  %v1049_v57 = vand.u32 2147483648, %v4355_v8  ;;  %v1362_v60 = vadd.f32 0.2548296, %v1344_v55  ;;  %v3481_v58 = vpop.eup %3480 }
 0x1f3   :  { %v1027_v10 = vadd.f32 %v4374_v1, %v1026_v56  ;;  %v1467_v62 = vmul.f32 %v3477_v24, %v1377_v23  ;;  %vm1044_vm15 = vweird.f32 %v4380_v29  ;;  %v1379_v32 = vmul.f32 %v1361_v35, %v4324_v30 }
 0x1f4   :  { %v1042_v27 = vadd.f32 %v4380_v29, %v1041_v48  ;;  %vm4409_vm1 = vcmp.eq.f32.partialorder %v1032_v36, 8.507059e+37  ;;  %vm1043_vm2 = vweird.f32 %v4355_v8  ;;  %v1054_v59 = vmul.f32 %v3475_v31, %v4371_v61 }
 0x1f5   :  { %v1468_v0 = vmul.f32 %v3479_v40, %v1378_v51  ;;  %v1031_v52 = vsel %vm4405_vm0, %v4374_v1, %v1027_v10  ;;  %v1035_v2 = vor.u32 1.1754944e-38, %v1034_v50  ;;  %v1047_v30 = vand.u32 2147483647, %v4355_v8  ;;  %vm4419_vm3 = vmor %vm1043_vm2, %vm1044_vm15  ;;  %v3483_v8 = vpop.eup %3482 }
 0x1f6   :  { %v1050_v5 = vor.u32 1.1754944e-38, %v1049_v57  ;;  %v1055_v20 = vsub.f32 1.0, %v1054_v59  ;;  %v1062_v13 = vand.u32 2147483647, %v4371_v61  ;;  %v1064_v19 = vand.u32 2147483648, %v4371_v61 }
 0x1f7   :  { %v1380_v6 = vmul.f32 %v1362_v60, %v4338_v43  ;;  %v3306_v9 = vadd.f32 -1.0, %v1467_v62  ;;  %v1521_v42 = vsub.f32 1.0, %v1467_v62  ;;  %v1046_v1 = vsel %vm4419_vm3, %v4380_v29, %v1042_v27 }
 0x1f8   :  { %v1469_v54 = vmul.f32 %v3481_v58, %v1379_v32  ;;  %v4431_v3 = vsel %vm4409_vm1, %v1035_v2, %v1031_v52  ;;  %v1056_v55 = vmul.f32 %v3475_v31, %v1055_v20  ;;  %vm1059_vm4 = vweird.f32 %v3475_v31 }
 0x1f9   :  { %v3307_v23 = vadd.f32 -1.0, %v1468_v0  ;;  %v1522_v56 = vsub.f32 1.0, %v1468_v0  ;;  %v4434_v26 = vmul.f32 0.70710677, %v4398_v7  ;;  %vm1048_vm5 = vcmp.eq.f32.partialorder %v1047_v30, 8.507059e+37 }
 0x1fa   :  { %vm1486_vm6 = vcmp.lt.f32.partialorder %v4243_v46, 0.0  ;;  %v4437_v43 = vsel %vm1048_vm5, %v1050_v5, %v1046_v1  ;;  %v1057_v35 = vadd.f32 %v3475_v31, %v1056_v55  ;;  %vm1058_vm7 = vweird.f32 %v4371_v61 }
 0x1fb   :  { %v1470_v29 = vmul.f32 %v3483_v8, %v1380_v6  ;;  %v1539_v36 = vsel %vm1485_vm10, %v3306_v9, %v1521_v42  ;;  %vm1060_vm8 = vmor %vm1058_vm7, %vm1059_vm4  ;;  %v1065_v50 = vor.u32 1.1754944e-38, %v1064_v19  ;;  %v1237_v51 = vmul.f32 1.0614054, %v4431_v3  ;;  %v706_v19 = vpop.f32.mrf.mxu1 }
 0x1fc   :  { %v3308_v10 = vadd.f32 -1.0, %v1469_v54  ;;  %v1523_v48 = vsub.f32 1.0, %v1469_v54  ;;  %v1061_v24 = vsel %vm1060_vm8, %v3475_v31, %v1057_v35  ;;  %vm1063_vm9 = vcmp.eq.f32.partialorder %v1062_v13, 8.507059e+37 }
 0x1fd   :  { %v1540_v57 = vsel %vm1486_vm6, %v3307_v23, %v1522_v56  ;;  %v4444_v46 = vand.u32 2147483647, %v4434_v26  ;;  %v4446_v60 = vsel %vm1063_vm9, %v1065_v50, %v1061_v24  ;;  %v1238_v61 = vmul.f32 1.0614054, %v4437_v43 }
 0x1fe   :  { %vm1487_vm13 = vcmp.lt.f32.partialorder %v4246_v17, 0.0  ;;  %v1575_v62 = vadd.f32 1.0, %v1539_v36  ;;  %v1239_v27 = vmul.f32 1.0614054, %v4446_v60  ;;  %v3309_v40 = vadd.f32 -1.0, %v1470_v29 }
 0x1ff   :  { %v1524_v32 = vsub.f32 1.0, %v1470_v29  ;;  %v1255_v49 = vadd.f32 -1.4531521, %v1237_v51  ;;  %v1256_v31 = vadd.f32 -1.4531521, %v1238_v61  ;;  %v1541_v63 = vsel %vm1487_vm13, %v3308_v10, %v1523_v48  ;;  %v818_v10 = vpop.f32.mrf.mxu2 }
 0x200   :  { %v1576_v59 = vadd.f32 1.0, %v1540_v57  ;;  %v1257_v0 = vadd.f32 -1.4531521, %v1239_v27  ;;  %v1399_v52 = vsub.f32 0.0, %v4334_v41  ;;  %v934_v2 = vmul.f32 0.3275911, %v4444_v46 }
 0x201   :  { %v1273_v30 = vmul.f32 %v1255_v49, %v4431_v3  ;;  %v1274_v17 = vmul.f32 %v1256_v31, %v4437_v43  ;;  %vm1488_vm10 = vcmp.lt.f32.partialorder %v4249_v4, 0.0  ;;  %v1593_v58 = vmul.f32 %v1575_v62, %v1557_v45 }
 0x202   :  { %v1275_v15 = vmul.f32 %v1257_v0, %v4446_v60  ;;  %v1577_v5 = vadd.f32 1.0, %v1541_v63  ;;  %vm1611_vm14 = vcmask 1041408   ;;  %v1542_v6 = vsel %vm1488_vm10, %v3309_v40, %v1524_v32 }
 0x203   :  { %v1291_v20 = vadd.f32 1.4214138, %v1273_v30  ;;  %v1292_v13 = vadd.f32 1.4214138, %v1274_v17  ;;  %v1594_v9 = vmul.f32 %v1576_v59, %v1558_v37  ;;  %v1417_v1 = vmul.f32 %v1399_v52, %v4334_v41  ;;  %v709_v52 = vpop.f32.mrf.mxu1 }
 0x204   :  { %v1293_v42 = vadd.f32 1.4214138, %v1275_v15  ;;  %v1559_v8 = vmul.f32 0.5, %v4234_v39  ;;  %v4461_v54 = vadd.f32 1.0, %v934_v2  ;;  %v1612_v55 = vsel %vm1611_vm14, %v1593_v58, -inf }
 0x205   :  { %v1309_v4 = vmul.f32 %v1291_v20, %v4431_v3  ;;  %v1310_v23 = vmul.f32 %v1292_v13, %v4437_v43  ;;  %v707_v56 = vadd.f32 %v706_v19, %v634_v38  ;;  %v1578_v35 = vadd.f32 1.0, %v1542_v6 }
 0x206   :  { %v1595_v29 = vmul.f32 %v1577_v5, %v1559_v8  ;;  %v1619_v50 = vsel %vm1611_vm14, %v1594_v9, -inf  ;;  %v1311_v51 = vmul.f32 %v1293_v42, %v4446_v60  ;;  %v1400_v41 = vsub.f32 0.0, %v4341_v28  ;;  %v637_v5 = vpop.f32.mrf.mxu0 }
 0x207   :  { %v1327_v36 = vadd.f32 -0.28449672, %v1309_v4  ;;  %v1439_v39 = vmul.f32 1.442695, %v1417_v1  ;;  %v1613_v48 = vrot.slane %v1612_v55, 4  ;;  %3484 = vrcp.f32 %v4461_v54 }
 0x208   :  { %v1401_v57 = vsub.f32 0.0, %v4347_v34  ;;  %v1560_v61 = vmul.f32 0.5, %v4237_v44  ;;  %v1328_v45 = vadd.f32 -0.28449672, %v1310_v23  ;;  %v1620_v62 = vrot.slane %v1619_v50, 4 }
 0x209   :  { %v1345_v24 = vmul.f32 %v1327_v36, %v4431_v3  ;;  %v1626_v27 = vsel %vm1611_vm14, %v1595_v29, -inf  ;;  %v829_v32 = vadd.f32 %v818_v10, %v707_v56  ;;  %v1329_v49 = vadd.f32 -0.28449672, %v1311_v51 }
 0x20a   :  { %v1418_v31 = vmul.f32 %v1400_v41, %v4341_v28  ;;  %3486 = vpow2.f32 %v1439_v39  ;;  %v1596_v63 = vmul.f32 %v1578_v35, %v1560_v61  ;;  %v1614_v59 = vmax.f32 %v1612_v55, %v1613_v48 }
 0x20b   :  { %v1363_v40 = vadd.f32 0.2548296, %v1345_v24  ;;  %v1419_v0 = vmul.f32 %v1401_v57, %v4347_v34  ;;  %v1627_v2 = vrot.slane %v1626_v27, 4  ;;  %v1346_v30 = vmul.f32 %v1328_v45, %v4437_v43 }
 0x20c   :  { %v845_v17 = vrot.slane %v829_v32, 6  ;;  %v4478_v44 = vadd.f32 %v4216_v18, %v829_v32  ;;  %v1621_v58 = vmax.f32 %v1619_v50, %v1620_v62  ;;  %v1347_v28 = vmul.f32 %v1329_v49, %v4446_v60 }
 0x20d   :  { %v4480_v37 = vpop.eup %3484  ;;  %v1381_v15 = vmul.f32 %v1363_v40, %v4431_v3  ;;  %v1441_v20 = vmul.f32 1.442695, %v1418_v31  ;;  %v4490_v19 = vadd.f32 %v709_v52, %v637_v5  ;;  %v1633_v6 = vsel %vm1611_vm14, %v1596_v63, -inf }
 0x20e   :  { %v4485_v13 = vadd.f32 %v4222_v11, %v845_v17  ;;  %v4488_v34 = vmul.f32 0.70710677, %v4478_v44  ;;  %v1443_v9 = vmul.f32 1.442695, %v1419_v0  ;;  %v1615_v1 = vrot.slane %v1614_v59, 2 }
 0x20f   :  { %v1628_v8 = vmax.f32 %v1626_v27, %v1627_v2  ;;  %v1069_v3 = vmul.f32 %v4480_v37, %v4461_v54  ;;  %v1364_v4 = vadd.f32 0.2548296, %v1346_v30  ;;  %v843_v55 = vrot.slane %v829_v32, 2  ;;  %v712_v27 = vpop.f32.mrf.mxu1 }
 0x210   :  { %v3487_v42 = vpop.eup %3486  ;;  %v4496_v23 = vmul.f32 0.70710677, %v4485_v13  ;;  %v4499_v56 = vand.u32 2147483647, %v4488_v34  ;;  %v1622_v35 = vrot.slane %v1621_v58, 2  ;;  %v1634_v29 = vrot.slane %v1633_v6, 4 }
 0x211   :  { %v1471_v38 = vmul.f32 %v3487_v42, %v1381_v15  ;;  %v1365_v36 = vadd.f32 0.2548296, %v1347_v28  ;;  %3488 = vpow2.f32 %v1441_v20  ;;  %v1402_v50 = vsub.f32 0.0, %v4444_v46  ;;  %v821_v42 = vpop.f32.mrf.mxu2 }
 0x212   :  { %3490 = vpow2.f32 %v1443_v9  ;;  %v844_v51 = vrot.slane %v829_v32, 4  ;;  %v4503_v41 = vand.u32 2147483647, %v4496_v23  ;;  %v1616_v39 = vmax.f32 %v1614_v59, %v1615_v1 }
 0x213   :  { %v1070_v10 = vsub.f32 1.0, %v1069_v3  ;;  %v1382_v48 = vmul.f32 %v1364_v4, %v4437_v43  ;;  %v935_v24 = vmul.f32 0.3275911, %v4499_v56  ;;  %v3310_v57 = vadd.f32 -1.0, %v1471_v38 }
 0x214   :  { %v1525_v61 = vsub.f32 1.0, %v1471_v38  ;;  %v4508_v45 = vadd.f32 %v4216_v18, %v843_v55  ;;  %v938_v62 = vmul.f32 0.3275911, %v4503_v41  ;;  %v1629_v40 = vrot.slane %v1628_v8, 2 }
 0x215   :  { %v1079_v32 = vand.u32 2147483648, %v4461_v54  ;;  %v1383_v49 = vmul.f32 %v1365_v36, %v4446_v60  ;;  %v4513_v31 = vadd.f32 1.0, %v935_v24  ;;  %v4515_v63 = vmax.f32 %v1633_v6, %v1634_v29 }
 0x216   :  { %v1420_v43 = vmul.f32 %v1402_v50, %v4444_v46  ;;  %v4519_v59 = vadd.f32 %v4219_v25, %v844_v51  ;;  %v4521_v0 = vadd.f32 1.0, %v938_v62  ;;  %v1617_v2 = vrot.slane %v1616_v39, 1 }
 0x217   :  { %v3489_v52 = vpop.eup %3488  ;;  %v1071_v30 = vmul.f32 %v4480_v37, %v1070_v10  ;;  %vm1489_vm15 = vcmp.lt.f32.partialorder %v4312_v53, 0.0  ;;  %3492 = vrcp.f32 %v4513_v31  ;;  %v4527_v17 = vadd.f32 %v712_v27, %v4214_v16 }
 0x218   :  { %v3491_v60 = vpop.eup %3490  ;;  %v1472_v15 = vmul.f32 %v3489_v52, %v1382_v48  ;;  %v1543_v5 = vsel %vm1489_vm15, %v3310_v57, %v1525_v61  ;;  %v4530_v46 = vmul.f32 0.70710677, %v4508_v45  ;;  %v4532_v28 = vmax.f32 %v1621_v58, %v1622_v35 }
 0x219   :  { %v4535_v6 = vor.u32 1.1754944e-38, %v1079_v32  ;;  %v1473_v9 = vmul.f32 %v3491_v60, %v1383_v49  ;;  %v4537_v53 = vmax.f32 %v1628_v8, %v1629_v40  ;;  %v1445_v1 = vmul.f32 1.442695, %v1420_v43 }
 0x21a   :  { %6828 = vst [vmem:[#allocation13_spill] sm:$0xff] %v4530_v46  ;;  %v4540_v3 = vmul.f32 0.70710677, %v4519_v59  ;;  %3494 = vrcp.f32 %v4521_v0  ;;  %v4543_v16 = vmax.f32 %v1616_v39, %v1617_v2  ;;  %v4547_v58 = vadd.f32 %v4480_v37, %v1071_v30 }
 0x21b   :  { %v1579_v38 = vadd.f32 1.0, %v1543_v5  ;;  %v3311_v55 = vadd.f32 -1.0, %v1472_v15  ;;  %v1526_v35 = vsub.f32 1.0, %v1472_v15  ;;  %v4550_v29 = vand.u32 2147483647, %v4530_v46 }
 0x21c   :  { %6829 = vst [vmem:[#allocation14_spill] sm:$0xff] %v4543_v16  ;;  %v4553_v8 = vadd.f32 %v821_v42, %v4490_v19  ;;  %vm1490_vm0 = vcmp.lt.f32.partialorder %v4315_v33, 0.0  ;;  %v3312_v50 = vadd.f32 -1.0, %v1473_v9  ;;  %v1527_v51 = vsub.f32 1.0, %v1473_v9 }
 0x21d   :  { %v3493_v36 = vpop.eup %3492  ;;  %v1561_v39 = vmul.f32 0.5, %v4274_v47  ;;  %3496 = vpow2.f32 %v1445_v1  ;;  %vm1491_vm1 = vcmp.lt.f32.partialorder %v4330_v12, 0.0  ;;  %v4559_v10 = vand.u32 2147483647, %v4540_v3 }
 0x21e   :  { %v1084_v48 = vmul.f32 %v3493_v36, %v4513_v31  ;;  %v1562_v24 = vmul.f32 0.5, %v4300_v21  ;;  %v4564_v19 = vmul.f32 0.5, %v4303_v22  ;;  %v4567_v57 = vmul.f32 0.5, %v4398_v7 }
 0x21f   :  { %v1597_v33 = vmul.f32 %v1579_v38, %v1561_v39  ;;  %v1544_v62 = vsel %vm1490_vm0, %v3311_v55, %v1526_v35  ;;  %v936_v47 = vmul.f32 0.3275911, %v4550_v29  ;;  %v846_v12 = vrot.slane %v4553_v8, 2 }
 0x220   :  { %v3495_v61 = vpop.eup %3494  ;;  %v1085_v27 = vsub.f32 1.0, %v1084_v48  ;;  %v1545_v40 = vsel %vm1491_vm1, %v3312_v50, %v1527_v51  ;;  %v1094_v32 = vand.u32 2147483648, %v4513_v31  ;;  %v4574_v21 = vmul.f32 0.5, %v4478_v44 }
 0x221   :  { %v1129_v49 = vmul.f32 %v3495_v61, %v4521_v0  ;;  %v937_v22 = vmul.f32 0.3275911, %v4559_v10  ;;  %vm1089_vm2 = vweird.f32 %v3493_v36  ;;  %v1092_v43 = vand.u32 2147483647, %v4513_v31 }
 0x222   :  { %v1086_v7 = vmul.f32 %v3493_v36, %v1085_v27  ;;  %v1580_v52 = vadd.f32 1.0, %v1544_v62  ;;  %v1640_v2 = vsel %vm1611_vm14, %v1597_v33, -inf  ;;  %v1403_v60 = vsub.f32 0.0, %v4499_v56 }
 0x223   :  { %v1130_v30 = vsub.f32 1.0, %v1129_v49  ;;  %v4580_v15 = vpop.eup %3496  ;;  %v4582_v5 = vadd.f32 1.0, %v936_v47  ;;  %vm1088_vm3 = vweird.f32 %v4513_v31  ;;  %v1139_v44 = vand.u32 2147483648, %v4521_v0 }
 0x224   :  { %v1087_v9 = vadd.f32 %v3493_v36, %v1086_v7  ;;  %vm1090_vm4 = vmor %vm1088_vm3, %vm1089_vm2  ;;  %v1095_v42 = vor.u32 1.1754944e-38, %v1094_v32  ;;  %vm1134_vm5 = vweird.f32 %v3495_v61  ;;  %v1137_v38 = vand.u32 2147483647, %v4521_v0 }
 0x225   :  { %v1131_v1 = vmul.f32 %v3495_v61, %v1130_v30  ;;  %v4587_v55 = vadd.f32 1.0, %v937_v22  ;;  %vm1093_vm6 = vcmp.eq.f32.partialorder %v1092_v43, 8.507059e+37  ;;  %v847_v50 = vrot.slane %v4553_v8, 4 }
 0x226   :  { %v1091_v35 = vsel %vm1090_vm4, %v3493_v36, %v1087_v9  ;;  %vm1133_vm7 = vweird.f32 %v4521_v0  ;;  %v4595_v31 = vadd.f32 %v4225_v14, %v4553_v8  ;;  %v1140_v48 = vor.u32 1.1754944e-38, %v1139_v44 }
 0x227   :  { %v4590_v51 = vsel %vm1093_vm6, %v1095_v42, %v1091_v35  ;;  %v1132_v39 = vadd.f32 %v3495_v61, %v1131_v1  ;;  %vm1135_vm8 = vmor %vm1133_vm7, %vm1134_vm5  ;;  %v4599_v62 = vadd.f32 %v4216_v18, %v846_v12  ;;  %v4602_v36 = vadd.f32 %v4219_v25, %v847_v50 }
 0x228   :  { %v1241_v33 = vmul.f32 1.0614054, %v4590_v51  ;;  %vm1138_vm9 = vcmp.eq.f32.partialorder %v1137_v38, 8.507059e+37  ;;  %v848_v27 = vrot.slane %v4553_v8, 6  ;;  %v4606_v0 = vmul.f32 0.70710677, %v4595_v31 }
 0x229   :  { %6830 = vst [vmem:[#allocation15_spill] sm:$0xff] %v4602_v36  ;;  %v1136_v47 = vsel %vm1135_vm8, %v3495_v61, %v1132_v39  ;;  %v1598_v32 = vmul.f32 %v1580_v52, %v1562_v24  ;;  %v4611_v7 = vmul.f32 0.70710677, %v4599_v62  ;;  %3498 = vrcp.f32 %v4582_v5 }
 0x22a   :  { %v4608_v49 = vsel %vm1138_vm9, %v1140_v48, %v1136_v47  ;;  %v1259_v22 = vadd.f32 -1.4531521, %v1241_v33  ;;  %v4616_v25 = vmul.f32 0.70710677, %v4602_v36  ;;  %v4619_v61 = vand.u32 2147483647, %v4606_v0 }
 0x22b   :  { %v1244_v18 = vmul.f32 1.0614054, %v4608_v49  ;;  %v1641_v8 = vrot.slane %v1640_v2, 4  ;;  %3500 = vrcp.f32 %v4587_v55  ;;  %v4624_v12 = vand.u32 2147483647, %v4611_v7 }
 0x22c   :  { %6831 = vst [vmem:[#allocation16_spill] sm:$0xff] %v4616_v25  ;;  %v1277_v24 = vmul.f32 %v1259_v22, %v4590_v51  ;;  %v1581_v43 = vadd.f32 1.0, %v1545_v40  ;;  %v4627_v30 = vadd.f32 %v4222_v11, %v848_v27  ;;  %v939_v9 = vmul.f32 0.3275911, %v4619_v61 }
 0x22d   :  { %v1262_v52 = vadd.f32 -1.4531521, %v1244_v18  ;;  %v4631_v44 = vsel %vm1611_vm14, %v1598_v32, -inf  ;;  %v1404_v1 = vsub.f32 0.0, %v4550_v29  ;;  %v940_v38 = vmul.f32 0.3275911, %v4624_v12 }
 0x22e   :  { %6832 = vst [vmem:[#allocation17_spill] sm:$0xff] %v4627_v30  ;;  %v1295_v42 = vadd.f32 1.4214138, %v1277_v24  ;;  %v1405_v50 = vsub.f32 0.0, %v4559_v10  ;;  %v4638_v40 = vand.u32 2147483647, %v4616_v25  ;;  %v4642_v11 = vmax.f32 %v1640_v2, %v1641_v8 }
 0x22f   :  { %v1280_v35 = vmul.f32 %v1262_v52, %v4608_v49  ;;  %v4640_v39 = vadd.f32 1.0, %v939_v9  ;;  %v1421_v33 = vmul.f32 %v1403_v60, %v4499_v56  ;;  %v4646_v47 = vadd.f32 1.0, %v940_v38  ;;  %v4648_v27 = vpop.eup %3498 }
 0x230   :  { %v1313_v48 = vmul.f32 %v1295_v42, %v4590_v51  ;;  %v1109_v32 = vand.u32 2147483648, %v4582_v5  ;;  %v4652_v18 = vmul.f32 0.70710677, %v4627_v30  ;;  %v1406_v8 = vsub.f32 0.0, %v4503_v41 }
 0x231   :  { %v1298_v22 = vadd.f32 1.4214138, %v1280_v35  ;;  %3502 = vrcp.f32 %v4640_v39  ;;  %v4655_v24 = vpop.eup %3500  ;;  %v1422_v52 = vmul.f32 %v1404_v1, %v4550_v29  ;;  %v1124_v56 = vand.u32 2147483648, %v4587_v55 }
 0x232   :  { %6833 = vst [vmem:[#allocation18_spill] sm:$0xff] %v4652_v18  ;;  %v1331_v2 = vadd.f32 -0.28449672, %v1313_v48  ;;  %3504 = vrcp.f32 %v4646_v47  ;;  %v1423_v9 = vmul.f32 %v1405_v50, %v4559_v10  ;;  %v941_v42 = vmul.f32 0.3275911, %v4638_v40 }
 0x233   :  { %v1316_v60 = vmul.f32 %v1298_v22, %v4608_v49  ;;  %v4665_v38 = vmul.f32 %v1581_v43, %v4564_v19  ;;  %v4669_v35 = vmul.f32 %v4648_v27, %v4582_v5  ;;  %v1447_v29 = vmul.f32 1.442695, %v1421_v33 }
 0x234   :  { %v1349_v48 = vmul.f32 %v1331_v2, %v4590_v51  ;;  %v4675_v4 = vmul.f32 %v4655_v24, %v4587_v55  ;;  %v4678_v10 = vand.u32 2147483647, %v4652_v18  ;;  %v1424_v50 = vmul.f32 %v1406_v8, %v4503_v41 }
 0x235   :  { %v1334_v22 = vadd.f32 -0.28449672, %v1316_v60  ;;  %v1449_v20 = vmul.f32 1.442695, %v1422_v52  ;;  %v4683_v2 = vor.u32 1.1754944e-38, %v1109_v32  ;;  %v4685_v33 = vor.u32 1.1754944e-38, %v1124_v56 }
 0x236   :  { %v4687_v1 = vmul.f32 1.442695, %v1423_v9  ;;  %v4689_v36 = vadd.f32 1.0, %v941_v42  ;;  %v1367_v25 = vadd.f32 0.2548296, %v1349_v48  ;;  %3506 = vpow2.f32 %v1447_v29 }
 0x237   :  { %v3503_v30 = vpop.eup %3502  ;;  %v1352_v41 = vmul.f32 %v1334_v22, %v4608_v49  ;;  %v942_v32 = vmul.f32 0.3275911, %v4678_v10  ;;  %3508 = vpow2.f32 %v1449_v20  ;;  %v1453_v52 = vmul.f32 1.442695, %v1424_v50 }
 0x238   :  { %v3505_v60 = vpop.eup %3504  ;;  %v1144_v19 = vmul.f32 %v3503_v30, %v4640_v39  ;;  %v1152_v9 = vand.u32 2147483647, %v4640_v39  ;;  %v1154_v42 = vand.u32 2147483648, %v4640_v39  ;;  %v1167_v48 = vand.u32 2147483647, %v4646_v47 }
 0x239   :  { %v1159_v8 = vmul.f32 %v3505_v60, %v4646_v47  ;;  %3510 = vrcp.f32 %v4689_v36  ;;  %v1385_v29 = vmul.f32 %v1367_v25, %v4590_v51  ;;  %vm1149_vm13 = vweird.f32 %v3503_v30 }
 0x23a   :  { %v1145_v56 = vsub.f32 1.0, %v1144_v19  ;;  %v1169_v22 = vand.u32 2147483648, %v4646_v47  ;;  %v1370_v16 = vadd.f32 0.2548296, %v1352_v41  ;;  %v4703_v46 = vadd.f32 1.0, %v942_v32  ;;  %v824_v41 = vpop.f32.mrf.mxu2 }
 0x23b   :  { %v1160_v18 = vsub.f32 1.0, %v1159_v8  ;;  %vm1164_vm10 = vweird.f32 %v3505_v60  ;;  %3512 = vpow2.f32 %v1453_v52  ;;  %v4706_v50 = vmul.f32 0.5, %v4508_v45 }
 0x23c   :  { %v1146_v43 = vmul.f32 %v3503_v30, %v1145_v56  ;;  %v3507_v19 = vpop.eup %3506  ;;  %vm1148_vm15 = vweird.f32 %v4640_v39  ;;  %vm1493_vm0 = vcmp.lt.f32.partialorder %v4488_v34, 0.0  ;;  %vm1153_vm2 = vcmp.eq.f32.partialorder %v1152_v9, 8.507059e+37  ;;  %v3352_v34 = vld [vmem:[%s6754_s5 + $0x160] sm:$0xff] }
 0x23d   :  { %v1161_v20 = vmul.f32 %v3505_v60, %v1160_v18  ;;  %6834 = vst [vmem:[#allocation19_spill] sm:$0xff] %v4706_v50  ;;  %vm1150_vm1 = vmor %vm1148_vm15, %vm1149_vm13  ;;  %v1155_v51 = vor.u32 1.1754944e-38, %v1154_v42  ;;  %vm1163_vm3 = vweird.f32 %v4646_v47  ;;  %v4711_v32 = vpop.eup %3508  ;;  %v1475_v18 = vmul.f32 %v3507_v19, %v1385_v29 }
 0x23e   :  { %v1147_v8 = vadd.f32 %v3503_v30, %v1146_v43  ;;  %6835 = vst [vmem:[#allocation20_spill] sm:$0xff] %v4711_v32  ;;  %vm1165_vm4 = vmor %vm1163_vm3, %vm1164_vm10  ;;  %vm1168_vm5 = vcmp.eq.f32.partialorder %v1167_v48, 8.507059e+37  ;;  %v1170_v45 = vor.u32 1.1754944e-38, %v1169_v22  ;;  %v1388_v39 = vmul.f32 %v1370_v16, %v4608_v49  ;;  %v3339_v16 = vld [vmem:[%s6754_s5 + $0xf8] sm:$0xff] }
 0x23f   :  { %v1162_v25 = vadd.f32 %v3505_v60, %v1161_v20  ;;  %v4714_v43 = vpop.eup %3510  ;;  %3514 = vrcp.f32 %v4703_v46  ;;  %v4721_v47 = vmul.f32 0.5, %v4519_v59  ;;  %v4724_v42 = vmul.f32 0.5, %v4485_v13  ;;  %v1753_v49 = vld [vmem:[%s6754_s5 + $0x78] sm:$0xff]  ;;  %1803 = vmatpush.msra.mxu3 %v3339_v16 }
 0x240   :  { %v1151_v56 = vsel %vm1150_vm1, %v3503_v30, %v1147_v8  ;;  %v4729_v48 = vadd.f32 %v824_v41, %v4527_v17  ;;  %v3355_v59 = vld [vmem:[%s6754_s5 + $0x178] sm:$0xff]  ;;  %v1184_v13 = vand.u32 2147483648, %v4689_v36  ;;  %v1407_v17 = vsub.f32 0.0, %v4619_v61  ;;  %1842 = vmatpush.msrb.mxu0 %v1753_v49 }
 0x241   :  { %v4717_v52 = vsel %vm1153_vm2, %v1155_v51, %v1151_v56  ;;  %v1166_v9 = vsel %vm1165_vm4, %v3505_v60, %v1162_v25  ;;  %6836 = vst [vmem:[#allocation21_spill] sm:$0xff] %v4721_v47  ;;  %v3513_v22 = vpop.eup %3512  ;;  %vm1074_vm6 = vweird.f32 %v4480_v37  ;;  %v3314_v20 = vadd.f32 -1.0, %v1475_v18  ;;  %1898 = vmatpush.msra.mxu1 %v3355_v59  ;;  %v3338_v25 = vld [vmem:[%s6754_s5 + $0xf0] sm:$0xff] }
 0x242   :  { %v4726_v30 = vsel %vm1168_vm5, %v1170_v45, %v1166_v9  ;;  %v1245_v60 = vmul.f32 1.0614054, %v4717_v52  ;;  %v1529_v19 = vsub.f32 1.0, %v1475_v18  ;;  %v4747_v8 = vmul.f32 %v4714_v43, %v4689_v36  ;;  %1804 = vmatpush.msra.mxu3 %v3338_v25  ;;  %v3337_v18 = vld [vmem:[%s6754_s5 + $0xe8] sm:$0xff]  ;;  %v1750_v25 = vld [vmem:[%s6754_s5 + $0x60] sm:$0xff] }
 0x243   :  { %v1246_v29 = vmul.f32 1.0614054, %v4726_v30  ;;  %v1199_v51 = vand.u32 2147483648, %v4703_v46  ;;  %v4753_v41 = vmul.f32 %v3513_v22, %v1388_v39  ;;  %vm1073_vm7 = vweird.f32 %v4461_v54  ;;  %v1752_v39 = vld [vmem:[%s6754_s5 + $0x70] sm:$0xff]  ;;  %v1751_v9 = vld [vmem:[%s6754_s5 + $0x68] sm:$0xff] }
 0x244   :  { %v1263_v56 = vadd.f32 -1.4531521, %v1245_v60  ;;  %v1408_v16 = vsub.f32 0.0, %v4624_v12  ;;  %v4760_v49 = vmul.f32 0.5, %v4595_v31  ;;  %v4764_v59 = vadd.f32 %v4225_v14, %v4729_v48  ;;  %v3354_v60 = vld [vmem:[%s6754_s5 + $0x170] sm:$0xff]  ;;  %1843 = vmatpush.msrb.mxu0 %v1752_v39  ;;  %1805 = vmatpush.msra.mxu3 %v3337_v18  ;;  %vm4874_vm1 = vmor %vm1073_vm7, %vm1074_vm6 }
 0x245   :  { %v1264_v45 = vadd.f32 -1.4531521, %v1246_v29  ;;  %v4772_v29 = vpop.eup %3514  ;;  %vm1496_vm8 = vcmp.lt.f32.partialorder %v4496_v23, 0.0  ;;  %v1425_v14 = vmul.f32 %v1407_v17, %v4619_v61  ;;  %1899 = vmatpush.msra.mxu1 %v3354_v60  ;;  %vm1119_vm9 = vweird.f32 %v4655_v24  ;;  %v3336_v60 = vld [vmem:[%s6754_s5 + $0xe0] sm:$0xff] }
 0x246   :  { %6837 = vst [vmem:[#allocation22_spill] sm:$0xff] %v4760_v49  ;;  %v1281_v22 = vmul.f32 %v1263_v56, %v4717_v52  ;;  %v3353_v56 = vld [vmem:[%s6754_s5 + $0x168] sm:$0xff]  ;;  %v1175_v61 = vsub.f32 1.0, %v4747_v8  ;;  %v4792_v17 = vor.u32 1.1754944e-38, %v1184_v13  ;;  %v4794_v39 = vor.u32 1.1754944e-38, %v1199_v51  ;;  %1844 = vmatpush.msrb.mxu0 %v1751_v9  ;;  %1806 = vmatpush.msra.mxu3 %v3336_v60  ;;  %v1749_v9 = vld [vmem:[%s6754_s5 + $0x58] sm:$0xff] }
 0x247   :  { %6838 = vst [vmem:[#allocation23_spill] sm:$0xff] %v4764_v59  ;;  %v1282_v31 = vmul.f32 %v1264_v45, %v4726_v30  ;;  %v1547_v45 = vsel %vm1493_vm0, %v3314_v20, %v1529_v19  ;;  %v3317_v20 = vadd.f32 -1.0, %v4753_v41  ;;  %v849_v8 = vrot.slane %v4729_v48, 2  ;;  %1900 = vmatpush.msra.mxu1 %v3353_v56  ;;  %v3335_v48 = vld [vmem:[%s6754_s5 + $0xd8] sm:$0xff]  ;;  %v3630_v60 = vld [vmem:[#allocation6] ss:$0 sm:$0xff] }
 0x248   :  { %6839 = vst [vmem:[#allocation24_spill] sm:$0xff] %v4792_v17  ;;  %v1299_v19 = vadd.f32 1.4214138, %v1281_v22  ;;  %vm1118_vm13 = vweird.f32 %v4587_v55  ;;  %v1532_v51 = vsub.f32 1.0, %v4753_v41  ;;  %v4811_v18 = vmul.f32 %v4772_v29, %v4703_v46  ;;  %v3351_v41 = vld [vmem:[%s6754_s5 + $0x158] sm:$0xff]  ;;  %1845 = vmatpush.msrb.mxu0 %v1750_v25  ;;  %1807 = vmatpush.msra.mxu3 %v3335_v48  ;;  %v3334_v25 = vld [vmem:[%s6754_s5 + $0xd0] sm:$0xff] }
 0x249   :  { %6840 = vst [vmem:[#allocation25_spill] sm:$0xff] %v4794_v39  ;;  %v1300_v13 = vadd.f32 1.4214138, %v1282_v31  ;;  %v1426_v50 = vmul.f32 %v1408_v16, %v4624_v12  ;;  %v4815_v32 = vmul.f32 0.70710677, %v4764_v59  ;;  %v4834_v59 = vadd.f32 %v3630_v60, %v849_v8  ;;  %1901 = vmatpush.msra.mxu1 %v3352_v34  ;;  %v3349_v60 = vld [vmem:[%s6754_s5 + $0x148] sm:$0xff]  ;;  %vm4926_vm2 = vmor %vm1118_vm13, %vm1119_vm9 }
 0x24a   :  { %v6841_v22 = vand.u32 2147483647, %v4461_v54  ;;  %v1317_v16 = vmul.f32 %v1299_v19, %v4717_v52  ;;  %v1455_v56 = vmul.f32 1.442695, %v1425_v14  ;;  %v6845_v39 = vsub.f32 1.0, %v4669_v35  ;;  %v1748_v35 = vld [vmem:[%s6754_s5 + $0x50] sm:$0xff]  ;;  %1846 = vmatpush.msrb.mxu0 %v1749_v9  ;;  %1808 = vmatpush.msra.mxu3 %v3334_v25 }
 0x24b   :  { %v1318_v31 = vmul.f32 %v1300_v13, %v4726_v30  ;;  %6844 = vst [vmem:[#allocation26_spill] sm:$0xff] %v4834_v59  ;;  %vm1104_vm15 = vweird.f32 %v4648_v27  ;;  %v1583_v47 = vadd.f32 1.0, %v1547_v45  ;;  %v4844_v19 = vand.u32 2147483647, %v4815_v32  ;;  %v3350_v14 = vld [vmem:[%s6754_s5 + $0x150] sm:$0xff]  ;;  %1902 = vmatpush.msra.mxu1 %v3351_v41  ;;  %v1747_v9 = vld [vmem:[%s6754_s5 + $0x48] sm:$0xff] }
 0x24c   :  { %vm4828_vm10 = vcmp.eq.f32.partialorder %v6841_v22, 8.507059e+37  ;;  %v1101_v17 = vmul.f32 %v4648_v27, %v6845_v39  ;;  %v6846_v22 = vsub.f32 1.0, %v4675_v4  ;;  %3516 = vpow2.f32 %v4687_v1  ;;  %v3333_v1 = vld [vmem:[%s6754_s5 + $0xc8] sm:$0xff]  ;;  %1847 = vmatpush.msrb.mxu0 %v1748_v35  ;;  %v1746_v35 = vld [vmem:[%s6754_s5 + $0x40] sm:$0xff] }
 0x24d   :  { %v1335_v4 = vadd.f32 -0.28449672, %v1317_v16  ;;  %v1336_v45 = vadd.f32 -0.28449672, %v1318_v31  ;;  %v4857_v39 = vmul.f32 0.70710677, %v4834_v59  ;;  %vm1103_vm0 = vweird.f32 %v4582_v5  ;;  %1903 = vmatpush.msra.mxu1 %v3350_v14  ;;  %1809 = vmatpush.msra.mxu3 %v3333_v1 }
 0x24e   :  { %v1116_v49 = vmul.f32 %v4655_v24, %v6846_v22  ;;  %v1176_v34 = vmul.f32 %v4714_v43, %v1175_v61  ;;  %v1190_v13 = vsub.f32 1.0, %v4811_v18  ;;  %v1410_v8 = vsub.f32 0.0, %v4678_v10  ;;  %v3348_v14 = vld [vmem:[%s6754_s5 + $0x140] sm:$0xff]  ;;  %1848 = vmatpush.msrb.mxu0 %v1747_v9  ;;  %vm4982_vm4 = vmor %vm1103_vm0, %vm1104_vm15 }
 0x24f   :  { %v943_v48 = vmul.f32 0.3275911, %v4844_v19  ;;  %v1353_v18 = vmul.f32 %v1335_v4, %v4717_v52  ;;  %v1354_v41 = vmul.f32 %v1336_v45, %v4726_v30  ;;  %v1457_v16 = vmul.f32 1.442695, %v1426_v50  ;;  %v3332_v50 = vld [vmem:[%s6754_s5 + $0xc0] sm:$0xff]  ;;  %1904 = vmatpush.msra.mxu1 %v3349_v60  ;;  %v3330_v60 = vld [vmem:[%s6754_s5 + $0xb0] sm:$0xff] }
 0x250   :  { %v4881_v31 = vand.u32 2147483647, %v4857_v39  ;;  %v1550_v54 = vsel %vm1496_vm8, %v3317_v20, %v1532_v51  ;;  %v1601_v22 = vmul.f32 %v1583_v47, %v4574_v21  ;;  %v1117_v23 = vadd.f32 %v4655_v24, %v1116_v49  ;;  %1810 = vmatpush.msra.mxu3 %v3332_v50  ;;  %v3331_v49 = vld [vmem:[%s6754_s5 + $0xb8] sm:$0xff]  ;;  %1849 = vmatpush.msrb.mxu0 %v1746_v35  ;;  %v3329_v35 = vld [vmem:[%s6754_s5 + $0xa8] sm:$0xff] }
 0x251   :  { %v4889_v25 = vadd.f32 1.0, %v943_v48  ;;  %v1371_v20 = vadd.f32 0.2548296, %v1353_v18  ;;  %3518 = vpow2.f32 %v1455_v56  ;;  %v1076_v47 = vsel %vm4874_vm1, %v4480_v37, %v4547_v58  ;;  %v1745_v56 = vld [vmem:[%s6754_s5 + $0x38] sm:$0xff]  ;;  %1905 = vmatpush.msra.mxu1 %v3348_v14  ;;  %v1743_v14 = vld [vmem:[%s6754_s5 + $0x28] sm:$0xff] }
 0x252   :  { %v944_v21 = vmul.f32 0.3275911, %v4881_v31  ;;  %v4907_v51 = vadd.f32 %v4648_v27, %v1101_v17  ;;  %v1372_v4 = vadd.f32 0.2548296, %v1354_v41  ;;  %v1411_v45 = vsub.f32 0.0, %v4844_v19  ;;  %v3347_v37 = vld [vmem:[%s6754_s5 + $0x138] sm:$0xff]  ;;  %v4920_v58 = vpop.eup %3516  ;;  %1811 = vmatpush.msra.mxu3 %v3331_v49  ;;  %1850 = vmatpush.msrb.mxu0 %v1745_v56 }
 0x253   :  { %3520 = vrcp.f32 %v4889_v25  ;;  %v1586_v48 = vadd.f32 1.0, %v1550_v54  ;;  %v6851_v1 = vsub.f32 0.0, %v4638_v40  ;;  %v4936_v18 = vadd.f32 %v4714_v43, %v1176_v34  ;;  %v1744_v54 = vld [vmem:[%s6754_s5 + $0x30] sm:$0xff]  ;;  %1906 = vmatpush.msra.mxu1 %v3347_v37 }
 0x254   :  { %3522 = vpow2.f32 %v1457_v16  ;;  %v4933_v61 = vadd.f32 1.0, %v944_v21  ;;  %v1389_v41 = vmul.f32 %v1371_v20, %v4717_v52  ;;  %v1121_v34 = vsel %vm4926_vm2, %v4655_v24, %v1117_v23  ;;  %1812 = vmatpush.msra.mxu3 %v3330_v60  ;;  %v3345_v23 = vld [vmem:[%s6754_s5 + $0x128] sm:$0xff]  ;;  %1851 = vmatpush.msrb.mxu0 %v1744_v54  ;;  %v3327_v54 = vld [vmem:[%s6754_s5 + $0x98] sm:$0xff] }
 0x255   :  { %v1427_v9 = vmul.f32 %v6851_v1, %v4638_v40  ;;  %v4948_v40 = vsel %vm4828_vm10, %v4535_v6, %v1076_v47  ;;  %v4954_v52 = vsel %vm1611_vm14, %v1601_v22, -inf  ;;  %v1212_v16 = vand.u32 2147483647, %v4889_v25  ;;  %v3346_v6 = vld [vmem:[%s6754_s5 + $0x130] sm:$0xff] }
 0x256   :  { %v1214_v50 = vand.u32 2147483648, %v4889_v25  ;;  %3524 = vrcp.f32 %v4933_v61  ;;  %v4963_v12 = vmul.f32 %v4772_v29, %v1190_v13  ;;  %v1390_v24 = vmul.f32 %v1372_v4, %v4726_v30  ;;  %1907 = vmatpush.msra.mxu1 %v3346_v6  ;;  %1813 = vmatpush.msra.mxu3 %v3329_v35 }
 0x257   :  { %v1429_v22 = vmul.f32 %v1411_v45, %v4844_v19  ;;  %v6852_v13 = vand.u32 2147483647, %v4587_v55  ;;  %v3519_v20 = vpop.eup %3518  ;;  %v4987_v19 = vmul.f32 %v1586_v48, %v4724_v42  ;;  %v4992_v21 = vmul.f32 %v1410_v8, %v4678_v10  ;;  %v3328_v10 = vld [vmem:[%s6754_s5 + $0xa0] sm:$0xff]  ;;  %1852 = vmatpush.msrb.mxu0 %v1743_v14 }
 0x258   :  { %v1240_v47 = vmul.f32 1.0614054, %v4948_v40  ;;  %v5001_v49 = vmul.f32 1.442695, %v1427_v9  ;;  %v5003_v42 = vmul.f32 %v3519_v20, %v1389_v41  ;;  %vm1497_vm5 = vcmp.lt.f32.partialorder %v4606_v0, 0.0  ;;  %1908 = vmatpush.msra.mxu1 %v3345_v23  ;;  %v3344_v9 = vld [vmem:[%s6754_s5 + $0x120] sm:$0xff]  ;;  %1814 = vmatpush.msra.mxu3 %v3328_v10 }
 0x259   :  { %vm1123_vm3 = vcmp.eq.f32.partialorder %v6852_v13, 8.507059e+37  ;;  %v4998_v4 = vpop.eup %3520  ;;  %vm5018_vm6 = vcmp.eq.f32.partialorder %v1212_v16, 8.507059e+37  ;;  %v5022_v48 = vor.u32 1.1754944e-38, %v1214_v50  ;;  %v1412_v1 = vsub.f32 0.0, %v4881_v31 }
 0x25a   :  { %v4995_v55 = vsel %vm1123_vm3, %v4685_v33, %v1121_v34  ;;  %v1742_v33 = vld [vmem:[%s6754_s5 + $0x20] sm:$0xff]  ;;  %v3523_v56 = vpop.eup %3522  ;;  %v1204_v37 = vmul.f32 %v4998_v4, %v4889_v25  ;;  %vm1208_vm7 = vweird.f32 %v4889_v25  ;;  %v5031_v60 = vmul.f32 1.442695, %v1429_v22  ;;  %v1741_v34 = vld [vmem:[%s6754_s5 + $0x18] sm:$0xff]  ;;  %1909 = vmatpush.msra.mxu1 %v3344_v9  ;;  %1815 = vmatpush.msra.mxu3 %v3327_v54 }
 0x25b   :  { %v5028_v41 = vmul.f32 %v3523_v56, %v1390_v24  ;;  %v1243_v16 = vmul.f32 1.0614054, %v4995_v55  ;;  %v1227_v24 = vand.u32 2147483647, %v4933_v61  ;;  %1853 = vmatpush.msrb.mxu0 %v1742_v33  ;;  %v3343_v22 = vld [vmem:[%s6754_s5 + $0x118] sm:$0xff]  ;;  %v6857_v14 = vrot.slane %v4515_v63, 2 }
 0x25c   :  { %v5040_v50 = vpop.eup %3524  ;;  %v1205_v6 = vsub.f32 1.0, %v1204_v37  ;;  %v1258_v35 = vadd.f32 -1.4531521, %v1240_v47  ;;  %v3318_v13 = vadd.f32 -1.0, %v5003_v42  ;;  %vm1223_vm8 = vweird.f32 %v4933_v61  ;;  %v3326_v33 = vld [vmem:[%s6754_s5 + $0x90] sm:$0xff]  ;;  %1910 = vmatpush.msra.mxu1 %v3343_v22  ;;  %v3340_v25 = vld [vmem:[%s6754_s5 + $0x100] sm:$0xff] }
 0x25d   :  { %v5049_v23 = vmax.f32 %v4515_v63, %v6857_v14  ;;  %v1219_v20 = vmul.f32 %v5040_v50, %v4933_v61  ;;  %v1229_v10 = vand.u32 2147483648, %v4933_v61  ;;  %v1740_v47 = vld [vmem:[%s6754_s5 + $0x10] sm:$0xff]  ;;  %vm1209_vm9 = vweird.f32 %v4998_v4  ;;  %1854 = vmatpush.msrb.mxu0 %v1741_v34  ;;  %1816 = vmatpush.msra.mxu3 %v3326_v33  ;;  %v1739_v34 = vld [vmem:[%s6754_s5 + $0x8] sm:$0xff] }
 0x25e   :  { %v3342_v63 = vld [vmem:[%s6754_s5 + $0x110] sm:$0xff]  ;;  %v1206_v56 = vmul.f32 %v4998_v4, %v1205_v6  ;;  %v1261_v37 = vadd.f32 -1.4531521, %v1243_v16  ;;  %v1276_v9 = vmul.f32 %v1258_v35, %v4948_v40  ;;  %vm1498_vm13 = vcmp.lt.f32.partialorder %v4611_v7, 0.0  ;;  %v3325_v6 = vld [vmem:[%s6754_s5 + $0x88] sm:$0xff]  ;;  %vm5091_vm10 = vmor %vm1208_vm7, %vm1209_vm9 }
 0x25f   :  { %v3319_v54 = vadd.f32 -1.0, %v5028_v41  ;;  %v1533_v14 = vsub.f32 1.0, %v5003_v42  ;;  %v1220_v45 = vsub.f32 1.0, %v1219_v20  ;;  %v1430_v8 = vmul.f32 %v1412_v1, %v4881_v31  ;;  %v3341_v16 = vld [vmem:[%s6754_s5 + $0x108] sm:$0xff]  ;;  %1855 = vmatpush.msrb.mxu0 %v1740_v47  ;;  %1911 = vmatpush.msra.mxu1 %v3342_v63  ;;  %v3324_v31 = vld [vmem:[%s6754_s5 + $0x80] sm:$0xff] }
 0x260   :  { %v1534_v22 = vsub.f32 1.0, %v5028_v41  ;;  %v1207_v42 = vadd.f32 %v4998_v4, %v1206_v56  ;;  %v1279_v1 = vmul.f32 %v1261_v37, %v4995_v55  ;;  %v1294_v35 = vadd.f32 1.4214138, %v1276_v9  ;;  %1817 = vmatpush.msra.mxu3 %v3325_v6  ;;  %v1738_v47 = vld [vmem:[%s6754_s5] sm:$0xff] }
 0x261   :  { %v1221_v41 = vmul.f32 %v5040_v50, %v1220_v45  ;;  %vm1224_vm15 = vweird.f32 %v5040_v50  ;;  %vm5097_vm0 = vcmp.eq.f32.partialorder %v1227_v24, 8.507059e+37  ;;  %v6862_v63 = vrot.slane %v4631_v44, 4  ;;  %1856 = vmatpush.msrb.mxu0 %v1739_v34  ;;  %1912 = vmatpush.msra.mxu1 %v3341_v16 }
 0x262   :  { %v1211_v45 = vsel %vm5091_vm10, %v4998_v4, %v1207_v42  ;;  %v1230_v24 = vor.u32 1.1754944e-38, %v1229_v10  ;;  %v1297_v37 = vadd.f32 1.4214138, %v1279_v1  ;;  %v1312_v9 = vmul.f32 %v1294_v35, %v4948_v40  ;;  %1818 = vmatpush.msra.mxu3 %v3324_v31  ;;  %vm1225_vm1 = vmor %vm1223_vm8, %vm1224_vm15 }
 0x263   :  { %v1649_v56 = vmax.f32 %v4631_v44, %v6862_v63  ;;  %v1551_v6 = vsel %vm1497_vm5, %v3318_v13, %v1533_v14  ;;  %v5119_v59 = vsel %vm5018_vm6, %v5022_v48, %v1211_v45  ;;  %v1222_v44 = vadd.f32 %v5040_v50, %v1221_v41  ;;  %1857 = vmatpush.msrb.mxu0 %v1738_v47 }
 0x264   :  { %v5122_v63 = vmul.f32 1.442695, %v1430_v8  ;;  %v1249_v4 = vmul.f32 1.0614054, %v5119_v59  ;;  %1913 = vmatpush.msra.mxu1 %v3340_v25  ;;  %v1315_v0 = vmul.f32 %v1297_v37, %v4995_v55  ;;  %v1330_v13 = vadd.f32 -0.28449672, %v1312_v9 }
 0x265   :  { %v1654_v17 = vsel %vm1611_vm14, %v4665_v38, -inf  ;;  %v1226_v48 = vsel %vm1225_vm1, %v5040_v50, %v1222_v44  ;;  %v1624_v8 = vrot.slane %v4532_v28, 1  ;;  %v1650_v10 = vrot.slane %v1649_v56, 2 }
 0x266   :  { %v1655_v14 = vrot.slane %v1654_v17, 4  ;;  %v5136_v61 = vsel %vm5097_vm0, %v1230_v24, %v1226_v48  ;;  %v1267_v34 = vadd.f32 -1.4531521, %v1249_v4  ;;  %v1333_v16 = vadd.f32 -0.28449672, %v1315_v0 }
 0x267   :  { %v1348_v42 = vmul.f32 %v1330_v13, %v4948_v40  ;;  %vm1492_vm2 = vcmp.lt.f32.partialorder %v4434_v26, 0.0  ;;  %v1250_v31 = vmul.f32 1.0614054, %v5136_v61  ;;  %v1631_v38 = vrot.slane %v4537_v53, 1 }
 0x268   :  { %v1638_v50 = vrot.slane %v5049_v23, 1  ;;  %v6863_v1 = vrot.slane %v4642_v11, 2  ;;  %v1552_v20 = vsel %vm1498_vm13, %v3319_v54, %v1534_v22  ;;  %v1285_v41 = vmul.f32 %v1267_v34, %v5119_v59 }
 0x269   :  { %v1351_v33 = vmul.f32 %v1333_v16, %v4995_v55  ;;  %v1366_v47 = vadd.f32 0.2548296, %v1348_v42  ;;  %vm1495_vm3 = vcmp.lt.f32.partialorder %v4540_v3, 0.0  ;;  %v1587_v25 = vadd.f32 1.0, %v1551_v6 }
 0x26a   :  { %v1644_v35 = vmax.f32 %v4642_v11, %v6863_v1  ;;  %v1268_v45 = vadd.f32 -1.4531521, %v1250_v31  ;;  %v1651_v24 = vmax.f32 %v1649_v56, %v1650_v10  ;;  %v1656_v37 = vmax.f32 %v1654_v17, %v1655_v14 }
 0x26b   :  { %v1303_v9 = vadd.f32 1.4214138, %v1285_v41  ;;  %v1369_v44 = vadd.f32 0.2548296, %v1351_v33  ;;  %v1384_v4 = vmul.f32 %v1366_v47, %v4948_v40  ;;  %v5153_v11 = vmax.f32 %v4532_v28, %v1624_v8 }
 0x26c   :  { %v1286_v7 = vmul.f32 %v1268_v45, %v5136_v61  ;;  %v5157_v54 = vmax.f32 %v4537_v53, %v1631_v38  ;;  %v5160_v22 = vmax.f32 %v5049_v23, %v1638_v50  ;;  %v1645_v0 = vrot.slane %v1644_v35, 1 }
 0x26d   :  { %vm1179_vm5 = vweird.f32 %v4714_v43  ;;  %v1321_v56 = vmul.f32 %v1303_v9, %v5119_v59  ;;  %v1387_v6 = vmul.f32 %v1369_v44, %v4995_v55  ;;  %v1474_v40 = vmul.f32 %v4580_v15, %v1384_v4 }
 0x26e   :  { %vm6800_vm6 = vcmask 1041409   ;;  %v1304_v28 = vadd.f32 1.4214138, %v1286_v7  ;;  %v1652_v13 = vrot.slane %v1651_v24, 1  ;;  %v1657_v17 = vrot.slane %v1656_v37, 2 }
 0x26f   :  { %v6864_v48 = vand.u32 2147483647, %v4582_v5  ;;  %vm1178_vm8 = vweird.f32 %v4689_v36  ;;  %v1339_v53 = vadd.f32 -0.28449672, %v1321_v56  ;;  %v1477_v23 = vmul.f32 %v4920_v58, %v1387_v6  ;;  %v6872_v6 = vld [vmem:[#allocation22_spill] sm:$0xff] }
 0x270   :  { %v3313_v8 = vadd.f32 -1.0, %v1474_v40  ;;  %v1528_v10 = vsub.f32 1.0, %v1474_v40  ;;  %v1322_v14 = vmul.f32 %v1304_v28, %v5136_v61  ;;  %v5171_v34 = vmax.f32 %v1644_v35, %v1645_v0  ;;  %vm5220_vm15 = vmor %vm1178_vm8, %vm1179_vm5 }
 0x271   :  { %vm1108_vm7 = vcmp.eq.f32.partialorder %v6864_v48, 8.507059e+37  ;;  %v1786_v15 = vsel %vm6800_vm6, %v5157_v54, %v5153_v11  ;;  %v6865_v5 = vsel %vm4982_vm4, %v4648_v27, %v4907_v51  ;;  %v1357_v58 = vmul.f32 %v1339_v53, %v5119_v59 }
 0x272   :  { %v5182_v55 = vsel %vm1108_vm7, %v4683_v2, %v6865_v5  ;;  %v3316_v16 = vadd.f32 -1.0, %v1477_v23  ;;  %v1531_v42 = vsub.f32 1.0, %v1477_v23  ;;  %v1546_v31 = vsel %vm1492_vm2, %v3313_v8, %v1528_v10 }
 0x273   :  { %v1340_v38 = vadd.f32 -0.28449672, %v1322_v14  ;;  %v1582_v50 = vadd.f32 1.0, %v1546_v31  ;;  %v1658_v1 = vmax.f32 %v1656_v37, %v1657_v17  ;;  %v1242_v35 = vmul.f32 1.0614054, %v5182_v55 }
 0x274   :  { %v6866_v30 = vand.u32 2147483647, %v4689_v36  ;;  %v1549_v27 = vsel %vm1495_vm3, %v3316_v16, %v1531_v42  ;;  %v5196_v2 = vmax.f32 %v1651_v24, %v1652_v13  ;;  %v1787_v26 = vsel %vm6799_vm11, %v5160_v22, %v1786_v15  ;;  %v6869_v24 = vld [vmem:[#allocation21_spill] sm:$0xff] }
 0x275   :  { %vm1788_vm4 = vcmask 1043459   ;;  %vm1194_vm13 = vweird.f32 %v4772_v29  ;;  %v1358_v51 = vmul.f32 %v1340_v38, %v5136_v61  ;;  %v1585_v33 = vadd.f32 1.0, %v1549_v27 }
 0x276   :  { %vm5190_vm9 = vcmp.eq.f32.partialorder %v6866_v30, 8.507059e+37  ;;  %v1600_v47 = vmul.f32 %v1582_v50, %v4567_v57  ;;  %v1260_v45 = vadd.f32 -1.4531521, %v1242_v35  ;;  %v5204_v37 = vmul.f32 0.5, %v4599_v62 }
 0x277   :  { %v1375_v9 = vadd.f32 0.2548296, %v1357_v58  ;;  %3526 = vpow2.f32 %v5031_v60  ;;  %v1789_v3 = vsel %vm1788_vm4, %v5171_v34, %v1787_v26  ;;  %vm1193_vm10 = vweird.f32 %v4703_v46  ;;  %v6874_v58 = vld [vmem:[#allocation24_spill] sm:$0xff] }
 0x278   :  { %v1603_v44 = vmul.f32 %v1585_v33, %v6869_v24  ;;  %v1659_v4 = vrot.slane %v1658_v1, 1  ;;  %v1661_v7 = vsel %vm1611_vm14, %v1600_v47, -inf  ;;  %v1278_v0 = vmul.f32 %v1260_v45, %v5182_v55  ;;  %vm5263_vm3 = vmor %vm1193_vm10, %vm1194_vm13 }
 0x279   :  { %v5213_v57 = vadd.f32 1.0, %v1552_v20  ;;  %v1376_v56 = vadd.f32 0.2548296, %v1358_v51  ;;  %3528 = vpow2.f32 %v5122_v63  ;;  %v1662_v62 = vrot.slane %v1661_v7, 4 }
 0x27a   :  { %v5225_v40 = vmul.f32 %v1587_v25, %v6872_v6  ;;  %v1682_v28 = vsel %vm1611_vm14, %v1603_v44, -inf  ;;  %v1790_v20 = vsel %vm501_vm12, %v5196_v2, %v1789_v3  ;;  %v1296_v13 = vadd.f32 1.4214138, %v1278_v0  ;;  %v6878_v6 = vld [vmem:[#allocation25_spill] sm:$0xff] }
 0x27b   :  { %v1393_v63 = vmul.f32 %v1375_v9, %v5119_v59  ;;  %v1663_v17 = vmax.f32 %v1661_v7, %v1662_v62  ;;  %v1683_v48 = vrot.slane %v1682_v28, 4  ;;  %v1181_v36 = vsel %vm5220_vm15, %v4714_v43, %v4936_v18 }
 0x27c   :  { %v5235_v53 = vmax.f32 %v1658_v1, %v1659_v4  ;;  %vm1791_vm0 = vcmask 1045509   ;;  %v1314_v25 = vmul.f32 %v1296_v13, %v5182_v55  ;;  %v6873_v23 = vrot.slane %v4954_v52, 4 }
 0x27d   :  { %v3527_v10 = vpop.eup %3526  ;;  %v1394_v14 = vmul.f32 %v1376_v56, %v5136_v61  ;;  %v1664_v59 = vrot.slane %v1663_v17, 2  ;;  %v1684_v15 = vmax.f32 %v1682_v28, %v1683_v48  ;;  %vm1794_vm1 = vcmask 1047559  }
 0x27e   :  { %v1670_v8 = vmax.f32 %v4954_v52, %v6873_v23  ;;  %v1332_v5 = vadd.f32 -0.28449672, %v1314_v25  ;;  %v5245_v43 = vsel %vm5190_vm9, %v6874_v58, %v1181_v36  ;;  %v1192_v18 = vadd.f32 %v4772_v29, %v4963_v12  ;;  %v6875_v12 = vld [vmem:[#allocation13_spill] sm:$0xff] }
 0x27f   :  { %v1197_v16 = vand.u32 2147483647, %v4703_v46  ;;  %v3529_v42 = vpop.eup %3528  ;;  %v1483_v31 = vmul.f32 %v3527_v10, %v1393_v63  ;;  %v1665_v52 = vmax.f32 %v1663_v17, %v1664_v59  ;;  %v1685_v38 = vrot.slane %v1684_v15, 2 }
 0x280   :  { %v1671_v50 = vrot.slane %v1670_v8, 2  ;;  %v1792_v61 = vsel %vm1791_vm0, %v5235_v53, %v1790_v20  ;;  %v1350_v1 = vmul.f32 %v1332_v5, %v5182_v55  ;;  %v1689_v35 = vsel %vm1611_vm14, %v4987_v19, -inf  ;;  %v6880_v20 = vld [vmem:[#allocation20_spill] sm:$0xff] }
 0x281   :  { %v1884_v30 = vsel %vm6800_vm6, %v5160_v22, %v5157_v54  ;;  %vm1494_vm2 = vcmp.lt.f32.partialorder %v6875_v12, 0.0  ;;  %v1484_v27 = vmul.f32 %v3529_v42, %v1394_v14  ;;  %v1666_v26 = vrot.slane %v1665_v52, 1 }
 0x282   :  { %v1686_v51 = vmax.f32 %v1684_v15, %v1685_v38  ;;  %v1672_v33 = vmax.f32 %v1670_v8, %v1671_v50  ;;  %v1368_v47 = vadd.f32 0.2548296, %v1350_v1  ;;  %v1690_v19 = vrot.slane %v1689_v35, 4  ;;  %v6882_v1 = vld [vmem:[#allocation19_spill] sm:$0xff] }
 0x283   :  { %v1885_v45 = vsel %vm6799_vm11, %v5171_v34, %v1884_v30  ;;  %v1196_v9 = vsel %vm5263_vm3, %v4772_v29, %v1192_v18  ;;  %v3322_v3 = vadd.f32 -1.0, %v1483_v31  ;;  %v1667_v24 = vmax.f32 %v1665_v52, %v1666_v26  ;;  %v6883_v30 = vld [vmem:[#allocation14_spill] sm:$0xff] }
 0x284   :  { %v1687_v46 = vrot.slane %v1686_v51, 1  ;;  %vm1198_vm5 = vcmp.eq.f32.partialorder %v1197_v16, 8.507059e+37  ;;  %v1386_v44 = vmul.f32 %v1368_v47, %v5182_v55  ;;  %v1673_v4 = vrot.slane %v1672_v33, 1 }
 0x285   :  { %v1691_v7 = vmax.f32 %v1689_v35, %v1690_v19  ;;  %v1886_v0 = vsel %vm1788_vm4, %v5196_v2, %v1885_v45  ;;  %v3323_v56 = vadd.f32 -1.0, %v1484_v27  ;;  %v1537_v62 = vsub.f32 1.0, %v1483_v31 }
 0x286   :  { %v5275_v60 = vmax.f32 %v1686_v51, %v1687_v46  ;;  %v5278_v28 = vsel %vm1198_vm5, %v6878_v6, %v1196_v9  ;;  %vm6879_vm7 = vcmask 1046534   ;;  %v1476_v13 = vmul.f32 %v6880_v20, %v1386_v44 }
 0x287   :  { %v1793_v29 = vsel %vm6879_vm7, %v1667_v24, %v1792_v61  ;;  %v1692_v63 = vrot.slane %v1691_v7, 2  ;;  %v1887_v55 = vsel %vm501_vm12, %v5235_v53, %v1886_v0  ;;  %v1674_v48 = vmax.f32 %v1672_v33, %v1673_v4  ;;  %vm6881_vm13 = vmmov %vm6879_vm7 }
 0x288   :  { %v1795_v17 = vsel %vm1794_vm1, %v5275_v60, %v1793_v29  ;;  %v1247_v36 = vmul.f32 1.0614054, %v5245_v43  ;;  %v1248_v25 = vmul.f32 1.0614054, %v5278_v28  ;;  %v1538_v23 = vsub.f32 1.0, %v1484_v27  ;;  %vm6887_vm15 = vmmov %vm6879_vm7 }
 0x289   :  { %1819 = vmatmul.f32.vlgmr.msra.gmra.mxu3 %v1795_v17  ;;  %v3315_v8 = vadd.f32 -1.0, %v1476_v13  ;;  %v1530_v10 = vsub.f32 1.0, %v1476_v13  ;;  %v1693_v14 = vmax.f32 %v1691_v7, %v1692_v63  ;;  %vm1501_vm8 = vcmp.lt.f32.partialorder %v4815_v32, 0.0 }
 0x28a   :  { %vm1502_vm9 = vcmp.lt.f32.partialorder %v4857_v39, 0.0  ;;  %v1265_v59 = vadd.f32 -1.4531521, %v1247_v36  ;;  %v1266_v15 = vadd.f32 -1.4531521, %v1248_v25  ;;  %v1555_v5 = vsel %vm1501_vm8, %v3322_v3, %v1537_v62 }
 0x28b   :  { %v1548_v58 = vsel %vm1494_vm2, %v3315_v8, %v1530_v10  ;;  %v1694_v18 = vrot.slane %v1693_v14, 1  ;;  %v1888_v16 = vsel %vm1791_vm0, %v1667_v24, %v1887_v55  ;;  %v1606_v32 = vmul.f32 %v5213_v57, %v5204_v37 }
 0x28c   :  { %v1584_v42 = vadd.f32 1.0, %v1548_v58  ;;  %v1889_v31 = vsel %vm6881_vm13, %v1674_v48, %v1888_v16  ;;  %v1283_v52 = vmul.f32 %v1265_v59, %v5245_v43  ;;  %v1284_v38 = vmul.f32 %v1266_v15, %v5278_v28 }
 0x28d   :  { %v1696_v39 = vsel %vm1611_vm14, %v5225_v40, -inf  ;;  %v1556_v50 = vsel %vm1502_vm9, %v3323_v56, %v1538_v23  ;;  %v5300_v61 = vmax.f32 %v1693_v14, %v1694_v18  ;;  %v1828_v12 = vsel %vm6800_vm6, %v5153_v11, %v6883_v30  ;;  %v6884_v11 = vld [vmem:[#allocation23_spill] sm:$0xff]  ;;  %v6886_v18 = vld [vmem:[#allocation16_spill] sm:$0xff] }
 0x28e   :  { %v1602_v35 = vmul.f32 %v1584_v42, %v6882_v1  ;;  %v1301_v41 = vadd.f32 1.4214138, %v1283_v52  ;;  %v1302_v27 = vadd.f32 1.4214138, %v1284_v38  ;;  %3530 = vpow2.f32 %v5001_v49  ;;  %v6888_v38 = vld [vmem:[#allocation18_spill] sm:$0xff]  ;;  %v6889_v1 = vld [vmem:[#allocation15_spill] sm:$0xff] }
 0x28f   :  { %v1461_v26 = vmul.f32 1.442695, %v4992_v21  ;;  %v1591_v51 = vadd.f32 1.0, %v1555_v5  ;;  %v1890_v37 = vsel %vm1794_vm1, %v5300_v61, %v1889_v31  ;;  %v1592_v57 = vadd.f32 1.0, %v1556_v50  ;;  %v6885_v21 = vld [vmem:[#allocation26_spill] sm:$0xff] }
 0x290   :  { %v1675_v40 = vsel %vm1611_vm14, %v1602_v35, -inf  ;;  %1914 = vmatmul.f32.vlgmr.msra.gmra.mxu1 %v1890_v37  ;;  %v1319_v33 = vmul.f32 %v1301_v41, %v5245_v43  ;;  %v1320_v47 = vmul.f32 %v1302_v27, %v5278_v28  ;;  %v1697_v19 = vrot.slane %v1696_v39, 4  ;;  %v6890_v27 = vld [vmem:[#allocation17_spill] sm:$0xff] }
 0x291   :  { %v1573_v45 = vmul.f32 0.5, %v6884_v11  ;;  %v1676_v9 = vrot.slane %v1675_v40, 4  ;;  %v1829_v49 = vsel %vm6799_vm11, %v5157_v54, %v1828_v12  ;;  %v1574_v3 = vmul.f32 0.5, %v6885_v21 }
 0x292   :  { %v1337_v24 = vadd.f32 -0.28449672, %v1319_v33  ;;  %v1338_v46 = vadd.f32 -0.28449672, %v1320_v47  ;;  %v1703_v44 = vsel %vm1611_vm14, %v1606_v32, -inf  ;;  %3532 = vpow2.f32 %v1461_v26 }
 0x293   :  { %v1609_v4 = vmul.f32 %v1591_v51, %v1573_v45  ;;  %v1677_v7 = vmax.f32 %v1675_v40, %v1676_v9  ;;  %v1610_v0 = vmul.f32 %v1592_v57, %v1574_v3  ;;  %v1830_v56 = vsel %vm1788_vm4, %v5160_v22, %v1829_v49 }
 0x294   :  { %v1355_v62 = vmul.f32 %v1337_v24, %v5245_v43  ;;  %v1356_v6 = vmul.f32 %v1338_v46, %v5278_v28  ;;  %v3531_v29 = vpop.eup %3530  ;;  %v1698_v20 = vmax.f32 %v1696_v39, %v1697_v19  ;;  %v1831_v13 = vsel %vm501_vm12, %v5171_v34, %v1830_v56 }
 0x295   :  { %v1678_v54 = vrot.slane %v1677_v7, 2  ;;  %v1704_v63 = vrot.slane %v1703_v44, 4  ;;  %v1724_v48 = vsel %vm1611_vm14, %v1609_v4, -inf  ;;  %v1832_v25 = vsel %vm1791_vm0, %v5196_v2, %v1831_v13 }
 0x296   :  { %v1373_v55 = vadd.f32 0.2548296, %v1355_v62  ;;  %v1374_v17 = vadd.f32 0.2548296, %v1356_v6  ;;  %v1731_v8 = vsel %vm1611_vm14, %v1610_v0, -inf  ;;  %v1699_v59 = vrot.slane %v1698_v20, 2 }
 0x297   :  { %v1679_v36 = vmax.f32 %v1677_v7, %v1678_v54  ;;  %v1705_v15 = vmax.f32 %v1703_v44, %v1704_v63  ;;  %v1725_v34 = vrot.slane %v1724_v48, 4  ;;  %vm1499_vm10 = vcmp.lt.f32.partialorder %v6886_v18, 0.0 }
 0x298   :  { %v1391_v22 = vmul.f32 %v1373_v55, %v5245_v43  ;;  %v1392_v23 = vmul.f32 %v1374_v17, %v5278_v28  ;;  %v3533_v10 = vpop.eup %3532  ;;  %v1833_v42 = vsel %vm6887_vm15, %v5235_v53, %v1832_v25  ;;  %v1732_v2 = vrot.slane %v1731_v8, 4 }
 0x299   :  { %v1680_v14 = vrot.slane %v1679_v36, 1  ;;  %vm1500_vm2 = vcmp.lt.f32.partialorder %v6888_v38, 0.0  ;;  %v1700_v39 = vmax.f32 %v1698_v20, %v1699_v59  ;;  %v1706_v50 = vrot.slane %v1705_v15, 2 }
 0x29a   :  { %v1481_v5 = vmul.f32 %v3531_v29, %v1391_v22  ;;  %v1482_v58 = vmul.f32 %v3533_v10, %v1392_v23  ;;  %v1571_v35 = vmul.f32 0.5, %v6889_v1  ;;  %v1726_v41 = vmax.f32 %v1724_v48, %v1725_v34 }
 0x29b   :  { %v1681_v16 = vmax.f32 %v1679_v36, %v1680_v14  ;;  %v1572_v26 = vmul.f32 0.5, %v6890_v27  ;;  %v1733_v37 = vmax.f32 %v1731_v8, %v1732_v2  ;;  %v1701_v33 = vrot.slane %v1700_v39, 1 }
 0x29c   :  { %v3320_v31 = vadd.f32 -1.0, %v1481_v5  ;;  %v3321_v43 = vadd.f32 -1.0, %v1482_v58  ;;  %v1535_v52 = vsub.f32 1.0, %v1481_v5  ;;  %v1536_v28 = vsub.f32 1.0, %v1482_v58 }
 0x29d   :  { %v1834_v32 = vsel %vm1794_vm1, %v1681_v16, %v1833_v42  ;;  %v1707_v47 = vmax.f32 %v1705_v15, %v1706_v50  ;;  %v1727_v19 = vrot.slane %v1726_v41, 2  ;;  %v1734_v9 = vrot.slane %v1733_v37, 2 }
 0x29e   :  { %1858 = vmatmul.f32.vlgmr.msrb.gmra.mxu0 %v1834_v32  ;;  %v1553_v30 = vsel %vm1499_vm10, %v3320_v31, %v1535_v52  ;;  %v1554_v12 = vsel %vm1500_vm2, %v3321_v43, %v1536_v28  ;;  %v1702_v3 = vmax.f32 %v1700_v39, %v1701_v33  ;;  %v1835_v62 = vsel %vm6800_vm6, %v5300_v61, %v5275_v60  ;;  %v5357_v52 = vld [vmem:[#allocation7] ss:$0 sm:$0xff] }
 0x29f   :  { %v1589_v53 = vadd.f32 1.0, %v1553_v30  ;;  %v1590_v51 = vadd.f32 1.0, %v1554_v12  ;;  %v1708_v24 = vrot.slane %v1707_v47, 1  ;;  %v1728_v4 = vmax.f32 %v1726_v41, %v1727_v19 }
 0x2a0   :  { %v1735_v7 = vmax.f32 %v1733_v37, %v1734_v9  ;;  %v1836_v29 = vsel %vm6799_vm11, %v1702_v3, %v1835_v62  ;;  %v1796_v63 = vsel %vm6800_vm6, %v1702_v3, %v5300_v61  ;;  %v1953_v27 = vrot.slane %v5357_v52, 1 }
 0x2a1   :  { %v1607_v57 = vmul.f32 %v1589_v53, %v1571_v35  ;;  %v1608_v40 = vmul.f32 %v1590_v51, %v1572_v26  ;;  %v1709_v6 = vmax.f32 %v1707_v47, %v1708_v24  ;;  %v1729_v13 = vrot.slane %v1728_v4, 1 }
 0x2a2   :  { %v1736_v55 = vrot.slane %v1735_v7, 1  ;;  %v1954_v51 = vrot.slane %v5357_v52, 2 }
 0x2a3   :  { %v1710_v11 = vsel %vm1611_vm14, %v1607_v57, -inf  ;;  %v1717_v45 = vsel %vm1611_vm14, %v1608_v40, -inf  ;;  %v1837_v36 = vsel %vm1788_vm4, %v1709_v6, %v1836_v29  ;;  %v1797_v25 = vsel %vm6799_vm11, %v1709_v6, %v1796_v63 }
 0x2a4   :  { %v1711_v49 = vrot.slane %v1710_v11, 4  ;;  %v1718_v21 = vrot.slane %v1717_v45, 4  ;;  %v1891_v22 = vsel %vm6800_vm6, %v1709_v6, %v1702_v3  ;;  %v1730_v60 = vmax.f32 %v1728_v4, %v1729_v13 }
 0x2a5   :  { %v1737_v10 = vmax.f32 %v1735_v7, %v1736_v55  ;;  %v1955_v40 = vrot.slane %v5357_v52, 3  ;;  %v1957_v13 = vrot.slane %v5357_v52, 5  ;;  %v6768_v55 = vrot.slane %v5357_v52, 6 }
 0x2a6   :  { %v1712_v46 = vmax.f32 %v1710_v11, %v1711_v49  ;;  %v1719_v44 = vmax.f32 %v1717_v45, %v1718_v21  ;;  %v1956_v11 = vrot.slane %v5357_v52, 4 }
 0x2a8   :  { %v1713_v0 = vrot.slane %v1712_v46, 2  ;;  %v1720_v56 = vrot.slane %v1719_v44, 2 }
 0x2aa   :  { %v1714_v20 = vmax.f32 %v1712_v46, %v1713_v0  ;;  %v1721_v54 = vmax.f32 %v1719_v44, %v1720_v56 }
 0x2ac   :  { %v1715_v17 = vrot.slane %v1714_v20, 1  ;;  %v1722_v48 = vrot.slane %v1721_v54, 1 }
 0x2ae   :  { %v1716_v23 = vmax.f32 %v1714_v20, %v1715_v17  ;;  %v1723_v8 = vmax.f32 %v1721_v54, %v1722_v48 }
 0x2b0   :  { %v1838_v14 = vsel %vm501_vm12, %v1716_v23, %v1837_v36  ;;  %v1798_v59 = vsel %vm1788_vm4, %v1716_v23, %v1797_v25  ;;  %v1892_v15 = vsel %vm6799_vm11, %v1716_v23, %v1891_v22 }
 0x2b1   :  { %v1839_v61 = vsel %vm1791_vm0, %v1723_v8, %v1838_v14  ;;  %v1799_v34 = vsel %vm501_vm12, %v1723_v8, %v1798_v59  ;;  %v1893_v5 = vsel %vm1788_vm4, %v1723_v8, %v1892_v15 }
 0x2b2   :  { %1861 = vmatmul.f32.gmra.mxu0 %v1839_v61  ;;  %v1800_v58 = vsel %vm1791_vm0, %v1730_v60, %v1799_v34  ;;  %v1894_v18 = vsel %vm501_vm12, %v1730_v60, %v1893_v5 }
 0x2b3   :  { %1822 = vmatmul.f32.gmra.mxu3 %v1800_v58  ;;  %v1895_v16 = vsel %vm1791_vm0, %v1737_v10, %v1894_v18 }
 0x2b4   :  { %1917 = vmatmul.f32.gmra.mxu1 %v1895_v16 }
 0x30c   :  { %v1820_v42 = vpop.f32.mrf.mxu3 }
 0x30d   :  { %v1915_v43 = vpop.f32.mrf.mxu1 }
 0x31b   :  { %v1859_v2 = vpop.f32.mrf.mxu0 }
 0x31c   :  { %v1860_v31 = vadd.f32 %v1859_v2, %v1820_v42 }
 0x31e   :  { %v1921_v28 = vadd.f32 %v1915_v43, %v1860_v31 }
 0x320   :  { %v1931_v38 = vrot.slane %v1921_v28, 7  ;;  %v5360_v32 = vadd.f32 %v5357_v52, %v1921_v28  ;;  %v1925_v41 = vrot.slane %v1921_v28, 1  ;;  %v1926_v53 = vrot.slane %v1921_v28, 2 }
 0x321   :  { %v1927_v57 = vrot.slane %v1921_v28, 3  ;;  %v1928_v19 = vrot.slane %v1921_v28, 4  ;;  %v1929_v54 = vrot.slane %v1921_v28, 5  ;;  %v1930_v63 = vrot.slane %v1921_v28, 6 }
 0x322   :  { %6891 = vst [vmem:[#allocation21_spill] sm:$0xff] %v5360_v32  ;;  %v5363_v39 = vadd.f32 %v5357_v52, %v1931_v38  ;;  %v5366_v50 = vmul.f32 0.70710677, %v5360_v32  ;;  %v5381_v33 = vadd.f32 %v1953_v27, %v1925_v41  ;;  %v5386_v45 = vadd.f32 %v1954_v51, %v1926_v53 }
 0x323   :  { %v5389_v9 = vadd.f32 %v1955_v40, %v1927_v57  ;;  %v5395_v3 = vadd.f32 %v1956_v11, %v1928_v19  ;;  %v5433_v8 = vadd.f32 %v1957_v13, %v1929_v54  ;;  %v5437_v14 = vadd.f32 %v6768_v55, %v1930_v63 }
 0x324   :  { %6892 = vst [vmem:[#allocation22_spill] sm:$0xff] %v5363_v39  ;;  %v5369_v1 = vmul.f32 0.70710677, %v5363_v39  ;;  %v1993_v35 = vand.u32 2147483647, %v5366_v50 }
 0x325   :  { %6893 = vst [vmem:[#allocation24_spill] sm:$0xff] %v5366_v50  ;;  %v5392_v49 = vmul.f32 0.70710677, %v5381_v33  ;;  %v5398_v24 = vmul.f32 0.70710677, %v5386_v45 }
 0x326   :  { %6894 = vst [vmem:[#allocation13_spill] sm:$0xff] %v5369_v1  ;;  %v5373_v30 = vand.u32 2147483647, %v5369_v1  ;;  %v2007_v12 = vmul.f32 0.3275911, %v1993_v35  ;;  %v2371_v10 = vsub.f32 0.0, %v1993_v35 }
 0x327   :  { %6895 = vst [vmem:[#allocation25_spill] sm:$0xff] %v5381_v33  ;;  %v5401_v4 = vmul.f32 0.70710677, %v5389_v9  ;;  %v5404_v7 = vand.u32 2147483647, %v5392_v49 }
 0x328   :  { %v2014_v26 = vmul.f32 0.3275911, %v5373_v30  ;;  %v5378_v37 = vadd.f32 1.0, %v2007_v12  ;;  %6896 = vst [vmem:[#allocation20_spill] sm:$0xff] %v5386_v45  ;;  %v5407_v0 = vmul.f32 0.70710677, %v5395_v3  ;;  %v2385_v43 = vmul.f32 %v2371_v10, %v1993_v35 }
 0x329   :  { %6897 = vst [vmem:[#allocation19_spill] sm:$0xff] %v5389_v9  ;;  %v5410_v56 = vand.u32 2147483647, %v5398_v24  ;;  %v5421_v17 = vand.u32 2147483647, %v5401_v4 }
 0x32a   :  { %v5383_v47 = vadd.f32 1.0, %v2014_v26  ;;  %3534 = vrcp.f32 %v5378_v37  ;;  %6898 = vst [vmem:[#allocation14_spill] sm:$0xff] %v5395_v3  ;;  %v2008_v48 = vmul.f32 0.3275911, %v5404_v7  ;;  %v5427_v25 = vand.u32 2147483647, %v5407_v0 }
 0x32b   :  { %v2009_v22 = vmul.f32 0.3275911, %v5410_v56  ;;  %6899 = vst [vmem:[#allocation23_spill] sm:$0xff] %v5433_v8  ;;  %v2010_v59 = vmul.f32 0.3275911, %v5421_v17  ;;  %vm2040_vm12 = vweird.f32 %v5378_v37 }
 0x32c   :  { %3536 = vrcp.f32 %v5383_v47  ;;  %6900 = vst [vmem:[#allocation26_spill] sm:$0xff] %v5437_v14  ;;  %v5440_v15 = vadd.f32 1.0, %v2008_v48  ;;  %v2011_v5 = vmul.f32 0.3275911, %v5427_v25  ;;  %v5453_v31 = vmul.f32 0.70710677, %v5433_v8 }
 0x32d   :  { %v5444_v58 = vadd.f32 1.0, %v2009_v22  ;;  %v5456_v28 = vmul.f32 0.70710677, %v5437_v14  ;;  %v5458_v38 = vadd.f32 1.0, %v2010_v59  ;;  %v2044_v26 = vand.u32 2147483647, %v5378_v37 }
 0x32e   :  { %3538 = vrcp.f32 %v5440_v15  ;;  %v5498_v48 = vmul.f32 1.442695, %v2385_v43  ;;  %vm2145_vm5 = vweird.f32 %v5383_v47  ;;  %vm2055_vm9 = vweird.f32 %v5440_v15 }
 0x32f   :  { %v1862_v46 = vpop.f32.mrf.mxu0  ;;  %6903 = vst [vmem:[#allocation15_spill] sm:$0xff] %v5456_v28  ;;  %3540 = vrcp.f32 %v5444_v58  ;;  %vm5505_vm1 = vcmp.eq.f32.partialorder %v2044_v26, 8.507059e+37  ;;  %vm2070_vm13 = vweird.f32 %v5444_v58 }
 0x330   :  { %v5412_v62 = vpop.eup %3534  ;;  %3542 = vrcp.f32 %v5458_v38 }
 0x331   :  { %v1918_v6 = vpop.f32.mrf.mxu1  ;;  %v2036_v36 = vmul.f32 %v5412_v62, %v5378_v37  ;;  %vm2041_vm4 = vweird.f32 %v5412_v62 }
 0x332   :  { %v5414_v29 = vpop.eup %3536  ;;  %vm5519_vm3 = vmor %vm2040_vm12, %vm2041_vm4  ;;  %vm2085_vm4 = vweird.f32 %v5458_v38 }
 0x333   :  { %v2141_v23 = vmul.f32 %v5414_v29, %v5383_v47  ;;  %v2037_v61 = vsub.f32 1.0, %v2036_v36  ;;  %vm2146_vm0 = vweird.f32 %v5414_v29 }
 0x334   :  { %v5494_v54 = vpop.eup %3538  ;;  %vm5532_vm7 = vmor %vm2145_vm5, %vm2146_vm0 }
 0x335   :  { %v2142_v18 = vsub.f32 1.0, %v2141_v23  ;;  %v2038_v12 = vmul.f32 %v5412_v62, %v2037_v61  ;;  %v5503_v22 = vpop.eup %3540  ;;  %vm2056_vm10 = vweird.f32 %v5494_v54 }
 0x336   :  { %v1823_v21 = vpop.f32.mrf.mxu3  ;;  %vm2071_vm12 = vweird.f32 %v5503_v22  ;;  %vm5637_vm0 = vmor %vm2055_vm9, %vm2056_vm10 }
 0x337   :  { %v1863_v44 = vadd.f32 %v1862_v46, %v1823_v21  ;;  %v2143_v35 = vmul.f32 %v5414_v29, %v2142_v18  ;;  %v2151_v21 = vand.u32 2147483648, %v5383_v47  ;;  %v5482_v46 = vand.u32 2147483647, %v5453_v31  ;;  %vm5655_vm5 = vmor %vm2070_vm13, %vm2071_vm12 }
 0x339   :  { %v5416_v20 = vadd.f32 %v1918_v6, %v1863_v44  ;;  %v5485_v44 = vand.u32 2147483647, %v5456_v28  ;;  %v2039_v6 = vadd.f32 %v5412_v62, %v2038_v12  ;;  %v2144_v63 = vadd.f32 %v5414_v29, %v2143_v35 }
 0x33a   :  { %v2152_v43 = vor.u32 1.1754944e-38, %v2151_v21 }
 0x33b   :  { %v1932_v60 = vrot.slane %v5416_v20, 1  ;;  %v1933_v34 = vrot.slane %v5416_v20, 2  ;;  %v5447_v16 = vadd.f32 %v1953_v27, %v5416_v20  ;;  %v1934_v42 = vrot.slane %v5416_v20, 3  ;;  %6906 = vst [vmem:[#allocation28_spill] sm:$0xff] %v5485_v44 }
 0x33c   :  { %v5464_v27 = vadd.f32 1.0, %v2011_v5  ;;  %v1935_v57 = vrot.slane %v5416_v20, 4  ;;  %v2012_v5 = vmul.f32 0.3275911, %v5482_v46  ;;  %v2043_v18 = vsel %vm5519_vm3, %v5412_v62, %v2039_v6 }
 0x33d   :  { %6901 = vst [vmem:[#allocation16_spill] sm:$0xff] %v5447_v16  ;;  %v5450_v2 = vadd.f32 %v1954_v51, %v1932_v60  ;;  %v5462_v41 = vadd.f32 %v1955_v40, %v1933_v34  ;;  %v5471_v53 = vmul.f32 0.70710677, %v5447_v16  ;;  %v2046_v51 = vand.u32 2147483648, %v5378_v37 }
 0x33e   :  { %v5475_v19 = vadd.f32 %v1956_v11, %v1934_v42  ;;  %3544 = vrcp.f32 %v5464_v27  ;;  %v5509_v60 = vadd.f32 %v1957_v13, %v1935_v57  ;;  %v2149_v34 = vand.u32 2147483647, %v5383_v47  ;;  %v5539_v47 = vpop.eup %3542 }
 0x33f   :  { %6902 = vst [vmem:[#allocation18_spill] sm:$0xff] %v5450_v2  ;;  %v5478_v40 = vmul.f32 0.70710677, %v5450_v2  ;;  %v5491_v11 = vmul.f32 0.70710677, %v5462_v41  ;;  %v2047_v42 = vor.u32 1.1754944e-38, %v2046_v51  ;;  %v2148_v26 = vsel %vm5532_vm7, %v5414_v29, %v2144_v63 }
 0x340   :  { %6904 = vst [vmem:[#allocation17_spill] sm:$0xff] %v5462_v41  ;;  %v5501_v36 = vand.u32 2147483647, %v5471_v53  ;;  %v5512_v10 = vmul.f32 0.70710677, %v5475_v19  ;;  %v2051_v62 = vmul.f32 %v5494_v54, %v5440_v15  ;;  %v2066_v51 = vmul.f32 %v5503_v22, %v5444_v58 }
 0x341   :  { %6905 = vst [vmem:[#allocation27_spill] sm:$0xff] %v5475_v19  ;;  %v5515_v59 = vand.u32 2147483647, %v5478_v40  ;;  %v2013_v13 = vmul.f32 0.3275911, %v5485_v44  ;;  %vm2150_vm8 = vcmp.eq.f32.partialorder %v2149_v34, 8.507059e+37  ;;  %v5565_v55 = vsel %vm5505_vm1, %v2047_v42, %v2043_v18 }
 0x342   :  { %6907 = vst [vmem:[#allocation29_spill] sm:$0xff] %v5491_v11  ;;  %v5537_v12 = vand.u32 2147483647, %v5491_v11  ;;  %v2015_v35 = vmul.f32 0.3275911, %v5501_v36  ;;  %v5558_v29 = vadd.f32 1.0, %v2012_v5  ;;  %v5567_v14 = vsel %vm2150_vm8, %v2152_v43, %v2148_v26 }
 0x343   :  { %6910 = vst [vmem:[#allocation30_spill] sm:$0xff] %v5509_v60  ;;  %v5552_v21 = vmul.f32 0.70710677, %v5509_v60  ;;  %v5555_v6 = vand.u32 2147483647, %v5512_v10  ;;  %v5560_v63 = vadd.f32 1.0, %v2013_v13  ;;  %v2081_v39 = vmul.f32 %v5539_v47, %v5458_v38 }
 0x344   :  { %6911 = vst [vmem:[#allocation31_spill] sm:$0xff] %v5512_v10  ;;  %v5549_v57 = vpop.eup %3544  ;;  %v2016_v61 = vmul.f32 0.3275911, %v5515_v59  ;;  %v2059_v37 = vand.u32 2147483647, %v5440_v15  ;;  %v5572_v32 = vadd.f32 1.0, %v2015_v35  ;;  %3546 = vrcp.f32 %v5558_v29 }
 0x345   :  { %6916 = vst [vmem:[#allocation32_spill] sm:$0xff] %v5552_v21  ;;  %v2017_v28 = vmul.f32 0.3275911, %v5537_v12  ;;  %v2052_v34 = vsub.f32 1.0, %v2051_v62  ;;  %v2067_v5 = vsub.f32 1.0, %v2066_v51  ;;  %v2096_v13 = vmul.f32 %v5549_v57, %v5464_v27 }
 0x346   :  { %v5577_v1 = vand.u32 2147483647, %v5552_v21  ;;  %v2018_v23 = vmul.f32 0.3275911, %v5555_v6  ;;  %v5580_v18 = vadd.f32 1.0, %v2016_v61  ;;  %v2061_v42 = vand.u32 2147483648, %v5440_v15 }
 0x347   :  { %v2245_v43 = vmul.f32 1.0614054, %v5565_v55  ;;  %v1936_v26 = vrot.slane %v5416_v20, 5  ;;  %v2074_v35 = vand.u32 2147483647, %v5444_v58  ;;  %v2076_v62 = vand.u32 2147483648, %v5444_v58 }
 0x348   :  { %v2252_v51 = vmul.f32 1.0614054, %v5567_v14  ;;  %v5590_v44 = vadd.f32 1.0, %v2017_v28  ;;  %v2082_v61 = vsub.f32 1.0, %v2081_v39  ;;  %v2053_v50 = vmul.f32 %v5494_v54, %v2052_v34 }
 0x349   :  { %v2068_v60 = vmul.f32 %v5503_v22, %v2067_v5  ;;  %v2097_v19 = vsub.f32 1.0, %v2096_v13  ;;  %3548 = vrcp.f32 %v5572_v32  ;;  %v2019_v20 = vmul.f32 0.3275911, %v5577_v1 }
 0x34a   :  { %v5597_v21 = vadd.f32 1.0, %v2018_v23  ;;  %v2062_v10 = vor.u32 1.1754944e-38, %v2061_v42  ;;  %3550 = vrcp.f32 %v5580_v18  ;;  %v2259_v41 = vadd.f32 -1.4531521, %v2245_v43 }
 0x34b   :  { %v6917_v28 = vrot.slane %v5357_v52, 6  ;;  %v2077_v2 = vor.u32 1.1754944e-38, %v2076_v62  ;;  %v2089_v34 = vand.u32 2147483647, %v5458_v38  ;;  %v2266_v16 = vadd.f32 -1.4531521, %v2252_v51 }
 0x34c   :  { %vm5606_vm15 = vcmp.eq.f32.partialorder %v2059_v37, 8.507059e+37  ;;  %vm5610_vm2 = vcmp.eq.f32.partialorder %v2074_v35, 8.507059e+37  ;;  %v2083_v23 = vmul.f32 %v5539_v47, %v2082_v61  ;;  %3552 = vrcp.f32 %v5590_v44  ;;  %v5620_v37 = vpop.eup %3546 }
 0x34d   :  { %v5602_v39 = vadd.f32 %v6917_v28, %v1936_v26  ;;  %v2054_v52 = vadd.f32 %v5494_v54, %v2053_v50  ;;  %v2069_v42 = vadd.f32 %v5503_v22, %v2068_v60  ;;  %v2098_v43 = vmul.f32 %v5549_v57, %v2097_v19 }
 0x34e   :  { %v5622_v26 = vadd.f32 1.0, %v2019_v20  ;;  %v2091_v35 = vand.u32 2147483648, %v5458_v38  ;;  %3554 = vrcp.f32 %v5597_v21  ;;  %v2273_v50 = vmul.f32 %v2259_v41, %v5565_v55 }
 0x34f   :  { %6918 = vst [vmem:[#allocation33_spill] sm:$0xff] %v5602_v39  ;;  %v5627_v62 = vpop.eup %3548  ;;  %v5631_v60 = vmul.f32 0.70710677, %v5602_v39  ;;  %vm5641_vm1 = vcmp.eq.f32.partialorder %v2089_v34, 8.507059e+37  ;;  %vm2100_vm3 = vweird.f32 %v5464_v27  ;;  %v5649_v41 = vmul.f32 %v2266_v16, %v5567_v14 }
 0x350   :  { %v5646_v61 = vpop.eup %3550  ;;  %v2084_v20 = vadd.f32 %v5539_v47, %v2083_v23  ;;  %vm2086_vm7 = vweird.f32 %v5539_v47  ;;  %v2104_v28 = vand.u32 2147483647, %v5464_v27  ;;  %v2058_v34 = vsel %vm5637_vm0, %v5494_v54, %v2054_v52 }
 0x351   :  { %6923 = vst [vmem:[#allocation34_spill] sm:$0xff] %v5631_v60  ;;  %v2073_v16 = vsel %vm5655_vm5, %v5503_v22, %v2069_v42  ;;  %v2099_v58 = vadd.f32 %v5549_v57, %v2098_v43  ;;  %vm2101_vm8 = vweird.f32 %v5549_v57  ;;  %v2111_v23 = vmul.f32 %v5620_v37, %v5558_v29  ;;  %vm5686_vm9 = vmor %vm2085_vm4, %vm2086_vm7 }
 0x352   :  { %v5670_v39 = vpop.eup %3552  ;;  %v2156_v8 = vmul.f32 %v5627_v62, %v5572_v32  ;;  %v2171_v19 = vmul.f32 %v5646_v61, %v5580_v18  ;;  %3556 = vrcp.f32 %v5622_v26  ;;  %v5679_v54 = vadd.f32 1.4214138, %v2273_v50  ;;  %vm5715_vm10 = vmor %vm2100_vm3, %vm2101_vm8 }
 0x353   :  { %v5682_v22 = vand.u32 2147483647, %v5631_v60  ;;  %v2092_v42 = vor.u32 1.1754944e-38, %v2091_v35  ;;  %v2106_v43 = vand.u32 2147483648, %v5464_v27  ;;  %v2088_v3 = vsel %vm5686_vm9, %v5539_v47, %v2084_v20 }
 0x354   :  { %v5691_v15 = vpop.eup %3554  ;;  %vm5696_vm13 = vcmp.eq.f32.partialorder %v2104_v28, 8.507059e+37  ;;  %3558 = vrcp.f32 %v5560_v63  ;;  %v2186_v38 = vmul.f32 %v5670_v39, %v5590_v44  ;;  %v5705_v35 = vsel %vm5606_vm15, %v2062_v10, %v2058_v34 }
 0x355   :  { %6930 = vst [vmem:[#allocation35_spill] sm:$0xff] %v5682_v22  ;;  %v5709_v60 = vsel %vm5610_vm2, %v2077_v2, %v2073_v16  ;;  %v2121_v20 = vand.u32 2147483648, %v5558_v29  ;;  %v2201_v28 = vmul.f32 %v5691_v15, %v5597_v21  ;;  %v2103_v10 = vsel %vm5715_vm10, %v5549_v57, %v2099_v58 }
 0x356   :  { %v2112_v5 = vsub.f32 1.0, %v2111_v23  ;;  %v2157_v2 = vsub.f32 1.0, %v2156_v8  ;;  %v2172_v13 = vsub.f32 1.0, %v2171_v19  ;;  %v5727_v34 = vsel %vm5641_vm1, %v2092_v42, %v2088_v3 }
 0x357   :  { %v2107_v27 = vor.u32 1.1754944e-38, %v2106_v43  ;;  %vm2115_vm15 = vweird.f32 %v5558_v29  ;;  %v2187_v16 = vsub.f32 1.0, %v2186_v38  ;;  %v2119_v9 = vand.u32 2147483647, %v5558_v29 }
 0x358   :  { %v5730_v52 = vpop.eup %3556  ;;  %v2164_v45 = vand.u32 2147483647, %v5572_v32  ;;  %v2166_v47 = vand.u32 2147483648, %v5572_v32  ;;  %v2202_v57 = vsub.f32 1.0, %v2201_v28  ;;  %v2122_v51 = vor.u32 1.1754944e-38, %v2121_v20 }
 0x359   :  { %v5737_v8 = vsel %vm5696_vm13, %v2107_v27, %v2103_v10  ;;  %vm2160_vm2 = vweird.f32 %v5572_v32  ;;  %v2216_v3 = vmul.f32 %v5730_v52, %v5622_v26  ;;  %v2113_v23 = vmul.f32 %v5620_v37, %v2112_v5 }
 0x35a   :  { %v5742_v58 = vpop.eup %3558  ;;  %vm2116_vm12 = vweird.f32 %v5620_v37  ;;  %v2158_v19 = vmul.f32 %v5627_v62, %v2157_v2  ;;  %v2173_v42 = vmul.f32 %v5646_v61, %v2172_v13  ;;  %vm2175_vm4 = vweird.f32 %v5580_v18 }
 0x35b   :  { %v2179_v43 = vand.u32 2147483647, %v5580_v18  ;;  %v2188_v50 = vmul.f32 %v5670_v39, %v2187_v16  ;;  %v2217_v38 = vsub.f32 1.0, %v2216_v3  ;;  %vm5751_vm0 = vcmp.eq.f32.partialorder %v2119_v9, 8.507059e+37  ;;  %vm5777_vm8 = vmor %vm2115_vm15, %vm2116_vm12 }
 0x35c   :  { %vm5755_vm1 = vcmp.eq.f32.partialorder %v2164_v45, 8.507059e+37  ;;  %v2167_v10 = vor.u32 1.1754944e-38, %v2166_v47  ;;  %v2181_v5 = vand.u32 2147483648, %v5580_v18  ;;  %vm2190_vm3 = vweird.f32 %v5590_v44 }
 0x35d   :  { %v2203_v2 = vmul.f32 %v5691_v15, %v2202_v57  ;;  %v5764_v13 = vmul.f32 %v5742_v58, %v5560_v63  ;;  %vm2161_vm5 = vweird.f32 %v5627_v62  ;;  %v2194_v9 = vand.u32 2147483647, %v5590_v44 }
 0x35e   :  { %v2218_v45 = vmul.f32 %v5730_v52, %v2217_v38  ;;  %v2114_v27 = vadd.f32 %v5620_v37, %v2113_v23  ;;  %v2159_v16 = vadd.f32 %v5627_v62, %v2158_v19  ;;  %v2174_v47 = vadd.f32 %v5646_v61, %v2173_v42  ;;  %vm5790_vm10 = vmor %vm2160_vm2, %vm2161_vm5 }
 0x35f   :  { %vm2176_vm7 = vweird.f32 %v5646_v61  ;;  %vm5781_vm9 = vcmp.eq.f32.partialorder %v2179_v43, 8.507059e+37  ;;  %v2189_v23 = vadd.f32 %v5670_v39, %v2188_v50  ;;  %vm2191_vm13 = vweird.f32 %v5670_v39 }
 0x360   :  { %v2196_v19 = vand.u32 2147483648, %v5590_v44  ;;  %v2204_v29 = vadd.f32 %v5691_v15, %v2203_v2  ;;  %vm2206_vm15 = vweird.f32 %v5691_v15  ;;  %v2209_v43 = vand.u32 2147483647, %v5597_v21  ;;  %vm5800_vm12 = vmor %vm2175_vm4, %vm2176_vm7 }
 0x361   :  { %v2211_v38 = vand.u32 2147483648, %v5597_v21  ;;  %v2182_v33 = vor.u32 1.1754944e-38, %v2181_v5  ;;  %vm2205_vm2 = vweird.f32 %v5597_v21  ;;  %v2219_v32 = vadd.f32 %v5730_v52, %v2218_v45  ;;  %vm5820_vm4 = vmor %vm2190_vm3, %vm2191_vm13 }
 0x362   :  { %vm2221_vm5 = vweird.f32 %v5730_v52  ;;  %v2118_v2 = vsel %vm5777_vm8, %v5620_v37, %v2114_v27  ;;  %v2163_v11 = vsel %vm5790_vm10, %v5627_v62, %v2159_v16  ;;  %v2178_v18 = vsel %vm5800_vm12, %v5646_v61, %v2174_v47  ;;  %vm5830_vm8 = vmor %vm2205_vm2, %vm2206_vm15 }
 0x363   :  { %v2226_v5 = vand.u32 2147483648, %v5622_v26  ;;  %v2193_v37 = vsel %vm5820_vm4, %v5670_v39, %v2189_v23  ;;  %vm2195_vm7 = vcmp.eq.f32.partialorder %v2194_v9, 8.507059e+37  ;;  %vm2220_vm10 = vweird.f32 %v5622_v26 }
 0x364   :  { %v2224_v44 = vand.u32 2147483647, %v5622_v26  ;;  %v2197_v61 = vor.u32 1.1754944e-38, %v2196_v19  ;;  %v2208_v45 = vsel %vm5830_vm8, %v5691_v15, %v2204_v29  ;;  %vm2210_vm3 = vcmp.eq.f32.partialorder %v2209_v43, 8.507059e+37  ;;  %vm2222_vm13 = vmor %vm2220_vm10, %vm2221_vm5 }
 0x365   :  { %v2212_v27 = vor.u32 1.1754944e-38, %v2211_v38  ;;  %v5843_v39 = vsel %vm5751_vm0, %v2122_v51, %v2118_v2  ;;  %v5847_v9 = vsel %vm5755_vm1, %v2167_v10, %v2163_v11  ;;  %v5851_v26 = vsel %vm5781_vm9, %v2182_v33, %v2178_v18 }
 0x366   :  { %v2223_v16 = vsel %vm2222_vm13, %v5730_v52, %v2219_v32  ;;  %v5854_v15 = vsel %vm2195_vm7, %v2197_v61, %v2193_v37  ;;  %v2227_v47 = vor.u32 1.1754944e-38, %v2226_v5  ;;  %v2246_v57 = vmul.f32 1.0614054, %v5705_v35 }
 0x367   :  { %v2247_v23 = vmul.f32 1.0614054, %v5709_v60  ;;  %v5858_v20 = vsel %vm2210_vm3, %v2212_v27, %v2208_v45  ;;  %vm2225_vm0 = vcmp.eq.f32.partialorder %v2224_v44, 8.507059e+37  ;;  %v2248_v51 = vmul.f32 1.0614054, %v5727_v34 }
 0x368   :  { %v2249_v11 = vmul.f32 1.0614054, %v5737_v8  ;;  %v2020_v28 = vmul.f32 0.3275911, %v5682_v22  ;;  %v5863_v33 = vsel %vm2225_vm0, %v2227_v47, %v2223_v16  ;;  %v2250_v52 = vmul.f32 1.0614054, %v5843_v39 }
 0x369   :  { %v2253_v10 = vmul.f32 1.0614054, %v5847_v9  ;;  %v2378_v3 = vsub.f32 0.0, %v5373_v30  ;;  %v2127_v19 = vsub.f32 1.0, %v5764_v13  ;;  %v2254_v42 = vmul.f32 1.0614054, %v5851_v26 }
 0x36a   :  { %v2255_v29 = vmul.f32 1.0614054, %v5854_v15  ;;  %v2256_v43 = vmul.f32 1.0614054, %v5858_v20  ;;  %v2260_v38 = vadd.f32 -1.4531521, %v2246_v57  ;;  %v2301_v5 = vmul.f32 %v5679_v54, %v5565_v55 }
 0x36b   :  { %v2261_v50 = vadd.f32 -1.4531521, %v2247_v23  ;;  %v2257_v32 = vmul.f32 1.0614054, %v5863_v33  ;;  %v2262_v2 = vadd.f32 -1.4531521, %v2248_v51  ;;  %v2392_v13 = vmul.f32 %v2378_v3, %v5373_v30 }
 0x36c   :  { %v2263_v18 = vadd.f32 -1.4531521, %v2249_v11  ;;  %v2294_v21 = vadd.f32 1.4214138, %v5649_v41  ;;  %v2264_v37 = vadd.f32 -1.4531521, %v2250_v52  ;;  %3560 = vpow2.f32 %v5498_v48 }
 0x36d   :  { %v2267_v62 = vadd.f32 -1.4531521, %v2253_v10  ;;  %v5878_v44 = vadd.f32 1.0, %v2020_v28  ;;  %v2268_v61 = vadd.f32 -1.4531521, %v2254_v42  ;;  %v2128_v45 = vmul.f32 %v5742_v58, %v2127_v19 }
 0x36e   :  { %v2269_v27 = vadd.f32 -1.4531521, %v2255_v29  ;;  %v2270_v16 = vadd.f32 -1.4531521, %v2256_v43  ;;  %v2274_v47 = vmul.f32 %v2260_v38, %v5705_v35  ;;  %v2271_v57 = vadd.f32 -1.4531521, %v2257_v32 }
 0x36f   :  { %v2275_v41 = vmul.f32 %v2261_v50, %v5709_v60  ;;  %v2276_v54 = vmul.f32 %v2262_v2, %v5727_v34  ;;  %v2277_v23 = vmul.f32 %v2263_v18, %v5737_v8  ;;  %v2308_v30 = vmul.f32 %v2294_v21, %v5567_v14 }
 0x370   :  { %v2315_v51 = vadd.f32 -0.28449672, %v2301_v5  ;;  %v2278_v48 = vmul.f32 %v2264_v37, %v5843_v39  ;;  %v2281_v11 = vmul.f32 %v2267_v62, %v5847_v9  ;;  %vm2131_vm1 = vweird.f32 %v5742_v58 }
 0x371   :  { %v2136_v28 = vand.u32 2147483648, %v5560_v63  ;;  %3562 = vrcp.f32 %v5878_v44  ;;  %v2282_v52 = vmul.f32 %v2268_v61, %v5851_v26  ;;  %v2129_v10 = vadd.f32 %v5742_v58, %v2128_v45 }
 0x372   :  { %v2283_v3 = vmul.f32 %v2269_v27, %v5854_v15  ;;  %v2284_v19 = vmul.f32 %v2270_v16, %v5858_v20  ;;  %v2288_v42 = vadd.f32 1.4214138, %v2274_v47  ;;  %v5895_v29 = vpop.eup %3560  ;;  %v2285_v43 = vmul.f32 %v2271_v57, %v5863_v33 }
 0x373   :  { %v2289_v38 = vadd.f32 1.4214138, %v2275_v41  ;;  %v2290_v50 = vadd.f32 1.4214138, %v2276_v54  ;;  %v2291_v32 = vadd.f32 1.4214138, %v2277_v23  ;;  %vm2130_vm9 = vweird.f32 %v5560_v63 }
 0x374   :  { %v2134_v2 = vand.u32 2147483647, %v5560_v63  ;;  %v2292_v18 = vadd.f32 1.4214138, %v2278_v48  ;;  %v2295_v21 = vadd.f32 1.4214138, %v2281_v11  ;;  %v2329_v5 = vmul.f32 %v2315_v51, %v5565_v55  ;;  %vm5905_vm15 = vmor %vm2130_vm9, %vm2131_vm1 }
 0x375   :  { %v5901_v37 = vmul.f32 1.442695, %v2392_v13  ;;  %v2137_v61 = vor.u32 1.1754944e-38, %v2136_v28  ;;  %v2296_v45 = vadd.f32 1.4214138, %v2282_v52  ;;  %v2133_v27 = vsel %vm5905_vm15, %v5742_v58, %v2129_v10 }
 0x376   :  { %v2297_v16 = vadd.f32 1.4214138, %v2283_v3  ;;  %v2298_v63 = vadd.f32 1.4214138, %v2284_v19  ;;  %v2302_v47 = vmul.f32 %v2288_v42, %v5705_v35  ;;  %v2299_v13 = vadd.f32 1.4214138, %v2285_v43 }
 0x377   :  { %v5913_v57 = vpop.eup %3562  ;;  %v2303_v41 = vmul.f32 %v2289_v38, %v5709_v60  ;;  %v2304_v54 = vmul.f32 %v2290_v50, %v5727_v34  ;;  %v2305_v23 = vmul.f32 %v2291_v32, %v5737_v8  ;;  %v5918_v51 = vadd.f32 -0.28449672, %v2308_v30 }
 0x378   :  { %vm2135_vm12 = vcmp.eq.f32.partialorder %v2134_v2, 8.507059e+37  ;;  %v2306_v48 = vmul.f32 %v2292_v18, %v5843_v39  ;;  %v2309_v58 = vmul.f32 %v2295_v21, %v5847_v9  ;;  %v5922_v11 = vadd.f32 0.2548296, %v2329_v5 }
 0x379   :  { %v5924_v28 = vsel %vm2135_vm12, %v2137_v61, %v2133_v27  ;;  %v2310_v10 = vmul.f32 %v2296_v45, %v5851_v26  ;;  %v5930_v3 = vmul.f32 %v5913_v57, %v5878_v44  ;;  %v2311_v30 = vmul.f32 %v2297_v16, %v5854_v15 }
 0x37a   :  { %v2312_v19 = vmul.f32 %v2298_v63, %v5858_v20  ;;  %v2316_v42 = vadd.f32 -0.28449672, %v2302_v47  ;;  %v2313_v43 = vmul.f32 %v2299_v13, %v5863_v33  ;;  %v2317_v38 = vadd.f32 -0.28449672, %v2303_v41 }
 0x37b   :  { %v2318_v50 = vadd.f32 -0.28449672, %v2304_v54  ;;  %v2319_v32 = vadd.f32 -0.28449672, %v2305_v23  ;;  %v2320_v2 = vadd.f32 -0.28449672, %v2306_v48  ;;  %vm2236_vm0 = vweird.f32 %v5913_v57 }
 0x37c   :  { %v2323_v18 = vadd.f32 -0.28449672, %v2309_v58  ;;  %v2372_v21 = vsub.f32 0.0, %v5404_v7  ;;  %v2373_v5 = vsub.f32 0.0, %v5410_v56  ;;  %v2324_v62 = vadd.f32 -0.28449672, %v2310_v10 }
 0x37d   :  { %v2374_v61 = vsub.f32 0.0, %v5421_v17  ;;  %v2375_v45 = vsub.f32 0.0, %v5427_v25  ;;  %v2376_v27 = vsub.f32 0.0, %v5482_v46  ;;  %v2325_v63 = vadd.f32 -0.28449672, %v2311_v30 }
 0x37e   :  { %v2326_v47 = vadd.f32 -0.28449672, %v2312_v19  ;;  %v2379_v13 = vsub.f32 0.0, %v5501_v36  ;;  %v2327_v41 = vadd.f32 -0.28449672, %v2313_v43  ;;  %v2380_v54 = vsub.f32 0.0, %v5515_v59 }
 0x37f   :  { %v2386_v23 = vmul.f32 %v2372_v21, %v5404_v7  ;;  %v2387_v48 = vmul.f32 %v2373_v5, %v5410_v56  ;;  %v2330_v58 = vmul.f32 %v2316_v42, %v5705_v35  ;;  %v2381_v10 = vsub.f32 0.0, %v5537_v12 }
 0x380   :  { %v2388_v52 = vmul.f32 %v2374_v61, %v5421_v17  ;;  %v2389_v22 = vmul.f32 %v2375_v45, %v5427_v25  ;;  %v2331_v30 = vmul.f32 %v2317_v38, %v5709_v60  ;;  %v2332_v19 = vmul.f32 %v2318_v50, %v5727_v34 }
 0x381   :  { %v2333_v43 = vmul.f32 %v2319_v32, %v5737_v8  ;;  %v2390_v16 = vmul.f32 %v2376_v27, %v5482_v46  ;;  %v2334_v7 = vmul.f32 %v2320_v2, %v5843_v39  ;;  %v2393_v56 = vmul.f32 %v2379_v13, %v5501_v36 }
 0x382   :  { %v2401_v21 = vmul.f32 1.442695, %v2386_v23  ;;  %v2403_v42 = vmul.f32 1.442695, %v2387_v48  ;;  %v2337_v5 = vmul.f32 %v2323_v18, %v5847_v9  ;;  %v2338_v17 = vmul.f32 %v2324_v62, %v5851_v26 }
 0x383   :  { %v2394_v25 = vmul.f32 %v2380_v54, %v5515_v59  ;;  %v2405_v61 = vmul.f32 1.442695, %v2388_v52  ;;  %v2339_v38 = vmul.f32 %v2325_v63, %v5854_v15  ;;  %v2340_v50 = vmul.f32 %v2326_v47, %v5858_v20  ;;  %v3385_v59 = vld [vmem:[%s6756_s7 + $0xf8] sm:$0xff]  ;;  %v3384_v52 = vld [vmem:[%s6756_s7 + $0xf0] sm:$0xff] }
 0x384   :  { %v2395_v32 = vmul.f32 %v2381_v10, %v5537_v12  ;;  %v2407_v46 = vmul.f32 1.442695, %v2389_v22  ;;  %v2344_v45 = vadd.f32 0.2548296, %v2330_v58  ;;  %v2382_v2 = vsub.f32 0.0, %v5555_v6  ;;  %2603 = vmatpush.msrb.mxu2 %v3385_v59  ;;  %v2554_v58 = vld [vmem:[%s6756_s7 + $0x78] sm:$0xff] }
 0x385   :  { %3564 = vpow2.f32 %v2401_v21  ;;  %v2409_v36 = vmul.f32 1.442695, %v2390_v16  ;;  %v2341_v27 = vmul.f32 %v2327_v41, %v5863_v33  ;;  %v2345_v18 = vadd.f32 0.2548296, %v2331_v30  ;;  %v3383_v41 = vld [vmem:[%s6756_s7 + $0xe8] sm:$0xff]  ;;  %2649 = vmatpush.msrb.mxu3 %v2554_v58 }
 0x386   :  { %3566 = vpow2.f32 %v2403_v42  ;;  %v2415_v62 = vmul.f32 1.442695, %v2393_v56  ;;  %v2346_v12 = vadd.f32 0.2548296, %v2332_v19  ;;  %v2347_v22 = vadd.f32 0.2548296, %v2333_v43  ;;  %2604 = vmatpush.msrb.mxu2 %v3384_v52 }
 0x387   :  { %3568 = vpow2.f32 %v2405_v61  ;;  %v2417_v63 = vmul.f32 1.442695, %v2394_v25  ;;  %v2348_v47 = vadd.f32 0.2548296, %v2334_v7  ;;  %v2383_v16 = vsub.f32 0.0, %v5577_v1  ;;  %v3382_v43 = vld [vmem:[%s6756_s7 + $0xe0] sm:$0xff] }
 0x388   :  { %3570 = vpow2.f32 %v2407_v46  ;;  %v2419_v13 = vmul.f32 1.442695, %v2395_v32  ;;  %v2351_v54 = vadd.f32 0.2548296, %v2337_v5  ;;  %v2352_v23 = vadd.f32 0.2548296, %v2338_v17  ;;  %2605 = vmatpush.msrb.mxu2 %v3383_v41 }
 0x389   :  { %v2396_v48 = vmul.f32 %v2382_v2, %v5555_v6  ;;  %3572 = vpow2.f32 %v2409_v36  ;;  %v2353_v10 = vadd.f32 0.2548296, %v2339_v38  ;;  %v2358_v30 = vmul.f32 %v2344_v45, %v5705_v35  ;;  %v2553_v6 = vld [vmem:[%s6756_s7 + $0x70] sm:$0xff]  ;;  %v3381_v61 = vld [vmem:[%s6756_s7 + $0xd8] sm:$0xff]  ;;  %v3399_v41 = vld [vmem:[%s6756_s7 + $0x168] sm:$0xff] }
 0x38a   :  { %v2359_v19 = vmul.f32 %v2345_v18, %v5709_v60  ;;  %3574 = vpow2.f32 %v2415_v62  ;;  %v2354_v56 = vadd.f32 0.2548296, %v2340_v50  ;;  %v2355_v21 = vadd.f32 0.2548296, %v2341_v27  ;;  %v2552_v60 = vld [vmem:[%s6756_s7 + $0x68] sm:$0xff]  ;;  %2650 = vmatpush.msrb.mxu3 %v2553_v6  ;;  %2606 = vmatpush.msrb.mxu2 %v3382_v43  ;;  %v3401_v52 = vld [vmem:[%s6756_s7 + $0x178] sm:$0xff] }
 0x38b   :  { %v3565_v7 = vpop.eup %3564  ;;  %v2360_v42 = vmul.f32 %v2346_v12, %v5727_v34  ;;  %3576 = vpow2.f32 %v2417_v63  ;;  %v2361_v5 = vmul.f32 %v2347_v22, %v5737_v8  ;;  %v2362_v17 = vmul.f32 %v2348_v47, %v5843_v39  ;;  %2712 = vmatpush.msra.mxu0 %v3401_v52 }
 0x38c   :  { %v3567_v35 = vpop.eup %3566  ;;  %v2397_v25 = vmul.f32 %v2383_v16, %v5577_v1  ;;  %3578 = vpow2.f32 %v2419_v13  ;;  %v5997_v38 = vmul.f32 %v5918_v51, %v5567_v14  ;;  %v6000_v50 = vmul.f32 1.0614054, %v5924_v28  ;;  %v2551_v1 = vld [vmem:[%s6756_s7 + $0x60] sm:$0xff]  ;;  %2651 = vmatpush.msrb.mxu3 %v2552_v60  ;;  %2607 = vmatpush.msrb.mxu2 %v3381_v61  ;;  %v2549_v13 = vld [vmem:[%s6756_s7 + $0x50] sm:$0xff] }
 0x38d   :  { %v3569_v34 = vpop.eup %3568  ;;  %v2365_v8 = vmul.f32 %v2351_v54, %v5847_v9  ;;  %v2421_v32 = vmul.f32 1.442695, %v2396_v48  ;;  %v6955_v46 = vsub.f32 1.0, %v5930_v3  ;;  %v2366_v51 = vmul.f32 %v2352_v23, %v5851_v26  ;;  %v3380_v9 = vld [vmem:[%s6756_s7 + $0xd0] sm:$0xff]  ;;  %v2550_v26 = vld [vmem:[%s6756_s7 + $0x58] sm:$0xff] }
 0x38e   :  { %v3571_v39 = vpop.eup %3570  ;;  %v6012_v2 = vmul.f32 %v3565_v7, %v2358_v30  ;;  %v6014_v36 = vmul.f32 %v3567_v35, %v2359_v19  ;;  %v2367_v18 = vmul.f32 %v2353_v10, %v5854_v15  ;;  %v6021_v62 = vmul.f32 %v2354_v56, %v5858_v20  ;;  %v3379_v20 = vld [vmem:[%s6756_s7 + $0xc8] sm:$0xff]  ;;  %2652 = vmatpush.msrb.mxu3 %v2551_v1  ;;  %v3378_v30 = vld [vmem:[%s6756_s7 + $0xc0] sm:$0xff] }
 0x38f   :  { %v6009_v45 = vmul.f32 %v5913_v57, %v6955_v46  ;;  %v3573_v27 = vpop.eup %3572  ;;  %v6024_v3 = vmul.f32 %v2355_v21, %v5863_v33  ;;  %v6026_v59 = vmul.f32 %v3569_v34, %v2360_v42  ;;  %v2423_v22 = vmul.f32 1.442695, %v2397_v25  ;;  %v3400_v33 = vld [vmem:[%s6756_s7 + $0x170] sm:$0xff]  ;;  %2608 = vmatpush.msrb.mxu2 %v3380_v9  ;;  %v2548_v56 = vld [vmem:[%s6756_s7 + $0x48] sm:$0xff]  ;;  %v3398_v21 = vld [vmem:[%s6756_s7 + $0x160] sm:$0xff] }
 0x390   :  { %v3575_v12 = vpop.eup %3574  ;;  %v2431_v15 = vmul.f32 %v3571_v39, %v2361_v5  ;;  %v2432_v63 = vmul.f32 %v3573_v27, %v2362_v17  ;;  %vm2442_vm2 = vcmp.lt.f32.partialorder %v5392_v49, 0.0  ;;  %3580 = vpow2.f32 %v2421_v32  ;;  %2653 = vmatpush.msrb.mxu3 %v2550_v26  ;;  %2713 = vmatpush.msra.mxu0 %v3400_v33  ;;  %v3377_v17 = vld [vmem:[%s6756_s7 + $0xb8] sm:$0xff]  ;;  %v2547_v34 = vld [vmem:[%s6756_s7 + $0x40] sm:$0xff]  ;;  %v3376_v46 = vld [vmem:[%s6756_s7 + $0xb0] sm:$0xff] }
 0x391   :  { %v3577_v47 = vpop.eup %3576  ;;  %v2435_v16 = vmul.f32 %v3575_v12, %v2365_v8  ;;  %vm2443_vm5 = vcmp.lt.f32.partialorder %v5398_v24, 0.0  ;;  %vm2444_vm4 = vcmp.lt.f32.partialorder %v5401_v4, 0.0  ;;  %v3357_v48 = vadd.f32 -1.0, %v6012_v2  ;;  %2609 = vmatpush.msrb.mxu2 %v3379_v20  ;;  %v3375_v49 = vld [vmem:[%s6756_s7 + $0xa8] sm:$0xff]  ;;  %v6957_v26 = vld [vmem:[#allocation25_spill] sm:$0xff]  ;;  %v3374_v33 = vld [vmem:[%s6756_s7 + $0xa0] sm:$0xff] }
 0x392   :  { %v3579_v54 = vpop.eup %3578  ;;  %v2436_v23 = vmul.f32 %v3577_v47, %v2366_v51  ;;  %v3358_v58 = vadd.f32 -1.0, %v6014_v36  ;;  %v2470_v10 = vsub.f32 1.0, %v6012_v2  ;;  %v3359_v43 = vadd.f32 -1.0, %v6026_v59  ;;  %2654 = vmatpush.msrb.mxu3 %v2549_v13  ;;  %2714 = vmatpush.msra.mxu0 %v3399_v41  ;;  %v6958_v12 = vld [vmem:[#allocation20_spill] sm:$0xff]  ;;  %v2545_v4 = vld [vmem:[%s6756_s7 + $0x30] sm:$0xff] }
 0x393   :  { %v2437_v19 = vmul.f32 %v3579_v54, %v2367_v18  ;;  %v2471_v6 = vsub.f32 1.0, %v6014_v36  ;;  %v2472_v7 = vsub.f32 1.0, %v6026_v59  ;;  %v3360_v42 = vadd.f32 -1.0, %v2431_v15  ;;  %2610 = vmatpush.msrb.mxu2 %v3378_v30  ;;  %v2546_v36 = vld [vmem:[%s6756_s7 + $0x38] sm:$0xff]  ;;  %v6956_v18 = vld [vmem:[#allocation29_spill] sm:$0xff] }
 0x394   :  { %v3361_v60 = vadd.f32 -1.0, %v2432_v63  ;;  %v2473_v35 = vsub.f32 1.0, %v2431_v15  ;;  %v2474_v5 = vsub.f32 1.0, %v2432_v63  ;;  %3582 = vpow2.f32 %v2423_v22  ;;  %2655 = vmatpush.msrb.mxu3 %v2548_v56  ;;  %2715 = vmatpush.msra.mxu0 %v3398_v21  ;;  %v6959_v15 = vld [vmem:[#allocation19_spill] sm:$0xff] }
 0x395   :  { %vm2445_vm7 = vcmp.lt.f32.partialorder %v5407_v0, 0.0  ;;  %v3364_v25 = vadd.f32 -1.0, %v2435_v16  ;;  %v2477_v61 = vsub.f32 1.0, %v2435_v16  ;;  %v3365_v8 = vadd.f32 -1.0, %v2436_v23  ;;  %2611 = vmatpush.msrb.mxu2 %v3377_v17  ;;  %v3397_v17 = vld [vmem:[%s6756_s7 + $0x158] sm:$0xff] }
 0x396   :  { %v3366_v32 = vadd.f32 -1.0, %v2437_v19  ;;  %v2478_v1 = vsub.f32 1.0, %v2436_v23  ;;  %v2479_v39 = vsub.f32 1.0, %v2437_v19  ;;  %v3581_v51 = vpop.eup %3580  ;;  %vm2446_vm8 = vcmp.lt.f32.partialorder %v5453_v31, 0.0  ;;  %2656 = vmatpush.msrb.mxu3 %v2547_v34  ;;  %2716 = vmatpush.msra.mxu0 %v3397_v17 }
 0x397   :  { %vm2449_vm10 = vcmp.lt.f32.partialorder %v5471_v53, 0.0  ;;  %vm2450_vm3 = vcmp.lt.f32.partialorder %v5478_v40, 0.0  ;;  %v2484_v2 = vsel %vm2442_vm2, %v3357_v48, %v2470_v10  ;;  %v2485_v9 = vsel %vm2443_vm5, %v3358_v58, %v2471_v6  ;;  %2612 = vmatpush.msrb.mxu2 %v3376_v46  ;;  %v2544_v40 = vld [vmem:[%s6756_s7 + $0x28] sm:$0xff]  ;;  %v6960_v48 = vld [vmem:[#allocation14_spill] sm:$0xff]  ;;  %v6961_v10 = vld [vmem:[#allocation23_spill] sm:$0xff] }
 0x398   :  { %v2486_v27 = vsel %vm2444_vm4, %v3359_v43, %v2472_v7  ;;  %v2487_v31 = vsel %vm2445_vm7, %v3360_v42, %v2473_v35  ;;  %v2488_v53 = vsel %vm2446_vm8, %v3361_v60, %v2474_v5  ;;  %vm2451_vm13 = vcmp.lt.f32.partialorder %v6956_v18, 0.0  ;;  %2657 = vmatpush.msrb.mxu3 %v2546_v36  ;;  %v6962_v6 = vld [vmem:[#allocation16_spill] sm:$0xff]  ;;  %v2543_v42 = vld [vmem:[%s6756_s7 + $0x20] sm:$0xff] }
 0x399   :  { %v2491_v59 = vsel %vm2449_vm10, %v3364_v25, %v2477_v61  ;;  %v2498_v52 = vmul.f32 0.5, %v6957_v26  ;;  %v2499_v24 = vmul.f32 0.5, %v6958_v12  ;;  %v2492_v0 = vsel %vm2450_vm3, %v3365_v8, %v2478_v1  ;;  %2613 = vmatpush.msrb.mxu2 %v3375_v49  ;;  %v6963_v61 = vld [vmem:[#allocation18_spill] sm:$0xff]  ;;  %v2541_v49 = vld [vmem:[%s6756_s7 + $0x10] sm:$0xff]  ;;  %v3370_v12 = vld [vmem:[%s6756_s7 + $0x80] sm:$0xff] }
 0x39a   :  { %v2493_v22 = vsel %vm2451_vm13, %v3366_v32, %v2479_v39  ;;  %v2500_v63 = vmul.f32 0.5, %v6959_v15  ;;  %v2512_v20 = vadd.f32 1.0, %v2484_v2  ;;  %v3583_v47 = vpop.eup %3582  ;;  %v2513_v16 = vadd.f32 1.0, %v2485_v9  ;;  %2658 = vmatpush.msrb.mxu3 %v2545_v4  ;;  %v3372_v32 = vld [vmem:[%s6756_s7 + $0x90] sm:$0xff]  ;;  %v2542_v1 = vld [vmem:[%s6756_s7 + $0x18] sm:$0xff]  ;;  %v6967_v4 = vld [vmem:[#allocation31_spill] sm:$0xff] }
 0x39b   :  { %v2514_v13 = vadd.f32 1.0, %v2486_v27  ;;  %v2515_v41 = vadd.f32 1.0, %v2487_v31  ;;  %v2516_v54 = vadd.f32 1.0, %v2488_v53  ;;  %v6107_v23 = vmul.f32 %v3581_v51, %v6021_v62  ;;  %2614 = vmatpush.msrb.mxu2 %v3374_v33  ;;  %v3373_v62 = vld [vmem:[%s6756_s7 + $0x98] sm:$0xff]  ;;  %v6964_v51 = vld [vmem:[#allocation17_spill] sm:$0xff]  ;;  %v3371_v53 = vld [vmem:[%s6756_s7 + $0x88] sm:$0xff] }
 0x39c   :  { %v2501_v58 = vmul.f32 0.5, %v6960_v48  ;;  %v2502_v30 = vmul.f32 0.5, %v6961_v10  ;;  %v2519_v19 = vadd.f32 1.0, %v2491_v59  ;;  %v6112_v43 = vmul.f32 %v3583_v47, %v6024_v3  ;;  %2659 = vmatpush.msrb.mxu3 %v2544_v40  ;;  %v3396_v9 = vld [vmem:[%s6756_s7 + $0x150] sm:$0xff]  ;;  %v3395_v59 = vld [vmem:[%s6756_s7 + $0x148] sm:$0xff]  ;;  %v6970_v10 = vld [vmem:[#allocation27_spill] sm:$0xff] }
 0x39d   :  { %v2505_v7 = vmul.f32 0.5, %v6962_v6  ;;  %v2520_v56 = vadd.f32 1.0, %v2492_v0  ;;  %v6115_v21 = vmul.f32 %v2512_v20, %v2498_v52  ;;  %v2521_v60 = vadd.f32 1.0, %v2493_v22  ;;  %2615 = vmatpush.msrb.mxu2 %v3373_v62  ;;  %2717 = vmatpush.msra.mxu0 %v3396_v9  ;;  %v3394_v0 = vld [vmem:[%s6756_s7 + $0x140] sm:$0xff]  ;;  %v6971_v6 = vld [vmem:[#allocation30_spill] sm:$0xff] }
 0x39e   :  { %v6123_v35 = vmul.f32 %v2513_v16, %v2499_v24  ;;  %v6125_v5 = vmul.f32 %v2514_v13, %v2500_v63  ;;  %v6127_v3 = vmul.f32 %v2515_v41, %v2501_v58  ;;  %v2241_v25 = vand.u32 2147483648, %v5878_v44  ;;  %2660 = vmatpush.msrb.mxu3 %v2543_v42  ;;  %v2540_v24 = vld [vmem:[%s6756_s7 + $0x8] sm:$0xff]  ;;  %v3393_v13 = vld [vmem:[%s6756_s7 + $0x138] sm:$0xff]  ;;  %v3390_v62 = vld [vmem:[%s6756_s7 + $0x120] sm:$0xff] }
 0x39f   :  { %v2506_v34 = vmul.f32 0.5, %v6963_v61  ;;  %v6135_v8 = vmul.f32 %v2516_v54, %v2502_v30  ;;  %2582 = vst [vmem:[#allocation1] ss:$9 sm:$0xff] %v6115_v21  ;;  %v2234_v39 = vadd.f32 %v5913_v57, %v6009_v45  ;;  %v2265_v46 = vadd.f32 -1.4531521, %v6000_v50  ;;  %2616 = vmatpush.msrb.mxu2 %v3372_v32  ;;  %v6968_v63 = vld [vmem:[#allocation32_spill] sm:$0xff]  ;;  %2718 = vmatpush.msra.mxu0 %v3395_v59 }
 0x3a0   :  { %v2507_v2 = vmul.f32 0.5, %v6964_v51  ;;  %v6148_v36 = vmul.f32 %v2519_v19, %v2505_v7  ;;  %2584 = vst [vmem:[#allocation1 + $0x1] ss:$9 sm:$0xff] %v6123_v35  ;;  %v2357_v27 = vmul.f32 %v5922_v11, %v5565_v55  ;;  %v3367_v31 = vadd.f32 -1.0, %v6107_v23  ;;  %2661 = vmatpush.msrb.mxu3 %v2542_v1  ;;  %v3391_v19 = vld [vmem:[%s6756_s7 + $0x128] sm:$0xff] }
 0x3a1   :  { %v2480_v45 = vsub.f32 1.0, %v6107_v23  ;;  %v6158_v50 = vmul.f32 %v2520_v56, %v2506_v34  ;;  %2586 = vst [vmem:[#allocation1 + $0x2] ss:$9 sm:$0xff] %v6125_v5  ;;  %vm2235_vm1 = vweird.f32 %v5878_v44  ;;  %v3368_v55 = vadd.f32 -1.0, %v6112_v43  ;;  %2617 = vmatpush.msrb.mxu2 %v3371_v53  ;;  %2719 = vmatpush.msra.mxu0 %v3394_v0  ;;  %v6972_v42 = vld [vmem:[#allocation24_spill] sm:$0xff] }
 0x3a2   :  { %v2481_v11 = vsub.f32 1.0, %v6112_v43  ;;  %v6170_v18 = vmul.f32 %v2521_v60, %v2507_v2  ;;  %2588 = vst [vmem:[#allocation1 + $0x3] ss:$9 sm:$0xff] %v6127_v3  ;;  %v2350_v26 = vadd.f32 0.2548296, %v5997_v38  ;;  %vm6179_vm9 = vmor %vm2235_vm1, %vm2236_vm0  ;;  %3584 = vpow2.f32 %v5901_v37  ;;  %2662 = vmatpush.msrb.mxu3 %v2541_v49  ;;  %v6974_v2 = vld [vmem:[#allocation13_spill] sm:$0xff] }
 0x3a3   :  { %2590 = vst [vmem:[#allocation1 + $0x4] ss:$9 sm:$0xff] %v6135_v8  ;;  %v2238_v38 = vsel %vm6179_vm9, %v5913_v57, %v2234_v39  ;;  %vm2452_vm15 = vcmp.lt.f32.partialorder %v6967_v4, 0.0  ;;  %v2427_v22 = vmul.f32 %v5895_v29, %v2357_v27  ;;  %v2242_v15 = vor.u32 1.1754944e-38, %v2241_v25  ;;  %v2539_v57 = vld [vmem:[%s6756_s7] sm:$0xff]  ;;  %2618 = vmatpush.msrb.mxu2 %v3370_v12  ;;  %2720 = vmatpush.msra.mxu0 %v3393_v13  ;;  %v6973_v39 = vld [vmem:[#allocation28_spill] sm:$0xff] }
 0x3a4   :  { %2592 = vst [vmem:[#allocation1 + $0x5] ss:$9 sm:$0xff] %v6148_v36  ;;  %vm2453_vm12 = vcmp.lt.f32.partialorder %v6968_v63, 0.0  ;;  %v2494_v37 = vsel %vm2452_vm15, %v3367_v31, %v2480_v45  ;;  %v6969_v20 = vand.u32 2147483647, %v5878_v44  ;;  %v2279_v33 = vmul.f32 %v2265_v46, %v5924_v28  ;;  %2663 = vmatpush.msrb.mxu3 %v2540_v24  ;;  %v3392_v44 = vld [vmem:[%s6756_s7 + $0x130] sm:$0xff] }
 0x3a5   :  { %2594 = vst [vmem:[#allocation1 + $0x6] ss:$9 sm:$0xff] %v6158_v50  ;;  %v2495_v47 = vsel %vm2453_vm12, %v3368_v55, %v2481_v11  ;;  %v2364_v29 = vmul.f32 %v2350_v26, %v5567_v14  ;;  %v2522_v41 = vadd.f32 1.0, %v2494_v37  ;;  %v3356_v54 = vadd.f32 -1.0, %v2427_v22  ;;  %2721 = vmatpush.msra.mxu0 %v3392_v44  ;;  %v6975_v45 = vld [vmem:[#allocation21_spill] sm:$0xff]  ;;  %v3389_v12 = vld [vmem:[%s6756_s7 + $0x118] sm:$0xff] }
 0x3a6   :  { %vm2240_vm2 = vcmp.eq.f32.partialorder %v6969_v20, 8.507059e+37  ;;  %2596 = vst [vmem:[#allocation1 + $0x7] ss:$9 sm:$0xff] %v6170_v18  ;;  %2664 = vmatpush.msrb.mxu3 %v2539_v57  ;;  %v2469_v40 = vsub.f32 1.0, %v2427_v22  ;;  %v2523_v23 = vadd.f32 1.0, %v2495_v47  ;;  %v2508_v30 = vmul.f32 0.5, %v6970_v10 }
 0x3a7   :  { %v6210_v16 = vsel %vm2240_vm2, %v2242_v15, %v2238_v38  ;;  %v2293_v58 = vadd.f32 1.4214138, %v2279_v33  ;;  %v2509_v7 = vmul.f32 0.5, %v6971_v6  ;;  %vm2441_vm5 = vcmp.lt.f32.partialorder %v6972_v42, 0.0  ;;  %2722 = vmatpush.msra.mxu0 %v3391_v19  ;;  %v3388_v24 = vld [vmem:[%s6756_s7 + $0x110] sm:$0xff]  ;;  %v6976_v4 = vld [vmem:[#allocation22_spill] sm:$0xff] }
 0x3a8   :  { %v3585_v48 = vpop.eup %3584  ;;  %v2258_v14 = vmul.f32 1.0614054, %v6210_v16  ;;  %v6224_v56 = vmul.f32 %v2522_v41, %v2508_v30  ;;  %v2483_v25 = vsel %vm2441_vm5, %v3356_v54, %v2469_v40  ;;  %v2377_v46 = vsub.f32 0.0, %v6973_v39  ;;  %v3387_v22 = vld [vmem:[%s6756_s7 + $0x108] sm:$0xff]  ;;  %v3386_v57 = vld [vmem:[%s6756_s7 + $0x100] sm:$0xff]  ;;  %v6979_v6 = vld [vmem:[#allocation26_spill] sm:$0xff] }
 0x3a9   :  { %v2434_v43 = vmul.f32 %v3585_v48, %v2364_v29  ;;  %v6230_v60 = vmul.f32 %v2523_v23, %v2509_v7  ;;  %v2307_v34 = vmul.f32 %v2293_v58, %v5924_v28  ;;  %2723 = vmatpush.msra.mxu0 %v3390_v62  ;;  %v2511_v51 = vadd.f32 1.0, %v2483_v25  ;;  %v6977_v20 = vld [vmem:[#allocation35_spill] sm:$0xff] }
 0x3aa   :  { %v2272_v61 = vadd.f32 -1.4531521, %v2258_v14  ;;  %vm2448_vm4 = vcmp.lt.f32.partialorder %v6974_v2, 0.0  ;;  %v2497_v53 = vmul.f32 0.5, %v6975_v45  ;;  %v2391_v49 = vmul.f32 %v2377_v46, %v6973_v39 }
 0x3ab   :  { %v3363_v32 = vadd.f32 -1.0, %v2434_v43  ;;  %v2476_v1 = vsub.f32 1.0, %v2434_v43  ;;  %v2321_v27 = vadd.f32 -0.28449672, %v2307_v34  ;;  %2724 = vmatpush.msra.mxu0 %v3389_v12  ;;  %v2504_v0 = vmul.f32 0.5, %v6976_v4 }
 0x3ac   :  { %v2286_v9 = vmul.f32 %v2272_v61, %v6210_v16  ;;  %v2525_v55 = vmul.f32 %v2511_v51, %v2497_v53  ;;  %v2411_v38 = vmul.f32 1.442695, %v2391_v49  ;;  %v2384_v33 = vsub.f32 0.0, %v6977_v20  ;;  %v6981_v61 = vld [vmem:[#allocation33_spill] sm:$0xff] }
 0x3ad   :  { %v2597_v17 = vld [vmem:[#allocation1] sm:$0xff]  ;;  %v2490_v31 = vsel %vm2448_vm4, %v3363_v32, %v2476_v1  ;;  %v2335_v26 = vmul.f32 %v2321_v27, %v5924_v28  ;;  %2725 = vmatpush.msra.mxu0 %v3388_v24  ;;  %v2503_v7 = vmul.f32 0.5, %v6979_v6  ;;  %v3437_v1 = vld [vmem:[#allocation9] ss:$0 sm:$0xff] }
 0x3ae   :  { %2619 = vmatmul.f32.vlgmr.msrb.gmra.mxu2 %v2597_v17  ;;  %2598 = vst [vmem:[#allocation1] ss:$9 sm:$0xff] %v6224_v56  ;;  %v2518_v11 = vadd.f32 1.0, %v2490_v31  ;;  %v2300_v59 = vadd.f32 1.4214138, %v2286_v9  ;;  %3586 = vpow2.f32 %v2411_v38  ;;  %v2398_v29 = vmul.f32 %v2384_v33, %v6977_v20 }
 0x3af   :  { %2599 = vst [vmem:[#allocation1 + $0x1] ss:$9 sm:$0xff] %v6230_v60  ;;  %v2349_v37 = vadd.f32 0.2548296, %v2335_v26  ;;  %2726 = vmatpush.msra.mxu0 %v3387_v22  ;;  %v2759_v51 = vrot.slane %v3437_v1, 1  ;;  %v2760_v2 = vrot.slane %v3437_v1, 2 }
 0x3b0   :  { %v2532_v15 = vmul.f32 %v2518_v11, %v2504_v0  ;;  %v2314_v63 = vmul.f32 %v2300_v59, %v6210_v16  ;;  %v2425_v54 = vmul.f32 1.442695, %v2398_v29  ;;  %v2762_v9 = vrot.slane %v3437_v1, 4 }
 0x3b1   :  { %2727 = vmatpush.msra.mxu0 %v3386_v57  ;;  %v2363_v47 = vmul.f32 %v2349_v37, %v5924_v28  ;;  %v6978_v28 = vld [vmem:[#allocation15_spill] sm:$0xff] }
 0x3b2   :  { %3588 = vpow2.f32 %v2425_v54  ;;  %vm2447_vm7 = vcmp.lt.f32.partialorder %v6978_v28, 0.0 }
 0x3b4   :  { %v3587_v13 = vpop.eup %3586 }
 0x3b5   :  { %v2433_v44 = vmul.f32 %v3587_v13, %v2363_v47 }
 0x3b6   :  { %v2600_v52 = vld [vmem:[#allocation1] sm:$0xff] }
 0x3b7   :  { %2622 = vmatmul.f32.gmra.mxu2 %v2600_v52  ;;  %2628 = vst [vmem:[#allocation1] ss:$9 sm:$0xff] %v2525_v55  ;;  %v3362_v48 = vadd.f32 -1.0, %v2433_v44  ;;  %v2475_v14 = vsub.f32 1.0, %v2433_v44 }
 0x3b8   :  { %2630 = vst [vmem:[#allocation1 + $0x1] ss:$9 sm:$0xff] %v6115_v21  ;;  %v2328_v21 = vadd.f32 -0.28449672, %v2314_v63  ;;  %v3589_v10 = vpop.eup %3588 }
 0x3b9   :  { %2632 = vst [vmem:[#allocation1 + $0x2] ss:$9 sm:$0xff] %v6123_v35  ;;  %v2489_v58 = vsel %vm2447_vm7, %v3362_v48, %v2475_v14 }
 0x3ba   :  { %2634 = vst [vmem:[#allocation1 + $0x3] ss:$9 sm:$0xff] %v6125_v5  ;;  %v2342_v41 = vmul.f32 %v2328_v21, %v6210_v16  ;;  %v2517_v30 = vadd.f32 1.0, %v2489_v58 }
 0x3bb   :  { %2636 = vst [vmem:[#allocation1 + $0x4] ss:$9 sm:$0xff] %v6127_v3 }
 0x3bc   :  { %2638 = vst [vmem:[#allocation1 + $0x5] ss:$9 sm:$0xff] %v2532_v15  ;;  %v2356_v23 = vadd.f32 0.2548296, %v2342_v41  ;;  %v2531_v62 = vmul.f32 %v2517_v30, %v2503_v7 }
 0x3bd   :  { %2640 = vst [vmem:[#allocation1 + $0x6] ss:$9 sm:$0xff] %v6148_v36 }
 0x3be   :  { %2642 = vst [vmem:[#allocation1 + $0x7] ss:$9 sm:$0xff] %v6158_v50  ;;  %v2370_v36 = vmul.f32 %v2356_v23, %v6210_v16  ;;  %v6980_v16 = vld [vmem:[#allocation34_spill] sm:$0xff] }
 0x3bf   :  { %vm2454_vm8 = vcmp.lt.f32.partialorder %v6980_v16, 0.0 }
 0x3c0   :  { %v2440_v19 = vmul.f32 %v3589_v10, %v2370_v36 }
 0x3c2   :  { %v3369_v42 = vadd.f32 -1.0, %v2440_v19  ;;  %v2482_v17 = vsub.f32 1.0, %v2440_v19 }
 0x3c4   :  { %v2496_v25 = vsel %vm2454_vm8, %v3369_v42, %v2482_v17 }
 0x3c5   :  { %v2643_v40 = vld [vmem:[#allocation1] sm:$0xff] }
 0x3c6   :  { %2665 = vmatmul.f32.vlgmr.msrb.gmra.mxu3 %v2643_v40  ;;  %2644 = vst [vmem:[#allocation1] ss:$9 sm:$0xff] %v6170_v18 }
 0x3c7   :  { %2645 = vst [vmem:[#allocation1 + $0x1] ss:$9 sm:$0xff] %v6224_v56 }
 0x3ce   :  { %v2646_v43 = vld [vmem:[#allocation1] sm:$0xff] }
 0x3cf   :  { %2668 = vmatmul.f32.gmra.mxu3 %v2646_v43  ;;  %2691 = vst [vmem:[#allocation1] ss:$9 sm:$0xff] %v6123_v35  ;;  %v2524_v35 = vadd.f32 1.0, %v2496_v25 }
 0x3d0   :  { %2693 = vst [vmem:[#allocation1 + $0x1] ss:$9 sm:$0xff] %v6125_v5  ;;  %v2510_v5 = vmul.f32 0.5, %v6981_v61 }
 0x3d1   :  { %2695 = vst [vmem:[#allocation1 + $0x2] ss:$9 sm:$0xff] %v6127_v3 }
 0x3d2   :  { %2697 = vst [vmem:[#allocation1 + $0x3] ss:$9 sm:$0xff] %v6135_v8  ;;  %v2538_v34 = vmul.f32 %v2524_v35, %v2510_v5 }
 0x3d3   :  { %2699 = vst [vmem:[#allocation1 + $0x4] ss:$9 sm:$0xff] %v2531_v62 }
 0x3d4   :  { %2701 = vst [vmem:[#allocation1 + $0x5] ss:$9 sm:$0xff] %v6158_v50 }
 0x3d5   :  { %2703 = vst [vmem:[#allocation1 + $0x6] ss:$9 sm:$0xff] %v6170_v18 }
 0x3d6   :  { %2705 = vst [vmem:[#allocation1 + $0x7] ss:$9 sm:$0xff] %v6224_v56  ;;  %v2761_v56 = vrot.slane %v3437_v1, 3 }
 0x3dd   :  { %v2706_v32 = vld [vmem:[#allocation1] sm:$0xff] }
 0x3de   :  { %2728 = vmatmul.f32.vlgmr.msra.gmra.mxu0 %v2706_v32  ;;  %2707 = vst [vmem:[#allocation1] ss:$9 sm:$0xff] %v6230_v60 }
 0x3df   :  { %2708 = vst [vmem:[#allocation1 + $0x1] ss:$9 sm:$0xff] %v2538_v34 }
 0x3e6   :  { %v2709_v3 = vld [vmem:[#allocation1] sm:$0xff] }
 0x3e7   :  { %2731 = vmatmul.f32.gmra.mxu0 %v2709_v3 }
 0x431   :  { %v2620_v50 = vpop.f32.mrf.mxu2 }
 0x43a   :  { %v2623_v0 = vpop.f32.mrf.mxu2 }
 0x449   :  { %v2666_v8 = vpop.f32.mrf.mxu3 }
 0x44a   :  { %v2667_v39 = vadd.f32 %v2666_v8, %v2620_v50 }
 0x452   :  { %v2669_v59 = vpop.f32.mrf.mxu3 }
 0x453   :  { %v2670_v57 = vadd.f32 %v2669_v59, %v2623_v0 }
 0x45b   :  { %v2729_v46 = vpop.f32.mrf.mxu0 }
 0x45c   :  { %v2735_v18 = vadd.f32 %v2729_v46, %v2667_v39 }
 0x45e   :  { %v2739_v27 = vrot.slane %v2735_v18, 1  ;;  %v2740_v31 = vrot.slane %v2735_v18, 2  ;;  %v2743_v45 = vrot.slane %v2735_v18, 5  ;;  %v2744_v53 = vrot.slane %v2735_v18, 6 }
 0x45f   :  { %v2745_v49 = vrot.slane %v2735_v18, 7  ;;  %v2741_v55 = vrot.slane %v2735_v18, 3  ;;  %v2742_v60 = vrot.slane %v2735_v18, 4  ;;  %v6280_v11 = vadd.f32 %v3437_v1, %v2735_v18 }
 0x460   :  { %v6282_v26 = vadd.f32 %v2759_v51, %v2739_v27  ;;  %v6284_v52 = vadd.f32 %v2760_v2, %v2740_v31  ;;  %v6290_v38 = vadd.f32 %v3437_v1, %v2743_v45  ;;  %v6295_v22 = vadd.f32 %v2759_v51, %v2744_v53 }
 0x461   :  { %v6286_v12 = vadd.f32 %v2761_v56, %v2741_v55  ;;  %v6288_v24 = vadd.f32 %v2762_v9, %v2742_v60  ;;  %v6293_v4 = vmul.f32 0.70710677, %v6280_v11  ;;  %v6297_v15 = vadd.f32 %v2760_v2, %v2745_v49 }
 0x462   :  { %6982 = vst [vmem:[#allocation29_spill] sm:$0xff] %v6290_v38  ;;  %v6300_v63 = vmul.f32 0.70710677, %v6282_v26  ;;  %v6303_v37 = vmul.f32 0.70710677, %v6284_v52 }
 0x463   :  { %6983 = vst [vmem:[#allocation25_spill] sm:$0xff] %v6295_v22  ;;  %v6306_v20 = vmul.f32 0.70710677, %v6286_v12  ;;  %v6309_v21 = vmul.f32 0.70710677, %v6288_v24 }
 0x464   :  { %6984 = vst [vmem:[#allocation20_spill] sm:$0xff] %v6297_v15  ;;  %v2732_v33 = vpop.f32.mrf.mxu0  ;;  %v6312_v47 = vand.u32 2147483647, %v6293_v4  ;;  %v6315_v29 = vand.u32 2147483647, %v6300_v63 }
 0x465   :  { %v2736_v13 = vadd.f32 %v2732_v33, %v2670_v57  ;;  %v6318_v41 = vmul.f32 0.70710677, %v6290_v38  ;;  %v6321_v44 = vand.u32 2147483647, %v6303_v37  ;;  %v6324_v54 = vmul.f32 0.70710677, %v6295_v22 }
 0x466   :  { %v6327_v40 = vmul.f32 0.70710677, %v6297_v15  ;;  %v6330_v23 = vand.u32 2147483647, %v6306_v20  ;;  %v2797_v28 = vmul.f32 0.3275911, %v6312_v47 }
 0x467   :  { %v2746_v48 = vrot.slane %v2736_v13, 1  ;;  %v6332_v14 = vadd.f32 %v2761_v56, %v2736_v13  ;;  %v2798_v36 = vmul.f32 0.3275911, %v6315_v29  ;;  %v6337_v58 = vand.u32 2147483647, %v6309_v21 }
 0x468   :  { %6985 = vst [vmem:[#allocation19_spill] sm:$0xff] %v6327_v40  ;;  %v2799_v10 = vmul.f32 0.3275911, %v6321_v44  ;;  %v6343_v19 = vand.u32 2147483647, %v6318_v41  ;;  %v6349_v7 = vadd.f32 1.0, %v2797_v28 }
 0x469   :  { %6986 = vst [vmem:[#allocation14_spill] sm:$0xff] %v6332_v14  ;;  %v6340_v30 = vadd.f32 %v2762_v9, %v2746_v48  ;;  %v6346_v43 = vmul.f32 0.70710677, %v6332_v14  ;;  %v2800_v6 = vmul.f32 0.3275911, %v6330_v23  ;;  %v6351_v62 = vadd.f32 1.0, %v2798_v36 }
 0x46a   :  { %v6354_v42 = vand.u32 2147483647, %v6324_v54  ;;  %v6357_v17 = vand.u32 2147483647, %v6327_v40  ;;  %v2801_v25 = vmul.f32 0.3275911, %v6337_v58  ;;  %3590 = vrcp.f32 %v6349_v7 }
 0x46b   :  { %6987 = vst [vmem:[#allocation23_spill] sm:$0xff] %v6340_v30  ;;  %v6360_v16 = vmul.f32 0.70710677, %v6340_v30  ;;  %v6363_v35 = vadd.f32 1.0, %v2799_v10  ;;  %v6367_v61 = vand.u32 2147483647, %v6346_v43  ;;  %3592 = vrcp.f32 %v6351_v62 }
 0x46c   :  { %6988 = vst [vmem:[#allocation16_spill] sm:$0xff] %v6346_v43  ;;  %v2802_v5 = vmul.f32 0.3275911, %v6343_v19  ;;  %v6370_v34 = vadd.f32 1.0, %v2800_v6  ;;  %v2803_v32 = vmul.f32 0.3275911, %v6354_v42  ;;  %vm2822_vm10 = vweird.f32 %v6349_v7 }
 0x46d   :  { %6989 = vst [vmem:[#allocation18_spill] sm:$0xff] %v6360_v16  ;;  %v6375_v3 = vand.u32 2147483647, %v6360_v16  ;;  %v2804_v8 = vmul.f32 0.3275911, %v6357_v17  ;;  %v6378_v50 = vadd.f32 1.0, %v2801_v25  ;;  %3594 = vrcp.f32 %v6363_v35 }
 0x46e   :  { %v2805_v39 = vmul.f32 0.3275911, %v6367_v61  ;;  %v6384_v46 = vadd.f32 1.0, %v2802_v5  ;;  %3596 = vrcp.f32 %v6370_v34  ;;  %v6387_v18 = vadd.f32 1.0, %v2803_v32 }
 0x46f   :  { %v2828_v2 = vand.u32 2147483648, %v6349_v7  ;;  %v2806_v9 = vmul.f32 0.3275911, %v6375_v3  ;;  %v6395_v27 = vadd.f32 1.0, %v2804_v8  ;;  %v2843_v31 = vand.u32 2147483648, %v6351_v62 }
 0x470   :  { %v6381_v1 = vpop.eup %3590  ;;  %3598 = vrcp.f32 %v6378_v50  ;;  %v2826_v53 = vand.u32 2147483647, %v6349_v7  ;;  %v2841_v55 = vand.u32 2147483647, %v6351_v62  ;;  %v6406_v59 = vadd.f32 1.0, %v2805_v39 }
 0x471   :  { %v2818_v51 = vmul.f32 %v6381_v1, %v6349_v7  ;;  %v6392_v56 = vpop.eup %3592  ;;  %v2858_v0 = vand.u32 2147483648, %v6363_v35  ;;  %v2873_v57 = vand.u32 2147483648, %v6370_v34  ;;  %3600 = vrcp.f32 %v6384_v46 }
 0x472   :  { %v2833_v49 = vmul.f32 %v6392_v56, %v6351_v62  ;;  %v2829_v13 = vor.u32 1.1754944e-38, %v2828_v2  ;;  %vm2837_vm3 = vweird.f32 %v6351_v62  ;;  %v6417_v10 = vadd.f32 1.0, %v2806_v9 }
 0x473   :  { %v2819_v45 = vsub.f32 1.0, %v2818_v51  ;;  %v6404_v60 = vpop.eup %3594  ;;  %v6419_v6 = vor.u32 1.1754944e-38, %v2843_v31  ;;  %vm2852_vm13 = vweird.f32 %v6363_v35  ;;  %v2856_v25 = vand.u32 2147483647, %v6363_v35 }
 0x474   :  { %v2834_v48 = vsub.f32 1.0, %v2833_v49  ;;  %v2848_v28 = vmul.f32 %v6404_v60, %v6363_v35  ;;  %v6415_v36 = vpop.eup %3596  ;;  %v2871_v5 = vand.u32 2147483647, %v6370_v34  ;;  %vm2823_vm0 = vweird.f32 %v6381_v1 }
 0x475   :  { %v2820_v33 = vmul.f32 %v6381_v1, %v2819_v45  ;;  %vm6425_vm1 = vcmp.eq.f32.partialorder %v2826_v53, 8.507059e+37  ;;  %v2863_v51 = vmul.f32 %v6415_v36, %v6370_v34  ;;  %v2859_v9 = vor.u32 1.1754944e-38, %v2858_v0  ;;  %vm6467_vm7 = vmor %vm2822_vm10, %vm2823_vm0 }
 0x476   :  { %v2835_v8 = vmul.f32 %v6392_v56, %v2834_v48  ;;  %v2849_v39 = vsub.f32 1.0, %v2848_v28  ;;  %v6432_v2 = vpop.eup %3598  ;;  %v6434_v31 = vor.u32 1.1754944e-38, %v2873_v57  ;;  %v2888_v45 = vand.u32 2147483648, %v6378_v50 }
 0x477   :  { %3602 = vrcp.f32 %v6387_v18  ;;  %v2821_v53 = vadd.f32 %v6381_v1, %v2820_v33  ;;  %vm6439_vm9 = vcmp.eq.f32.partialorder %v2841_v55, 8.507059e+37  ;;  %v2864_v28 = vsub.f32 1.0, %v2863_v51  ;;  %v6446_v0 = vpop.eup %3600 }
 0x478   :  { %v2850_v48 = vmul.f32 %v6404_v60, %v2849_v39  ;;  %vm2867_vm15 = vweird.f32 %v6370_v34  ;;  %v2903_v14 = vand.u32 2147483648, %v6384_v46  ;;  %vm2838_vm12 = vweird.f32 %v6392_v56 }
 0x479   :  { %vm6449_vm2 = vcmp.eq.f32.partialorder %v2856_v25, 8.507059e+37  ;;  %v2878_v55 = vmul.f32 %v6432_v2, %v6378_v50  ;;  %vm2882_vm5 = vweird.f32 %v6378_v50  ;;  %v2886_v33 = vand.u32 2147483647, %v6378_v50  ;;  %vm6487_vm10 = vmor %vm2837_vm3, %vm2838_vm12 }
 0x47a   :  { %v2836_v39 = vadd.f32 %v6392_v56, %v2835_v8  ;;  %v2865_v51 = vmul.f32 %v6415_v36, %v2864_v28  ;;  %v2893_v30 = vmul.f32 %v6446_v0, %v6384_v46  ;;  %vm2897_vm4 = vweird.f32 %v6384_v46 }
 0x47b   :  { %v2901_v25 = vand.u32 2147483647, %v6384_v46  ;;  %v2851_v22 = vadd.f32 %v6404_v60, %v2850_v48  ;;  %vm2853_vm8 = vweird.f32 %v6404_v60  ;;  %v2879_v8 = vsub.f32 1.0, %v2878_v55 }
 0x47c   :  { %v2889_v28 = vor.u32 1.1754944e-38, %v2888_v45  ;;  %v2825_v38 = vsel %vm6467_vm7, %v6381_v1, %v2821_v53  ;;  %vm2868_vm11 = vweird.f32 %v6415_v36  ;;  %vm6477_vm6 = vcmp.eq.f32.partialorder %v2871_v5, 8.507059e+37  ;;  %vm6506_vm3 = vmor %vm2852_vm13, %vm2853_vm8 }
 0x47d   :  { %v2894_v7 = vsub.f32 1.0, %v2893_v30  ;;  %v2904_v16 = vor.u32 1.1754944e-38, %v2903_v14  ;;  %v6481_v40 = vpop.eup %3602  ;;  %v2880_v15 = vmul.f32 %v6432_v2, %v2879_v8  ;;  %vm6492_vm0 = vcmp.eq.f32.partialorder %v2886_v33, 8.507059e+37 }
 0x47e   :  { %vm2912_vm7 = vweird.f32 %v6387_v18  ;;  %v2916_v14 = vand.u32 2147483647, %v6387_v18  ;;  %3604 = vrcp.f32 %v6395_v27  ;;  %v2840_v30 = vsel %vm6487_vm10, %v6392_v56, %v2836_v39 }
 0x47f   :  { %v2866_v5 = vadd.f32 %v6415_v36, %v2865_v51  ;;  %v2895_v53 = vmul.f32 %v6446_v0, %v2894_v7  ;;  %vm6512_vm12 = vcmp.eq.f32.partialorder %v2901_v25, 8.507059e+37  ;;  %v2908_v55 = vmul.f32 %v6481_v40, %v6387_v18 }
 0x480   :  { %v6520_v56 = vsel %vm6425_vm1, %v2829_v13, %v2825_v38  ;;  %v2855_v35 = vsel %vm6506_vm3, %v6404_v60, %v2851_v22  ;;  %v2881_v33 = vadd.f32 %v6432_v2, %v2880_v15  ;;  %vm2883_vm13 = vweird.f32 %v6432_v2  ;;  %vm6539_vm1 = vmor %vm2867_vm15, %vm2868_vm11 }
 0x481   :  { %v2896_v39 = vadd.f32 %v6446_v0, %v2895_v53  ;;  %vm2898_vm8 = vweird.f32 %v6446_v0  ;;  %v2909_v51 = vsub.f32 1.0, %v2908_v55  ;;  %3606 = vrcp.f32 %v6406_v59  ;;  %vm6558_vm11 = vmor %vm2882_vm5, %vm2883_vm13 }
 0x482   :  { %v6533_v38 = vsel %vm6439_vm9, %v6419_v6, %v2840_v30  ;;  %vm6543_vm10 = vcmp.eq.f32.partialorder %v2916_v14, 8.507059e+37  ;;  %v2918_v13 = vand.u32 2147483648, %v6387_v18  ;;  %v2931_v32 = vand.u32 2147483647, %v6395_v27  ;;  %vm6571_vm9 = vmor %vm2897_vm4, %vm2898_vm8 }
 0x483   :  { %v6551_v6 = vsel %vm6449_vm2, %v2859_v9, %v2855_v35  ;;  %v2870_v34 = vsel %vm6539_vm1, %v6415_v36, %v2866_v5  ;;  %v2910_v25 = vmul.f32 %v6481_v40, %v2909_v51  ;;  %v2933_v8 = vand.u32 2147483648, %v6395_v27 }
 0x484   :  { %v3605_v7 = vpop.eup %3604  ;;  %v2885_v9 = vsel %vm6558_vm11, %v6432_v2, %v2881_v33  ;;  %vm2913_vm15 = vweird.f32 %v6481_v40  ;;  %v2946_v50 = vand.u32 2147483647, %v6406_v59  ;;  %3608 = vrcp.f32 %v6417_v10 }
 0x485   :  { %v2900_v57 = vsel %vm6571_vm9, %v6446_v0, %v2896_v39  ;;  %v2911_v2 = vadd.f32 %v6481_v40, %v2910_v25  ;;  %v2923_v45 = vmul.f32 %v3605_v7, %v6395_v27  ;;  %v2948_v46 = vand.u32 2147483648, %v6406_v59  ;;  %vm6600_vm4 = vmor %vm2912_vm7, %vm2913_vm15 }
 0x486   :  { %v6587_v15 = vsel %vm6477_vm6, %v6434_v31, %v2870_v34  ;;  %v2919_v14 = vor.u32 1.1754944e-38, %v2918_v13  ;;  %vm2927_vm2 = vweird.f32 %v6395_v27  ;;  %vm6590_vm5 = vcmp.eq.f32.partialorder %v2931_v32, 8.507059e+37 }
 0x487   :  { %v3607_v62 = vpop.eup %3606  ;;  %v6596_v0 = vsel %vm6492_vm0, %v2889_v28, %v2885_v9  ;;  %v2924_v43 = vsub.f32 1.0, %v2923_v45  ;;  %v2934_v31 = vor.u32 1.1754944e-38, %v2933_v8  ;;  %vm2942_vm6 = vweird.f32 %v6406_v59 }
 0x488   :  { %v6607_v53 = vsel %vm6512_vm12, %v2904_v16, %v2900_v57  ;;  %v2915_v1 = vsel %vm6600_vm4, %v6481_v40, %v2911_v2  ;;  %v2938_v28 = vmul.f32 %v3607_v62, %v6406_v59  ;;  %vm6613_vm0 = vcmp.eq.f32.partialorder %v2946_v50, 8.507059e+37 }
 0x489   :  { %v2925_v55 = vmul.f32 %v3605_v7, %v2924_v43  ;;  %vm2928_vm7 = vweird.f32 %v3605_v7  ;;  %v2949_v35 = vor.u32 1.1754944e-38, %v2948_v46  ;;  %vm2957_vm3 = vweird.f32 %v6417_v10 }
 0x48a   :  { %v3609_v33 = vpop.eup %3608  ;;  %v2939_v39 = vsub.f32 1.0, %v2938_v28  ;;  %v2961_v16 = vand.u32 2147483647, %v6417_v10  ;;  %v2963_v48 = vand.u32 2147483648, %v6417_v10  ;;  %v2967_v51 = vmul.f32 1.0614054, %v6520_v56  ;;  %vm2929_vm12 = vmor %vm2927_vm2, %vm2928_vm7 }
 0x48b   :  { %v6623_v40 = vsel %vm6543_vm10, %v2919_v14, %v2915_v1  ;;  %v2926_v22 = vadd.f32 %v3605_v7, %v2925_v55  ;;  %v2953_v13 = vmul.f32 %v3609_v33, %v6417_v10  ;;  %v2968_v32 = vmul.f32 1.0614054, %v6533_v38 }
 0x48c   :  { %v2940_v34 = vmul.f32 %v3607_v62, %v2939_v39  ;;  %vm2943_vm13 = vweird.f32 %v3607_v62  ;;  %v2969_v49 = vmul.f32 1.0614054, %v6551_v6  ;;  %v2970_v25 = vmul.f32 1.0614054, %v6587_v15 }
 0x48d   :  { %v2930_v8 = vsel %vm2929_vm12, %v3605_v7, %v2926_v22  ;;  %v2954_v9 = vsub.f32 1.0, %v2953_v13  ;;  %v2971_v60 = vmul.f32 1.0614054, %v6596_v0  ;;  %v2972_v36 = vmul.f32 1.0614054, %v6607_v53  ;;  %vm2944_vm8 = vmor %vm2942_vm6, %vm2943_vm13 }
 0x48e   :  { %v6635_v50 = vsel %vm6590_vm5, %v2934_v31, %v2930_v8  ;;  %v2941_v57 = vadd.f32 %v3607_v62, %v2940_v34  ;;  %v2964_v2 = vor.u32 1.1754944e-38, %v2963_v48  ;;  %v2973_v27 = vmul.f32 1.0614054, %v6623_v40 }
 0x48f   :  { %v2955_v45 = vmul.f32 %v3609_v33, %v2954_v9  ;;  %vm2958_vm1 = vweird.f32 %v3609_v33  ;;  %v2974_v7 = vmul.f32 1.0614054, %v6635_v50  ;;  %v2977_v46 = vadd.f32 -1.4531521, %v2967_v51 }
 0x490   :  { %v2945_v14 = vsel %vm2944_vm8, %v3607_v62, %v2941_v57  ;;  %v2978_v5 = vadd.f32 -1.4531521, %v2968_v32  ;;  %v2979_v43 = vadd.f32 -1.4531521, %v2969_v49  ;;  %v2980_v1 = vadd.f32 -1.4531521, %v2970_v25  ;;  %vm2959_vm10 = vmor %vm2957_vm3, %vm2958_vm1 }
 0x491   :  { %v6643_v30 = vsel %vm6613_vm0, %v2949_v35, %v2945_v14  ;;  %v2956_v31 = vadd.f32 %v3609_v33, %v2955_v45  ;;  %v2981_v28 = vadd.f32 -1.4531521, %v2971_v60  ;;  %v2982_v55 = vadd.f32 -1.4531521, %v2972_v36 }
 0x492   :  { %v2975_v59 = vmul.f32 1.0614054, %v6643_v30  ;;  %v2983_v39 = vadd.f32 -1.4531521, %v2973_v27  ;;  %v2984_v48 = vadd.f32 -1.4531521, %v2974_v7  ;;  %v2987_v62 = vmul.f32 %v2977_v46, %v6520_v56 }
 0x493   :  { %v2960_v22 = vsel %vm2959_vm10, %v3609_v33, %v2956_v31  ;;  %vm2962_vm11 = vcmp.eq.f32.partialorder %v2961_v16, 8.507059e+37  ;;  %v2988_v18 = vmul.f32 %v2978_v5, %v6533_v38  ;;  %v2989_v35 = vmul.f32 %v2979_v43, %v6551_v6 }
 0x494   :  { %v6649_v51 = vsel %vm2962_vm11, %v2964_v2, %v2960_v22  ;;  %v2985_v13 = vadd.f32 -1.4531521, %v2975_v59  ;;  %v2990_v32 = vmul.f32 %v2980_v1, %v6587_v15  ;;  %v2991_v10 = vmul.f32 %v2981_v28, %v6596_v0 }
 0x495   :  { %v2992_v34 = vmul.f32 %v2982_v55, %v6607_v53  ;;  %v2976_v49 = vmul.f32 1.0614054, %v6649_v51  ;;  %v2993_v33 = vmul.f32 %v2983_v39, %v6623_v40  ;;  %v2994_v16 = vmul.f32 %v2984_v48, %v6635_v50 }
 0x496   :  { %v2997_v25 = vadd.f32 1.4214138, %v2987_v62  ;;  %v2995_v8 = vmul.f32 %v2985_v13, %v6643_v30  ;;  %v2998_v9 = vadd.f32 1.4214138, %v2988_v18  ;;  %v2999_v60 = vadd.f32 1.4214138, %v2989_v35 }
 0x497   :  { %v3000_v36 = vadd.f32 1.4214138, %v2990_v32  ;;  %v3001_v57 = vadd.f32 1.4214138, %v2991_v10  ;;  %v3002_v2 = vadd.f32 1.4214138, %v2992_v34 }
 0x498   :  { %v2986_v27 = vadd.f32 -1.4531521, %v2976_v49  ;;  %v3003_v45 = vadd.f32 1.4214138, %v2993_v33  ;;  %v3004_v7 = vadd.f32 1.4214138, %v2994_v16  ;;  %v3007_v46 = vmul.f32 %v2997_v25, %v6520_v56 }
 0x499   :  { %v3005_v14 = vadd.f32 1.4214138, %v2995_v8  ;;  %v3008_v5 = vmul.f32 %v2998_v9, %v6533_v38  ;;  %v3009_v43 = vmul.f32 %v2999_v60, %v6551_v6  ;;  %v3010_v1 = vmul.f32 %v3000_v36, %v6587_v15 }
 0x49a   :  { %v3011_v31 = vmul.f32 %v3001_v57, %v6596_v0  ;;  %v3012_v28 = vmul.f32 %v3002_v2, %v6607_v53  ;;  %v2996_v55 = vmul.f32 %v2986_v27, %v6649_v51  ;;  %v3013_v59 = vmul.f32 %v3003_v45, %v6623_v40 }
 0x49b   :  { %v3014_v39 = vmul.f32 %v3004_v7, %v6635_v50  ;;  %v3057_v48 = vsub.f32 0.0, %v6312_v47  ;;  %v3017_v22 = vadd.f32 -0.28449672, %v3007_v46  ;;  %v3015_v62 = vmul.f32 %v3005_v14, %v6643_v30 }
 0x49c   :  { %v3018_v13 = vadd.f32 -0.28449672, %v3008_v5  ;;  %v3019_v18 = vadd.f32 -0.28449672, %v3009_v43  ;;  %v3020_v35 = vadd.f32 -0.28449672, %v3010_v1 }
 0x49d   :  { %v3021_v32 = vadd.f32 -0.28449672, %v3011_v31  ;;  %v3022_v10 = vadd.f32 -0.28449672, %v3012_v28  ;;  %v3006_v34 = vadd.f32 1.4214138, %v2996_v55  ;;  %v3067_v16 = vmul.f32 %v3057_v48, %v6312_v47 }
 0x49e   :  { %v3023_v49 = vadd.f32 -0.28449672, %v3013_v59  ;;  %v3024_v33 = vadd.f32 -0.28449672, %v3014_v39  ;;  %v3027_v25 = vmul.f32 %v3017_v22, %v6520_v56  ;;  %v3058_v8 = vsub.f32 0.0, %v6315_v29 }
 0x49f   :  { %v3059_v9 = vsub.f32 0.0, %v6321_v44  ;;  %v3060_v60 = vsub.f32 0.0, %v6330_v23  ;;  %v3025_v36 = vadd.f32 -0.28449672, %v3015_v62  ;;  %v3028_v57 = vmul.f32 %v3018_v13, %v6533_v38 }
 0x4a0   :  { %v3029_v2 = vmul.f32 %v3019_v18, %v6551_v6  ;;  %v3061_v27 = vsub.f32 0.0, %v6337_v58  ;;  %v3030_v45 = vmul.f32 %v3020_v35, %v6587_v15  ;;  %v3031_v7 = vmul.f32 %v3021_v32, %v6596_v0 }
 0x4a1   :  { %v3032_v47 = vmul.f32 %v3022_v10, %v6607_v53  ;;  %v3068_v46 = vmul.f32 %v3058_v8, %v6315_v29  ;;  %v3016_v14 = vmul.f32 %v3006_v34, %v6649_v51  ;;  %v3069_v5 = vmul.f32 %v3059_v9, %v6321_v44 }
 0x4a2   :  { %v3070_v43 = vmul.f32 %v3060_v60, %v6330_v23  ;;  %v3071_v1 = vmul.f32 %v3061_v27, %v6337_v58  ;;  %v3033_v31 = vmul.f32 %v3023_v49, %v6623_v40  ;;  %v3037_v28 = vadd.f32 0.2548296, %v3027_v25 }
 0x4a3   :  { %v3062_v55 = vsub.f32 0.0, %v6343_v19  ;;  %v3063_v59 = vsub.f32 0.0, %v6354_v42  ;;  %v3034_v39 = vmul.f32 %v3024_v33, %v6635_v50  ;;  %v3077_v48 = vmul.f32 1.442695, %v3067_v16 }
 0x4a4   :  { %v3079_v22 = vmul.f32 1.442695, %v3068_v46  ;;  %v3081_v29 = vmul.f32 1.442695, %v3069_v5  ;;  %v3035_v62 = vmul.f32 %v3025_v36, %v6643_v30  ;;  %v3038_v13 = vadd.f32 0.2548296, %v3028_v57 }
 0x4a5   :  { %v3064_v44 = vsub.f32 0.0, %v6357_v17  ;;  %v3083_v23 = vmul.f32 1.442695, %v3070_v43  ;;  %v3026_v18 = vadd.f32 -0.28449672, %v3016_v14  ;;  %3610 = vpow2.f32 %v3077_v48 }
 0x4a6   :  { %v3039_v58 = vadd.f32 0.2548296, %v3029_v2  ;;  %v3085_v35 = vmul.f32 1.442695, %v3071_v1  ;;  %v3065_v32 = vsub.f32 0.0, %v6367_v61  ;;  %v3066_v10 = vsub.f32 0.0, %v6375_v3 }
 0x4a7   :  { %v3072_v34 = vmul.f32 %v3062_v55, %v6343_v19  ;;  %3612 = vpow2.f32 %v3079_v22  ;;  %v3040_v49 = vadd.f32 0.2548296, %v3030_v45  ;;  %v3041_v33 = vadd.f32 0.2548296, %v3031_v7 }
 0x4a8   :  { %v3073_v16 = vmul.f32 %v3063_v59, %v6354_v42  ;;  %3614 = vpow2.f32 %v3081_v29  ;;  %v3042_v25 = vadd.f32 0.2548296, %v3032_v47  ;;  %v3047_v8 = vmul.f32 %v3037_v28, %v6520_v56 }
 0x4a9   :  { %v3074_v9 = vmul.f32 %v3064_v44, %v6357_v17  ;;  %3616 = vpow2.f32 %v3083_v23  ;;  %v3036_v60 = vmul.f32 %v3026_v18, %v6649_v51  ;;  %v3043_v36 = vadd.f32 0.2548296, %v3033_v31 }
 0x4aa   :  { %v3048_v57 = vmul.f32 %v3038_v13, %v6533_v38  ;;  %3618 = vpow2.f32 %v3085_v35  ;;  %v3049_v19 = vmul.f32 %v3039_v58, %v6551_v6  ;;  %v3075_v2 = vmul.f32 %v3065_v32, %v6367_v61 }
 0x4ab   :  { %v3076_v27 = vmul.f32 %v3066_v10, %v6375_v3  ;;  %v3087_v42 = vmul.f32 1.442695, %v3072_v34  ;;  %v3611_v45 = vpop.eup %3610  ;;  %v3044_v7 = vadd.f32 0.2548296, %v3034_v39  ;;  %v3050_v56 = vmul.f32 %v3040_v49, %v6587_v15 }
 0x4ac   :  { %v3089_v47 = vmul.f32 1.442695, %v3073_v16  ;;  %v3045_v46 = vadd.f32 0.2548296, %v3035_v62  ;;  %v3051_v14 = vmul.f32 %v3041_v33, %v6596_v0  ;;  %v3091_v5 = vmul.f32 1.442695, %v3074_v9 }
 0x4ad   :  { %v3613_v17 = vpop.eup %3612  ;;  %v3097_v43 = vmul.f32 %v3611_v45, %v3047_v8  ;;  %v3046_v1 = vadd.f32 0.2548296, %v3036_v60  ;;  %v3052_v6 = vmul.f32 %v3042_v25, %v6607_v53  ;;  %v3053_v61 = vmul.f32 %v3043_v36, %v6623_v40 }
 0x4ae   :  { %v3615_v38 = vpop.eup %3614  ;;  %v3098_v31 = vmul.f32 %v3613_v17, %v3048_v57  ;;  %3620 = vpow2.f32 %v3087_v42  ;;  %v3093_v28 = vmul.f32 1.442695, %v3075_v2  ;;  %v3095_v55 = vmul.f32 1.442695, %v3076_v27 }
 0x4af   :  { %v3617_v3 = vpop.eup %3616  ;;  %v3099_v59 = vmul.f32 %v3615_v38, %v3049_v19  ;;  %3622 = vpow2.f32 %v3089_v47  ;;  %v3402_v48 = vadd.f32 -1.0, %v3097_v43  ;;  %v3127_v22 = vsub.f32 1.0, %v3097_v43 }
 0x4b0   :  { %v3619_v15 = vpop.eup %3618  ;;  %v3100_v39 = vmul.f32 %v3617_v3, %v3050_v56  ;;  %3624 = vpow2.f32 %v3091_v5  ;;  %v3403_v29 = vadd.f32 -1.0, %v3098_v31  ;;  %v3128_v62 = vsub.f32 1.0, %v3098_v31  ;;  %v7022_v31 = vld [vmem:[#allocation19_spill] sm:$0xff]  ;;  %v7023_v3 = vld [vmem:[#allocation18_spill] sm:$0xff] }
 0x4b1   :  { %v3101_v0 = vmul.f32 %v3619_v15, %v3051_v14  ;;  %v3404_v13 = vadd.f32 -1.0, %v3099_v59  ;;  %v3129_v53 = vsub.f32 1.0, %v3099_v59  ;;  %3626 = vpow2.f32 %v3095_v55  ;;  %v7024_v55 = vld [vmem:[#allocation16_spill] sm:$0xff] }
 0x4b2   :  { %v3405_v44 = vadd.f32 -1.0, %v3100_v39  ;;  %v3130_v23 = vsub.f32 1.0, %v3100_v39  ;;  %vm3107_vm9 = vcmp.lt.f32.partialorder %v6293_v4, 0.0  ;;  %v3054_v58 = vmul.f32 %v3044_v7, %v6635_v50 }
 0x4b3   :  { %v3406_v40 = vadd.f32 -1.0, %v3101_v0  ;;  %v3131_v18 = vsub.f32 1.0, %v3101_v0  ;;  %3628 = vpow2.f32 %v3093_v28  ;;  %vm3108_vm15 = vcmp.lt.f32.partialorder %v6300_v63, 0.0 }
 0x4b4   :  { %v3137_v35 = vsel %vm3107_vm9, %v3402_v48, %v3127_v22  ;;  %v3621_v32 = vpop.eup %3620  ;;  %vm3109_vm2 = vcmp.lt.f32.partialorder %v6303_v37, 0.0  ;;  %vm3110_vm5 = vcmp.lt.f32.partialorder %v6306_v20, 0.0  ;;  %vm3111_vm4 = vcmp.lt.f32.partialorder %v6309_v21, 0.0  ;;  %v7025_v22 = vld [vmem:[#allocation29_spill] sm:$0xff] }
 0x4b5   :  { %v3138_v10 = vsel %vm3108_vm15, %v3403_v29, %v3128_v62  ;;  %v3623_v34 = vpop.eup %3622  ;;  %v3056_v49 = vmul.f32 %v3046_v1, %v6649_v51  ;;  %v3139_v4 = vsel %vm3109_vm2, %v3404_v13, %v3129_v53  ;;  %v3140_v33 = vsel %vm3110_vm5, %v3405_v44, %v3130_v23  ;;  %v7027_v53 = vld [vmem:[#allocation20_spill] sm:$0xff] }
 0x4b6   :  { %v3141_v16 = vsel %vm3111_vm4, %v3406_v40, %v3131_v18  ;;  %v3625_v25 = vpop.eup %3624  ;;  %v3055_v50 = vmul.f32 %v3045_v46, %v6643_v30  ;;  %v3157_v8 = vadd.f32 1.0, %v3137_v35  ;;  %v3102_v63 = vmul.f32 %v3621_v32, %v3052_v6  ;;  %v7028_v40 = vld [vmem:[#allocation23_spill] sm:$0xff]  ;;  %v7029_v35 = vld [vmem:[#allocation14_spill] sm:$0xff] }
 0x4b7   :  { %v3147_v9 = vmul.f32 0.5, %v6280_v11  ;;  %v3148_v37 = vmul.f32 0.5, %v6282_v26  ;;  %v3158_v60 = vadd.f32 1.0, %v3138_v10  ;;  %v3627_v20 = vpop.eup %3626  ;;  %v3103_v36 = vmul.f32 %v3623_v34, %v3053_v61 }
 0x4b8   :  { %v3159_v21 = vadd.f32 1.0, %v3139_v4  ;;  %v3160_v57 = vadd.f32 1.0, %v3140_v33  ;;  %v3161_v19 = vadd.f32 1.0, %v3141_v16  ;;  %v3104_v51 = vmul.f32 %v3625_v25, %v3054_v58 }
 0x4b9   :  { %v3629_v2 = vpop.eup %3628  ;;  %v3106_v27 = vmul.f32 %v3627_v20, %v3056_v49  ;;  %v3149_v42 = vmul.f32 0.5, %v6284_v52  ;;  %v3150_v45 = vmul.f32 0.5, %v6286_v12  ;;  %v3151_v7 = vmul.f32 0.5, %v6288_v24 }
 0x4ba   :  { %v3105_v30 = vmul.f32 %v3629_v2, %v3055_v50  ;;  %v3167_v56 = vmul.f32 %v3157_v8, %v3147_v9  ;;  %v3168_v11 = vmul.f32 %v3158_v60, %v3148_v37  ;;  %v3407_v47 = vadd.f32 -1.0, %v3102_v63 }
 0x4bb   :  { %v3132_v26 = vsub.f32 1.0, %v3102_v63  ;;  %v3169_v17 = vmul.f32 %v3159_v21, %v3149_v42  ;;  %v3170_v46 = vmul.f32 %v3160_v57, %v3150_v45  ;;  %v3408_v14 = vadd.f32 -1.0, %v3103_v36 }
 0x4bc   :  { %v3133_v5 = vsub.f32 1.0, %v3103_v36  ;;  %v3171_v43 = vmul.f32 %v3161_v19, %v3151_v7  ;;  %3187 = vst [vmem:[#allocation1] ss:$9 sm:$0xff] %v3167_v56  ;;  %v3409_v38 = vadd.f32 -1.0, %v3104_v51  ;;  %v3411_v1 = vadd.f32 -1.0, %v3106_v27 }
 0x4bd   :  { %v3134_v6 = vsub.f32 1.0, %v3104_v51  ;;  %v3136_v61 = vsub.f32 1.0, %v3106_v27  ;;  %3189 = vst [vmem:[#allocation1 + $0x1] ss:$9 sm:$0xff] %v3168_v11  ;;  %vm3112_vm6 = vcmp.lt.f32.partialorder %v6318_v41, 0.0  ;;  %v3410_v52 = vadd.f32 -1.0, %v3105_v30 }
 0x4be   :  { %v3135_v12 = vsub.f32 1.0, %v3105_v30  ;;  %3191 = vst [vmem:[#allocation1 + $0x2] ss:$9 sm:$0xff] %v3169_v17  ;;  %vm3113_vm0 = vcmp.lt.f32.partialorder %v6324_v54, 0.0  ;;  %v3142_v24 = vsel %vm3112_vm6, %v3407_v47, %v3132_v26  ;;  %vm3114_vm7 = vcmp.lt.f32.partialorder %v7022_v31, 0.0  ;;  %v7026_v54 = vld [vmem:[#allocation25_spill] sm:$0xff] }
 0x4bf   :  { %3193 = vst [vmem:[#allocation1 + $0x3] ss:$9 sm:$0xff] %v3170_v46  ;;  %vm3116_vm3 = vcmp.lt.f32.partialorder %v7023_v3, 0.0  ;;  %v3143_v28 = vsel %vm3113_vm0, %v3408_v14, %v3133_v5  ;;  %vm3115_vm12 = vcmp.lt.f32.partialorder %v7024_v55, 0.0  ;;  %v3144_v59 = vsel %vm3114_vm7, %v3409_v38, %v3134_v6 }
 0x4c0   :  { %3195 = vst [vmem:[#allocation1 + $0x4] ss:$9 sm:$0xff] %v3171_v43  ;;  %v3146_v15 = vsel %vm3116_vm3, %v3411_v1, %v3136_v61  ;;  %v3145_v39 = vsel %vm3115_vm12, %v3410_v52, %v3135_v12  ;;  %v3162_v48 = vadd.f32 1.0, %v3142_v24  ;;  %v3163_v41 = vadd.f32 1.0, %v3143_v28 }
 0x4c1   :  { %v3152_v0 = vmul.f32 0.5, %v7025_v22  ;;  %v3164_v29 = vadd.f32 1.0, %v3144_v59  ;;  %v3166_v62 = vadd.f32 1.0, %v3146_v15  ;;  %v3153_v13 = vmul.f32 0.5, %v7026_v54 }
 0x4c2   :  { %v3165_v44 = vadd.f32 1.0, %v3145_v39  ;;  %vm3205_vm13 = vcmask 1044480   ;;  %v3154_v23 = vmul.f32 0.5, %v7027_v53  ;;  %v3156_v18 = vmul.f32 0.5, %v7028_v40 }
 0x4c3   :  { %v3172_v58 = vmul.f32 %v3162_v48, %v3152_v0  ;;  %v3155_v32 = vmul.f32 0.5, %v7029_v35  ;;  %v3173_v10 = vmul.f32 %v3163_v41, %v3153_v13  ;;  %vm7030_vm8 = vcmask 1041409  }
 0x4c4   :  { %v3174_v49 = vmul.f32 %v3164_v29, %v3154_v23  ;;  %v3176_v4 = vmul.f32 %v3166_v62, %v3156_v18  ;;  %vm7031_vm1 = vcmask 1042434  }
 0x4c5   :  { %v3175_v16 = vmul.f32 %v3165_v44, %v3155_v32  ;;  %vm7033_vm10 = vmmov %vm7031_vm1 }
 0x4c7   :  { %v3196_v34 = vld [vmem:[#allocation1] sm:$0xff] }
 0x4c8   :  { %3197 = vst [vmem:[#allocation1] ss:$9 sm:$0xff] %v3172_v58  ;;  %v3206_v33 = vsel %vm3205_vm13, %v3196_v34, -inf }
 0x4c9   :  { %3198 = vst [vmem:[#allocation1 + $0x1] ss:$9 sm:$0xff] %v3173_v10  ;;  %v3210_v25 = vrot.slane %v3206_v33, 2  ;;  %v3211_v50 = vrot.slane %v3206_v33, 4  ;;  %v3218_v8 = vsel %vm1611_vm14, %v3206_v33, -inf }
 0x4ca   :  { %3199 = vst [vmem:[#allocation1 + $0x2] ss:$9 sm:$0xff] %v3174_v49  ;;  %v3219_v63 = vrot.slane %v3218_v8, 4 }
 0x4cb   :  { %3200 = vst [vmem:[#allocation1 + $0x3] ss:$9 sm:$0xff] %v3175_v16  ;;  %v3225_v9 = vsel %vm1611_vm14, %v3210_v25, -inf  ;;  %v3232_v37 = vsel %vm1611_vm14, %v3211_v50, -inf }
 0x4cc   :  { %3201 = vst [vmem:[#allocation1 + $0x4] ss:$9 sm:$0xff] %v3176_v4  ;;  %v3220_v60 = vmax.f32 %v3218_v8, %v3219_v63  ;;  %v3226_v20 = vrot.slane %v3225_v9, 4  ;;  %v3233_v36 = vrot.slane %v3232_v37, 4 }
 0x4ce   :  { %v3221_v21 = vrot.slane %v3220_v60, 2  ;;  %v3227_v57 = vmax.f32 %v3225_v9, %v3226_v20  ;;  %v3234_v19 = vmax.f32 %v3232_v37, %v3233_v36 }
 0x4d0   :  { %v3222_v2 = vmax.f32 %v3220_v60, %v3221_v21  ;;  %v3228_v51 = vrot.slane %v3227_v57, 2  ;;  %v3235_v27 = vrot.slane %v3234_v19, 2 }
 0x4d2   :  { %v3223_v42 = vrot.slane %v3222_v2, 1  ;;  %v3229_v45 = vmax.f32 %v3227_v57, %v3228_v51  ;;  %v3236_v30 = vmax.f32 %v3234_v19, %v3235_v27 }
 0x4d3   :  { %v3202_v7 = vld [vmem:[#allocation1] sm:$0xff] }
 0x4d4   :  { %v3207_v56 = vsel %vm3205_vm13, %v3202_v7, -inf  ;;  %v3230_v11 = vrot.slane %v3229_v45, 1  ;;  %v3237_v47 = vrot.slane %v3236_v30, 1  ;;  %v3224_v14 = vmax.f32 %v3222_v2, %v3223_v42 }
 0x4d5   :  { %v3212_v26 = vrot.slane %v3207_v56, 2  ;;  %v3213_v17 = vrot.slane %v3207_v56, 4  ;;  %v3239_v46 = vsel %vm1611_vm14, %v3207_v56, -inf }
 0x4d6   :  { %v3231_v5 = vmax.f32 %v3229_v45, %v3230_v11  ;;  %v3238_v43 = vmax.f32 %v3236_v30, %v3237_v47  ;;  %v3240_v38 = vrot.slane %v3239_v46, 4 }
 0x4d7   :  { %v3246_v1 = vsel %vm1611_vm14, %v3212_v26, -inf  ;;  %v3253_v6 = vsel %vm1611_vm14, %v3213_v17, -inf  ;;  %vm7032_vm14 = vmmov %vm7030_vm8 }
 0x4d8   :  { %v3241_v61 = vmax.f32 %v3239_v46, %v3240_v38  ;;  %v3247_v52 = vrot.slane %v3246_v1, 4  ;;  %v3254_v12 = vrot.slane %v3253_v6, 4  ;;  %v3266_v24 = vsel %vm7030_vm8, %v3231_v5, %v3224_v14 }
 0x4d9   :  { %v3267_v31 = vsel %vm7031_vm1, %v3238_v43, %v3266_v24 }
 0x4da   :  { %v3242_v3 = vrot.slane %v3241_v61, 2  ;;  %v3248_v28 = vmax.f32 %v3246_v1, %v3247_v52  ;;  %v3255_v55 = vmax.f32 %v3253_v6, %v3254_v12  ;;  %3272 = vst [vmem:[%s6758_s9] sm:$0x7] %v3267_v31 }
 0x4dc   :  { %v3243_v59 = vmax.f32 %v3241_v61, %v3242_v3  ;;  %v3249_v15 = vrot.slane %v3248_v28, 2  ;;  %v3256_v39 = vrot.slane %v3255_v55, 2 }
 0x4de   :  { %v3244_v48 = vrot.slane %v3243_v59, 1  ;;  %v3250_v41 = vmax.f32 %v3248_v28, %v3249_v15  ;;  %v3257_v22 = vmax.f32 %v3255_v55, %v3256_v39 }
 0x4e0   :  { %v3251_v0 = vrot.slane %v3250_v41, 1  ;;  %v3258_v29 = vrot.slane %v3257_v22, 1  ;;  %v3245_v62 = vmax.f32 %v3243_v59, %v3244_v48 }
 0x4e2   :  { %v3252_v54 = vmax.f32 %v3250_v41, %v3251_v0  ;;  %v3259_v13 = vmax.f32 %v3257_v22, %v3258_v29 }
 0x4e4   :  { %v3268_v44 = vsel %vm7032_vm14, %v3252_v54, %v3245_v62 }
 0x4e5   :  { %v3269_v53 = vsel %vm7033_vm10, %v3259_v13, %v3268_v44 }
 0x4e6   :  { %3273 = vst [vmem:[%s6758_s9 + $0x4] sm:$0x7] %v3269_v53 }
 0x4e7   :  { %3278 = vsyncpa [#allocation3], 1 }
 0x4e8   :  { %3279 = vsyncpa [#allocation5], 1 }
 0x4e9   :  { %3280 = vsyncpa [#allocation8], 1 }

// kernel: convnet_forward.3
= control target key start
LH: loop header
LB: loop body
LE: loop exit
PB: predicated region body
PF: predicated region fallthrough
CT: control target
= control target key end

     0   :  { %s3450_s0 = inlined_call_operand.vmem [shape: f32[2,128,3], index: 0, kind: input, shape index: {}]   ;;  %s3451_s1 = inlined_call_operand.vmem [shape: f32[3,512], index: 1, kind: input, shape index: {}]   ;;  %s3452_s2 = inlined_call_operand.vmem [shape: f32[128,512], index: 2, kind: input, shape index: {}]   ;;  %s3453_s3 = inlined_call_operand.vmem [shape: f32[1,512], index: 3, kind: input, shape index: {}]   ;;  %s3454_s4 = inlined_call_operand.vmem [shape: f32[256,512], index: 4, kind: input, shape index: {}]   ;;  %s3455_s5 = inlined_call_operand.vmem [shape: f32[1,512], index: 5, kind: input, shape index: {}]   ;;  %s3456_s6 = inlined_call_operand.vmem [shape: f32[128,48,128], index: 6, kind: input, shape index: {}]   ;;  %s3457_s7 = inlined_call_operand.vmem [shape: f32[1,128], index: 7, kind: input, shape index: {}]   ;;  %s3458_s8 = inlined_call_operand.vmem [shape: f32[128,128], index: 8, kind: input, shape index: {}]   ;;  %s3459_s9 = inlined_call_operand.vmem [shape: f32[1,128], index: 9, kind: input, shape index: {}]   ;;  %s3460_s10 = inlined_call_operand.hbm [shape: f32[2,128], index: 10, kind: output, shape index: {}]  }
   0x1   :  { %v69_v0 = vld [vmem:[%s3451_s1 + $0x8] sm:$0x77] }
   0x2   :  { %74 = vst [vmem:[#allocation1 + $0x10] ss:$2 sm:$0xff] %v69_v0 }
   0x3   :  { %15 = vsyncpa [#allocation4], 0  ;;  %v68_v1 = vld [vmem:[%s3451_s1] sm:$0x77]  ;;  %vm176_vm0 = vcmask 1042432   ;;  %vm79_vm1 = vcmask 23552  }
   0x4   :  { %72 = vst [vmem:[#allocation1] ss:$2 sm:$0xff] %v68_v1  ;;  %v36_v2 = vld [vmem:[%s3450_s0] sm:$0xff]  ;;  %v37_v7 = vld [vmem:[%s3450_s0 + $0x8] sm:$0xff]  ;;  %v38_v8 = vld [vmem:[%s3450_s0 + $0x10] sm:$0xff] }
   0x5   :  { %v39_v9 = vld [vmem:[%s3450_s0 + $0x18] sm:$0xff]  ;;  %v40_v10 = vld [vmem:[%s3450_s0 + $0x20] sm:$0xff]  ;;  %v41_v11 = vld [vmem:[%s3450_s0 + $0x28] sm:$0xff] }
   0x6   :  { %v42_v12 = vld [vmem:[%s3450_s0 + $0x30] sm:$0xff]  ;;  %v43_v13 = vld [vmem:[%s3450_s0 + $0x38] sm:$0xff]  ;;  %v44_v14 = vld [vmem:[%s3450_s0 + $0x40] sm:$0xff] }
   0x7   :  { %v45_v15 = vld [vmem:[%s3450_s0 + $0x48] sm:$0xff]  ;;  %v46_v16 = vld [vmem:[%s3450_s0 + $0x50] sm:$0xff]  ;;  %v47_v17 = vld [vmem:[%s3450_s0 + $0x58] sm:$0xff] }
   0x8   :  { %v48_v18 = vld [vmem:[%s3450_s0 + $0x60] sm:$0xff]  ;;  %v49_v19 = vld [vmem:[%s3450_s0 + $0x68] sm:$0xff]  ;;  %v50_v20 = vld [vmem:[%s3450_s0 + $0x70] sm:$0xff] }
   0x9   :  { %v77_v3 = vld.sshfl [vmem:[#allocation1 + $0x10] sm:$0xff pattern:$0x75316420]  ;;  %v78_v4 = vld.sshfl [vmem:[#allocation1 + $0x18] sm:$0xff pattern:$0x75316420] }
   0xa   :  { %1832 = vmatpush.msk.msra.mxu2 %vm176_vm0, %v77_v3  ;;  %1865 = vmatpush.msk.msra.mxu3 %vm176_vm0, %v78_v4  ;;  %v51_v21 = vld [vmem:[%s3450_s0 + $0x78] sm:$0xff]  ;;  %v637_v22 = vld [vmem:[%s3453_s3] sm:$0xf]  ;;  %v53_v36 = vld [vmem:[%s3450_s0 + $0x88] sm:$0xff] }
   0xb   :  { %v75_v5 = vld.sshfl [vmem:[#allocation1] sm:$0xff pattern:$0x75316420]  ;;  %v76_v6 = vld.sshfl [vmem:[#allocation1 + $0x8] sm:$0xff pattern:$0x75316420]  ;;  %1833 = vmatmul.msk.f32.vlgmr.msra.gmra.mxu2 %vm79_vm1, %v36_v2  ;;  %1866 = vmatmul.msk.f32.vlgmr.msra.gmra.mxu3 %vm79_vm1, %v36_v2 }
   0xc   :  { %1766 = vmatpush.msk.msra.mxu0 %vm176_vm0, %v75_v5  ;;  %1799 = vmatpush.msk.msra.mxu1 %vm176_vm0, %v76_v6  ;;  %v2299_v23 = vperm.slane %v637_v22, 0  ;;  %v2301_v24 = vperm.slane %v637_v22, 1  ;;  %v52_v25 = vld [vmem:[%s3450_s0 + $0x80] sm:$0xff]  ;;  %v2310_v30 = vperm.slane %v637_v22, 2  ;;  %v2312_v31 = vperm.slane %v637_v22, 3  ;;  %v54_v45 = vld [vmem:[%s3450_s0 + $0x90] sm:$0xff] }
   0xd   :  { %1767 = vmatmul.msk.f32.vlgmr.msra.gmra.mxu0 %vm79_vm1, %v36_v2  ;;  %1800 = vmatmul.msk.f32.vlgmr.msra.gmra.mxu1 %vm79_vm1, %v36_v2  ;;  %v55_v54 = vld [vmem:[%s3450_s0 + $0x98] sm:$0xff]  ;;  %v56_v63 = vld [vmem:[%s3450_s0 + $0xa0] sm:$0xff] }
  0x13   :  { %1834 = vmatmul.msk.f32.gmra.mxu2 %vm79_vm1, %v37_v7  ;;  %1867 = vmatmul.msk.f32.gmra.mxu3 %vm79_vm1, %v37_v7 }
  0x15   :  { %1768 = vmatmul.msk.f32.gmra.mxu0 %vm79_vm1, %v37_v7  ;;  %1801 = vmatmul.msk.f32.gmra.mxu1 %vm79_vm1, %v37_v7 }
  0x1b   :  { %1835 = vmatmul.msk.f32.gmra.mxu2 %vm79_vm1, %v38_v8  ;;  %1868 = vmatmul.msk.f32.gmra.mxu3 %vm79_vm1, %v38_v8 }
  0x1d   :  { %1769 = vmatmul.msk.f32.gmra.mxu0 %vm79_vm1, %v38_v8  ;;  %1802 = vmatmul.msk.f32.gmra.mxu1 %vm79_vm1, %v38_v8  ;;  %v57_v8 = vld [vmem:[%s3450_s0 + $0xa8] sm:$0xff] }
  0x23   :  { %1836 = vmatmul.msk.f32.gmra.mxu2 %vm79_vm1, %v39_v9  ;;  %1869 = vmatmul.msk.f32.gmra.mxu3 %vm79_vm1, %v39_v9 }
  0x25   :  { %1770 = vmatmul.msk.f32.gmra.mxu0 %vm79_vm1, %v39_v9  ;;  %1803 = vmatmul.msk.f32.gmra.mxu1 %vm79_vm1, %v39_v9 }
  0x2b   :  { %1837 = vmatmul.msk.f32.gmra.mxu2 %vm79_vm1, %v40_v10  ;;  %1870 = vmatmul.msk.f32.gmra.mxu3 %vm79_vm1, %v40_v10 }
  0x2d   :  { %1771 = vmatmul.msk.f32.gmra.mxu0 %vm79_vm1, %v40_v10  ;;  %1804 = vmatmul.msk.f32.gmra.mxu1 %vm79_vm1, %v40_v10 }
  0x33   :  { %1838 = vmatmul.msk.f32.gmra.mxu2 %vm79_vm1, %v41_v11  ;;  %1871 = vmatmul.msk.f32.gmra.mxu3 %vm79_vm1, %v41_v11 }
  0x35   :  { %1772 = vmatmul.msk.f32.gmra.mxu0 %vm79_vm1, %v41_v11  ;;  %1805 = vmatmul.msk.f32.gmra.mxu1 %vm79_vm1, %v41_v11 }
  0x3b   :  { %1839 = vmatmul.msk.f32.gmra.mxu2 %vm79_vm1, %v42_v12  ;;  %1872 = vmatmul.msk.f32.gmra.mxu3 %vm79_vm1, %v42_v12 }
  0x3d   :  { %1773 = vmatmul.msk.f32.gmra.mxu0 %vm79_vm1, %v42_v12  ;;  %1806 = vmatmul.msk.f32.gmra.mxu1 %vm79_vm1, %v42_v12 }
  0x43   :  { %1840 = vmatmul.msk.f32.gmra.mxu2 %vm79_vm1, %v43_v13  ;;  %1873 = vmatmul.msk.f32.gmra.mxu3 %vm79_vm1, %v43_v13 }
  0x45   :  { %1774 = vmatmul.msk.f32.gmra.mxu0 %vm79_vm1, %v43_v13  ;;  %1807 = vmatmul.msk.f32.gmra.mxu1 %vm79_vm1, %v43_v13 }
  0x4b   :  { %1841 = vmatmul.msk.f32.gmra.mxu2 %vm79_vm1, %v44_v14  ;;  %1874 = vmatmul.msk.f32.gmra.mxu3 %vm79_vm1, %v44_v14 }
  0x4d   :  { %1775 = vmatmul.msk.f32.gmra.mxu0 %vm79_vm1, %v44_v14  ;;  %1808 = vmatmul.msk.f32.gmra.mxu1 %vm79_vm1, %v44_v14 }
  0x53   :  { %1842 = vmatmul.msk.f32.gmra.mxu2 %vm79_vm1, %v45_v15  ;;  %1875 = vmatmul.msk.f32.gmra.mxu3 %vm79_vm1, %v45_v15 }
  0x55   :  { %1776 = vmatmul.msk.f32.gmra.mxu0 %vm79_vm1, %v45_v15  ;;  %1809 = vmatmul.msk.f32.gmra.mxu1 %vm79_vm1, %v45_v15 }
  0x5b   :  { %1843 = vmatmul.msk.f32.gmra.mxu2 %vm79_vm1, %v46_v16  ;;  %1876 = vmatmul.msk.f32.gmra.mxu3 %vm79_vm1, %v46_v16 }
  0x5d   :  { %1777 = vmatmul.msk.f32.gmra.mxu0 %vm79_vm1, %v46_v16  ;;  %1810 = vmatmul.msk.f32.gmra.mxu1 %vm79_vm1, %v46_v16 }
  0x63   :  { %1844 = vmatmul.msk.f32.gmra.mxu2 %vm79_vm1, %v47_v17  ;;  %1877 = vmatmul.msk.f32.gmra.mxu3 %vm79_vm1, %v47_v17 }
  0x65   :  { %1778 = vmatmul.msk.f32.gmra.mxu0 %vm79_vm1, %v47_v17  ;;  %1811 = vmatmul.msk.f32.gmra.mxu1 %vm79_vm1, %v47_v17  ;;  %v58_v17 = vld [vmem:[%s3450_s0 + $0xb0] sm:$0xff] }
  0x6b   :  { %1845 = vmatmul.msk.f32.gmra.mxu2 %vm79_vm1, %v48_v18  ;;  %1878 = vmatmul.msk.f32.gmra.mxu3 %vm79_vm1, %v48_v18 }
  0x6d   :  { %1779 = vmatmul.msk.f32.gmra.mxu0 %vm79_vm1, %v48_v18  ;;  %1812 = vmatmul.msk.f32.gmra.mxu1 %vm79_vm1, %v48_v18 }
  0x73   :  { %1846 = vmatmul.msk.f32.gmra.mxu2 %vm79_vm1, %v49_v19  ;;  %1879 = vmatmul.msk.f32.gmra.mxu3 %vm79_vm1, %v49_v19 }
  0x75   :  { %1780 = vmatmul.msk.f32.gmra.mxu0 %vm79_vm1, %v49_v19  ;;  %1813 = vmatmul.msk.f32.gmra.mxu1 %vm79_vm1, %v49_v19 }
  0x7b   :  { %1847 = vmatmul.msk.f32.gmra.mxu2 %vm79_vm1, %v50_v20  ;;  %1880 = vmatmul.msk.f32.gmra.mxu3 %vm79_vm1, %v50_v20 }
  0x7d   :  { %1781 = vmatmul.msk.f32.gmra.mxu0 %vm79_vm1, %v50_v20  ;;  %1814 = vmatmul.msk.f32.gmra.mxu1 %vm79_vm1, %v50_v20 }
  0x83   :  { %1848 = vmatmul.msk.f32.gmra.mxu2 %vm79_vm1, %v51_v21  ;;  %1881 = vmatmul.msk.f32.gmra.mxu3 %vm79_vm1, %v51_v21 }
  0x85   :  { %1782 = vmatmul.msk.f32.gmra.mxu0 %vm79_vm1, %v51_v21  ;;  %1815 = vmatmul.msk.f32.gmra.mxu1 %vm79_vm1, %v51_v21 }
  0x8a   :  { %v202_v26 = vpop.f32.mrf.mxu0  ;;  %v315_v27 = vpop.f32.mrf.mxu1 }
  0x8b   :  { %1849 = vmatmul.msk.f32.gmra.mxu2 %vm79_vm1, %v52_v25  ;;  %1882 = vmatmul.msk.f32.gmra.mxu3 %vm79_vm1, %v52_v25  ;;  %v647_v28 = vadd.f32 %v2299_v23, %v202_v26  ;;  %v648_v29 = vadd.f32 %v2301_v24, %v315_v27 }
  0x8d   :  { %775 = vst [vmem:[#allocation2] sm:$0xff] %v647_v28  ;;  %1783 = vmatmul.msk.f32.gmra.mxu0 %vm79_vm1, %v52_v25  ;;  %1816 = vmatmul.msk.f32.gmra.mxu1 %vm79_vm1, %v52_v25  ;;  %v59_v28 = vld [vmem:[%s3450_s0 + $0xb8] sm:$0xff] }
  0x8e   :  { %776 = vst [vmem:[#allocation2 + $0x8] sm:$0xff] %v648_v29  ;;  %v428_v32 = vpop.f32.mrf.mxu2  ;;  %v541_v33 = vpop.f32.mrf.mxu3 }
  0x8f   :  { %v649_v34 = vadd.f32 %v2310_v30, %v428_v32  ;;  %v650_v35 = vadd.f32 %v2312_v31, %v541_v33 }
  0x91   :  { %777 = vst [vmem:[#allocation2 + $0x10] sm:$0xff] %v649_v34 }
  0x92   :  { %778 = vst [vmem:[#allocation2 + $0x18] sm:$0xff] %v650_v35  ;;  %v205_v37 = vpop.f32.mrf.mxu0  ;;  %v318_v38 = vpop.f32.mrf.mxu1 }
  0x93   :  { %1850 = vmatmul.msk.f32.gmra.mxu2 %vm79_vm1, %v53_v36  ;;  %1883 = vmatmul.msk.f32.gmra.mxu3 %vm79_vm1, %v53_v36  ;;  %v651_v39 = vadd.f32 %v2299_v23, %v205_v37  ;;  %v652_v40 = vadd.f32 %v2301_v24, %v318_v38 }
  0x95   :  { %779 = vst [vmem:[#allocation2 + $0x20] sm:$0xff] %v651_v39  ;;  %1784 = vmatmul.msk.f32.gmra.mxu0 %vm79_vm1, %v53_v36  ;;  %1817 = vmatmul.msk.f32.gmra.mxu1 %vm79_vm1, %v53_v36  ;;  %v60_v39 = vld [vmem:[%s3450_s0 + $0xc0] sm:$0xff] }
  0x96   :  { %780 = vst [vmem:[#allocation2 + $0x28] sm:$0xff] %v652_v40  ;;  %v431_v41 = vpop.f32.mrf.mxu2  ;;  %v544_v42 = vpop.f32.mrf.mxu3 }
  0x97   :  { %v653_v43 = vadd.f32 %v2310_v30, %v431_v41  ;;  %v654_v44 = vadd.f32 %v2312_v31, %v544_v42 }
  0x99   :  { %781 = vst [vmem:[#allocation2 + $0x30] sm:$0xff] %v653_v43 }
  0x9a   :  { %782 = vst [vmem:[#allocation2 + $0x38] sm:$0xff] %v654_v44  ;;  %v208_v46 = vpop.f32.mrf.mxu0  ;;  %v321_v47 = vpop.f32.mrf.mxu1 }
  0x9b   :  { %1851 = vmatmul.msk.f32.gmra.mxu2 %vm79_vm1, %v54_v45  ;;  %1884 = vmatmul.msk.f32.gmra.mxu3 %vm79_vm1, %v54_v45  ;;  %v655_v48 = vadd.f32 %v2299_v23, %v208_v46  ;;  %v656_v49 = vadd.f32 %v2301_v24, %v321_v47 }
  0x9d   :  { %783 = vst [vmem:[#allocation2 + $0x40] sm:$0xff] %v655_v48  ;;  %1785 = vmatmul.msk.f32.gmra.mxu0 %vm79_vm1, %v54_v45  ;;  %1818 = vmatmul.msk.f32.gmra.mxu1 %vm79_vm1, %v54_v45  ;;  %v61_v48 = vld [vmem:[%s3450_s0 + $0xc8] sm:$0xff] }
  0x9e   :  { %784 = vst [vmem:[#allocation2 + $0x48] sm:$0xff] %v656_v49  ;;  %v434_v50 = vpop.f32.mrf.mxu2  ;;  %v547_v51 = vpop.f32.mrf.mxu3 }
  0x9f   :  { %v657_v52 = vadd.f32 %v2310_v30, %v434_v50  ;;  %v658_v53 = vadd.f32 %v2312_v31, %v547_v51 }
  0xa1   :  { %785 = vst [vmem:[#allocation2 + $0x50] sm:$0xff] %v657_v52 }
  0xa2   :  { %786 = vst [vmem:[#allocation2 + $0x58] sm:$0xff] %v658_v53  ;;  %v211_v55 = vpop.f32.mrf.mxu0  ;;  %v324_v56 = vpop.f32.mrf.mxu1 }
  0xa3   :  { %1852 = vmatmul.msk.f32.gmra.mxu2 %vm79_vm1, %v55_v54  ;;  %1885 = vmatmul.msk.f32.gmra.mxu3 %vm79_vm1, %v55_v54  ;;  %v659_v57 = vadd.f32 %v2299_v23, %v211_v55  ;;  %v660_v58 = vadd.f32 %v2301_v24, %v324_v56 }
  0xa5   :  { %787 = vst [vmem:[#allocation2 + $0x60] sm:$0xff] %v659_v57  ;;  %1786 = vmatmul.msk.f32.gmra.mxu0 %vm79_vm1, %v55_v54  ;;  %1819 = vmatmul.msk.f32.gmra.mxu1 %vm79_vm1, %v55_v54  ;;  %v62_v57 = vld [vmem:[%s3450_s0 + $0xd0] sm:$0xff] }
  0xa6   :  { %788 = vst [vmem:[#allocation2 + $0x68] sm:$0xff] %v660_v58  ;;  %v437_v59 = vpop.f32.mrf.mxu2  ;;  %v550_v60 = vpop.f32.mrf.mxu3 }
  0xa7   :  { %v661_v61 = vadd.f32 %v2310_v30, %v437_v59  ;;  %v662_v62 = vadd.f32 %v2312_v31, %v550_v60 }
  0xa9   :  { %789 = vst [vmem:[#allocation2 + $0x70] sm:$0xff] %v661_v61 }
  0xaa   :  { %790 = vst [vmem:[#allocation2 + $0x78] sm:$0xff] %v662_v62  ;;  %v214_v0 = vpop.f32.mrf.mxu0  ;;  %v327_v1 = vpop.f32.mrf.mxu1 }
  0xab   :  { %1853 = vmatmul.msk.f32.gmra.mxu2 %vm79_vm1, %v56_v63  ;;  %1886 = vmatmul.msk.f32.gmra.mxu3 %vm79_vm1, %v56_v63  ;;  %v663_v2 = vadd.f32 %v2299_v23, %v214_v0  ;;  %v664_v3 = vadd.f32 %v2301_v24, %v327_v1 }
  0xad   :  { %791 = vst [vmem:[#allocation2 + $0x80] sm:$0xff] %v663_v2  ;;  %1787 = vmatmul.msk.f32.gmra.mxu0 %vm79_vm1, %v56_v63  ;;  %1820 = vmatmul.msk.f32.gmra.mxu1 %vm79_vm1, %v56_v63  ;;  %v63_v2 = vld [vmem:[%s3450_s0 + $0xd8] sm:$0xff] }
  0xae   :  { %792 = vst [vmem:[#allocation2 + $0x88] sm:$0xff] %v664_v3  ;;  %v440_v4 = vpop.f32.mrf.mxu2  ;;  %v553_v5 = vpop.f32.mrf.mxu3 }
  0xaf   :  { %v665_v6 = vadd.f32 %v2310_v30, %v440_v4  ;;  %v666_v7 = vadd.f32 %v2312_v31, %v553_v5 }
  0xb1   :  { %793 = vst [vmem:[#allocation2 + $0x90] sm:$0xff] %v665_v6 }
  0xb2   :  { %794 = vst [vmem:[#allocation2 + $0x98] sm:$0xff] %v666_v7  ;;  %v217_v9 = vpop.f32.mrf.mxu0  ;;  %v330_v10 = vpop.f32.mrf.mxu1 }
  0xb3   :  { %1854 = vmatmul.msk.f32.gmra.mxu2 %vm79_vm1, %v57_v8  ;;  %1887 = vmatmul.msk.f32.gmra.mxu3 %vm79_vm1, %v57_v8  ;;  %v667_v11 = vadd.f32 %v2299_v23, %v217_v9  ;;  %v668_v12 = vadd.f32 %v2301_v24, %v330_v10 }
  0xb5   :  { %795 = vst [vmem:[#allocation2 + $0xa0] sm:$0xff] %v667_v11  ;;  %1788 = vmatmul.msk.f32.gmra.mxu0 %vm79_vm1, %v57_v8  ;;  %1821 = vmatmul.msk.f32.gmra.mxu1 %vm79_vm1, %v57_v8  ;;  %v64_v11 = vld [vmem:[%s3450_s0 + $0xe0] sm:$0xff] }
  0xb6   :  { %796 = vst [vmem:[#allocation2 + $0xa8] sm:$0xff] %v668_v12  ;;  %v443_v13 = vpop.f32.mrf.mxu2  ;;  %v556_v14 = vpop.f32.mrf.mxu3 }
  0xb7   :  { %v669_v15 = vadd.f32 %v2310_v30, %v443_v13  ;;  %v670_v16 = vadd.f32 %v2312_v31, %v556_v14 }
  0xb9   :  { %797 = vst [vmem:[#allocation2 + $0xb0] sm:$0xff] %v669_v15 }
  0xba   :  { %798 = vst [vmem:[#allocation2 + $0xb8] sm:$0xff] %v670_v16  ;;  %v220_v18 = vpop.f32.mrf.mxu0  ;;  %v333_v19 = vpop.f32.mrf.mxu1 }
  0xbb   :  { %1855 = vmatmul.msk.f32.gmra.mxu2 %vm79_vm1, %v58_v17  ;;  %1888 = vmatmul.msk.f32.gmra.mxu3 %vm79_vm1, %v58_v17  ;;  %v671_v20 = vadd.f32 %v2299_v23, %v220_v18  ;;  %v672_v21 = vadd.f32 %v2301_v24, %v333_v19 }
  0xbd   :  { %799 = vst [vmem:[#allocation2 + $0xc0] sm:$0xff] %v671_v20  ;;  %1789 = vmatmul.msk.f32.gmra.mxu0 %vm79_vm1, %v58_v17  ;;  %1822 = vmatmul.msk.f32.gmra.mxu1 %vm79_vm1, %v58_v17  ;;  %v65_v20 = vld [vmem:[%s3450_s0 + $0xe8] sm:$0xff] }
  0xbe   :  { %800 = vst [vmem:[#allocation2 + $0xc8] sm:$0xff] %v672_v21  ;;  %v446_v22 = vpop.f32.mrf.mxu2  ;;  %v559_v25 = vpop.f32.mrf.mxu3 }
  0xbf   :  { %v673_v26 = vadd.f32 %v2310_v30, %v446_v22  ;;  %v674_v27 = vadd.f32 %v2312_v31, %v559_v25 }
  0xc1   :  { %801 = vst [vmem:[#allocation2 + $0xd0] sm:$0xff] %v673_v26 }
  0xc2   :  { %802 = vst [vmem:[#allocation2 + $0xd8] sm:$0xff] %v674_v27  ;;  %v223_v29 = vpop.f32.mrf.mxu0  ;;  %v336_v32 = vpop.f32.mrf.mxu1 }
  0xc3   :  { %1856 = vmatmul.msk.f32.gmra.mxu2 %vm79_vm1, %v59_v28  ;;  %1889 = vmatmul.msk.f32.gmra.mxu3 %vm79_vm1, %v59_v28  ;;  %v675_v33 = vadd.f32 %v2299_v23, %v223_v29  ;;  %v676_v34 = vadd.f32 %v2301_v24, %v336_v32 }
  0xc5   :  { %803 = vst [vmem:[#allocation2 + $0xe0] sm:$0xff] %v675_v33  ;;  %1790 = vmatmul.msk.f32.gmra.mxu0 %vm79_vm1, %v59_v28  ;;  %1823 = vmatmul.msk.f32.gmra.mxu1 %vm79_vm1, %v59_v28  ;;  %v66_v33 = vld [vmem:[%s3450_s0 + $0xf0] sm:$0xff] }
  0xc6   :  { %804 = vst [vmem:[#allocation2 + $0xe8] sm:$0xff] %v676_v34  ;;  %v449_v35 = vpop.f32.mrf.mxu2  ;;  %v562_v36 = vpop.f32.mrf.mxu3 }
  0xc7   :  { %v677_v37 = vadd.f32 %v2310_v30, %v449_v35  ;;  %v678_v38 = vadd.f32 %v2312_v31, %v562_v36 }
  0xc9   :  { %805 = vst [vmem:[#allocation2 + $0xf0] sm:$0xff] %v677_v37 }
  0xca   :  { %806 = vst [vmem:[#allocation2 + $0xf8] sm:$0xff] %v678_v38  ;;  %v226_v40 = vpop.f32.mrf.mxu0  ;;  %v339_v41 = vpop.f32.mrf.mxu1 }
  0xcb   :  { %1857 = vmatmul.msk.f32.gmra.mxu2 %vm79_vm1, %v60_v39  ;;  %1890 = vmatmul.msk.f32.gmra.mxu3 %vm79_vm1, %v60_v39  ;;  %v679_v42 = vadd.f32 %v2299_v23, %v226_v40  ;;  %v680_v43 = vadd.f32 %v2301_v24, %v339_v41 }
  0xcd   :  { %807 = vst [vmem:[#allocation2 + $0x100] sm:$0xff] %v679_v42  ;;  %1791 = vmatmul.msk.f32.gmra.mxu0 %vm79_vm1, %v60_v39  ;;  %1824 = vmatmul.msk.f32.gmra.mxu1 %vm79_vm1, %v60_v39  ;;  %v67_v42 = vld [vmem:[%s3450_s0 + $0xf8] sm:$0xff]  ;;  %s2561_s0 = smov 0  }
  0xce   :  { %808 = vst [vmem:[#allocation2 + $0x108] sm:$0xff] %v680_v43  ;;  %v452_v44 = vpop.f32.mrf.mxu2  ;;  %v565_v45 = vpop.f32.mrf.mxu3 }
  0xcf   :  { %v681_v46 = vadd.f32 %v2310_v30, %v452_v44  ;;  %v682_v47 = vadd.f32 %v2312_v31, %v565_v45 }
  0xd1   :  { %809 = vst [vmem:[#allocation2 + $0x110] sm:$0xff] %v681_v46 }
  0xd2   :  { %810 = vst [vmem:[#allocation2 + $0x118] sm:$0xff] %v682_v47  ;;  %v229_v49 = vpop.f32.mrf.mxu0  ;;  %v342_v50 = vpop.f32.mrf.mxu1 }
  0xd3   :  { %1858 = vmatmul.msk.f32.gmra.mxu2 %vm79_vm1, %v61_v48  ;;  %1891 = vmatmul.msk.f32.gmra.mxu3 %vm79_vm1, %v61_v48  ;;  %v683_v51 = vadd.f32 %v2299_v23, %v229_v49  ;;  %v684_v52 = vadd.f32 %v2301_v24, %v342_v50 }
  0xd5   :  { %811 = vst [vmem:[#allocation2 + $0x120] sm:$0xff] %v683_v51  ;;  %1792 = vmatmul.msk.f32.gmra.mxu0 %vm79_vm1, %v61_v48  ;;  %1825 = vmatmul.msk.f32.gmra.mxu1 %vm79_vm1, %v61_v48 }
  0xd6   :  { %812 = vst [vmem:[#allocation2 + $0x128] sm:$0xff] %v684_v52  ;;  %v455_v53 = vpop.f32.mrf.mxu2  ;;  %v568_v54 = vpop.f32.mrf.mxu3 }
  0xd7   :  { %v685_v55 = vadd.f32 %v2310_v30, %v455_v53  ;;  %v686_v56 = vadd.f32 %v2312_v31, %v568_v54 }
  0xd9   :  { %813 = vst [vmem:[#allocation2 + $0x130] sm:$0xff] %v685_v55 }
  0xda   :  { %814 = vst [vmem:[#allocation2 + $0x138] sm:$0xff] %v686_v56  ;;  %v232_v58 = vpop.f32.mrf.mxu0  ;;  %v345_v59 = vpop.f32.mrf.mxu1 }
  0xdb   :  { %1859 = vmatmul.msk.f32.gmra.mxu2 %vm79_vm1, %v62_v57  ;;  %1892 = vmatmul.msk.f32.gmra.mxu3 %vm79_vm1, %v62_v57  ;;  %v687_v60 = vadd.f32 %v2299_v23, %v232_v58  ;;  %v688_v61 = vadd.f32 %v2301_v24, %v345_v59 }
  0xdd   :  { %815 = vst [vmem:[#allocation2 + $0x140] sm:$0xff] %v687_v60  ;;  %1793 = vmatmul.msk.f32.gmra.mxu0 %vm79_vm1, %v62_v57  ;;  %1826 = vmatmul.msk.f32.gmra.mxu1 %vm79_vm1, %v62_v57 }
  0xde   :  { %816 = vst [vmem:[#allocation2 + $0x148] sm:$0xff] %v688_v61  ;;  %v458_v62 = vpop.f32.mrf.mxu2  ;;  %v571_v63 = vpop.f32.mrf.mxu3 }
  0xdf   :  { %v689_v0 = vadd.f32 %v2310_v30, %v458_v62  ;;  %v690_v1 = vadd.f32 %v2312_v31, %v571_v63 }
  0xe1   :  { %817 = vst [vmem:[#allocation2 + $0x150] sm:$0xff] %v689_v0 }
  0xe2   :  { %818 = vst [vmem:[#allocation2 + $0x158] sm:$0xff] %v690_v1  ;;  %v235_v3 = vpop.f32.mrf.mxu0  ;;  %v348_v4 = vpop.f32.mrf.mxu1 }
  0xe3   :  { %1860 = vmatmul.msk.f32.gmra.mxu2 %vm79_vm1, %v63_v2  ;;  %1893 = vmatmul.msk.f32.gmra.mxu3 %vm79_vm1, %v63_v2  ;;  %v691_v5 = vadd.f32 %v2299_v23, %v235_v3  ;;  %v692_v6 = vadd.f32 %v2301_v24, %v348_v4 }
  0xe5   :  { %819 = vst [vmem:[#allocation2 + $0x160] sm:$0xff] %v691_v5  ;;  %1794 = vmatmul.msk.f32.gmra.mxu0 %vm79_vm1, %v63_v2  ;;  %1827 = vmatmul.msk.f32.gmra.mxu1 %vm79_vm1, %v63_v2 }
  0xe6   :  { %820 = vst [vmem:[#allocation2 + $0x168] sm:$0xff] %v692_v6  ;;  %v461_v7 = vpop.f32.mrf.mxu2  ;;  %v574_v8 = vpop.f32.mrf.mxu3 }
  0xe7   :  { %v693_v9 = vadd.f32 %v2310_v30, %v461_v7  ;;  %v694_v10 = vadd.f32 %v2312_v31, %v574_v8 }
  0xe9   :  { %821 = vst [vmem:[#allocation2 + $0x170] sm:$0xff] %v693_v9 }
  0xea   :  { %822 = vst [vmem:[#allocation2 + $0x178] sm:$0xff] %v694_v10  ;;  %v238_v12 = vpop.f32.mrf.mxu0  ;;  %v351_v13 = vpop.f32.mrf.mxu1 }
  0xeb   :  { %1861 = vmatmul.msk.f32.gmra.mxu2 %vm79_vm1, %v64_v11  ;;  %1894 = vmatmul.msk.f32.gmra.mxu3 %vm79_vm1, %v64_v11  ;;  %v695_v14 = vadd.f32 %v2299_v23, %v238_v12  ;;  %v696_v15 = vadd.f32 %v2301_v24, %v351_v13 }
  0xed   :  { %823 = vst [vmem:[#allocation2 + $0x180] sm:$0xff] %v695_v14  ;;  %1795 = vmatmul.msk.f32.gmra.mxu0 %vm79_vm1, %v64_v11  ;;  %1828 = vmatmul.msk.f32.gmra.mxu1 %vm79_vm1, %v64_v11 }
  0xee   :  { %824 = vst [vmem:[#allocation2 + $0x188] sm:$0xff] %v696_v15  ;;  %v464_v16 = vpop.f32.mrf.mxu2  ;;  %v577_v17 = vpop.f32.mrf.mxu3 }
  0xef   :  { %v697_v18 = vadd.f32 %v2310_v30, %v464_v16  ;;  %v698_v19 = vadd.f32 %v2312_v31, %v577_v17 }
  0xf1   :  { %825 = vst [vmem:[#allocation2 + $0x190] sm:$0xff] %v697_v18 }
  0xf2   :  { %826 = vst [vmem:[#allocation2 + $0x198] sm:$0xff] %v698_v19  ;;  %v241_v21 = vpop.f32.mrf.mxu0  ;;  %v354_v22 = vpop.f32.mrf.mxu1 }
  0xf3   :  { %1862 = vmatmul.msk.f32.gmra.mxu2 %vm79_vm1, %v65_v20  ;;  %1895 = vmatmul.msk.f32.gmra.mxu3 %vm79_vm1, %v65_v20  ;;  %v699_v25 = vadd.f32 %v2299_v23, %v241_v21  ;;  %v700_v26 = vadd.f32 %v2301_v24, %v354_v22 }
  0xf5   :  { %827 = vst [vmem:[#allocation2 + $0x1a0] sm:$0xff] %v699_v25  ;;  %1796 = vmatmul.msk.f32.gmra.mxu0 %vm79_vm1, %v65_v20  ;;  %1829 = vmatmul.msk.f32.gmra.mxu1 %vm79_vm1, %v65_v20 }
  0xf6   :  { %828 = vst [vmem:[#allocation2 + $0x1a8] sm:$0xff] %v700_v26  ;;  %v467_v27 = vpop.f32.mrf.mxu2  ;;  %v580_v28 = vpop.f32.mrf.mxu3 }
  0xf7   :  { %v701_v29 = vadd.f32 %v2310_v30, %v467_v27  ;;  %v702_v32 = vadd.f32 %v2312_v31, %v580_v28 }
  0xf9   :  { %829 = vst [vmem:[#allocation2 + $0x1b0] sm:$0xff] %v701_v29 }
  0xfa   :  { %830 = vst [vmem:[#allocation2 + $0x1b8] sm:$0xff] %v702_v32  ;;  %v244_v34 = vpop.f32.mrf.mxu0  ;;  %v357_v35 = vpop.f32.mrf.mxu1 }
  0xfb   :  { %1863 = vmatmul.msk.f32.gmra.mxu2 %vm79_vm1, %v66_v33  ;;  %1896 = vmatmul.msk.f32.gmra.mxu3 %vm79_vm1, %v66_v33  ;;  %v703_v36 = vadd.f32 %v2299_v23, %v244_v34  ;;  %v704_v37 = vadd.f32 %v2301_v24, %v357_v35 }
  0xfd   :  { %831 = vst [vmem:[#allocation2 + $0x1c0] sm:$0xff] %v703_v36  ;;  %1797 = vmatmul.msk.f32.gmra.mxu0 %vm79_vm1, %v66_v33  ;;  %1830 = vmatmul.msk.f32.gmra.mxu1 %vm79_vm1, %v66_v33 }
  0xfe   :  { %832 = vst [vmem:[#allocation2 + $0x1c8] sm:$0xff] %v704_v37  ;;  %v470_v38 = vpop.f32.mrf.mxu2  ;;  %v583_v39 = vpop.f32.mrf.mxu3 }
  0xff   :  { %v705_v40 = vadd.f32 %v2310_v30, %v470_v38  ;;  %v706_v41 = vadd.f32 %v2312_v31, %v583_v39 }
 0x101   :  { %833 = vst [vmem:[#allocation2 + $0x1d0] sm:$0xff] %v705_v40 }
 0x102   :  { %834 = vst [vmem:[#allocation2 + $0x1d8] sm:$0xff] %v706_v41  ;;  %v247_v43 = vpop.f32.mrf.mxu0  ;;  %v360_v44 = vpop.f32.mrf.mxu1 }
 0x103   :  { %1864 = vmatmul.msk.f32.gmra.mxu2 %vm79_vm1, %v67_v42  ;;  %1897 = vmatmul.msk.f32.gmra.mxu3 %vm79_vm1, %v67_v42  ;;  %v707_v45 = vadd.f32 %v2299_v23, %v247_v43  ;;  %v708_v46 = vadd.f32 %v2301_v24, %v360_v44 }
 0x105   :  { %835 = vst [vmem:[#allocation2 + $0x1e0] sm:$0xff] %v707_v45  ;;  %1798 = vmatmul.msk.f32.gmra.mxu0 %vm79_vm1, %v67_v42  ;;  %1831 = vmatmul.msk.f32.gmra.mxu1 %vm79_vm1, %v67_v42 }
 0x106   :  { %836 = vst [vmem:[#allocation2 + $0x1e8] sm:$0xff] %v708_v46  ;;  %v473_v47 = vpop.f32.mrf.mxu2  ;;  %v586_v48 = vpop.f32.mrf.mxu3 }
 0x107   :  { %v709_v49 = vadd.f32 %v2310_v30, %v473_v47  ;;  %v710_v50 = vadd.f32 %v2312_v31, %v586_v48 }
 0x109   :  { %837 = vst [vmem:[#allocation2 + $0x1f0] sm:$0xff] %v709_v49 }
 0x10a   :  { %838 = vst [vmem:[#allocation2 + $0x1f8] sm:$0xff] %v710_v50  ;;  %v250_v51 = vpop.f32.mrf.mxu0  ;;  %v363_v52 = vpop.f32.mrf.mxu1 }
 0x10b   :  { %v711_v53 = vadd.f32 %v2299_v23, %v250_v51  ;;  %v712_v54 = vadd.f32 %v2301_v24, %v363_v52 }
 0x10d   :  { %839 = vst [vmem:[#allocation2 + $0x200] sm:$0xff] %v711_v53 }
 0x10e   :  { %840 = vst [vmem:[#allocation2 + $0x208] sm:$0xff] %v712_v54  ;;  %v476_v55 = vpop.f32.mrf.mxu2  ;;  %v589_v56 = vpop.f32.mrf.mxu3 }
 0x10f   :  { %v713_v57 = vadd.f32 %v2310_v30, %v476_v55  ;;  %v714_v58 = vadd.f32 %v2312_v31, %v589_v56 }
 0x111   :  { %841 = vst [vmem:[#allocation2 + $0x210] sm:$0xff] %v713_v57 }
 0x112   :  { %842 = vst [vmem:[#allocation2 + $0x218] sm:$0xff] %v714_v58  ;;  %v253_v59 = vpop.f32.mrf.mxu0  ;;  %v366_v60 = vpop.f32.mrf.mxu1 }
 0x113   :  { %v715_v61 = vadd.f32 %v2299_v23, %v253_v59  ;;  %v716_v62 = vadd.f32 %v2301_v24, %v366_v60 }
 0x115   :  { %843 = vst [vmem:[#allocation2 + $0x220] sm:$0xff] %v715_v61 }
 0x116   :  { %844 = vst [vmem:[#allocation2 + $0x228] sm:$0xff] %v716_v62  ;;  %v479_v63 = vpop.f32.mrf.mxu2  ;;  %v592_v0 = vpop.f32.mrf.mxu3 }
 0x117   :  { %v717_v1 = vadd.f32 %v2310_v30, %v479_v63  ;;  %v718_v2 = vadd.f32 %v2312_v31, %v592_v0 }
 0x119   :  { %845 = vst [vmem:[#allocation2 + $0x230] sm:$0xff] %v717_v1 }
 0x11a   :  { %846 = vst [vmem:[#allocation2 + $0x238] sm:$0xff] %v718_v2  ;;  %v256_v3 = vpop.f32.mrf.mxu0  ;;  %v369_v4 = vpop.f32.mrf.mxu1 }
 0x11b   :  { %v719_v5 = vadd.f32 %v2299_v23, %v256_v3  ;;  %v720_v6 = vadd.f32 %v2301_v24, %v369_v4 }
 0x11d   :  { %847 = vst [vmem:[#allocation2 + $0x240] sm:$0xff] %v719_v5 }
 0x11e   :  { %848 = vst [vmem:[#allocation2 + $0x248] sm:$0xff] %v720_v6  ;;  %v482_v7 = vpop.f32.mrf.mxu2  ;;  %v595_v8 = vpop.f32.mrf.mxu3 }
 0x11f   :  { %v721_v9 = vadd.f32 %v2310_v30, %v482_v7  ;;  %v722_v10 = vadd.f32 %v2312_v31, %v595_v8 }
 0x121   :  { %849 = vst [vmem:[#allocation2 + $0x250] sm:$0xff] %v721_v9 }
 0x122   :  { %850 = vst [vmem:[#allocation2 + $0x258] sm:$0xff] %v722_v10  ;;  %v259_v11 = vpop.f32.mrf.mxu0  ;;  %v372_v12 = vpop.f32.mrf.mxu1 }
 0x123   :  { %v723_v13 = vadd.f32 %v2299_v23, %v259_v11  ;;  %v724_v14 = vadd.f32 %v2301_v24, %v372_v12 }
 0x125   :  { %851 = vst [vmem:[#allocation2 + $0x260] sm:$0xff] %v723_v13 }
 0x126   :  { %852 = vst [vmem:[#allocation2 + $0x268] sm:$0xff] %v724_v14  ;;  %v485_v15 = vpop.f32.mrf.mxu2  ;;  %v598_v16 = vpop.f32.mrf.mxu3 }
 0x127   :  { %v725_v17 = vadd.f32 %v2310_v30, %v485_v15  ;;  %v726_v18 = vadd.f32 %v2312_v31, %v598_v16 }
 0x129   :  { %853 = vst [vmem:[#allocation2 + $0x270] sm:$0xff] %v725_v17 }
 0x12a   :  { %854 = vst [vmem:[#allocation2 + $0x278] sm:$0xff] %v726_v18  ;;  %v262_v19 = vpop.f32.mrf.mxu0  ;;  %v375_v20 = vpop.f32.mrf.mxu1 }
 0x12b   :  { %v727_v21 = vadd.f32 %v2299_v23, %v262_v19  ;;  %v728_v22 = vadd.f32 %v2301_v24, %v375_v20 }
 0x12d   :  { %855 = vst [vmem:[#allocation2 + $0x280] sm:$0xff] %v727_v21 }
 0x12e   :  { %856 = vst [vmem:[#allocation2 + $0x288] sm:$0xff] %v728_v22  ;;  %v488_v25 = vpop.f32.mrf.mxu2  ;;  %v601_v26 = vpop.f32.mrf.mxu3 }
 0x12f   :  { %v729_v27 = vadd.f32 %v2310_v30, %v488_v25  ;;  %v730_v28 = vadd.f32 %v2312_v31, %v601_v26 }
 0x131   :  { %857 = vst [vmem:[#allocation2 + $0x290] sm:$0xff] %v729_v27 }
 0x132   :  { %858 = vst [vmem:[#allocation2 + $0x298] sm:$0xff] %v730_v28  ;;  %v265_v29 = vpop.f32.mrf.mxu0  ;;  %v378_v32 = vpop.f32.mrf.mxu1 }
 0x133   :  { %v731_v33 = vadd.f32 %v2299_v23, %v265_v29  ;;  %v732_v34 = vadd.f32 %v2301_v24, %v378_v32 }
 0x135   :  { %859 = vst [vmem:[#allocation2 + $0x2a0] sm:$0xff] %v731_v33 }
 0x136   :  { %860 = vst [vmem:[#allocation2 + $0x2a8] sm:$0xff] %v732_v34  ;;  %v491_v35 = vpop.f32.mrf.mxu2  ;;  %v604_v36 = vpop.f32.mrf.mxu3 }
 0x137   :  { %v733_v37 = vadd.f32 %v2310_v30, %v491_v35  ;;  %v734_v38 = vadd.f32 %v2312_v31, %v604_v36 }
 0x139   :  { %861 = vst [vmem:[#allocation2 + $0x2b0] sm:$0xff] %v733_v37 }
 0x13a   :  { %862 = vst [vmem:[#allocation2 + $0x2b8] sm:$0xff] %v734_v38  ;;  %v268_v39 = vpop.f32.mrf.mxu0  ;;  %v381_v40 = vpop.f32.mrf.mxu1 }
 0x13b   :  { %v735_v41 = vadd.f32 %v2299_v23, %v268_v39  ;;  %v736_v42 = vadd.f32 %v2301_v24, %v381_v40 }
 0x13d   :  { %863 = vst [vmem:[#allocation2 + $0x2c0] sm:$0xff] %v735_v41 }
 0x13e   :  { %864 = vst [vmem:[#allocation2 + $0x2c8] sm:$0xff] %v736_v42  ;;  %v494_v43 = vpop.f32.mrf.mxu2  ;;  %v607_v44 = vpop.f32.mrf.mxu3 }
 0x13f   :  { %v737_v45 = vadd.f32 %v2310_v30, %v494_v43  ;;  %v738_v46 = vadd.f32 %v2312_v31, %v607_v44 }
 0x141   :  { %865 = vst [vmem:[#allocation2 + $0x2d0] sm:$0xff] %v737_v45 }
 0x142   :  { %866 = vst [vmem:[#allocation2 + $0x2d8] sm:$0xff] %v738_v46  ;;  %v271_v47 = vpop.f32.mrf.mxu0  ;;  %v384_v48 = vpop.f32.mrf.mxu1 }
 0x143   :  { %v739_v49 = vadd.f32 %v2299_v23, %v271_v47  ;;  %v740_v50 = vadd.f32 %v2301_v24, %v384_v48 }
 0x145   :  { %867 = vst [vmem:[#allocation2 + $0x2e0] sm:$0xff] %v739_v49 }
 0x146   :  { %868 = vst [vmem:[#allocation2 + $0x2e8] sm:$0xff] %v740_v50  ;;  %v497_v51 = vpop.f32.mrf.mxu2  ;;  %v610_v52 = vpop.f32.mrf.mxu3 }
 0x147   :  { %v741_v53 = vadd.f32 %v2310_v30, %v497_v51  ;;  %v742_v54 = vadd.f32 %v2312_v31, %v610_v52 }
 0x149   :  { %869 = vst [vmem:[#allocation2 + $0x2f0] sm:$0xff] %v741_v53 }
 0x14a   :  { %870 = vst [vmem:[#allocation2 + $0x2f8] sm:$0xff] %v742_v54  ;;  %v274_v55 = vpop.f32.mrf.mxu0  ;;  %v387_v56 = vpop.f32.mrf.mxu1 }
 0x14b   :  { %v743_v57 = vadd.f32 %v2299_v23, %v274_v55  ;;  %v744_v58 = vadd.f32 %v2301_v24, %v387_v56 }
 0x14d   :  { %871 = vst [vmem:[#allocation2 + $0x300] sm:$0xff] %v743_v57 }
 0x14e   :  { %872 = vst [vmem:[#allocation2 + $0x308] sm:$0xff] %v744_v58  ;;  %v500_v59 = vpop.f32.mrf.mxu2  ;;  %v613_v60 = vpop.f32.mrf.mxu3 }
 0x14f   :  { %v745_v61 = vadd.f32 %v2310_v30, %v500_v59  ;;  %v746_v62 = vadd.f32 %v2312_v31, %v613_v60  ;;  %v2547_v59 = vmov 0.0   ;;  %v2549_v60 = vmov 0.0  }
 0x151   :  { %873 = vst [vmem:[#allocation2 + $0x310] sm:$0xff] %v745_v61  ;;  %v2551_v61 = vmov 0.0  }
 0x152   :  { %874 = vst [vmem:[#allocation2 + $0x318] sm:$0xff] %v746_v62  ;;  %v277_v63 = vpop.f32.mrf.mxu0  ;;  %v390_v0 = vpop.f32.mrf.mxu1  ;;  %v2553_v62 = vmov 0.0  }
 0x153   :  { %v747_v1 = vadd.f32 %v2299_v23, %v277_v63  ;;  %v748_v2 = vadd.f32 %v2301_v24, %v390_v0  ;;  %v2559_v63 = vmov 0.0  }
 0x155   :  { %875 = vst [vmem:[#allocation2 + $0x320] sm:$0xff] %v747_v1 }
 0x156   :  { %876 = vst [vmem:[#allocation2 + $0x328] sm:$0xff] %v748_v2  ;;  %v503_v3 = vpop.f32.mrf.mxu2  ;;  %v616_v4 = vpop.f32.mrf.mxu3 }
 0x157   :  { %v749_v5 = vadd.f32 %v2310_v30, %v503_v3  ;;  %v750_v6 = vadd.f32 %v2312_v31, %v616_v4 }
 0x159   :  { %877 = vst [vmem:[#allocation2 + $0x330] sm:$0xff] %v749_v5 }
 0x15a   :  { %878 = vst [vmem:[#allocation2 + $0x338] sm:$0xff] %v750_v6  ;;  %v280_v7 = vpop.f32.mrf.mxu0  ;;  %v393_v8 = vpop.f32.mrf.mxu1 }
 0x15b   :  { %v751_v9 = vadd.f32 %v2299_v23, %v280_v7  ;;  %v752_v10 = vadd.f32 %v2301_v24, %v393_v8 }
 0x15d   :  { %879 = vst [vmem:[#allocation2 + $0x340] sm:$0xff] %v751_v9 }
 0x15e   :  { %880 = vst [vmem:[#allocation2 + $0x348] sm:$0xff] %v752_v10  ;;  %v506_v11 = vpop.f32.mrf.mxu2  ;;  %v619_v12 = vpop.f32.mrf.mxu3 }
 0x15f   :  { %v753_v13 = vadd.f32 %v2310_v30, %v506_v11  ;;  %v754_v14 = vadd.f32 %v2312_v31, %v619_v12 }
 0x161   :  { %881 = vst [vmem:[#allocation2 + $0x350] sm:$0xff] %v753_v13 }
 0x162   :  { %882 = vst [vmem:[#allocation2 + $0x358] sm:$0xff] %v754_v14  ;;  %v283_v15 = vpop.f32.mrf.mxu0  ;;  %v396_v16 = vpop.f32.mrf.mxu1 }
 0x163   :  { %v755_v17 = vadd.f32 %v2299_v23, %v283_v15  ;;  %v756_v18 = vadd.f32 %v2301_v24, %v396_v16 }
 0x165   :  { %883 = vst [vmem:[#allocation2 + $0x360] sm:$0xff] %v755_v17 }
 0x166   :  { %884 = vst [vmem:[#allocation2 + $0x368] sm:$0xff] %v756_v18  ;;  %v509_v19 = vpop.f32.mrf.mxu2  ;;  %v622_v20 = vpop.f32.mrf.mxu3 }
 0x167   :  { %v757_v21 = vadd.f32 %v2310_v30, %v509_v19  ;;  %v758_v22 = vadd.f32 %v2312_v31, %v622_v20 }
 0x169   :  { %885 = vst [vmem:[#allocation2 + $0x370] sm:$0xff] %v757_v21 }
 0x16a   :  { %886 = vst [vmem:[#allocation2 + $0x378] sm:$0xff] %v758_v22  ;;  %v286_v25 = vpop.f32.mrf.mxu0  ;;  %v399_v26 = vpop.f32.mrf.mxu1 }
 0x16b   :  { %v759_v27 = vadd.f32 %v2299_v23, %v286_v25  ;;  %v760_v28 = vadd.f32 %v2301_v24, %v399_v26 }
 0x16d   :  { %887 = vst [vmem:[#allocation2 + $0x380] sm:$0xff] %v759_v27 }
 0x16e   :  { %888 = vst [vmem:[#allocation2 + $0x388] sm:$0xff] %v760_v28  ;;  %v512_v29 = vpop.f32.mrf.mxu2  ;;  %v625_v32 = vpop.f32.mrf.mxu3 }
 0x16f   :  { %v761_v33 = vadd.f32 %v2310_v30, %v512_v29  ;;  %v762_v34 = vadd.f32 %v2312_v31, %v625_v32 }
 0x171   :  { %889 = vst [vmem:[#allocation2 + $0x390] sm:$0xff] %v761_v33 }
 0x172   :  { %890 = vst [vmem:[#allocation2 + $0x398] sm:$0xff] %v762_v34  ;;  %v289_v35 = vpop.f32.mrf.mxu0  ;;  %v402_v36 = vpop.f32.mrf.mxu1 }
 0x173   :  { %v763_v37 = vadd.f32 %v2299_v23, %v289_v35  ;;  %v764_v38 = vadd.f32 %v2301_v24, %v402_v36 }
 0x175   :  { %891 = vst [vmem:[#allocation2 + $0x3a0] sm:$0xff] %v763_v37 }
 0x176   :  { %892 = vst [vmem:[#allocation2 + $0x3a8] sm:$0xff] %v764_v38  ;;  %v515_v39 = vpop.f32.mrf.mxu2  ;;  %v628_v40 = vpop.f32.mrf.mxu3 }
 0x177   :  { %v765_v41 = vadd.f32 %v2310_v30, %v515_v39  ;;  %v766_v42 = vadd.f32 %v2312_v31, %v628_v40 }
 0x179   :  { %893 = vst [vmem:[#allocation2 + $0x3b0] sm:$0xff] %v765_v41 }
 0x17a   :  { %894 = vst [vmem:[#allocation2 + $0x3b8] sm:$0xff] %v766_v42  ;;  %v292_v43 = vpop.f32.mrf.mxu0  ;;  %v405_v44 = vpop.f32.mrf.mxu1 }
 0x17b   :  { %v767_v45 = vadd.f32 %v2299_v23, %v292_v43  ;;  %v768_v46 = vadd.f32 %v2301_v24, %v405_v44 }
 0x17d   :  { %895 = vst [vmem:[#allocation2 + $0x3c0] sm:$0xff] %v767_v45 }
 0x17e   :  { %896 = vst [vmem:[#allocation2 + $0x3c8] sm:$0xff] %v768_v46  ;;  %v518_v47 = vpop.f32.mrf.mxu2  ;;  %v631_v48 = vpop.f32.mrf.mxu3 }
 0x17f   :  { %v769_v49 = vadd.f32 %v2310_v30, %v518_v47  ;;  %v770_v50 = vadd.f32 %v2312_v31, %v631_v48 }
 0x181   :  { %897 = vst [vmem:[#allocation2 + $0x3d0] sm:$0xff] %v769_v49 }
 0x182   :  { %898 = vst [vmem:[#allocation2 + $0x3d8] sm:$0xff] %v770_v50  ;;  %v295_v51 = vpop.f32.mrf.mxu0  ;;  %v408_v52 = vpop.f32.mrf.mxu1 }
 0x183   :  { %v771_v53 = vadd.f32 %v2299_v23, %v295_v51  ;;  %v772_v54 = vadd.f32 %v2301_v24, %v408_v52  ;;  %v2555_v23 = vmov 0.0   ;;  %v2557_v24 = vmov 0.0  }
 0x185   :  { %899 = vst [vmem:[#allocation2 + $0x3e0] sm:$0xff] %v771_v53 }
 0x186   :  { %900 = vst [vmem:[#allocation2 + $0x3e8] sm:$0xff] %v772_v54  ;;  %v521_v55 = vpop.f32.mrf.mxu2  ;;  %v634_v56 = vpop.f32.mrf.mxu3 }
 0x187   :  { %v773_v57 = vadd.f32 %v2310_v30, %v521_v55  ;;  %v774_v58 = vadd.f32 %v2312_v31, %v634_v56 }
 0x189   :  { %901 = vst [vmem:[#allocation2 + $0x3f0] sm:$0xff] %v773_v57 }
 0x18a   :  { %902 = vst [vmem:[#allocation2 + $0x3f8] sm:$0xff] %v774_v58 }
 0x18b LB: > { %v990_v30 = vld [vmem:[%s3452_s2 + $0x1f0] sm:$0xff]  ;;  %v991_v31 = vld [vmem:[%s3452_s2 + $0x1f8] sm:$0xff]  ;;  %v989_v4 = vld [vmem:[%s3452_s2 + $0x1e8] sm:$0xff]  ;;  %994 = vst [vmem:[#allocation1] ss:$9 sm:$0xff] %v2116_v63  ;;  %s916_s18 = sshra.s32 %s2120_s0, 3  ;;  %s2120_s0 = sphi %s2561_s0, %s908_s0   ;;  %v2116_v63 = vphi %v2559_v63, %v3353_v63   ;;  %v2112_v24 = vphi %v2557_v24, %v3355_v24   ;;  %v2108_v23 = vphi %v2555_v23, %v3479_v23   ;;  %v2104_v62 = vphi %v2553_v62, %v3478_v62   ;;  %v2100_v61 = vphi %v2551_v61, %v1610_v61   ;;  %v2096_v60 = vphi %v2549_v60, %v1608_v60   ;;  %v2092_v59 = vphi %v2547_v59, %v3477_v59  }
 0x18c   : > { %v986_v0 = vld [vmem:[%s3452_s2 + $0x1d0] sm:$0xff]  ;;  %1039 = vmatpush.msra.mxu2 %v990_v30  ;;  %1059 = vmatpush.msra.mxu3 %v991_v31  ;;  %v987_v1 = vld [vmem:[%s3452_s2 + $0x1d8] sm:$0xff]  ;;  %v988_v5 = vld [vmem:[%s3452_s2 + $0x1e0] sm:$0xff]  ;;  %996 = vst [vmem:[#allocation1 + $0x1] ss:$9 sm:$0xff] %v2112_v24  ;;  %s919_s28 = sand.u32 7, %s2120_s0 }
 0x18d   : > { %v982_v2 = vld [vmem:[%s3452_s2 + $0x1b0] sm:$0xff]  ;;  %v983_v3 = vld [vmem:[%s3452_s2 + $0x1b8] sm:$0xff]  ;;  %v985_v6 = vld [vmem:[%s3452_s2 + $0x1c8] sm:$0xff]  ;;  %1019 = vmatpush.msra.mxu1 %v989_v4  ;;  %999 = vmatpush.msra.mxu0 %v988_v5  ;;  %s1912_s29 = sshll.u32 %s916_s18, 5  ;;  %vm1086_vm2 = vcmask 1040384   ;;  %vm1092_vm3 = vcmask 1041409  }
 0x18e   : > { %1040 = vmatpush.msra.mxu2 %v986_v0  ;;  %1060 = vmatpush.msra.mxu3 %v987_v1  ;;  %v978_v7 = vld [vmem:[%s3452_s2 + $0x190] sm:$0xff]  ;;  %v979_v8 = vld [vmem:[%s3452_s2 + $0x198] sm:$0xff]  ;;  %v984_v9 = vld [vmem:[%s3452_s2 + $0x1c0] sm:$0xff]  ;;  %s2852_s22 = sadd.s32 %s1912_s29, %s919_s28  ;;  %vm1088_vm4 = vcmask 1042434   ;;  %vm1094_vm5 = vcmask 1043459   ;;  %vm1090_vm6 = vcmask 1041408  }
 0x18f   : > { %v981_v10 = vld [vmem:[%s3452_s2 + $0x1a8] sm:$0xff]  ;;  %v980_v11 = vld [vmem:[%s3452_s2 + $0x1a0] sm:$0xff]  ;;  %1020 = vmatpush.msra.mxu1 %v985_v6  ;;  %v974_v12 = vld [vmem:[%s3452_s2 + $0x170] sm:$0xff]  ;;  %1000 = vmatpush.msra.mxu0 %v984_v9  ;;  %vm1096_vm7 = vcmask 1042433   ;;  %s923_s26 = scalar_lea.vmem [#allocation2], %s2852_s22  ;;  %s1611_s13 = smul.u32 48, %s2120_s0 }
 0x190   : > { %1041 = vmatpush.msra.mxu2 %v982_v2  ;;  %1061 = vmatpush.msra.mxu3 %v983_v3  ;;  %v975_v13 = vld [vmem:[%s3452_s2 + $0x178] sm:$0xff]  ;;  %v977_v14 = vld [vmem:[%s3452_s2 + $0x188] sm:$0xff]  ;;  %v976_v15 = vld [vmem:[%s3452_s2 + $0x180] sm:$0xff]  ;;  %s908_s0 = sadd.s32 1, %s2120_s0  }
 0x191   : > { %1021 = vmatpush.msra.mxu1 %v981_v10  ;;  %v970_v16 = vld [vmem:[%s3452_s2 + $0x150] sm:$0xff]  ;;  %v971_v17 = vld [vmem:[%s3452_s2 + $0x158] sm:$0xff]  ;;  %1001 = vmatpush.msra.mxu0 %v980_v11  ;;  %v973_v18 = vld [vmem:[%s3452_s2 + $0x168] sm:$0xff]  ;;  %s1612_s16 = scalar_lea.vmem %s3456_s6, %s1611_s13  ;;  %p905_p0 = scmp.ge.s32.totalorder %s908_s0, 128  }
 0x192   : > { %1042 = vmatpush.msra.mxu2 %v978_v7  ;;  %1062 = vmatpush.msra.mxu3 %v979_v8  ;;  %v972_v19 = vld [vmem:[%s3452_s2 + $0x160] sm:$0xff]  ;;  %v966_v20 = vld [vmem:[%s3452_s2 + $0x130] sm:$0xff]  ;;  %v967_v21 = vld [vmem:[%s3452_s2 + $0x138] sm:$0xff] }
 0x193   : > { %1022 = vmatpush.msra.mxu1 %v977_v14  ;;  %1002 = vmatpush.msra.mxu0 %v976_v15  ;;  %v969_v22 = vld [vmem:[%s3452_s2 + $0x148] sm:$0xff]  ;;  %v968_v25 = vld [vmem:[%s3452_s2 + $0x140] sm:$0xff]  ;;  %v962_v26 = vld [vmem:[%s3452_s2 + $0x110] sm:$0xff] }
 0x194   : > { %1043 = vmatpush.msra.mxu2 %v974_v12  ;;  %1063 = vmatpush.msra.mxu3 %v975_v13  ;;  %v963_v27 = vld [vmem:[%s3452_s2 + $0x118] sm:$0xff]  ;;  %v965_v28 = vld [vmem:[%s3452_s2 + $0x128] sm:$0xff]  ;;  %v964_v29 = vld [vmem:[%s3452_s2 + $0x120] sm:$0xff] }
 0x195   : > { %1023 = vmatpush.msra.mxu1 %v973_v18  ;;  %1003 = vmatpush.msra.mxu0 %v972_v19  ;;  %v958_v32 = vld [vmem:[%s3452_s2 + $0xf0] sm:$0xff]  ;;  %v959_v33 = vld [vmem:[%s3452_s2 + $0xf8] sm:$0xff]  ;;  %v961_v34 = vld [vmem:[%s3452_s2 + $0x108] sm:$0xff] }
 0x196   : > { %1044 = vmatpush.msra.mxu2 %v970_v16  ;;  %1064 = vmatpush.msra.mxu3 %v971_v17  ;;  %v960_v35 = vld [vmem:[%s3452_s2 + $0x100] sm:$0xff]  ;;  %v954_v36 = vld [vmem:[%s3452_s2 + $0xd0] sm:$0xff]  ;;  %v955_v37 = vld [vmem:[%s3452_s2 + $0xd8] sm:$0xff] }
 0x197   : > { %1024 = vmatpush.msra.mxu1 %v969_v22  ;;  %1004 = vmatpush.msra.mxu0 %v968_v25  ;;  %v957_v38 = vld [vmem:[%s3452_s2 + $0xe8] sm:$0xff]  ;;  %v956_v39 = vld [vmem:[%s3452_s2 + $0xe0] sm:$0xff]  ;;  %v950_v40 = vld [vmem:[%s3452_s2 + $0xb0] sm:$0xff] }
 0x198   : > { %1045 = vmatpush.msra.mxu2 %v966_v20  ;;  %1065 = vmatpush.msra.mxu3 %v967_v21  ;;  %v951_v41 = vld [vmem:[%s3452_s2 + $0xb8] sm:$0xff]  ;;  %v953_v42 = vld [vmem:[%s3452_s2 + $0xc8] sm:$0xff]  ;;  %v952_v43 = vld [vmem:[%s3452_s2 + $0xc0] sm:$0xff] }
 0x199   : > { %1025 = vmatpush.msra.mxu1 %v965_v28  ;;  %1005 = vmatpush.msra.mxu0 %v964_v29  ;;  %v946_v44 = vld [vmem:[%s3452_s2 + $0x90] sm:$0xff]  ;;  %v947_v45 = vld [vmem:[%s3452_s2 + $0x98] sm:$0xff]  ;;  %v949_v46 = vld [vmem:[%s3452_s2 + $0xa8] sm:$0xff] }
 0x19a   : > { %1046 = vmatpush.msra.mxu2 %v962_v26  ;;  %1066 = vmatpush.msra.mxu3 %v963_v27  ;;  %v948_v47 = vld [vmem:[%s3452_s2 + $0xa0] sm:$0xff]  ;;  %v942_v48 = vld [vmem:[%s3452_s2 + $0x70] sm:$0xff]  ;;  %v943_v49 = vld [vmem:[%s3452_s2 + $0x78] sm:$0xff] }
 0x19b   : > { %1026 = vmatpush.msra.mxu1 %v961_v34  ;;  %1006 = vmatpush.msra.mxu0 %v960_v35  ;;  %v945_v50 = vld [vmem:[%s3452_s2 + $0x88] sm:$0xff]  ;;  %v944_v51 = vld [vmem:[%s3452_s2 + $0x80] sm:$0xff]  ;;  %v938_v52 = vld [vmem:[%s3452_s2 + $0x50] sm:$0xff] }
 0x19c   : > { %1047 = vmatpush.msra.mxu2 %v958_v32  ;;  %1067 = vmatpush.msra.mxu3 %v959_v33  ;;  %v939_v53 = vld [vmem:[%s3452_s2 + $0x58] sm:$0xff]  ;;  %v941_v54 = vld [vmem:[%s3452_s2 + $0x68] sm:$0xff]  ;;  %v940_v55 = vld [vmem:[%s3452_s2 + $0x60] sm:$0xff] }
 0x19d   : > { %1027 = vmatpush.msra.mxu1 %v957_v38  ;;  %1007 = vmatpush.msra.mxu0 %v956_v39  ;;  %v934_v56 = vld [vmem:[%s3452_s2 + $0x30] sm:$0xff]  ;;  %v935_v57 = vld [vmem:[%s3452_s2 + $0x38] sm:$0xff]  ;;  %v937_v58 = vld [vmem:[%s3452_s2 + $0x48] sm:$0xff] }
 0x19e   : > { %1048 = vmatpush.msra.mxu2 %v954_v36  ;;  %1068 = vmatpush.msra.mxu3 %v955_v37  ;;  %v936_v24 = vld [vmem:[%s3452_s2 + $0x40] sm:$0xff]  ;;  %v930_v63 = vld [vmem:[%s3452_s2 + $0x10] sm:$0xff]  ;;  %v931_v30 = vld [vmem:[%s3452_s2 + $0x18] sm:$0xff] }
 0x19f   : > { %1028 = vmatpush.msra.mxu1 %v953_v42  ;;  %1008 = vmatpush.msra.mxu0 %v952_v43  ;;  %v997_v31 = vld [vmem:[#allocation1] sm:$0xff]  ;;  %v933_v0 = vld [vmem:[%s3452_s2 + $0x28] sm:$0xff] }
 0x1a0   : > { %1049 = vmatpush.msra.mxu2 %v950_v40  ;;  %1069 = vmatpush.msra.mxu3 %v951_v41  ;;  %v932_v1 = vld [vmem:[%s3452_s2 + $0x20] sm:$0xff]  ;;  %v929_v2 = vld [vmem:[%s3452_s2 + $0x8] sm:$0xff] }
 0x1a1   : > { %1029 = vmatpush.msra.mxu1 %v949_v46  ;;  %1009 = vmatpush.msra.mxu0 %v948_v47  ;;  %v928_v3 = vld [vmem:[%s3452_s2] sm:$0xff]  ;;  %v1311_v5 = vld [vmem:[%s3454_s4 + $0x1e8] sm:$0xff] }
 0x1a2   : > { %1050 = vmatpush.msra.mxu2 %v946_v44  ;;  %1070 = vmatpush.msra.mxu3 %v947_v45  ;;  %v1310_v4 = vld [vmem:[%s3454_s4 + $0x1e0] sm:$0xff]  ;;  %v1307_v8 = vld [vmem:[%s3454_s4 + $0x1c8] sm:$0xff] }
 0x1a3   : > { %1030 = vmatpush.msra.mxu1 %v945_v50  ;;  %1010 = vmatpush.msra.mxu0 %v944_v51  ;;  %v1306_v6 = vld [vmem:[%s3454_s4 + $0x1c0] sm:$0xff]  ;;  %v1375_v9 = vld [vmem:[%s3454_s4 + $0x3e8] sm:$0xff] }
 0x1a4   : > { %1051 = vmatpush.msra.mxu2 %v942_v48  ;;  %1071 = vmatpush.msra.mxu3 %v943_v49  ;;  %v1374_v7 = vld [vmem:[%s3454_s4 + $0x3e0] sm:$0xff]  ;;  %v1303_v12 = vld [vmem:[%s3454_s4 + $0x1a8] sm:$0xff] }
 0x1a5   : > { %1031 = vmatpush.msra.mxu1 %v941_v54  ;;  %1011 = vmatpush.msra.mxu0 %v940_v55  ;;  %v1302_v10 = vld [vmem:[%s3454_s4 + $0x1a0] sm:$0xff]  ;;  %v1371_v13 = vld [vmem:[%s3454_s4 + $0x3c8] sm:$0xff] }
 0x1a6   : > { %1052 = vmatpush.msra.mxu2 %v938_v52  ;;  %1072 = vmatpush.msra.mxu3 %v939_v53  ;;  %v1370_v11 = vld [vmem:[%s3454_s4 + $0x3c0] sm:$0xff]  ;;  %v1299_v16 = vld [vmem:[%s3454_s4 + $0x188] sm:$0xff] }
 0x1a7   : > { %1032 = vmatpush.msra.mxu1 %v937_v58  ;;  %1012 = vmatpush.msra.mxu0 %v936_v24  ;;  %v1298_v14 = vld [vmem:[%s3454_s4 + $0x180] sm:$0xff]  ;;  %v1367_v17 = vld [vmem:[%s3454_s4 + $0x3a8] sm:$0xff] }
 0x1a8   : > { %1053 = vmatpush.msra.mxu2 %v934_v56  ;;  %1073 = vmatpush.msra.mxu3 %v935_v57  ;;  %v1366_v15 = vld [vmem:[%s3454_s4 + $0x3a0] sm:$0xff]  ;;  %v1295_v20 = vld [vmem:[%s3454_s4 + $0x168] sm:$0xff] }
 0x1a9   : > { %1033 = vmatpush.msra.mxu1 %v933_v0  ;;  %1013 = vmatpush.msra.mxu0 %v932_v1  ;;  %v1294_v18 = vld [vmem:[%s3454_s4 + $0x160] sm:$0xff]  ;;  %v1363_v21 = vld [vmem:[%s3454_s4 + $0x388] sm:$0xff] }
 0x1aa   : > { %1054 = vmatpush.msra.mxu2 %v930_v63  ;;  %1074 = vmatpush.msra.mxu3 %v931_v30  ;;  %v1362_v19 = vld [vmem:[%s3454_s4 + $0x380] sm:$0xff]  ;;  %v1291_v26 = vld [vmem:[%s3454_s4 + $0x148] sm:$0xff] }
 0x1ab   : > { %1055 = vmatmul.f32.vlgmr.msra.gmra.mxu2 %v997_v31  ;;  %1075 = vmatmul.f32.vlgmr.msra.gmra.mxu3 %v997_v31  ;;  %v1290_v22 = vld [vmem:[%s3454_s4 + $0x140] sm:$0xff]  ;;  %v1359_v27 = vld [vmem:[%s3454_s4 + $0x368] sm:$0xff] }
 0x1ac   : > { %1034 = vmatpush.msra.mxu1 %v929_v2  ;;  %1014 = vmatpush.msra.mxu0 %v928_v3  ;;  %v1358_v25 = vld [vmem:[%s3454_s4 + $0x360] sm:$0xff]  ;;  %v1287_v32 = vld [vmem:[%s3454_s4 + $0x128] sm:$0xff] }
 0x1ad   : > { %1035 = vmatmul.f32.vlgmr.msra.gmra.mxu1 %v997_v31  ;;  %1015 = vmatmul.f32.vlgmr.msra.gmra.mxu0 %v997_v31  ;;  %v1286_v28 = vld [vmem:[%s3454_s4 + $0x120] sm:$0xff]  ;;  %v1355_v33 = vld [vmem:[%s3454_s4 + $0x348] sm:$0xff] }
 0x1ae   : > { %1388 = vmatpush.msrb.mxu0 %v1310_v4  ;;  %1428 = vmatpush.msrb.mxu2 %v1311_v5  ;;  %v1354_v29 = vld [vmem:[%s3454_s4 + $0x340] sm:$0xff]  ;;  %v1283_v36 = vld [vmem:[%s3454_s4 + $0x108] sm:$0xff] }
 0x1af   : > { %1408 = vmatpush.msrb.mxu1 %v1374_v7  ;;  %1448 = vmatpush.msrb.mxu3 %v1375_v9  ;;  %v1282_v34 = vld [vmem:[%s3454_s4 + $0x100] sm:$0xff]  ;;  %v1351_v39 = vld [vmem:[%s3454_s4 + $0x328] sm:$0xff] }
 0x1b0   : > { %1389 = vmatpush.msrb.mxu0 %v1306_v6  ;;  %1429 = vmatpush.msrb.mxu2 %v1307_v8  ;;  %v1350_v35 = vld [vmem:[%s3454_s4 + $0x320] sm:$0xff]  ;;  %v1279_v43 = vld [vmem:[%s3454_s4 + $0xe8] sm:$0xff] }
 0x1b1   : > { %1409 = vmatpush.msrb.mxu1 %v1370_v11  ;;  %1449 = vmatpush.msrb.mxu3 %v1371_v13  ;;  %v1278_v41 = vld [vmem:[%s3454_s4 + $0xe0] sm:$0xff]  ;;  %v1347_v46 = vld [vmem:[%s3454_s4 + $0x308] sm:$0xff] }
 0x1b2   : > { %1390 = vmatpush.msrb.mxu0 %v1302_v10  ;;  %1430 = vmatpush.msrb.mxu2 %v1303_v12  ;;  %v1346_v42 = vld [vmem:[%s3454_s4 + $0x300] sm:$0xff]  ;;  %v1275_v53 = vld [vmem:[%s3454_s4 + $0xc8] sm:$0xff] }
 0x1b3   : > { %1410 = vmatpush.msrb.mxu1 %v1366_v15  ;;  %1450 = vmatpush.msrb.mxu3 %v1367_v17  ;;  %v1274_v51 = vld [vmem:[%s3454_s4 + $0xc0] sm:$0xff]  ;;  %v1343_v55 = vld [vmem:[%s3454_s4 + $0x2e8] sm:$0xff] }
 0x1b4   : > { %1391 = vmatpush.msrb.mxu0 %v1298_v14  ;;  %1431 = vmatpush.msrb.mxu2 %v1299_v16  ;;  %v1342_v52 = vld [vmem:[%s3454_s4 + $0x2e0] sm:$0xff]  ;;  %v1271_v63 = vld [vmem:[%s3454_s4 + $0xa8] sm:$0xff] }
 0x1b5   : > { %1411 = vmatpush.msrb.mxu1 %v1362_v19  ;;  %1451 = vmatpush.msrb.mxu3 %v1363_v21  ;;  %v924_v54 = vld [vmem:[%s923_s26] ss:$8 sm:$0xf] }
 0x1b6   : > { %1392 = vmatpush.msrb.mxu0 %v1294_v18  ;;  %1432 = vmatpush.msrb.mxu2 %v1295_v20  ;;  %v1270_v58 = vld [vmem:[%s3454_s4 + $0xa0] sm:$0xff]  ;;  %v1339_v1 = vld [vmem:[%s3454_s4 + $0x2c8] sm:$0xff] }
 0x1b7   : > { %1412 = vmatpush.msrb.mxu1 %v1358_v25  ;;  %1452 = vmatpush.msrb.mxu3 %v1359_v27  ;;  %v1338_v24 = vld [vmem:[%s3454_s4 + $0x2c0] sm:$0xff]  ;;  %v1267_v6 = vld [vmem:[%s3454_s4 + $0x88] sm:$0xff] }
 0x1b8   : > { %1393 = vmatpush.msrb.mxu0 %v1290_v22  ;;  %1433 = vmatpush.msrb.mxu2 %v1291_v26  ;;  %v1901_v30 = vld [vmem:[%s923_s26 + $0x200] ss:$8 sm:$0xf] }
 0x1b9   : > { %1413 = vmatpush.msrb.mxu1 %v1354_v29  ;;  %1453 = vmatpush.msrb.mxu3 %v1355_v33  ;;  %v1266_v4 = vld [vmem:[%s3454_s4 + $0x80] sm:$0xff]  ;;  %v1335_v7 = vld [vmem:[%s3454_s4 + $0x2a8] sm:$0xff] }
 0x1ba   : > { %1394 = vmatpush.msrb.mxu0 %v1286_v28  ;;  %1434 = vmatpush.msrb.mxu2 %v1287_v32  ;;  %v1334_v5 = vld [vmem:[%s3454_s4 + $0x2a0] sm:$0xff]  ;;  %v1263_v14 = vld [vmem:[%s3454_s4 + $0x68] sm:$0xff] }
 0x1bb   : > { %1414 = vmatpush.msrb.mxu1 %v1350_v35  ;;  %1454 = vmatpush.msrb.mxu3 %v1351_v39  ;;  %v1262_v11 = vld [vmem:[%s3454_s4 + $0x60] sm:$0xff]  ;;  %v1331_v15 = vld [vmem:[%s3454_s4 + $0x288] sm:$0xff]  ;;  %v1312_v39 = vld [vmem:[%s3454_s4 + $0x1f0] sm:$0xff] }
 0x1bc   : > { %1395 = vmatpush.msrb.mxu0 %v1282_v34  ;;  %1435 = vmatpush.msrb.mxu2 %v1283_v36  ;;  %v1330_v12 = vld [vmem:[%s3454_s4 + $0x280] sm:$0xff]  ;;  %v1259_v25 = vld [vmem:[%s3454_s4 + $0x48] sm:$0xff] }
 0x1bd   : > { %1415 = vmatpush.msrb.mxu1 %v1346_v42  ;;  %1455 = vmatpush.msrb.mxu3 %v1347_v46  ;;  %v1258_v19 = vld [vmem:[%s3454_s4 + $0x40] sm:$0xff]  ;;  %v1327_v27 = vld [vmem:[%s3454_s4 + $0x268] sm:$0xff]  ;;  %v1376_v46 = vld [vmem:[%s3454_s4 + $0x3f0] sm:$0xff] }
 0x1be   : > { %1396 = vmatpush.msrb.mxu0 %v1278_v41  ;;  %1436 = vmatpush.msrb.mxu2 %v1279_v43  ;;  %v1326_v22 = vld [vmem:[%s3454_s4 + $0x260] sm:$0xff]  ;;  %v1255_v33 = vld [vmem:[%s3454_s4 + $0x28] sm:$0xff] }
 0x1bf   : > { %1416 = vmatpush.msrb.mxu1 %v1342_v52  ;;  %1456 = vmatpush.msrb.mxu3 %v1343_v55  ;;  %v1254_v28 = vld [vmem:[%s3454_s4 + $0x20] sm:$0xff]  ;;  %v1323_v34 = vld [vmem:[%s3454_s4 + $0x248] sm:$0xff]  ;;  %v1304_v52 = vld [vmem:[%s3454_s4 + $0x1b0] sm:$0xff] }
 0x1c0   : > { %1397 = vmatpush.msrb.mxu0 %v1274_v51  ;;  %1437 = vmatpush.msrb.mxu2 %v1275_v53  ;;  %v1322_v29 = vld [vmem:[%s3454_s4 + $0x240] sm:$0xff]  ;;  %v1315_v43 = vld [vmem:[%s3454_s4 + $0x208] sm:$0xff]  ;;  %v1372_v53 = vld [vmem:[%s3454_s4 + $0x3d0] sm:$0xff] }
 0x1c1   : > { %1417 = vmatpush.msrb.mxu1 %v1338_v24  ;;  %1457 = vmatpush.msrb.mxu3 %v1339_v1  ;;  %v1250_v35 = vld [vmem:[%s3454_s4] sm:$0xff]  ;;  %v1300_v24 = vld [vmem:[%s3454_s4 + $0x190] sm:$0xff] }
 0x1c2   : > { %1398 = vmatpush.msrb.mxu0 %v1270_v58  ;;  %1438 = vmatpush.msrb.mxu2 %v1271_v63  ;;  %v1318_v36 = vld [vmem:[%s3454_s4 + $0x220] sm:$0xff]  ;;  %v1368_v63 = vld [vmem:[%s3454_s4 + $0x3b0] sm:$0xff] }
 0x1c3   : > { %1418 = vmatpush.msrb.mxu1 %v1334_v5  ;;  %1458 = vmatpush.msrb.mxu3 %v1335_v7  ;;  %v1314_v42 = vld [vmem:[%s3454_s4 + $0x200] sm:$0xff]  ;;  %v1297_v7 = vld [vmem:[%s3454_s4 + $0x178] sm:$0xff] }
 0x1c4   : > { %1399 = vmatpush.msrb.mxu0 %v1266_v4  ;;  %1439 = vmatpush.msrb.mxu2 %v1267_v6  ;;  %v1364_v6 = vld [vmem:[%s3454_s4 + $0x390] sm:$0xff] }
 0x1c5   : > { %1419 = vmatpush.msrb.mxu1 %v1330_v12  ;;  %1459 = vmatpush.msrb.mxu3 %v1331_v15  ;;  %v1293_v15 = vld [vmem:[%s3454_s4 + $0x158] sm:$0xff] }
 0x1c6   : > { %1400 = vmatpush.msrb.mxu0 %v1262_v11  ;;  %1440 = vmatpush.msrb.mxu2 %v1263_v14  ;;  %v1360_v14 = vld [vmem:[%s3454_s4 + $0x370] sm:$0xff] }
 0x1c7   : > { %1420 = vmatpush.msrb.mxu1 %v1326_v22  ;;  %1460 = vmatpush.msrb.mxu3 %v1327_v27 }
 0x1c8   : > { %1401 = vmatpush.msrb.mxu0 %v1258_v19  ;;  %1441 = vmatpush.msrb.mxu2 %v1259_v25  ;;  %v1288_v19 = vld [vmem:[%s3454_s4 + $0x130] sm:$0xff] }
 0x1c9   : > { %1421 = vmatpush.msrb.mxu1 %v1322_v29  ;;  %1461 = vmatpush.msrb.mxu3 %v1323_v34  ;;  %v1356_v25 = vld [vmem:[%s3454_s4 + $0x350] sm:$0xff] }
 0x1ca   : > { %1402 = vmatpush.msrb.mxu0 %v1254_v28  ;;  %1442 = vmatpush.msrb.mxu2 %v1255_v33  ;;  %v1357_v33 = vld [vmem:[%s3454_s4 + $0x358] sm:$0xff]  ;;  %v1284_v34 = vld [vmem:[%s3454_s4 + $0x110] sm:$0xff] }
 0x1cb   : > { %1422 = vmatpush.msrb.mxu1 %v1318_v36 }
 0x1cc   : > { %1403 = vmatpush.msrb.mxu0 %v1250_v35  ;;  %v1269_v35 = vld [vmem:[%s3454_s4 + $0x98] sm:$0xff] }
 0x1cd   : > { %1423 = vmatpush.msrb.mxu1 %v1314_v42 }
 0x1ce   : > { %1468 = vmatpush.msra.mxu0 %v1312_v39  ;;  %v1285_v39 = vld [vmem:[%s3454_s4 + $0x118] sm:$0xff]  ;;  %1424 = vmatmul.f32.vlgmr.msrb.gmra.mxu1 %v2100_v61 }
 0x1cf   : > { %1488 = vmatpush.msra.mxu1 %v1376_v46  ;;  %v1280_v46 = vld [vmem:[%s3454_s4 + $0xf0] sm:$0xff] }
 0x1d1   : > { %1489 = vmatpush.msra.mxu1 %v1372_v53  ;;  %v1281_v53 = vld [vmem:[%s3454_s4 + $0xf8] sm:$0xff] }
 0x1d3   : > { %1490 = vmatpush.msra.mxu1 %v1368_v63  ;;  %v1276_v63 = vld [vmem:[%s3454_s4 + $0xd0] sm:$0xff] }
 0x1d5   : > { %1491 = vmatpush.msra.mxu1 %v1364_v6 }
 0x1d7   : > { %1492 = vmatpush.msra.mxu1 %v1360_v14 }
 0x1d9   : > { %1493 = vmatpush.msra.mxu1 %v1356_v25 }
 0x22a   : > { %v1036_v37 = vpop.f32.mrf.mxu1  ;;  %v1016_v38 = vpop.f32.mrf.mxu0 }
 0x22b   : > { %v1083_v40 = vrot.slane %v1036_v37, 7  ;;  %v1251_v37 = vld [vmem:[%s3454_s4 + $0x8] sm:$0xff] }
 0x22c   : > { %1443 = vmatpush.msrb.mxu2 %v1251_v37 }
 0x22d   : > { %v1087_v49 = vsel %vm1086_vm2, %v1016_v38, %v1083_v40  ;;  %v1093_v50 = vsel %vm1092_vm3, %v1016_v38, %v1083_v40  ;;  %v1319_v38 = vld [vmem:[%s3454_s4 + $0x228] sm:$0xff]  ;;  %v1313_v40 = vld [vmem:[%s3454_s4 + $0x1f8] sm:$0xff] }
 0x22e   : > { %v1056_v44 = vpop.f32.mrf.mxu2  ;;  %v1076_v45 = vpop.f32.mrf.mxu3  ;;  %1462 = vmatpush.msrb.mxu3 %v1319_v38  ;;  %1508 = vmatpush.msra.mxu2 %v1313_v40  ;;  %v1352_v38 = vld [vmem:[%s3454_s4 + $0x330] sm:$0xff] }
 0x22f   : > { %v1084_v47 = vrot.slane %v1056_v44, 6  ;;  %v1085_v48 = vrot.slane %v1076_v45, 5  ;;  %v1308_v45 = vld [vmem:[%s3454_s4 + $0x1d0] sm:$0xff]  ;;  %1494 = vmatpush.msra.mxu1 %v1352_v38  ;;  %v1337_v38 = vld [vmem:[%s3454_s4 + $0x2b8] sm:$0xff] }
 0x230   : > { %1463 = vmatpush.msrb.mxu3 %v1315_v43  ;;  %1469 = vmatpush.msra.mxu0 %v1308_v45  ;;  %v1353_v45 = vld [vmem:[%s3454_s4 + $0x338] sm:$0xff] }
 0x231   : > { %v1089_v56 = vsel %vm1088_vm4, %v1084_v47, %v1085_v48  ;;  %v1095_v57 = vsel %vm1094_vm5, %v1084_v47, %v1085_v48  ;;  %v1309_v47 = vld [vmem:[%s3454_s4 + $0x1d8] sm:$0xff]  ;;  %1464 = vmatmul.f32.vlgmr.msrb.gmra.mxu3 %v2100_v61 }
 0x232   : > { %v1091_v31 = vsel %vm1090_vm6, %v1087_v49, %v1089_v56  ;;  %v1097_v0 = vsel %vm1096_vm7, %v1093_v50, %v1095_v57  ;;  %v1377_v49 = vld [vmem:[%s3454_s4 + $0x3f8] sm:$0xff]  ;;  %1509 = vmatpush.msra.mxu2 %v1309_v47  ;;  %1470 = vmatpush.msra.mxu0 %v1304_v52  ;;  %v1348_v52 = vld [vmem:[%s3454_s4 + $0x310] sm:$0xff] }
 0x233   : > { %v1098_v2 = vrot.slane %v1097_v0, 1  ;;  %v2912_v3 = vadd.f32 %v1091_v31, %v924_v54  ;;  %v1305_v54 = vld [vmem:[%s3454_s4 + $0x1b8] sm:$0xff]  ;;  %1528 = vmatpush.msra.mxu3 %v1377_v49  ;;  %1495 = vmatpush.msra.mxu1 %v1348_v52  ;;  %v1260_v52 = vld [vmem:[%s3454_s4 + $0x50] sm:$0xff] }
 0x234   : > { %v1373_v57 = vld [vmem:[%s3454_s4 + $0x3d8] sm:$0xff]  ;;  %1510 = vmatpush.msra.mxu2 %v1305_v54  ;;  %1471 = vmatpush.msra.mxu0 %v1300_v24 }
 0x235   : > { %v2926_v8 = vadd.f32 %v1901_v30, %v1098_v2  ;;  %v1902_v9 = vmul.f32 -1.442695, %v2912_v3  ;;  %v1143_v10 = vrot.slane %v2912_v3, 1  ;;  %v1191_v13 = vrot.slane %v2912_v3, 3  ;;  %v1301_v30 = vld [vmem:[%s3454_s4 + $0x198] sm:$0xff]  ;;  %1529 = vmatpush.msra.mxu3 %v1373_v57 }
 0x236   : > { %v1185_v58 = vrot.slane %v2912_v3, 2  ;;  %v1369_v2 = vld [vmem:[%s3454_s4 + $0x3b8] sm:$0xff]  ;;  %v1296_v3 = vld [vmem:[%s3454_s4 + $0x170] sm:$0xff]  ;;  %1511 = vmatpush.msra.mxu2 %v1301_v30 }
 0x237   : > { %1978 = vpow2.f32 %v1902_v9  ;;  %v1903_v16 = vmul.f32 -1.442695, %v2926_v8  ;;  %v1144_v17 = vrot.slane %v2926_v8, 1  ;;  %v1904_v18 = vmul.f32 -1.442695, %v1143_v10  ;;  %v1365_v9 = vld [vmem:[%s3454_s4 + $0x398] sm:$0xff]  ;;  %1530 = vmatpush.msra.mxu3 %v1369_v2  ;;  %1472 = vmatpush.msra.mxu0 %v1296_v3 }
 0x238   : > { %v1192_v20 = vrot.slane %v2926_v8, 3  ;;  %v1906_v21 = vmul.f32 -1.442695, %v1191_v13  ;;  %v1186_v1 = vrot.slane %v2926_v8, 2  ;;  %v1292_v10 = vld [vmem:[%s3454_s4 + $0x150] sm:$0xff]  ;;  %1512 = vmatpush.msra.mxu2 %v1297_v7  ;;  %v1349_v24 = vld [vmem:[%s3454_s4 + $0x318] sm:$0xff] }
 0x239   : > { %1980 = vpow2.f32 %v1903_v16  ;;  %v1905_v26 = vmul.f32 -1.442695, %v1144_v17  ;;  %1531 = vmatpush.msra.mxu3 %v1365_v9  ;;  %1473 = vmatpush.msra.mxu0 %v1292_v10  ;;  %v1345_v9 = vld [vmem:[%s3454_s4 + $0x2f8] sm:$0xff] }
 0x23a   : > { %1982 = vpow2.f32 %v1904_v18  ;;  %v1907_v32 = vmul.f32 -1.442695, %v1192_v20  ;;  %v1361_v18 = vld [vmem:[%s3454_s4 + $0x378] sm:$0xff]  ;;  %1513 = vmatpush.msra.mxu2 %v1293_v15 }
 0x23b   : > { %1984 = vpow2.f32 %v1905_v26  ;;  %v1289_v26 = vld [vmem:[%s3454_s4 + $0x138] sm:$0xff]  ;;  %1532 = vmatpush.msra.mxu3 %v1361_v18  ;;  %1474 = vmatpush.msra.mxu0 %v1288_v19 }
 0x23c   : > { %1986 = vpow2.f32 %v1906_v21  ;;  %1514 = vmatpush.msra.mxu2 %v1289_v26  ;;  %v1273_v21 = vld [vmem:[%s3454_s4 + $0xb8] sm:$0xff] }
 0x23d   : > { %v1979_v41 = vpop.eup %1978  ;;  %1988 = vpow2.f32 %v1907_v32  ;;  %1533 = vmatpush.msra.mxu3 %v1357_v33  ;;  %1475 = vmatpush.msra.mxu0 %v1284_v34  ;;  %v1341_v26 = vld [vmem:[%s3454_s4 + $0x2d8] sm:$0xff] }
 0x23e   : > { %v2994_v44 = vadd.f32 1.0, %v1979_v41  ;;  %1515 = vmatpush.msra.mxu2 %v1285_v39 }
 0x23f   : > { %v1981_v48 = vpop.eup %1980  ;;  %1534 = vmatpush.msra.mxu3 %v1353_v45  ;;  %1476 = vmatpush.msra.mxu0 %v1280_v46 }
 0x240   : > { %v1983_v50 = vpop.eup %1982  ;;  %v3008_v51 = vadd.f32 1.0, %v1981_v48  ;;  %1990 = vrcp.f32 %v2994_v44  ;;  %v1120_v5 = vand.u32 2147483647, %v2994_v44  ;;  %v1122_v8 = vand.u32 2147483648, %v2994_v44  ;;  %1516 = vmatpush.msra.mxu2 %v1281_v53 }
 0x241   : > { %v1985_v55 = vpop.eup %1984  ;;  %v3020_v56 = vadd.f32 1.0, %v1983_v50  ;;  %vm1116_vm8 = vweird.f32 %v2994_v44  ;;  %1535 = vmatpush.msra.mxu3 %v1349_v24  ;;  %1477 = vmatpush.msra.mxu0 %v1276_v63  ;;  %v1256_v63 = vld [vmem:[%s3454_s4 + $0x30] sm:$0xff] }
 0x242   : > { %1992 = vrcp.f32 %v3008_v51  ;;  %v1987_v31 = vpop.eup %1986  ;;  %v3036_v0 = vadd.f32 1.0, %v1985_v55  ;;  %v1135_v12 = vand.u32 2147483647, %v3008_v51  ;;  %vm3085_vm9 = vcmp.eq.f32.partialorder %v1120_v5, 8.507059e+37 }
 0x243   : > { %1994 = vrcp.f32 %v3020_v56  ;;  %v1989_v4 = vpop.eup %1988  ;;  %v3064_v13 = vadd.f32 1.0, %v1987_v31  ;;  %v1137_v22 = vand.u32 2147483648, %v3008_v51  ;;  %v3099_v29 = vor.u32 1.1754944e-38, %v1122_v8  ;;  %1536 = vmatpush.msra.mxu3 %v1345_v9  ;;  %v1324_v31 = vld [vmem:[%s3454_s4 + $0x250] sm:$0xff] }
 0x244   : > { %1996 = vrcp.f32 %v3036_v0  ;;  %v3074_v17 = vadd.f32 1.0, %v1989_v4  ;;  %vm1131_vm10 = vweird.f32 %v3008_v51  ;;  %vm3110_vm11 = vcmp.eq.f32.partialorder %v1135_v12, 8.507059e+37  ;;  %v1344_v4 = vld [vmem:[%s3454_s4 + $0x2f0] sm:$0xff] }
 0x245   : > { %1998 = vtanh.f32 %v1185_v58  ;;  %vm1160_vm12 = vweird.f32 %v3020_v56  ;;  %v1164_v37 = vand.u32 2147483647, %v3020_v56  ;;  %v1166_v43 = vand.u32 2147483648, %v3020_v56  ;;  %1496 = vmatpush.msra.mxu1 %v1344_v4  ;;  %1537 = vmatpush.msra.mxu3 %v1341_v26 }
 0x246   : > { %v3061_v11 = vpop.eup %1990  ;;  %2000 = vtanh.f32 %v1186_v1  ;;  %v1138_v48 = vor.u32 1.1754944e-38, %v1137_v22  ;;  %vm1175_vm14 = vweird.f32 %v3036_v0  ;;  %v1179_v58 = vand.u32 2147483647, %v3036_v0 }
 0x247   : > { %v1112_v16 = vmul.f32 %v3061_v11, %v2994_v44  ;;  %2002 = vrcp.f32 %v3064_v13  ;;  %vm1117_vm13 = vweird.f32 %v3061_v11  ;;  %v1181_v3 = vand.u32 2147483648, %v3036_v0  ;;  %v1277_v44 = vld [vmem:[%s3454_s4 + $0xd8] sm:$0xff]  ;;  %1538 = vmatpush.msra.mxu3 %v1337_v38 }
 0x248   : > { %v3082_v20 = vpop.eup %1992  ;;  %2004 = vrcp.f32 %v3074_v17  ;;  %vm3165_vm0 = vmor %vm1116_vm8, %vm1117_vm13  ;;  %vm3182_vm2 = vcmp.eq.f32.partialorder %v1164_v37, 8.507059e+37  ;;  %v1167_v14 = vor.u32 1.1754944e-38, %v1166_v43  ;;  %1517 = vmatpush.msra.mxu2 %v1277_v44  ;;  %vm1180_vm8 = vcmp.eq.f32.partialorder %v1179_v58, 8.507059e+37  ;;  %v1332_v43 = vld [vmem:[%s3454_s4 + $0x290] sm:$0xff]  ;;  %v1616_v38 = vld [vmem:[%s1612_s16 + $0x18] sm:$0xff] }
 0x249   : > { %v3097_v27 = vpop.eup %1994  ;;  %v1113_v28 = vsub.f32 1.0, %v1112_v16  ;;  %v1127_v32 = vmul.f32 %v3082_v20, %v3008_v51  ;;  %vm1132_vm15 = vweird.f32 %v3082_v20  ;;  %v1272_v16 = vld [vmem:[%s3454_s4 + $0xb0] sm:$0xff]  ;;  %v1214_v53 = vand.u32 2147483648, %v3064_v13 }
 0x24a   : > { %v1156_v36 = vmul.f32 %v3097_v27, %v3020_v56  ;;  %v3125_v40 = vpop.eup %1996  ;;  %vm1161_vm1 = vweird.f32 %v3097_v27  ;;  %vm3197_vm3 = vmor %vm1131_vm10, %vm1132_vm15  ;;  %v1340_v51 = vld [vmem:[%s3454_s4 + $0x2d0] sm:$0xff]  ;;  %v1182_v56 = vor.u32 1.1754944e-38, %v1181_v3  ;;  %1478 = vmatpush.msra.mxu0 %v1272_v16  ;;  %1518 = vmatpush.msra.mxu2 %v1273_v21  ;;  %vm1208_vm10 = vweird.f32 %v3064_v13  ;;  %v1325_v3 = vld [vmem:[%s3454_s4 + $0x258] sm:$0xff] }
 0x24b   : > { %v1114_v41 = vmul.f32 %v3061_v11, %v1113_v28  ;;  %v1128_v42 = vsub.f32 1.0, %v1127_v32  ;;  %v3136_v47 = vpop.eup %1998  ;;  %v1171_v50 = vmul.f32 %v3125_v40, %v3036_v0  ;;  %vm1176_vm4 = vweird.f32 %v3125_v40  ;;  %vm1162_vm5 = vmor %vm1160_vm12, %vm1161_vm1  ;;  %v1336_v32 = vld [vmem:[%s3454_s4 + $0x2b0] sm:$0xff]  ;;  %1497 = vmatpush.msra.mxu1 %v1340_v51  ;;  %v1317_v16 = vld [vmem:[%s3454_s4 + $0x218] sm:$0xff]  ;;  %v1425_v21 = vpop.f32.mrf.mxu1 }
 0x24c   : > { %v1157_v49 = vsub.f32 1.0, %v1156_v36  ;;  %v3147_v54 = vpop.eup %2000  ;;  %vm3244_vm7 = vmor %vm1175_vm14, %vm1176_vm4  ;;  %1519 = vmatpush.msra.mxu2 %v1269_v35  ;;  %v1212_v58 = vand.u32 2147483647, %v3064_v13  ;;  %vm1223_vm13 = vweird.f32 %v3074_v17  ;;  %v1227_v44 = vand.u32 2147483647, %v3074_v17 }
 0x24d   : > { %v1115_v55 = vadd.f32 %v3061_v11, %v1114_v41  ;;  %v1129_v57 = vmul.f32 %v3082_v20, %v1128_v42  ;;  %v3159_v30 = vpop.eup %2002  ;;  %v1172_v2 = vsub.f32 1.0, %v1171_v50  ;;  %v1264_v42 = vld [vmem:[%s3454_s4 + $0x70] sm:$0xff]  ;;  %1498 = vmatpush.msra.mxu1 %v1336_v32  ;;  %v1215_v7 = vor.u32 1.1754944e-38, %v1214_v53 }
 0x24e   : > { %v1158_v1 = vmul.f32 %v3097_v27, %v1157_v49  ;;  %v1204_v8 = vmul.f32 %v3159_v30, %v3064_v13  ;;  %v3191_v10 = vpop.eup %2004  ;;  %vm1213_vm15 = vcmp.eq.f32.partialorder %v1212_v58, 8.507059e+37 }
 0x24f   : > { %v1119_v5 = vsel %vm3165_vm0, %v3061_v11, %v1115_v55  ;;  %v1130_v6 = vadd.f32 %v3082_v20, %v1129_v57  ;;  %v1173_v15 = vmul.f32 %v3125_v40, %v1172_v2  ;;  %v1219_v25 = vmul.f32 %v3191_v10, %v3074_v17  ;;  %1499 = vmatpush.msra.mxu1 %v1332_v43  ;;  %v1261_v55 = vld [vmem:[%s3454_s4 + $0x58] sm:$0xff]  ;;  %v1316_v11 = vld [vmem:[%s3454_s4 + $0x210] sm:$0xff] }
 0x250   : > { %v1159_v12 = vadd.f32 %v3097_v27, %v1158_v1  ;;  %v1124_v18 = vsel %vm3085_vm9, %v3099_v29, %v1119_v5  ;;  %v1205_v22 = vsub.f32 1.0, %v1204_v8  ;;  %v1268_v29 = vld [vmem:[%s3454_s4 + $0x90] sm:$0xff]  ;;  %vm1209_vm9 = vweird.f32 %v3159_v30  ;;  %v1329_v57 = vld [vmem:[%s3454_s4 + $0x278] sm:$0xff] }
 0x251   : > { %v1134_v19 = vsel %vm3197_vm3, %v3082_v20, %v1130_v6  ;;  %v1174_v28 = vadd.f32 %v3125_v40, %v1173_v15  ;;  %v1220_v37 = vsub.f32 1.0, %v1219_v25  ;;  %v1235_v41 = vmul.f32 %v3136_v47, %v1124_v18  ;;  %1479 = vmatpush.msra.mxu0 %v1268_v29  ;;  %vm3309_vm12 = vmor %vm1208_vm10, %vm1209_vm9  ;;  %v1257_v2 = vld [vmem:[%s3454_s4 + $0x38] sm:$0xff]  ;;  %v1252_v5 = vld [vmem:[%s3454_s4 + $0x10] sm:$0xff] }
 0x252   : > { %v1163_v20 = vsel %vm1162_vm5, %v3097_v27, %v1159_v12  ;;  %v1139_v33 = vsel %vm3110_vm11, %v1138_v48, %v1134_v19  ;;  %v1206_v36 = vmul.f32 %v3159_v30, %v1205_v22  ;;  %vm1224_vm11 = vweird.f32 %v3191_v10  ;;  %v1320_v6 = vld [vmem:[%s3454_s4 + $0x230] sm:$0xff]  ;;  %v1378_v19 = vld [vmem:[%s3455_s5] sm:$0xf] }
 0x253   : > { %v1168_v34 = vsel %vm3182_vm2, %v1167_v14, %v1163_v20  ;;  %v1178_v0 = vsel %vm3244_vm7, %v3125_v40, %v1174_v28  ;;  %v1221_v46 = vmul.f32 %v3191_v10, %v1220_v37  ;;  %v1333_v40 = vld [vmem:[%s3454_s4 + $0x298] sm:$0xff]  ;;  %v1236_v48 = vmul.f32 %v3147_v54, %v1139_v33  ;;  %1480 = vmatpush.msra.mxu0 %v1264_v42  ;;  %vm3334_vm14 = vmor %vm1223_vm13, %vm1224_vm11  ;;  %v1617_v37 = vld [vmem:[%s1612_s16 + $0x20] sm:$0xff] }
 0x254   : > { %v1233_v39 = vmul.f32 %v2108_v23, %v1168_v34  ;;  %v1183_v45 = vsel %vm1180_vm8, %v1182_v56, %v1178_v0  ;;  %v1265_v23 = vld [vmem:[%s3454_s4 + $0x78] sm:$0xff]  ;;  %v1207_v50 = vadd.f32 %v3159_v30, %v1206_v36  ;;  %1539 = vmatpush.msra.mxu3 %v1333_v40  ;;  %v1229_v1 = vand.u32 2147483648, %v3074_v17  ;;  %v1618_v36 = vld [vmem:[%s1612_s16 + $0x28] sm:$0xff]  ;;  %v1615_v43 = vld [vmem:[%s1612_s16 + $0x10] sm:$0xff] }
 0x255   : > { %v1234_v47 = vmul.f32 %v2104_v62, %v1183_v45  ;;  %v1328_v62 = vld [vmem:[%s3454_s4 + $0x270] sm:$0xff]  ;;  %1520 = vmatpush.msra.mxu2 %v1265_v23  ;;  %v1222_v24 = vadd.f32 %v3191_v10, %v1221_v46  ;;  %1481 = vmatpush.msra.mxu0 %v1260_v52  ;;  %v1253_v17 = vld [vmem:[%s3454_s4 + $0x18] sm:$0xff]  ;;  %vm1228_vm0 = vcmp.eq.f32.partialorder %v1227_v44, 8.507059e+37  ;;  %v1380_v22 = vperm.slane %v1378_v19, 0  ;;  %v1614_v46 = vld [vmem:[%s1612_s16 + $0x8] sm:$0xff] }
 0x256   : > { %v3275_v49 = vadd.f32 %v1235_v41, %v1233_v39   ;;  %1500 = vmatpush.msra.mxu1 %v1328_v62  ;;  %v1211_v4 = vsel %vm3309_vm12, %v3159_v30, %v1207_v50  ;;  %1540 = vmatpush.msra.mxu3 %v1329_v57  ;;  %v1321_v30 = vld [vmem:[%s3454_s4 + $0x238] sm:$0xff]  ;;  %v1230_v15 = vor.u32 1.1754944e-38, %v1229_v1  ;;  %v1381_v28 = vperm.slane %v1378_v19, 1  ;;  %s1722_s4 = sshll.u32 (%p905_p0), %s3460_s10, 4  ;;  %s1723_s4 = int_to_ptr.hbm [resolvable:$true] %s1722_s4 }
 0x257   : > { %v3286_v54 = vadd.f32 %v1236_v48, %v1234_v47   ;;  %1521 = vmatpush.msra.mxu2 %v1261_v55  ;;  %1482 = vmatpush.msra.mxu0 %v1256_v63  ;;  %v1226_v9 = vsel %vm3334_vm14, %v3191_v10, %v1222_v24  ;;  %v1216_v14 = vsel %vm1213_vm15, %v1215_v7, %v1211_v4  ;;  %v1383_v27 = vperm.slane %v1378_v19, 3  ;;  %v1613_v47 = vld [vmem:[%s1612_s16] sm:$0xff] }
 0x258   : > { %2006 = vtanh.f32 %v3275_v49  ;;  %1501 = vmatpush.msra.mxu1 %v1324_v31  ;;  %1541 = vmatpush.msra.mxu3 %v1325_v3  ;;  %v1231_v51 = vsel %vm1228_vm0, %v1230_v15, %v1226_v9  ;;  %v1382_v50 = vperm.slane %v1378_v19, 2  ;;  %vm1619_vm14 = vcmask 392192  }
 0x259   : > { %2008 = vtanh.f32 %v3286_v54  ;;  %1522 = vmatpush.msra.mxu2 %v1257_v2  ;;  %1483 = vmatpush.msra.mxu0 %v1252_v5 }
 0x25a   : > { %1502 = vmatpush.msra.mxu1 %v1320_v6  ;;  %1542 = vmatpush.msra.mxu3 %v1321_v30 }
 0x25b   : > { %1523 = vmatpush.msra.mxu2 %v1253_v17 }
 0x25c   : > { %1503 = vmatpush.msra.mxu1 %v1316_v11  ;;  %1543 = vmatpush.msra.mxu3 %v1317_v16 }
 0x25d   : > { %1504 = vmatmul.f32.vlgmr.msra.gmra.mxu1 %v2100_v61  ;;  %1544 = vmatmul.f32.vlgmr.msra.gmra.mxu3 %v2100_v61 }
 0x25e   : > { %v2007_v12 = vpop.eup %2006 }
 0x25f   : > { %v3353_v63 = vmul.f32 %v2007_v12, %v1216_v14   ;;  %v2009_v10 = vpop.eup %2008 }
 0x260   : > { %v3355_v24 = vmul.f32 %v2009_v10, %v1231_v51  }
 0x261   : > { %1245 = vst [vmem:[#allocation1] ss:$9 sm:$0xff] %v3353_v63  ;;  %v1661_v63 = vld [vmem:[%s3458_s8 + $0x60] sm:$0xff] (%p905_p0) }
 0x262   : > { %1247 = vst [vmem:[#allocation1 + $0x1] ss:$9 sm:$0xff] %v3355_v24  ;;  %v1658_v24 = vld [vmem:[%s3458_s8 + $0x48] sm:$0xff] (%p905_p0) }
 0x269   : > { %v1248_v18 = vld [vmem:[#allocation1] sm:$0xff] }
 0x26a   : > { %1404 = vmatmul.f32.vlgmr.msrb.gmra.mxu0 %v1248_v18  ;;  %1444 = vmatmul.f32.vlgmr.msrb.gmra.mxu2 %v1248_v18 }
 0x26b   : > { %1633 = vmatpush.msrb.mxu0 %v1618_v36  ;;  %v1664_v36 = vld [vmem:[%s3458_s8 + $0x78] sm:$0xff] (%p905_p0) }
 0x26d   : > { %1634 = vmatpush.msrb.mxu0 %v1617_v37  ;;  %v1657_v37 = vld [vmem:[%s3458_s8 + $0x40] sm:$0xff] (%p905_p0) }
 0x26f   : > { %1635 = vmatpush.msrb.mxu0 %v1616_v38  ;;  %v1655_v38 = vld [vmem:[%s3458_s8 + $0x30] sm:$0xff] (%p905_p0) }
 0x271   : > { %1636 = vmatpush.msrb.mxu0 %v1615_v43  ;;  %v2026_v43 = vld [vmem:[%s3457_s7] ss:$0 sm:$0xff] (%p905_p0)  ;;  %s2122_s7 = smov (%p905_p0), [#allocation3]  }
 0x272   : > { %1484 = vmatmul.f32.vlgmr.msra.gmra.mxu0 %v1248_v18  ;;  %1524 = vmatmul.f32.vlgmr.msra.gmra.mxu2 %v1248_v18 }
 0x273   : > { %1637 = vmatpush.msrb.mxu0 %v1614_v46  ;;  %v1649_v46 = vld [vmem:[%s3458_s8] sm:$0xff] (%p905_p0) }
 0x275   : > { %1638 = vmatpush.msrb.mxu0 %v1613_v47 }
 0x277   :  { %1669 = vmatpush.msra.mxu0 (%p905_p0), %v1664_v36 }
 0x2b4   : > { %v1465_v56 = vpop.f32.mrf.mxu3 }
 0x2da   : > { %v1505_v58 = vpop.f32.mrf.mxu1 }
 0x2e0   : > { %v1545_v41 = vpop.f32.mrf.mxu3 }
 0x2e7   : > { %v1405_v25 = vpop.f32.mrf.mxu0 }
 0x2e8   : > { %v1406_v26 = vadd.f32 %v1405_v25, %v1380_v22 }
 0x2ea   : > { %v1426_v20 = vadd.f32 %v1425_v21, %v1406_v26 }
 0x2ec   : > { %v1908_v61 = vmul.f32 -1.442695, %v1426_v20 }
 0x2ed   : > { %v1445_v29 = vpop.f32.mrf.mxu2 }
 0x2ee   : > { %2010 = vpow2.f32 %v1908_v61  ;;  %v1446_v32 = vadd.f32 %v1445_v29, %v1381_v28 }
 0x2ef   : > { %v1485_v52 = vpop.f32.mrf.mxu0 }
 0x2f0   : > { %v1466_v33 = vadd.f32 %v1465_v56, %v1446_v32  ;;  %v1486_v55 = vadd.f32 %v1485_v52, %v1382_v50 }
 0x2f2   : > { %v1909_v34 = vmul.f32 -1.442695, %v1466_v33  ;;  %v1506_v2 = vadd.f32 %v1505_v58, %v1486_v55 }
 0x2f4   : > { %v2011_v35 = vpop.eup %2010  ;;  %2012 = vpow2.f32 %v1909_v34 }
 0x2f5   : > { %v1551_v0 = vadd.f32 1.0, %v2011_v35  ;;  %v1525_v39 = vpop.f32.mrf.mxu2  ;;  %v1656_v35 = vld [vmem:[%s3458_s8 + $0x38] sm:$0xff] (%p905_p0) }
 0x2f6   : > { %v1526_v42 = vadd.f32 %v1525_v39, %v1383_v27  ;;  %v1653_v39 = vld [vmem:[%s3458_s8 + $0x20] sm:$0xff] (%p905_p0) }
 0x2f7   : > { %2014 = vrcp.f32 %v1551_v0  ;;  %v1563_v5 = vand.u32 2147483648, %v1551_v0  ;;  %vm1557_vm2 = vweird.f32 %v1551_v0  ;;  %v1561_v7 = vand.u32 2147483647, %v1551_v0 }
 0x2f8   : > { %v1546_v45 = vadd.f32 %v1545_v41, %v1526_v42  ;;  %v1652_v41 = vld [vmem:[%s3458_s8 + $0x18] sm:$0xff] (%p905_p0)  ;;  %v1651_v42 = vld [vmem:[%s3458_s8 + $0x10] sm:$0xff] (%p905_p0) }
 0x2f9   : > { %v1564_v11 = vor.u32 1.1754944e-38, %v1563_v5  ;;  %vm1562_vm7 = vcmp.eq.f32.partialorder %v1561_v7, 8.507059e+37 }
 0x2fa   : > { %v2013_v23 = vpop.eup %2012  ;;  %v1910_v40 = vmul.f32 -1.442695, %v1546_v45  ;;  %v1650_v45 = vld [vmem:[%s3458_s8 + $0x8] sm:$0xff] (%p905_p0) }
 0x2fb   : > { %v1570_v48 = vadd.f32 1.0, %v2013_v23  ;;  %v3479_v23 = vmov %v3275_v49  ;;  %v1662_v49 = vld [vmem:[%s3458_s8 + $0x68] sm:$0xff] (%p905_p0) }
 0x2fc   : > { %2016 = vpow2.f32 %v1910_v40  ;;  %v2027_v40 = vld [vmem:[%s3459_s9] ss:$0 sm:$0xff] (%p905_p0) }
 0x2fd   : > { %v2015_v62 = vpop.eup %2014  ;;  %2018 = vrcp.f32 %v1570_v48  ;;  %v1582_v8 = vand.u32 2147483648, %v1570_v48  ;;  %v1580_v9 = vand.u32 2147483647, %v1570_v48  ;;  %vm1576_vm5 = vweird.f32 %v1570_v48 }
 0x2fe   : > { %v1553_v53 = vmul.f32 %v2015_v62, %v1551_v0  ;;  %vm1558_vm1 = vweird.f32 %v2015_v62  ;;  %v1654_v0 = vld [vmem:[%s3458_s8 + $0x28] sm:$0xff] (%p905_p0) }
 0x2ff   : > { %vm1559_vm3 = vmor %vm1557_vm2, %vm1558_vm1  ;;  %v1583_v15 = vor.u32 1.1754944e-38, %v1582_v8  ;;  %vm1581_vm9 = vcmp.eq.f32.partialorder %v1580_v9, 8.507059e+37 }
 0x300   : > { %v1554_v57 = vsub.f32 1.0, %v1553_v53 }
 0x302   : > { %v2017_v31 = vpop.eup %2016  ;;  %v1555_v13 = vmul.f32 %v2015_v62, %v1554_v57 }
 0x303   : > { %v2019_v1 = vpop.eup %2018  ;;  %v1590_v3 = vadd.f32 1.0, %v2017_v31 }
 0x304   : > { %v1572_v4 = vmul.f32 %v2019_v1, %v1570_v48  ;;  %v1556_v44 = vadd.f32 %v2015_v62, %v1555_v13  ;;  %vm1577_vm4 = vweird.f32 %v2019_v1 }
 0x305   : > { %2020 = vrcp.f32 %v1590_v3  ;;  %vm1578_vm8 = vmor %vm1576_vm5, %vm1577_vm4  ;;  %v1602_v20 = vand.u32 2147483648, %v1590_v3  ;;  %vm1596_vm11 = vweird.f32 %v1590_v3  ;;  %v1600_v56 = vand.u32 2147483647, %v1590_v3 }
 0x306   : > { %v1573_v6 = vsub.f32 1.0, %v1572_v4  ;;  %2022 = vtanh.f32 %v1506_v2  ;;  %v1560_v30 = vsel %vm1559_vm3, %v2015_v62, %v1556_v44  ;;  %v3478_v62 = vmov %v3286_v54  ;;  %v1663_v54 = vld [vmem:[%s3458_s8 + $0x70] sm:$0xff] (%p905_p0) }
 0x307   : > { %v1565_v16 = vsel %vm1562_vm7, %v1564_v11, %v1560_v30  ;;  %v1603_v29 = vor.u32 1.1754944e-38, %v1602_v20  ;;  %vm1601_vm13 = vcmp.eq.f32.partialorder %v1600_v56, 8.507059e+37  ;;  %1670 = vmatpush.msra.mxu0 (%p905_p0), %v1663_v54 }
 0x308   : > { %v1574_v17 = vmul.f32 %v2019_v1, %v1573_v6 }
 0x309   :  { %1671 = vmatpush.msra.mxu0 (%p905_p0), %v1662_v49 }
 0x30a   : > { %v1575_v12 = vadd.f32 %v2019_v1, %v1574_v17 }
 0x30b   : > { %v2021_v14 = vpop.eup %2020  ;;  %1672 = vmatpush.msra.mxu0 (%p905_p0), %v1661_v63 }
 0x30c   : > { %v1579_v10 = vsel %vm1578_vm8, %v2019_v1, %v1575_v12  ;;  %v1592_v51 = vmul.f32 %v2021_v14, %v1590_v3  ;;  %v2023_v18 = vpop.eup %2022  ;;  %vm1597_vm10 = vweird.f32 %v2021_v14 }
 0x30d   : > { %v1584_v19 = vsel %vm1581_vm9, %v1583_v15, %v1579_v10  ;;  %v1607_v25 = vmul.f32 %v2023_v18, %v1565_v16  ;;  %vm1598_vm12 = vmor %vm1596_vm11, %vm1597_vm10 }
 0x30e   : > { %v1606_v22 = vmul.f32 %v2096_v60, %v1584_v19  ;;  %v1593_v21 = vsub.f32 1.0, %v1592_v51 }
 0x310   : > { %v1608_v60 = vadd.f32 %v1607_v25, %v1606_v22   ;;  %v1594_v26 = vmul.f32 %v2021_v14, %v1593_v21 }
 0x312   : > { %2024 = vtanh.f32 %v1608_v60  ;;  %v1595_v28 = vadd.f32 %v2021_v14, %v1594_v26  ;;  %v1659_v60 = vld [vmem:[%s3458_s8 + $0x50] sm:$0xff] (%p905_p0) }
 0x314   : > { %v1599_v61 = vsel %vm1598_vm12, %v2021_v14, %v1595_v28 }
 0x315   : > { %v1604_v33 = vsel %vm1601_vm13, %v1603_v29, %v1599_v61 }
 0x318   : > { %v2025_v32 = vpop.eup %2024 }
 0x319   : > { %v1610_v61 = vmul.f32 %v2025_v32, %v1604_v33  }
 0x31b   : > { %1911 = vmatmul.msk.f32.vlgmr.msrb.gmra.mxu0 %vm1619_vm14, %v1610_v61 }
 0x397   :  { %907 = sbr.rel (!%p905_p0) target bundleno = 395 (0x18b), region = 73 }
 0x398   : > { %v1640_v34 = vpop.f32.mrf.mxu0 }
 0x399   : > { %v1643_v27 = vadd.f32 %v2092_v59, %v1640_v34  }
 0x39b   : > { %v3477_v59 = vmov %v1643_v27  ;;  %v1648_v23 = vadd.f32 (%p905_p0), %v2026_v43, %v1643_v27 }
 0x39c   :  { %v1660_v59 = vld [vmem:[%s3458_s8 + $0x58] sm:$0xff]  ;;  %s1720_s8 = sshll.u32 %s2122_s7, 4  ;;  %s1721_s8 = int_to_ptr.vmem [resolvable:$true] %s1720_s8 }
 0x39d   :  { %1673 = vmatpush.msra.mxu0 %v1660_v59 }
 0x39f   :  { %1674 = vmatpush.msra.mxu0 %v1659_v60 }
 0x3a1   :  { %1675 = vmatpush.msra.mxu0 %v1658_v24 }
 0x3a3   :  { %1676 = vmatpush.msra.mxu0 %v1657_v37 }
 0x3a5   :  { %1677 = vmatpush.msra.mxu0 %v1656_v35 }
 0x3a7   :  { %1678 = vmatpush.msra.mxu0 %v1655_v38 }
 0x3a9   :  { %1679 = vmatpush.msra.mxu0 %v1654_v0 }
 0x3ab   :  { %1680 = vmatpush.msra.mxu0 %v1653_v39 }
 0x3ad   :  { %1681 = vmatpush.msra.mxu0 %v1652_v41 }
 0x3af   :  { %1682 = vmatpush.msra.mxu0 %v1651_v42 }
 0x3b1   :  { %1683 = vmatpush.msra.mxu0 %v1650_v45 }
 0x3b3   :  { %1684 = vmatpush.msra.mxu0 %v1649_v46 }
 0x3b4   :  { %1685 = vmatmul.f32.vlgmr.msra.gmra.mxu0 %v1648_v23 }
 0x431   :  { %v1686_v47 = vpop.f32.mrf.mxu0 }
 0x432   :  { %v1687_v48 = vadd.f32 %v2027_v40, %v1686_v47 }
 0x434   :  { %v1690_v50 = vsel %vm1090_vm6, %v1687_v48, -inf }
 0x435   :  { %1691 = vmax.xlane.f32.xlu0 %v1690_v50 }
 0x4a8   :  { %v1692_v52 = vpop.xlane.xlu0 %1691 }
 0x4a9   :  { %v1693_v62 = vsub.f32 %v1687_v48, %v1692_v52 }
 0x4ab   :  { %v1694_v53 = vmul.f32 1.442695, %v1693_v62 }
 0x4ad   :  { %2028 = vpow2.f32 %v1694_v53 }
 0x4b3   :  { %v2029_v55 = vpop.eup %2028 }
 0x4b4   :  { %v1696_v57 = vsel %vm1090_vm6, %v2029_v55, 0.0 }
 0x4b5   :  { %1697 = vadd.xlane.f32.xlu0 %v1696_v57 }
 0x528   :  { %v1698_v58 = vpop.xlane.xlu0 %1697 }
 0x529   :  { %2030 = vrcp.f32 %v1698_v58  ;;  %v1710_v2 = vand.u32 2147483648, %v1698_v58  ;;  %v1708_v4 = vand.u32 2147483647, %v1698_v58  ;;  %vm1704_vm0 = vweird.f32 %v1698_v58 }
 0x52b   :  { %v1711_v5 = vor.u32 1.1754944e-38, %v1710_v2  ;;  %vm1709_vm6 = vcmp.eq.f32.partialorder %v1708_v4, 8.507059e+37 }
 0x52f   :  { %v2031_v31 = vpop.eup %2030 }
 0x530   :  { %v1700_v13 = vmul.f32 %v2031_v31, %v1698_v58  ;;  %vm1705_vm15 = vweird.f32 %v2031_v31 }
 0x531   :  { %vm1706_vm1 = vmor %vm1704_vm0, %vm1705_vm15 }
 0x532   :  { %v1701_v1 = vsub.f32 1.0, %v1700_v13 }
 0x534   :  { %v1702_v3 = vmul.f32 %v2031_v31, %v1701_v1 }
 0x536   :  { %v1703_v44 = vadd.f32 %v2031_v31, %v1702_v3 }
 0x538   :  { %v1707_v6 = vsel %vm1706_vm1, %v2031_v31, %v1703_v44 }
 0x539   :  { %v1712_v7 = vsel %vm1709_vm6, %v1711_v5, %v1707_v6 }
 0x53a   :  { %v1713_v8 = vmul.f32 %v2029_v55, %v1712_v7 }
 0x53c   :  { %1714 = vst [vmem:[#allocation3] sm:$0x3] %v1713_v8 }
 0x53d   :  { %1725 = dma.vmem_to_hbm [thread:$0]  %s1721_s8, 32, %s1723_s4, [#allocation4]  }
 0x53e   :  { %2088 = dma.done.wait [#allocation4], 32  }
 0x53f   :  { %2089 = vsyncadd [#allocation4], 4294967264 }
 0x540   :  { %1730 = vsyncpa [#allocation4], 1 }

</bundles_post_ra>
